<compile_context>
chip_gen: v5e
topology: v5e:2x2
jax: 0.10.0
libtpu: 0.0.40
codegen_flags: <defaults>
</compile_context>

<pallas_src>
import functools
import math

import jax
import jax.numpy as jnp
from jax.experimental import pallas as pl
from jax.experimental.pallas import tpu as pltpu


def _round_up(x: int, m: int) -> int:
    return (x + m - 1) // m * m


def _physical_vmem_bytes() -> int:
    """Per-core VMEM capacity; conservative 64 MiB fallback (v7x)."""
    try:
        info = pltpu.get_tpu_info()
        cap = int(getattr(info, "vmem_capacity_bytes", 0))
        if cap > 0:
            return cap
    except Exception:
        pass
    return 64 * 1024 * 1024


# --------------------------------------------------------------------------
# Fused path: whole (padded) adj resident in VMEM, all K hops in one call.
# --------------------------------------------------------------------------
def _fused_kernel(adj_ref, x_ref, w_ref, o_ref, *, K):
    w = w_ref[...]                                   # (1, Fp)   f32
    adj = adj_ref[...]                               # (Np, Np)  matmul dtype
    h = x_ref[...]                                   # (Np, Fp)  f32
    # k = 0 term.
    acc = jax.nn.sigmoid(jnp.sum(h * w, axis=-1, keepdims=True)) * h
    # K is a small static int (e.g. 10) -> static unroll keeps the whole hop
    # chain visible to the scheduler; adj stays in VMEM the entire time.
    for _ in range(K):
        h = jnp.dot(adj, h.astype(adj.dtype), preferred_element_type=jnp.float32)
        s = jax.nn.sigmoid(jnp.sum(h * w, axis=-1, keepdims=True))
        acc = acc + s * h
    o_ref[...] = acc


# --------------------------------------------------------------------------
# Tiled path: per hop, grid = (row blocks, contraction blocks).
# --------------------------------------------------------------------------
def _first_hop_tiled_kernel(adj_ref, h_ref, h0_ref, w_ref,
                            h_out_ref, acc_out_ref, acc_sc):
    kc = pl.program_id(1)

    @pl.when(kc == 0)
    def _():
        acc_sc[...] = jnp.zeros_like(acc_sc)

    acc_sc[...] += jnp.dot(adj_ref[...], h_ref[...],
                           preferred_element_type=jnp.float32)

    @pl.when(kc == pl.num_programs(1) - 1)
    def _():
        w = w_ref[...]
        h0 = h0_ref[...].astype(jnp.float32)          # this row block of h_0
        h1 = acc_sc[...]                              # f32 matmul result
        s0 = jax.nn.sigmoid(jnp.sum(h0 * w, axis=-1, keepdims=True))
        s1 = jax.nn.sigmoid(jnp.sum(h1 * w, axis=-1, keepdims=True))
        h_out_ref[...] = h1.astype(h_out_ref.dtype)
        acc_out_ref[...] = s0 * h0 + s1 * h1


def _mid_hop_tiled_kernel(adj_ref, h_ref, w_ref, acc_in_ref,
                          h_out_ref, acc_out_ref, acc_sc):
    kc = pl.program_id(1)

    @pl.when(kc == 0)
    def _():
        acc_sc[...] = jnp.zeros_like(acc_sc)

    acc_sc[...] += jnp.dot(adj_ref[...], h_ref[...],
                           preferred_element_type=jnp.float32)

    @pl.when(kc == pl.num_programs(1) - 1)
    def _():
        h_new = acc_sc[...]
        s = jax.nn.sigmoid(jnp.sum(h_new * w_ref[...], axis=-1, keepdims=True))
        h_out_ref[...] = h_new.astype(h_out_ref.dtype)
        acc_out_ref[...] = acc_in_ref[...] + s * h_new


def _last_hop_tiled_kernel(adj_ref, h_ref, w_ref, acc_in_ref,
                           acc_out_ref, acc_sc):
    # Same as the mid hop but h_K is never consumed -> skip its writeback.
    kc = pl.program_id(1)

    @pl.when(kc == 0)
    def _():
        acc_sc[...] = jnp.zeros_like(acc_sc)

    acc_sc[...] += jnp.dot(adj_ref[...], h_ref[...],
                           preferred_element_type=jnp.float32)

    @pl.when(kc == pl.num_programs(1) - 1)
    def _():
        h_new = acc_sc[...]
        s = jax.nn.sigmoid(jnp.sum(h_new * w_ref[...], axis=-1, keepdims=True))
        acc_out_ref[...] = acc_in_ref[...] + s * h_new


# --------------------------------------------------------------------------
# Wrapper.
# --------------------------------------------------------------------------
def dagnn_conv(x, adj, weight, *, K: int = 10,
               block_rows=None, block_cols=None,
               matmul_dtype=None, force_tiled: bool = False):
    """DAGNNConv forward.

    x:      (N, F) node features
    adj:    (N, N) dense (normalized) adjacency
    weight: (1, F) nn.Linear(F, 1, bias=False) weight
    """
    assert K >= 1, "K must be >= 1"
    N, F = x.shape
    assert adj.shape == (N, N)

    f32 = jnp.float32
    matmul_dtype = matmul_dtype or f32               # f32 default: 1e-4 tol
    mm_bytes = jnp.dtype(matmul_dtype).itemsize

    Fp = _round_up(F, 128)
    N128 = _round_up(N, 128)

    vmem = _physical_vmem_bytes()
    vmem_limit = int(vmem * 0.85)                    # leave Mosaic headroom

    w_p = jnp.zeros((1, Fp), f32).at[0, :F].set(
        jnp.reshape(weight, (F,)).astype(f32))

    # -------------------- fused path --------------------
    # Rough VMEM footprint: adj block (+ possible value copy) + x + out +
    # h/acc temporaries.  Keep a conservative 60% budget.
    fused_bytes = 2 * N128 * N128 * mm_bytes + 6 * N128 * Fp * 4 + 4 * Fp * 4
    if (not force_tiled) and fused_bytes <= int(vmem * 0.6):
        x_p = jnp.zeros((N128, Fp), f32).at[:N, :F].set(x.astype(f32))
        adj_p = jnp.zeros((N128, N128), matmul_dtype).at[:N, :N].set(
            adj.astype(matmul_dtype))
        out = pl.pallas_call(
            functools.partial(_fused_kernel, K=K),
            out_shape=jax.ShapeDtypeStruct((N128, Fp), f32),
            compiler_params=pltpu.CompilerParams(vmem_limit_bytes=vmem_limit),
        )(adj_p, x_p, w_p)
        return out[:N, :F].astype(x.dtype)

    # -------------------- tiled path --------------------
    big_vmem = vmem >= 100 * 1024 * 1024             # v6e / v5e (128 MiB)
    if block_rows is None:
        block_rows = 512 if big_vmem else 256
    if block_cols is None:
        block_cols = 512
    tm = min(_round_up(block_rows, 128), N128)
    tk = min(_round_up(block_cols, 128), N128)
    Np = _round_up(N, math.lcm(tm, tk))
    J, Kc = Np // tm, Np // tk
    if J == 1 and tm > 128:                          # keep both v7x TCs busy
        tm = max(128, tm // 2)
        Np = _round_up(N, math.lcm(tm, tk))
        J, Kc = Np // tm, Np // tk

    # Zero padding is exact: padded adj rows/cols, x rows and w lanes are
    # zero, so padded output entries stay zero and are sliced off.
    x_p = jnp.zeros((Np, Fp), matmul_dtype).at[:N, :F].set(
        x.astype(matmul_dtype))
    adj_p = jnp.zeros((Np, Np), matmul_dtype).at[:N, :N].set(
        adj.astype(matmul_dtype))

    adj_spec = pl.BlockSpec((tm, tk), lambda j, k: (j, k))
    h_contract_spec = pl.BlockSpec((tk, Fp), lambda j, k: (k, 0))
    rows_spec = pl.BlockSpec((tm, Fp), lambda j, k: (j, 0))
    w_spec = pl.BlockSpec((1, Fp), lambda j, k: (0, 0))

    cparams = pltpu.CompilerParams(
        dimension_semantics=("parallel", "arbitrary"),
        vmem_limit_bytes=vmem_limit,
    )
    scratch = [pltpu.VMEM((tm, Fp), jnp.float32)]

    h_shape = jax.ShapeDtypeStruct((Np, Fp), matmul_dtype)
    acc_shape = jax.ShapeDtypeStruct((Np, Fp), f32)

    first_hop = pl.pallas_call(
        _first_hop_tiled_kernel,
        out_shape=(h_shape, acc_shape),
        grid=(J, Kc),
        in_specs=[adj_spec, h_contract_spec, rows_spec, w_spec],
        out_specs=(rows_spec, rows_spec),
        scratch_shapes=scratch,
        compiler_params=cparams,
    )
    mid_hop = pl.pallas_call(
        _mid_hop_tiled_kernel,
        out_shape=(h_shape, acc_shape),
        grid=(J, Kc),
        in_specs=[adj_spec, h_contract_spec, w_spec, rows_spec],
        out_specs=(rows_spec, rows_spec),
        scratch_shapes=scratch,
        input_output_aliases={3: 1},                 # acc accumulated in place
        compiler_params=cparams,
    )
    last_hop = pl.pallas_call(
        _last_hop_tiled_kernel,
        out_shape=acc_shape,
        grid=(J, Kc),
        in_specs=[adj_spec, h_contract_spec, w_spec, rows_spec],
        out_specs=rows_spec,
        scratch_shapes=scratch,
        input_output_aliases={3: 0},
        compiler_params=cparams,
    )

    h, acc = first_hop(adj_p, x_p, x_p, w_p)
    if K == 1:
        return acc[:N, :F].astype(x.dtype)
    for _ in range(K - 2):
        h, acc = mid_hop(adj_p, h, w_p, acc)
    acc = last_hop(adj_p, h, w_p, acc)
    return acc[:N, :F].astype(x.dtype)


# --------------------------------------------------------------------------
# Pure-JAX reference (mirrors the PyTorch module).
# --------------------------------------------------------------------------
def _reference(x, adj, weight, K):
    props = [x]
    h = x
    for _ in range(K):
        h = adj @ h
        props.append(h)
    hstk = jnp.stack(props, axis=1)                      # (N, K+1, F)
    retain = jax.nn.sigmoid(hstk @ weight.T)             # (N, K+1, 1)
    retain = jnp.transpose(retain, (0, 2, 1))            # (N, 1, K+1)
    return jnp.squeeze(retain @ hstk, axis=1)            # (N, F)


def _make_inputs(key, n, f):
    k_x, k_adj, k_w = jax.random.split(key, 3)
    x = jax.random.normal(k_x, (n, f), dtype=jnp.float32)
    a = jax.random.uniform(k_adj, (n, n), dtype=jnp.float32)
    a = (a > 0.8).astype(jnp.float32)
    a = a + a.T + jnp.eye(n, dtype=jnp.float32)
    a = jnp.minimum(a, 1.0)
    adj = a / jnp.sum(a, axis=1, keepdims=True)
    bound = 1.0 / jnp.sqrt(jnp.float32(f))
    w = jax.random.uniform(k_w, (1, f), minval=-bound, maxval=bound,
                           dtype=jnp.float32)
    return x, adj, w


if __name__ == "__main__":
    key = jax.random.PRNGKey(0)

    # 1) Small graph -> fused single-call path (adj resident in VMEM).
    N, F, K = 64, 32, 10
    x, adj, weight = _make_inputs(key, N, F)
    fn = jax.jit(functools.partial(dagnn_conv, K=K))
    out = jax.block_until_ready(fn(x, adj, weight))
    ref = _reference(x, adj, weight, K)
    assert out.shape == (N, F)
    err = float(jnp.max(jnp.abs(out - ref)))
    assert jnp.allclose(out, ref, atol=1e-4, rtol=1e-4), err

    # 2) N not a multiple of 128, multiple row/contraction blocks, aliased
    #    accumulator and last-hop variant -> tiled grid path.
    N2, F2, K2 = 200, 48, 4
    x2, adj2, w2 = _make_inputs(jax.random.PRNGKey(0), N2, F2)
    fn2 = jax.jit(functools.partial(dagnn_conv, K=K2, force_tiled=True,
                                    block_rows=128, block_cols=128))
    out2 = jax.block_until_ready(fn2(x2, adj2, w2))
    ref2 = _reference(x2, adj2, w2, K2)
    assert out2.shape == (N2, F2)
    err2 = float(jnp.max(jnp.abs(out2 - ref2)))
    assert jnp.allclose(out2, ref2, atol=1e-4, rtol=1e-4), err2

    print("KERNEL_OK")
</pallas_src>

<mosaic_0001>
module attributes {stable_mosaic.version = 11 : i64} {
  func.func @_fused_kernel(%arg0: memref<128x128xf32, #tpu.memory_space<vmem>>, %arg1: memref<128x128xf32, #tpu.memory_space<vmem>>, %arg2: memref<1x128xf32, #tpu.memory_space<vmem>>, %arg3: memref<128x128xf32, #tpu.memory_space<vmem>>) attributes {dimension_semantics = [], scalar_prefetch = 0 : i64, scratch_operands = 0 : i64, tpu.core_type = #tpu.core_type<tc>} {
    %c0 = arith.constant 0 : index
    %c0_0 = arith.constant 0 : index
    %0 = vector.load %arg2[%c0, %c0_0] : memref<1x128xf32, #tpu.memory_space<vmem>>, vector<1x128xf32>
    %c0_1 = arith.constant 0 : index
    %c0_2 = arith.constant 0 : index
    %1 = vector.load %arg0[%c0_1, %c0_2] : memref<128x128xf32, #tpu.memory_space<vmem>>, vector<128x128xf32>
    %c0_3 = arith.constant 0 : index
    %c0_4 = arith.constant 0 : index
    %2 = vector.load %arg1[%c0_3, %c0_4] : memref<128x128xf32, #tpu.memory_space<vmem>>, vector<128x128xf32>
    %3 = vector.broadcast %0 : vector<1x128xf32> to vector<128x128xf32>
    %4 = arith.mulf %2, %3 : vector<128x128xf32>
    %cst = arith.constant dense<0.000000e+00> : vector<128xf32>
    %5 = vector.multi_reduction <add>, %4, %cst [1] : vector<128x128xf32> to vector<128xf32>
    %6 = vector.shape_cast %5 : vector<128xf32> to vector<128x1xf32>
    %7 = arith.negf %6 : vector<128x1xf32>
    %8 = math.exp %7 : vector<128x1xf32>
    %cst_5 = arith.constant 1.000000e+00 : f32
    %9 = vector.broadcast %cst_5 : f32 to vector<128x1xf32>
    %10 = arith.addf %9, %8 : vector<128x1xf32>
    %11 = arith.divf %9, %10 : vector<128x1xf32>
    %12 = vector.broadcast %11 : vector<128x1xf32> to vector<128x128xf32>
    %13 = arith.mulf %12, %2 : vector<128x128xf32>
    %cst_6 = arith.constant dense<0.000000e+00> : vector<128x128xf32>
    %14 = tpu.matmul %1, %2, %cst_6 {dimension_numbers = #tpu.dot_dimension_numbers<[1], [0], [0], [1], [0, 0, 1, 1], [], []>} : vector<128x128xf32>, vector<128x128xf32>, vector<128x128xf32> -> vector<128x128xf32>
    %15 = vector.broadcast %0 : vector<1x128xf32> to vector<128x128xf32>
    %16 = arith.mulf %14, %15 : vector<128x128xf32>
    %cst_7 = arith.constant dense<0.000000e+00> : vector<128xf32>
    %17 = vector.multi_reduction <add>, %16, %cst_7 [1] : vector<128x128xf32> to vector<128xf32>
    %18 = vector.shape_cast %17 : vector<128xf32> to vector<128x1xf32>
    %19 = arith.negf %18 : vector<128x1xf32>
    %20 = math.exp %19 : vector<128x1xf32>
    %cst_8 = arith.constant 1.000000e+00 : f32
    %21 = vector.broadcast %cst_8 : f32 to vector<128x1xf32>
    %22 = arith.addf %21, %20 : vector<128x1xf32>
    %23 = arith.divf %21, %22 : vector<128x1xf32>
    %24 = vector.broadcast %23 : vector<128x1xf32> to vector<128x128xf32>
    %25 = arith.mulf %24, %14 : vector<128x128xf32>
    %26 = arith.addf %13, %25 : vector<128x128xf32>
    %cst_9 = arith.constant dense<0.000000e+00> : vector<128x128xf32>
    %27 = tpu.matmul %1, %14, %cst_9 {dimension_numbers = #tpu.dot_dimension_numbers<[1], [0], [0], [1], [0, 0, 1, 1], [], []>} : vector<128x128xf32>, vector<128x128xf32>, vector<128x128xf32> -> vector<128x128xf32>
    %28 = vector.broadcast %0 : vector<1x128xf32> to vector<128x128xf32>
    %29 = arith.mulf %27, %28 : vector<128x128xf32>
    %cst_10 = arith.constant dense<0.000000e+00> : vector<128xf32>
    %30 = vector.multi_reduction <add>, %29, %cst_10 [1] : vector<128x128xf32> to vector<128xf32>
    %31 = vector.shape_cast %30 : vector<128xf32> to vector<128x1xf32>
    %32 = arith.negf %31 : vector<128x1xf32>
    %33 = math.exp %32 : vector<128x1xf32>
    %cst_11 = arith.constant 1.000000e+00 : f32
    %34 = vector.broadcast %cst_11 : f32 to vector<128x1xf32>
    %35 = arith.addf %34, %33 : vector<128x1xf32>
    %36 = arith.divf %34, %35 : vector<128x1xf32>
    %37 = vector.broadcast %36 : vector<128x1xf32> to vector<128x128xf32>
    %38 = arith.mulf %37, %27 : vector<128x128xf32>
    %39 = arith.addf %26, %38 : vector<128x128xf32>
    %cst_12 = arith.constant dense<0.000000e+00> : vector<128x128xf32>
    %40 = tpu.matmul %1, %27, %cst_12 {dimension_numbers = #tpu.dot_dimension_numbers<[1], [0], [0], [1], [0, 0, 1, 1], [], []>} : vector<128x128xf32>, vector<128x128xf32>, vector<128x128xf32> -> vector<128x128xf32>
    %41 = vector.broadcast %0 : vector<1x128xf32> to vector<128x128xf32>
    %42 = arith.mulf %40, %41 : vector<128x128xf32>
    %cst_13 = arith.constant dense<0.000000e+00> : vector<128xf32>
    %43 = vector.multi_reduction <add>, %42, %cst_13 [1] : vector<128x128xf32> to vector<128xf32>
    %44 = vector.shape_cast %43 : vector<128xf32> to vector<128x1xf32>
    %45 = arith.negf %44 : vector<128x1xf32>
    %46 = math.exp %45 : vector<128x1xf32>
    %cst_14 = arith.constant 1.000000e+00 : f32
    %47 = vector.broadcast %cst_14 : f32 to vector<128x1xf32>
    %48 = arith.addf %47, %46 : vector<128x1xf32>
    %49 = arith.divf %47, %48 : vector<128x1xf32>
    %50 = vector.broadcast %49 : vector<128x1xf32> to vector<128x128xf32>
    %51 = arith.mulf %50, %40 : vector<128x128xf32>
    %52 = arith.addf %39, %51 : vector<128x128xf32>
    %cst_15 = arith.constant dense<0.000000e+00> : vector<128x128xf32>
    %53 = tpu.matmul %1, %40, %cst_15 {dimension_numbers = #tpu.dot_dimension_numbers<[1], [0], [0], [1], [0, 0, 1, 1], [], []>} : vector<128x128xf32>, vector<128x128xf32>, vector<128x128xf32> -> vector<128x128xf32>
    %54 = vector.broadcast %0 : vector<1x128xf32> to vector<128x128xf32>
    %55 = arith.mulf %53, %54 : vector<128x128xf32>
    %cst_16 = arith.constant dense<0.000000e+00> : vector<128xf32>
    %56 = vector.multi_reduction <add>, %55, %cst_16 [1] : vector<128x128xf32> to vector<128xf32>
    %57 = vector.shape_cast %56 : vector<128xf32> to vector<128x1xf32>
    %58 = arith.negf %57 : vector<128x1xf32>
    %59 = math.exp %58 : vector<128x1xf32>
    %cst_17 = arith.constant 1.000000e+00 : f32
    %60 = vector.broadcast %cst_17 : f32 to vector<128x1xf32>
    %61 = arith.addf %60, %59 : vector<128x1xf32>
    %62 = arith.divf %60, %61 : vector<128x1xf32>
    %63 = vector.broadcast %62 : vector<128x1xf32> to vector<128x128xf32>
    %64 = arith.mulf %63, %53 : vector<128x128xf32>
    %65 = arith.addf %52, %64 : vector<128x128xf32>
    %cst_18 = arith.constant dense<0.000000e+00> : vector<128x128xf32>
    %66 = tpu.matmul %1, %53, %cst_18 {dimension_numbers = #tpu.dot_dimension_numbers<[1], [0], [0], [1], [0, 0, 1, 1], [], []>} : vector<128x128xf32>, vector<128x128xf32>, vector<128x128xf32> -> vector<128x128xf32>
    %67 = vector.broadcast %0 : vector<1x128xf32> to vector<128x128xf32>
    %68 = arith.mulf %66, %67 : vector<128x128xf32>
    %cst_19 = arith.constant dense<0.000000e+00> : vector<128xf32>
    %69 = vector.multi_reduction <add>, %68, %cst_19 [1] : vector<128x128xf32> to vector<128xf32>
    %70 = vector.shape_cast %69 : vector<128xf32> to vector<128x1xf32>
    %71 = arith.negf %70 : vector<128x1xf32>
    %72 = math.exp %71 : vector<128x1xf32>
    %cst_20 = arith.constant 1.000000e+00 : f32
    %73 = vector.broadcast %cst_20 : f32 to vector<128x1xf32>
    %74 = arith.addf %73, %72 : vector<128x1xf32>
    %75 = arith.divf %73, %74 : vector<128x1xf32>
    %76 = vector.broadcast %75 : vector<128x1xf32> to vector<128x128xf32>
    %77 = arith.mulf %76, %66 : vector<128x128xf32>
    %78 = arith.addf %65, %77 : vector<128x128xf32>
    %cst_21 = arith.constant dense<0.000000e+00> : vector<128x128xf32>
    %79 = tpu.matmul %1, %66, %cst_21 {dimension_numbers = #tpu.dot_dimension_numbers<[1], [0], [0], [1], [0, 0, 1, 1], [], []>} : vector<128x128xf32>, vector<128x128xf32>, vector<128x128xf32> -> vector<128x128xf32>
    %80 = vector.broadcast %0 : vector<1x128xf32> to vector<128x128xf32>
    %81 = arith.mulf %79, %80 : vector<128x128xf32>
    %cst_22 = arith.constant dense<0.000000e+00> : vector<128xf32>
    %82 = vector.multi_reduction <add>, %81, %cst_22 [1] : vector<128x128xf32> to vector<128xf32>
    %83 = vector.shape_cast %82 : vector<128xf32> to vector<128x1xf32>
    %84 = arith.negf %83 : vector<128x1xf32>
    %85 = math.exp %84 : vector<128x1xf32>
    %cst_23 = arith.constant 1.000000e+00 : f32
    %86 = vector.broadcast %cst_23 : f32 to vector<128x1xf32>
    %87 = arith.addf %86, %85 : vector<128x1xf32>
    %88 = arith.divf %86, %87 : vector<128x1xf32>
    %89 = vector.broadcast %88 : vector<128x1xf32> to vector<128x128xf32>
    %90 = arith.mulf %89, %79 : vector<128x128xf32>
    %91 = arith.addf %78, %90 : vector<128x128xf32>
    %cst_24 = arith.constant dense<0.000000e+00> : vector<128x128xf32>
    %92 = tpu.matmul %1, %79, %cst_24 {dimension_numbers = #tpu.dot_dimension_numbers<[1], [0], [0], [1], [0, 0, 1, 1], [], []>} : vector<128x128xf32>, vector<128x128xf32>, vector<128x128xf32> -> vector<128x128xf32>
    %93 = vector.broadcast %0 : vector<1x128xf32> to vector<128x128xf32>
    %94 = arith.mulf %92, %93 : vector<128x128xf32>
    %cst_25 = arith.constant dense<0.000000e+00> : vector<128xf32>
    %95 = vector.multi_reduction <add>, %94, %cst_25 [1] : vector<128x128xf32> to vector<128xf32>
    %96 = vector.shape_cast %95 : vector<128xf32> to vector<128x1xf32>
    %97 = arith.negf %96 : vector<128x1xf32>
    %98 = math.exp %97 : vector<128x1xf32>
    %cst_26 = arith.constant 1.000000e+00 : f32
    %99 = vector.broadcast %cst_26 : f32 to vector<128x1xf32>
    %100 = arith.addf %99, %98 : vector<128x1xf32>
    %101 = arith.divf %99, %100 : vector<128x1xf32>
    %102 = vector.broadcast %101 : vector<128x1xf32> to vector<128x128xf32>
    %103 = arith.mulf %102, %92 : vector<128x128xf32>
    %104 = arith.addf %91, %103 : vector<128x128xf32>
    %cst_27 = arith.constant dense<0.000000e+00> : vector<128x128xf32>
    %105 = tpu.matmul %1, %92, %cst_27 {dimension_numbers = #tpu.dot_dimension_numbers<[1], [0], [0], [1], [0, 0, 1, 1], [], []>} : vector<128x128xf32>, vector<128x128xf32>, vector<128x128xf32> -> vector<128x128xf32>
    %106 = vector.broadcast %0 : vector<1x128xf32> to vector<128x128xf32>
    %107 = arith.mulf %105, %106 : vector<128x128xf32>
    %cst_28 = arith.constant dense<0.000000e+00> : vector<128xf32>
    %108 = vector.multi_reduction <add>, %107, %cst_28 [1] : vector<128x128xf32> to vector<128xf32>
    %109 = vector.shape_cast %108 : vector<128xf32> to vector<128x1xf32>
    %110 = arith.negf %109 : vector<128x1xf32>
    %111 = math.exp %110 : vector<128x1xf32>
    %cst_29 = arith.constant 1.000000e+00 : f32
    %112 = vector.broadcast %cst_29 : f32 to vector<128x1xf32>
    %113 = arith.addf %112, %111 : vector<128x1xf32>
    %114 = arith.divf %112, %113 : vector<128x1xf32>
    %115 = vector.broadcast %114 : vector<128x1xf32> to vector<128x128xf32>
    %116 = arith.mulf %115, %105 : vector<128x128xf32>
    %117 = arith.addf %104, %116 : vector<128x128xf32>
    %cst_30 = arith.constant dense<0.000000e+00> : vector<128x128xf32>
    %118 = tpu.matmul %1, %105, %cst_30 {dimension_numbers = #tpu.dot_dimension_numbers<[1], [0], [0], [1], [0, 0, 1, 1], [], []>} : vector<128x128xf32>, vector<128x128xf32>, vector<128x128xf32> -> vector<128x128xf32>
    %119 = vector.broadcast %0 : vector<1x128xf32> to vector<128x128xf32>
    %120 = arith.mulf %118, %119 : vector<128x128xf32>
    %cst_31 = arith.constant dense<0.000000e+00> : vector<128xf32>
    %121 = vector.multi_reduction <add>, %120, %cst_31 [1] : vector<128x128xf32> to vector<128xf32>
    %122 = vector.shape_cast %121 : vector<128xf32> to vector<128x1xf32>
    %123 = arith.negf %122 : vector<128x1xf32>
    %124 = math.exp %123 : vector<128x1xf32>
    %cst_32 = arith.constant 1.000000e+00 : f32
    %125 = vector.broadcast %cst_32 : f32 to vector<128x1xf32>
    %126 = arith.addf %125, %124 : vector<128x1xf32>
    %127 = arith.divf %125, %126 : vector<128x1xf32>
    %128 = vector.broadcast %127 : vector<128x1xf32> to vector<128x128xf32>
    %129 = arith.mulf %128, %118 : vector<128x128xf32>
    %130 = arith.addf %117, %129 : vector<128x128xf32>
    %cst_33 = arith.constant dense<0.000000e+00> : vector<128x128xf32>
    %131 = tpu.matmul %1, %118, %cst_33 {dimension_numbers = #tpu.dot_dimension_numbers<[1], [0], [0], [1], [0, 0, 1, 1], [], []>} : vector<128x128xf32>, vector<128x128xf32>, vector<128x128xf32> -> vector<128x128xf32>
    %132 = vector.broadcast %0 : vector<1x128xf32> to vector<128x128xf32>
    %133 = arith.mulf %131, %132 : vector<128x128xf32>
    %cst_34 = arith.constant dense<0.000000e+00> : vector<128xf32>
    %134 = vector.multi_reduction <add>, %133, %cst_34 [1] : vector<128x128xf32> to vector<128xf32>
    %135 = vector.shape_cast %134 : vector<128xf32> to vector<128x1xf32>
    %136 = arith.negf %135 : vector<128x1xf32>
    %137 = math.exp %136 : vector<128x1xf32>
    %cst_35 = arith.constant 1.000000e+00 : f32
    %138 = vector.broadcast %cst_35 : f32 to vector<128x1xf32>
    %139 = arith.addf %138, %137 : vector<128x1xf32>
    %140 = arith.divf %138, %139 : vector<128x1xf32>
    %141 = vector.broadcast %140 : vector<128x1xf32> to vector<128x128xf32>
    %142 = arith.mulf %141, %131 : vector<128x128xf32>
    %143 = arith.addf %130, %142 : vector<128x128xf32>
    %c0_36 = arith.constant 0 : index
    %c0_37 = arith.constant 0 : index
    %144 = vector.load %arg3[%c0_36, %c0_37] : memref<128x128xf32, #tpu.memory_space<vmem>>, vector<128x128xf32>
    tpu.vector_store %arg3[%c0_36, %c0_37], %143 {strides = array<i32>} : memref<128x128xf32, #tpu.memory_space<vmem>>, vector<128x128xf32>,
    return
  }
}

</mosaic_0001>

<bundles_post_ra>
// kernel: dagnn_conv.1
= control target key start
LH: loop header
LB: loop body
LE: loop exit
PB: predicated region body
PF: predicated region fallthrough
CT: control target
= control target key end

     0   :  { %s10601_s1 = inlined_call_operand.vmem [shape: f32[128,128], index: 1, kind: input, shape index: {}]   ;;  %s10602_s2 = inlined_call_operand.vmem [shape: f32[1,128], index: 2, kind: input, shape index: {}]   ;;  %s10603_s0 = inlined_call_operand.vmem [shape: f32[128,128], index: 0, kind: input, shape index: {}]   ;;  %s10604_s3 = inlined_call_operand.vmem [shape: f32[128,128], index: 3, kind: output, shape index: {}]  }
   0x1   :  { %v5943_v0 = vld [vmem:[%s10601_s1 + $0x78] sm:$0xff]  ;;  %v5948_v1 = vld [vmem:[%s10601_s1 + $0x70] sm:$0xff]  ;;  %v5955_v2 = vld [vmem:[%s10601_s1 + $0x68] sm:$0xff] }
   0x2   :  { %418 = vmatpush.msra.mxu0 %v5943_v0  ;;  %5104 = vmatpush.msra.mxu2 %v5943_v0  ;;  %v5962_v3 = vld [vmem:[%s10601_s1 + $0x60] sm:$0xff]  ;;  %v5969_v4 = vld [vmem:[%s10601_s1 + $0x58] sm:$0xff]  ;;  %v5976_v5 = vld [vmem:[%s10601_s1 + $0x50] sm:$0xff] }
   0x3   :  { %v5983_v6 = vld [vmem:[%s10601_s1 + $0x48] sm:$0xff]  ;;  %v5990_v7 = vld [vmem:[%s10601_s1 + $0x40] sm:$0xff]  ;;  %v5997_v8 = vld [vmem:[%s10601_s1 + $0x38] sm:$0xff] }
   0x4   :  { %419 = vmatpush.msra.mxu0 %v5948_v1  ;;  %5105 = vmatpush.msra.mxu2 %v5948_v1  ;;  %v6004_v9 = vld [vmem:[%s10601_s1 + $0x30] sm:$0xff]  ;;  %v36_v10 = vld [vmem:[%s10601_s1 + $0x28] sm:$0xff]  ;;  %v6016_v11 = vld [vmem:[%s10601_s1 + $0x20] sm:$0xff] }
   0x5   :  { %v6021_v12 = vld [vmem:[%s10601_s1 + $0x18] sm:$0xff]  ;;  %v6028_v13 = vld [vmem:[%s10601_s1 + $0x10] sm:$0xff]  ;;  %v6035_v14 = vld [vmem:[%s10601_s1 + $0x8] sm:$0xff] }
   0x6   :  { %420 = vmatpush.msra.mxu0 %v5955_v2  ;;  %5106 = vmatpush.msra.mxu2 %v5955_v2  ;;  %v6042_v15 = vld [vmem:[%s10601_s1] sm:$0xff]  ;;  %v6063_v18 = vld [vmem:[%s10603_s0 + $0x8] sm:$0xff]  ;;  %v6075_v20 = vld [vmem:[%s10603_s0 + $0x10] sm:$0xff] }
   0x7   :  { %v6049_v16 = vld [vmem:[%s10603_s0] sm:$0xff]  ;;  %v6068_v19 = vld [vmem:[%s10603_s0 + $0x48] sm:$0xff]  ;;  %v6080_v21 = vld [vmem:[%s10603_s0 + $0x50] sm:$0xff] }
   0x8   :  { %421 = vmatpush.msra.mxu0 %v5962_v3  ;;  %5107 = vmatpush.msra.mxu2 %v5962_v3  ;;  %v6054_v17 = vld [vmem:[%s10603_s0 + $0x40] sm:$0xff]  ;;  %v6087_v22 = vld [vmem:[%s10603_s0 + $0x18] sm:$0xff]  ;;  %v6127_v33 = vld [vmem:[%s10603_s0 + $0x28] sm:$0xff] }
   0x9   :  { %v6092_v23 = vld [vmem:[%s10603_s0 + $0x58] sm:$0xff]  ;;  %v6099_v24 = vld [vmem:[%s10602_s2] ss:$0 sm:$0xff]  ;;  %v6132_v34 = vld [vmem:[%s10603_s0 + $0x68] sm:$0xff] }
   0xa   :  { %422 = vmatpush.msra.mxu0 %v5969_v4  ;;  %5108 = vmatpush.msra.mxu2 %v5969_v4  ;;  %v50_v25 = vmul.f32 %v6099_v24, %v6042_v15  ;;  %v52_v26 = vmul.f32 %v6099_v24, %v6028_v13  ;;  %v54_v27 = vmul.f32 %v6099_v24, %v6016_v11  ;;  %v6110_v28 = vld [vmem:[%s10603_s0 + $0x20] sm:$0xff]  ;;  %v6145_v38 = vld [vmem:[%s10603_s0 + $0x30] sm:$0xff]  ;;  %v6163_v43 = vld [vmem:[%s10603_s0 + $0x38] sm:$0xff] }
   0xb   :  { %v6115_v29 = vld [vmem:[%s10603_s0 + $0x60] sm:$0xff]  ;;  %v51_v30 = vmul.f32 %v6099_v24, %v6035_v14  ;;  %v53_v31 = vmul.f32 %v6099_v24, %v6021_v12  ;;  %v55_v32 = vmul.f32 %v6099_v24, %v36_v10  ;;  %v56_v35 = vmul.f32 %v6099_v24, %v6004_v9  ;;  %v6150_v39 = vld [vmem:[%s10603_s0 + $0x70] sm:$0xff]  ;;  %v6168_v44 = vld [vmem:[%s10603_s0 + $0x78] sm:$0xff] }
   0xc   :  { %423 = vmatpush.msra.mxu0 %v5976_v5  ;;  %5109 = vmatpush.msra.mxu2 %v5976_v5  ;;  %v57_v36 = vmul.f32 %v6099_v24, %v5997_v8  ;;  %v58_v37 = vmul.f32 %v6099_v24, %v5990_v7  ;;  %v59_v40 = vmul.f32 %v6099_v24, %v5983_v6 }
   0xd   :  { %66 = vadd.xlane.f32.xlu0 %v50_v25  ;;  %70 = vadd.xlane.f32.xlu1 %v52_v26  ;;  %v60_v41 = vmul.f32 %v6099_v24, %v5976_v5  ;;  %v61_v42 = vmul.f32 %v6099_v24, %v5969_v4  ;;  %v62_v45 = vmul.f32 %v6099_v24, %v5962_v3 }
   0xe   :  { %424 = vmatpush.msra.mxu0 %v5983_v6  ;;  %5110 = vmatpush.msra.mxu2 %v5983_v6  ;;  %v63_v46 = vmul.f32 %v6099_v24, %v5955_v2  ;;  %v65_v47 = vmul.f32 %v6099_v24, %v5943_v0  ;;  %v64_v48 = vmul.f32 %v6099_v24, %v5948_v1 }
   0xf   :  { %74 = vadd.xlane.f32.xlu2 %v54_v27 }
  0x10   :  { %425 = vmatpush.msra.mxu0 %v5990_v7  ;;  %5111 = vmatpush.msra.mxu2 %v5990_v7 }
  0x12   :  { %426 = vmatpush.msra.mxu0 %v5997_v8  ;;  %5112 = vmatpush.msra.mxu2 %v5997_v8 }
  0x14   :  { %427 = vmatpush.msra.mxu0 %v6004_v9  ;;  %5113 = vmatpush.msra.mxu2 %v6004_v9 }
  0x15   :  { %68 = vadd.xlane.f32.xlu0 %v51_v30  ;;  %72 = vadd.xlane.f32.xlu1 %v53_v31 }
  0x16   :  { %428 = vmatpush.msra.mxu0 %v36_v10  ;;  %5114 = vmatpush.msra.mxu2 %v36_v10 }
  0x17   :  { %76 = vadd.xlane.f32.xlu2 %v55_v32 }
  0x18   :  { %429 = vmatpush.msra.mxu0 %v6016_v11  ;;  %5115 = vmatpush.msra.mxu2 %v6016_v11 }
  0x1a   :  { %430 = vmatpush.msra.mxu0 %v6021_v12  ;;  %5116 = vmatpush.msra.mxu2 %v6021_v12 }
  0x1c   :  { %431 = vmatpush.msra.mxu0 %v6028_v13  ;;  %5117 = vmatpush.msra.mxu2 %v6028_v13 }
  0x1d   :  { %78 = vadd.xlane.f32.xlu0 %v56_v35  ;;  %80 = vadd.xlane.f32.xlu1 %v57_v36 }
  0x1e   :  { %432 = vmatpush.msra.mxu0 %v6035_v14  ;;  %5118 = vmatpush.msra.mxu2 %v6035_v14 }
  0x1f   :  { %82 = vadd.xlane.f32.xlu2 %v58_v37 }
  0x20   :  { %433 = vmatpush.msra.mxu0 %v6042_v15  ;;  %5119 = vmatpush.msra.mxu2 %v6042_v15 }
  0x21   :  { %434 = vmatmul.f32.vlgmr.msra.gmra.mxu0 %v6049_v16  ;;  %458 = vmatmul.f32.vlgmr.msra.gmra.mxu2 %v6054_v17 }
  0x25   :  { %84 = vadd.xlane.f32.xlu0 %v59_v40  ;;  %86 = vadd.xlane.f32.xlu1 %v60_v41 }
  0x27   :  { %88 = vadd.xlane.f32.xlu2 %v61_v42 }
  0x29   :  { %437 = vmatmul.f32.gmra.mxu0 %v6063_v18  ;;  %461 = vmatmul.f32.gmra.mxu2 %v6068_v19 }
  0x2d   :  { %90 = vadd.xlane.f32.xlu0 %v62_v45  ;;  %92 = vadd.xlane.f32.xlu1 %v63_v46 }
  0x2f   :  { %94 = vadd.xlane.f32.xlu2 %v64_v48 }
  0x31   :  { %440 = vmatmul.f32.gmra.mxu0 %v6075_v20  ;;  %464 = vmatmul.f32.gmra.mxu2 %v6080_v21 }
  0x35   :  { %96 = vadd.xlane.f32.xlu0 %v65_v47 }
  0x39   :  { %443 = vmatmul.f32.gmra.mxu0 %v6087_v22  ;;  %467 = vmatmul.f32.gmra.mxu2 %v6092_v23 }
  0x41   :  { %446 = vmatmul.f32.gmra.mxu0 %v6110_v28  ;;  %470 = vmatmul.f32.gmra.mxu2 %v6115_v29 }
  0x49   :  { %449 = vmatmul.f32.gmra.mxu0 %v6127_v33  ;;  %473 = vmatmul.f32.gmra.mxu2 %v6132_v34 }
  0x51   :  { %452 = vmatmul.f32.gmra.mxu0 %v6145_v38  ;;  %476 = vmatmul.f32.gmra.mxu2 %v6150_v39 }
  0x59   :  { %455 = vmatmul.f32.gmra.mxu0 %v6163_v43  ;;  %479 = vmatmul.f32.gmra.mxu2 %v6168_v44 }
  0x9e   :  { %v6180_v49 = vpop.f32.mrf.mxu0 }
  0x9f   :  { %v483_v50 = vmul.f32 %v6099_v24, %v6180_v49 }
  0xa1   :  { %499 = vadd.xlane.f32.xlu1 %v483_v50 }
  0xa4   :  { %v6184_v51 = vpop.f32.mrf.mxu2 }
  0xa5   :  { %v491_v52 = vmul.f32 %v6099_v24, %v6184_v51 }
  0xa6   :  { %v6188_v53 = vpop.f32.mrf.mxu0 }
  0xa7   :  { %515 = vadd.xlane.f32.xlu0 %v491_v52  ;;  %v484_v54 = vmul.f32 %v6099_v24, %v6188_v53 }
  0xa9   :  { %501 = vadd.xlane.f32.xlu2 %v484_v54 }
  0xac   :  { %v6192_v55 = vpop.f32.mrf.mxu2 }
  0xad   :  { %v492_v56 = vmul.f32 %v6099_v24, %v6192_v55 }
  0xae   :  { %v6196_v57 = vpop.f32.mrf.mxu0 }
  0xaf   :  { %517 = vadd.xlane.f32.xlu1 %v492_v56  ;;  %v485_v58 = vmul.f32 %v6099_v24, %v6196_v57 }
  0xb1   :  { %503 = vadd.xlane.f32.xlu0 %v485_v58 }
  0xb4   :  { %v6200_v59 = vpop.f32.mrf.mxu2 }
  0xb5   :  { %10670 = vst [vmem:[#allocation2_spill] sm:$0xff] %v6200_v59  ;;  %v493_v60 = vmul.f32 %v6099_v24, %v6200_v59 }
  0xb6   :  { %v6204_v61 = vpop.f32.mrf.mxu0 }
  0xb7   :  { %519 = vadd.xlane.f32.xlu2 %v493_v60  ;;  %v486_v62 = vmul.f32 %v6099_v24, %v6204_v61 }
  0xb9   :  { %505 = vadd.xlane.f32.xlu1 %v486_v62 }
  0xbc   :  { %v6208_v63 = vpop.f32.mrf.mxu2 }
  0xbd   :  { %10671 = vst [vmem:[#allocation3_spill] sm:$0xff] %v6208_v63  ;;  %v494_v0 = vmul.f32 %v6099_v24, %v6208_v63 }
  0xbe   :  { %v6212_v1 = vpop.f32.mrf.mxu0 }
  0xbf   :  { %521 = vadd.xlane.f32.xlu0 %v494_v0  ;;  %v487_v2 = vmul.f32 %v6099_v24, %v6212_v1 }
  0xc1   :  { %507 = vadd.xlane.f32.xlu2 %v487_v2 }
  0xc4   :  { %v6216_v3 = vpop.f32.mrf.mxu2 }
  0xc5   :  { %10672 = vst [vmem:[#allocation4_spill] sm:$0xff] %v6216_v3  ;;  %v495_v4 = vmul.f32 %v6099_v24, %v6216_v3 }
  0xc6   :  { %v6220_v5 = vpop.f32.mrf.mxu0 }
  0xc7   :  { %523 = vadd.xlane.f32.xlu1 %v495_v4  ;;  %v488_v6 = vmul.f32 %v6099_v24, %v6220_v5 }
  0xc9   :  { %509 = vadd.xlane.f32.xlu0 %v488_v6 }
  0xcc   :  { %v6224_v7 = vpop.f32.mrf.mxu2 }
  0xcd   :  { %10673 = vst [vmem:[#allocation5_spill] sm:$0xff] %v6224_v7  ;;  %v496_v8 = vmul.f32 %v6099_v24, %v6224_v7 }
  0xce   :  { %v6228_v10 = vpop.f32.mrf.mxu0 }
  0xcf   :  { %10674 = vst [vmem:[#allocation6_spill] sm:$0xff] %v6228_v10  ;;  %525 = vadd.xlane.f32.xlu2 %v496_v8  ;;  %v489_v25 = vmul.f32 %v6099_v24, %v6228_v10 }
  0xd1   :  { %511 = vadd.xlane.f32.xlu1 %v489_v25 }
  0xd4   :  { %v6232_v26 = vpop.f32.mrf.mxu2 }
  0xd5   :  { %10675 = vst [vmem:[#allocation7_spill] sm:$0xff] %v6232_v26  ;;  %v497_v27 = vmul.f32 %v6099_v24, %v6232_v26 }
  0xd6   :  { %v6236_v30 = vpop.f32.mrf.mxu0 }
  0xd7   :  { %10676 = vst [vmem:[#allocation8_spill] sm:$0xff] %v6236_v30  ;;  %527 = vadd.xlane.f32.xlu0 %v497_v27  ;;  %v490_v31 = vmul.f32 %v6099_v24, %v6236_v30 }
  0xd9   :  { %513 = vadd.xlane.f32.xlu2 %v490_v31 }
  0xdc   :  { %v6240_v32 = vpop.f32.mrf.mxu2 }
  0xdd   :  { %10677 = vst [vmem:[#allocation9_spill] sm:$0xff] %v6240_v32  ;;  %867 = vmatpush.msra.mxu1 %v6240_v32  ;;  %5120 = vmatpush.msra.mxu3 %v6240_v32  ;;  %v498_v35 = vmul.f32 %v6099_v24, %v6240_v32 }
  0xdf   :  { %868 = vmatpush.msra.mxu1 %v6232_v26  ;;  %5121 = vmatpush.msra.mxu3 %v6232_v26 }
  0xe0   :  { %529 = vadd.xlane.f32.xlu1 %v498_v35 }
  0xe1   :  { %869 = vmatpush.msra.mxu1 %v6224_v7  ;;  %5122 = vmatpush.msra.mxu3 %v6224_v7 }
  0xe3   :  { %870 = vmatpush.msra.mxu1 %v6216_v3  ;;  %5123 = vmatpush.msra.mxu3 %v6216_v3 }
  0xe5   :  { %871 = vmatpush.msra.mxu1 %v6208_v63  ;;  %5124 = vmatpush.msra.mxu3 %v6208_v63 }
  0xe7   :  { %872 = vmatpush.msra.mxu1 %v6200_v59  ;;  %5125 = vmatpush.msra.mxu3 %v6200_v59 }
  0xe9   :  { %873 = vmatpush.msra.mxu1 %v6192_v55  ;;  %5126 = vmatpush.msra.mxu3 %v6192_v55 }
  0xeb   :  { %874 = vmatpush.msra.mxu1 %v6184_v51  ;;  %5127 = vmatpush.msra.mxu3 %v6184_v51 }
  0xed   :  { %875 = vmatpush.msra.mxu1 %v6236_v30  ;;  %5128 = vmatpush.msra.mxu3 %v6236_v30 }
  0xef   :  { %876 = vmatpush.msra.mxu1 %v6228_v10  ;;  %5129 = vmatpush.msra.mxu3 %v6228_v10 }
  0xf1   :  { %877 = vmatpush.msra.mxu1 %v6220_v5  ;;  %5130 = vmatpush.msra.mxu3 %v6220_v5 }
  0xf3   :  { %878 = vmatpush.msra.mxu1 %v6212_v1  ;;  %5131 = vmatpush.msra.mxu3 %v6212_v1 }
  0xf5   :  { %879 = vmatpush.msra.mxu1 %v6204_v61  ;;  %5132 = vmatpush.msra.mxu3 %v6204_v61 }
  0xf7   :  { %880 = vmatpush.msra.mxu1 %v6196_v57  ;;  %5133 = vmatpush.msra.mxu3 %v6196_v57 }
  0xf9   :  { %881 = vmatpush.msra.mxu1 %v6188_v53  ;;  %5134 = vmatpush.msra.mxu3 %v6188_v53 }
  0xfb   :  { %882 = vmatpush.msra.mxu1 %v6180_v49  ;;  %5135 = vmatpush.msra.mxu3 %v6180_v49 }
  0xfc   :  { %883 = vmatmul.f32.vlgmr.msra.gmra.mxu1 %v6049_v16  ;;  %907 = vmatmul.f32.vlgmr.msra.gmra.mxu3 %v6054_v17 }
 0x104   :  { %886 = vmatmul.f32.gmra.mxu1 %v6063_v18  ;;  %910 = vmatmul.f32.gmra.mxu3 %v6068_v19 }
 0x10c   :  { %889 = vmatmul.f32.gmra.mxu1 %v6075_v20  ;;  %913 = vmatmul.f32.gmra.mxu3 %v6080_v21 }
 0x114   :  { %892 = vmatmul.f32.gmra.mxu1 %v6087_v22  ;;  %916 = vmatmul.f32.gmra.mxu3 %v6092_v23 }
 0x11c   :  { %895 = vmatmul.f32.gmra.mxu1 %v6110_v28  ;;  %919 = vmatmul.f32.gmra.mxu3 %v6115_v29 }
 0x124   :  { %898 = vmatmul.f32.gmra.mxu1 %v6127_v33  ;;  %922 = vmatmul.f32.gmra.mxu3 %v6132_v34 }
 0x12c   :  { %901 = vmatmul.f32.gmra.mxu1 %v6145_v38  ;;  %925 = vmatmul.f32.gmra.mxu3 %v6150_v39 }
 0x134   :  { %904 = vmatmul.f32.gmra.mxu1 %v6163_v43  ;;  %928 = vmatmul.f32.gmra.mxu3 %v6168_v44 }
 0x179   :  { %v6292_v36 = vpop.f32.mrf.mxu1 }
 0x17a   :  { %v932_v37 = vmul.f32 %v6099_v24, %v6292_v36 }
 0x17c   :  { %948 = vadd.xlane.f32.xlu2 %v932_v37 }
 0x17f   :  { %v6296_v40 = vpop.f32.mrf.mxu3 }
 0x180   :  { %10678 = vst [vmem:[#allocation10_spill] sm:$0xff] %v6296_v40  ;;  %v940_v41 = vmul.f32 %v6099_v24, %v6296_v40 }
 0x181   :  { %v6300_v42 = vpop.f32.mrf.mxu1 }
 0x182   :  { %10679 = vst [vmem:[#allocation11_spill] sm:$0xff] %v6300_v42  ;;  %964 = vadd.xlane.f32.xlu1 %v940_v41  ;;  %v933_v45 = vmul.f32 %v6099_v24, %v6300_v42 }
 0x184   :  { %950 = vadd.xlane.f32.xlu0 %v933_v45 }
 0x187   :  { %v6304_v46 = vpop.f32.mrf.mxu3 }
 0x188   :  { %10680 = vst [vmem:[#allocation12_spill] sm:$0xff] %v6304_v46  ;;  %v941_v47 = vmul.f32 %v6099_v24, %v6304_v46 }
 0x189   :  { %v6308_v48 = vpop.f32.mrf.mxu1 }
 0x18a   :  { %10681 = vst [vmem:[#allocation13_spill] sm:$0xff] %v6308_v48  ;;  %966 = vadd.xlane.f32.xlu2 %v941_v47  ;;  %v934_v50 = vmul.f32 %v6099_v24, %v6308_v48 }
 0x18c   :  { %952 = vadd.xlane.f32.xlu1 %v934_v50 }
 0x18f   :  { %v6312_v52 = vpop.f32.mrf.mxu3 }
 0x190   :  { %10682 = vst [vmem:[#allocation14_spill] sm:$0xff] %v6312_v52  ;;  %v942_v54 = vmul.f32 %v6099_v24, %v6312_v52 }
 0x191   :  { %v6316_v56 = vpop.f32.mrf.mxu1 }
 0x192   :  { %10683 = vst [vmem:[#allocation15_spill] sm:$0xff] %v6316_v56  ;;  %968 = vadd.xlane.f32.xlu0 %v942_v54  ;;  %v935_v58 = vmul.f32 %v6099_v24, %v6316_v56 }
 0x194   :  { %954 = vadd.xlane.f32.xlu2 %v935_v58 }
 0x197   :  { %v6320_v60 = vpop.f32.mrf.mxu3 }
 0x198   :  { %10684 = vst [vmem:[#allocation16_spill] sm:$0xff] %v6320_v60  ;;  %v943_v62 = vmul.f32 %v6099_v24, %v6320_v60 }
 0x199   :  { %v6324_v0 = vpop.f32.mrf.mxu1 }
 0x19a   :  { %10685 = vst [vmem:[#allocation17_spill] sm:$0xff] %v6324_v0  ;;  %970 = vadd.xlane.f32.xlu1 %v943_v62  ;;  %v936_v2 = vmul.f32 %v6099_v24, %v6324_v0 }
 0x19c   :  { %956 = vadd.xlane.f32.xlu0 %v936_v2 }
 0x19f   :  { %v6328_v4 = vpop.f32.mrf.mxu3 }
 0x1a0   :  { %10686 = vst [vmem:[#allocation18_spill] sm:$0xff] %v6328_v4  ;;  %v944_v6 = vmul.f32 %v6099_v24, %v6328_v4 }
 0x1a1   :  { %v6332_v8 = vpop.f32.mrf.mxu1 }
 0x1a2   :  { %10687 = vst [vmem:[#allocation19_spill] sm:$0xff] %v6332_v8  ;;  %972 = vadd.xlane.f32.xlu2 %v944_v6  ;;  %v937_v25 = vmul.f32 %v6099_v24, %v6332_v8 }
 0x1a4   :  { %958 = vadd.xlane.f32.xlu1 %v937_v25 }
 0x1a7   :  { %v6336_v27 = vpop.f32.mrf.mxu3 }
 0x1a8   :  { %10688 = vst [vmem:[#allocation20_spill] sm:$0xff] %v6336_v27  ;;  %v945_v31 = vmul.f32 %v6099_v24, %v6336_v27 }
 0x1a9   :  { %v6340_v35 = vpop.f32.mrf.mxu1 }
 0x1aa   :  { %10689 = vst [vmem:[#allocation21_spill] sm:$0xff] %v6340_v35  ;;  %974 = vadd.xlane.f32.xlu0 %v945_v31  ;;  %v938_v37 = vmul.f32 %v6099_v24, %v6340_v35 }
 0x1ac   :  { %960 = vadd.xlane.f32.xlu2 %v938_v37 }
 0x1af   :  { %v6344_v41 = vpop.f32.mrf.mxu3 }
 0x1b0   :  { %10690 = vst [vmem:[#allocation22_spill] sm:$0xff] %v6344_v41  ;;  %v946_v45 = vmul.f32 %v6099_v24, %v6344_v41 }
 0x1b1   :  { %v6348_v47 = vpop.f32.mrf.mxu1 }
 0x1b2   :  { %10691 = vst [vmem:[#allocation23_spill] sm:$0xff] %v6348_v47  ;;  %976 = vadd.xlane.f32.xlu1 %v946_v45  ;;  %v939_v50 = vmul.f32 %v6099_v24, %v6348_v47 }
 0x1b4   :  { %962 = vadd.xlane.f32.xlu0 %v939_v50 }
 0x1b7   :  { %v6352_v54 = vpop.f32.mrf.mxu3 }
 0x1b8   :  { %10692 = vst [vmem:[#allocation24_spill] sm:$0xff] %v6352_v54  ;;  %1316 = vmatpush.msrb.mxu2 %v6352_v54  ;;  %v947_v58 = vmul.f32 %v6099_v24, %v6352_v54 }
 0x1ba   :  { %1317 = vmatpush.msrb.mxu2 %v6344_v41  ;;  %978 = vadd.xlane.f32.xlu2 %v947_v58 }
 0x1bc   :  { %1318 = vmatpush.msrb.mxu2 %v6336_v27 }
 0x1be   :  { %1319 = vmatpush.msrb.mxu2 %v6328_v4 }
 0x1c0   :  { %1320 = vmatpush.msrb.mxu2 %v6320_v60 }
 0x1c2   :  { %1321 = vmatpush.msrb.mxu2 %v6312_v52 }
 0x1c4   :  { %1322 = vmatpush.msrb.mxu2 %v6304_v46 }
 0x1c6   :  { %1323 = vmatpush.msrb.mxu2 %v6296_v40 }
 0x1c8   :  { %1324 = vmatpush.msrb.mxu2 %v6348_v47 }
 0x1ca   :  { %1325 = vmatpush.msrb.mxu2 %v6340_v35 }
 0x1cc   :  { %1326 = vmatpush.msrb.mxu2 %v6332_v8 }
 0x1ce   :  { %1327 = vmatpush.msrb.mxu2 %v6324_v0 }
 0x1d0   :  { %1328 = vmatpush.msrb.mxu2 %v6316_v56 }
 0x1d2   :  { %1329 = vmatpush.msrb.mxu2 %v6308_v48 }
 0x1d4   :  { %1330 = vmatpush.msrb.mxu2 %v6300_v42 }
 0x1d6   :  { %1331 = vmatpush.msrb.mxu2 %v6292_v36 }
 0x1d7   :  { %1332 = vmatmul.f32.vlgmr.msrb.gmra.mxu2 %v6049_v16  ;;  %v67_v16 = vpop.xlane.xlu0 %66 }
 0x1df   :  { %1335 = vmatmul.f32.gmra.mxu2 %v6063_v18  ;;  %v71_v18 = vpop.xlane.xlu1 %70 }
 0x1e7   :  { %1338 = vmatmul.f32.gmra.mxu2 %v6075_v20  ;;  %v69_v20 = vpop.xlane.xlu0 %68 }
 0x1e8   :  { %v4929_v62 = vmul.f32 -1.442695, %v69_v20 }
 0x1ef   :  { %1341 = vmatmul.f32.gmra.mxu2 %v6087_v22  ;;  %v75_v22 = vpop.xlane.xlu2 %74 }
 0x1f0   :  { %v4932_v2 = vmul.f32 -1.442695, %v75_v22 }
 0x1f7   :  { %1344 = vmatmul.f32.gmra.mxu2 %v6110_v28  ;;  %v73_v28 = vpop.xlane.xlu1 %72 }
 0x1f8   :  { %v4931_v6 = vmul.f32 -1.442695, %v73_v28 }
 0x1ff   :  { %1347 = vmatmul.f32.gmra.mxu2 %v6127_v33 }
 0x207   :  { %1350 = vmatmul.f32.gmra.mxu2 %v6145_v38 }
 0x20f   :  { %1353 = vmatmul.f32.gmra.mxu2 %v6163_v43 }
 0x217   :  { %1356 = vmatmul.f32.gmra.mxu2 %v6054_v17  ;;  %v79_v17 = vpop.xlane.xlu0 %78 }
 0x218   :  { %v4934_v45 = vmul.f32 -1.442695, %v79_v17 }
 0x21f   :  { %1359 = vmatmul.f32.gmra.mxu2 %v6068_v19  ;;  %v85_v38 = vpop.xlane.xlu0 %84 }
 0x220   :  { %v4937_v7 = vmul.f32 -1.442695, %v85_v38 }
 0x227   :  { %1362 = vmatmul.f32.gmra.mxu2 %v6080_v21  ;;  %v4928_v21 = vmul.f32 -1.442695, %v67_v16 }
 0x229   :  { %5137 = vpow2.f32 %v4928_v21 }
 0x22f   :  { %1365 = vmatmul.f32.gmra.mxu2 %v6092_v23  ;;  %v77_v23 = vpop.xlane.xlu2 %76 }
 0x230   :  { %v4933_v22 = vmul.f32 -1.442695, %v77_v23 }
 0x237   :  { %1368 = vmatmul.f32.gmra.mxu2 %v6115_v29  ;;  %v4930_v29 = vmul.f32 -1.442695, %v71_v18  ;;  %v83_v25 = vpop.xlane.xlu2 %82  ;;  %v6404_v18 = vpop.xlane.xlu0 %90 }
 0x238   :  { %v4940_v10 = vmul.f32 -1.442695, %v6404_v18 }
 0x239   :  { %5139 = vpow2.f32 %v4930_v29 }
 0x23a   :  { %5141 = vpow2.f32 %v4929_v62 }
 0x23b   :  { %5143 = vpow2.f32 %v4932_v2 }
 0x23c   :  { %5145 = vpow2.f32 %v4931_v6 }
 0x23f   :  { %1371 = vmatmul.f32.gmra.mxu2 %v6132_v34  ;;  %v6392_v34 = vpop.xlane.xlu1 %80  ;;  %v89_v21 = vpop.xlane.xlu2 %88 }
 0x240   :  { %10694 = vst [vmem:[#allocation26_spill] sm:$0xff] %v6392_v34 }
 0x247   :  { %1374 = vmatmul.f32.gmra.mxu2 %v6150_v39  ;;  %v87_v16 = vpop.xlane.xlu1 %86 }
 0x24f   :  { %1377 = vmatmul.f32.gmra.mxu2 %v6168_v44  ;;  %v5138_v44 = vpop.eup %5137 }
 0x250   :  { %v6398_v31 = vadd.f32 1.0, %v5138_v44  ;;  %v5140_v37 = vpop.eup %5139 }
 0x251   :  { %v6407_v20 = vadd.f32 1.0, %v5140_v37  ;;  %v5142_v28 = vpop.eup %5141 }
 0x252   :  { %5147 = vrcp.f32 %v6398_v31  ;;  %v6414_v44 = vadd.f32 1.0, %v5142_v28  ;;  %vm167_vm0 = vweird.f32 %v6398_v31 }
 0x253   :  { %5149 = vpow2.f32 %v4934_v45  ;;  %v6424_v45 = vpop.xlane.xlu1 %92  ;;  %v203_v26 = vand.u32 2147483648, %v6407_v20  ;;  %vm197_vm1 = vweird.f32 %v6407_v20 }
 0x254   :  { %5151 = vrcp.f32 %v6407_v20  ;;  %10698 = vst [vmem:[#allocation30_spill] sm:$0xff] %v6424_v45  ;;  %vm182_vm4 = vweird.f32 %v6414_v44 }
 0x255   :  { %5153 = vpow2.f32 %v4933_v22  ;;  %v6466_v4 = vor.u32 1.1754944e-38, %v203_v26  ;;  %v186_v26 = vand.u32 2147483647, %v6414_v44 }
 0x256   :  { %5155 = vrcp.f32 %v6414_v44 }
 0x257   :  { %vm6545_vm12 = vcmp.eq.f32.partialorder %v186_v26, 8.507059e+37 }
 0x25a   :  { %v6388_v33 = vpop.f32.mrf.mxu2 }
 0x25b   :  { %10693 = vst [vmem:[#allocation25_spill] sm:$0xff] %v6388_v33  ;;  %v1381_v19 = vmul.f32 %v6099_v24, %v6388_v33  ;;  %v6468_v3 = vpop.xlane.xlu1 %499 }
 0x25d   :  { %1397 = vadd.xlane.f32.xlu0 %v1381_v19  ;;  %v5144_v19 = vpop.eup %5143 }
 0x25e   :  { %v5146_v17 = vpop.eup %5145  ;;  %v6418_v6 = vadd.f32 1.0, %v5144_v19 }
 0x25f   :  { %v6420_v23 = vadd.f32 1.0, %v5146_v17  ;;  %v171_v17 = vand.u32 2147483647, %v6398_v31 }
 0x260   :  { %5157 = vrcp.f32 %v6418_v6  ;;  %vm227_vm8 = vweird.f32 %v6418_v6  ;;  %v231_v0 = vand.u32 2147483647, %v6418_v6 }
 0x261   :  { %5159 = vrcp.f32 %v6420_v23  ;;  %vm6460_vm2 = vcmp.eq.f32.partialorder %v171_v17, 8.507059e+37  ;;  %vm212_vm9 = vweird.f32 %v6420_v23  ;;  %v216_v18 = vand.u32 2147483647, %v6420_v23 }
 0x262   :  { %v6394_v39 = vpop.f32.mrf.mxu2  ;;  %v218_v40 = vand.u32 2147483648, %v6420_v23  ;;  %vm6550_vm13 = vcmp.eq.f32.partialorder %v231_v0, 8.507059e+37 }
 0x263   :  { %10695 = vst [vmem:[#allocation27_spill] sm:$0xff] %v6394_v39  ;;  %v1382_v43 = vmul.f32 %v6099_v24, %v6394_v39 }
 0x265   :  { %1399 = vadd.xlane.f32.xlu1 %v1382_v43  ;;  %v6412_v43 = vpop.eup %5147 }
 0x266   :  { %v5150_v2 = vpop.eup %5149  ;;  %v163_v37 = vmul.f32 %v6412_v43, %v6398_v31  ;;  %vm168_vm3 = vweird.f32 %v6412_v43 }
 0x267   :  { %v6428_v22 = vpop.eup %5151  ;;  %v6431_v28 = vadd.f32 1.0, %v5150_v2  ;;  %vm6492_vm5 = vmor %vm167_vm0, %vm168_vm3  ;;  %vm6562_vm0 = vcmp.eq.f32.partialorder %v216_v18, 8.507059e+37 }
 0x268   :  { %v5154_v54 = vpop.eup %5153  ;;  %v164_v19 = vsub.f32 1.0, %v163_v37  ;;  %v193_v27 = vmul.f32 %v6428_v22, %v6407_v20  ;;  %v6447_v37 = vpop.xlane.xlu2 %94  ;;  %vm198_vm6 = vweird.f32 %v6428_v22 }
 0x269   :  { %5161 = vrcp.f32 %v6431_v28  ;;  %v6442_v32 = vadd.f32 1.0, %v5154_v54  ;;  %10701 = vst [vmem:[#allocation33_spill] sm:$0xff] %v6447_v37  ;;  %v201_v37 = vand.u32 2147483647, %v6407_v20  ;;  %vm6523_vm10 = vmor %vm197_vm1, %vm198_vm6  ;;  %vm257_vm14 = vweird.f32 %v6431_v28 }
 0x26a   :  { %v6400_v50 = vpop.f32.mrf.mxu2  ;;  %v165_v30 = vmul.f32 %v6412_v43, %v164_v19  ;;  %v194_v38 = vsub.f32 1.0, %v193_v27  ;;  %v188_v19 = vand.u32 2147483648, %v6414_v44  ;;  %v261_v0 = vand.u32 2147483647, %v6431_v28 }
 0x26b   :  { %10696 = vst [vmem:[#allocation28_spill] sm:$0xff] %v6400_v50  ;;  %v1383_v58 = vmul.f32 %v6099_v24, %v6400_v50  ;;  %5163 = vrcp.f32 %v6442_v32  ;;  %vm6497_vm7 = vcmp.eq.f32.partialorder %v201_v37, 8.507059e+37 }
 0x26c   :  { %5165 = vpow2.f32 %v4937_v7  ;;  %v166_v52 = vadd.f32 %v6412_v43, %v165_v30  ;;  %v195_v46 = vmul.f32 %v6428_v22, %v194_v38  ;;  %v233_v30 = vand.u32 2147483648, %v6418_v6 }
 0x26d   :  { %1401 = vadd.xlane.f32.xlu2 %v1383_v58  ;;  %v6426_v58 = vpop.xlane.xlu0 %96  ;;  %vm6612_vm6 = vcmp.eq.f32.partialorder %v261_v0, 8.507059e+37 }
 0x26e   :  { %10699 = vst [vmem:[#allocation31_spill] sm:$0xff] %v6426_v58  ;;  %v6449_v58 = vpop.eup %5155 }
 0x26f   :  { %v6451_v45 = vpop.eup %5157  ;;  %v178_v27 = vmul.f32 %v6449_v58, %v6414_v44  ;;  %vm183_vm11 = vweird.f32 %v6449_v58 }
 0x270   :  { %v6457_v54 = vpop.eup %5159  ;;  %v223_v7 = vmul.f32 %v6451_v45, %v6418_v6  ;;  %v6511_v48 = vpop.xlane.xlu2 %501  ;;  %vm228_vm15 = vweird.f32 %v6451_v45 }
 0x271   :  { %v6472_v63 = vpop.eup %5161  ;;  %v179_v35 = vsub.f32 1.0, %v178_v27  ;;  %v196_v27 = vadd.f32 %v6428_v22, %v195_v46  ;;  %v6531_v46 = vpop.xlane.xlu1 %517  ;;  %vm213_vm1 = vweird.f32 %v6457_v54  ;;  %vm6591_vm3 = vmor %vm227_vm8, %vm228_vm15  ;;  %vm242_vm8 = vweird.f32 %v6442_v32 }
 0x272   :  { %v6410_v29 = vpop.f32.mrf.mxu2  ;;  %v253_v38 = vmul.f32 %v6472_v63, %v6431_v28  ;;  %v224_v37 = vsub.f32 1.0, %v223_v7 }
 0x273   :  { %10697 = vst [vmem:[#allocation29_spill] sm:$0xff] %v6410_v29  ;;  %v1384_v62 = vmul.f32 %v6099_v24, %v6410_v29 }
 0x274   :  { %v225_v50 = vmul.f32 %v6451_v45, %v224_v37  ;;  %v263_v37 = vand.u32 2147483648, %v6431_v28 }
 0x275   :  { %1403 = vadd.xlane.f32.xlu0 %v1384_v62  ;;  %v173_v62 = vand.u32 2147483648, %v6398_v31  ;;  %v6470_v60 = vpop.xlane.xlu0 %515  ;;  %v6506_v31 = vor.u32 1.1754944e-38, %v188_v19 }
 0x276   :  { %v264_v29 = vor.u32 1.1754944e-38, %v263_v37  ;;  %v4952_v59 = vmul.f32 -1.442695, %v6470_v60  ;;  %v4945_v37 = vmul.f32 -1.442695, %v6511_v48 }
 0x277   :  { %v6454_v47 = vor.u32 1.1754944e-38, %v173_v62  ;;  %v4938_v62 = vmul.f32 -1.442695, %v87_v16  ;;  %v208_v16 = vmul.f32 %v6457_v54, %v6420_v23 }
 0x279   :  { %v209_v56 = vsub.f32 1.0, %v208_v16  ;;  %v180_v16 = vmul.f32 %v6449_v58, %v179_v35 }
 0x27a   :  { %v6437_v41 = vpop.f32.mrf.mxu2 }
 0x27b   :  { %10700 = vst [vmem:[#allocation32_spill] sm:$0xff] %v6437_v41  ;;  %v1385_v2 = vmul.f32 %v6099_v24, %v6437_v41 }
 0x27d   :  { %1405 = vadd.xlane.f32.xlu1 %v1385_v2  ;;  %v4936_v2 = vmul.f32 -1.442695, %v83_v25  ;;  %v4939_v25 = vmul.f32 -1.442695, %v89_v21 }
 0x27f   :  { %5167 = vpow2.f32 %v4936_v2  ;;  %v6504_v2 = vpop.eup %5163 }
 0x280   :  { %5169 = vpow2.f32 %v4938_v62  ;;  %v5166_v8 = vpop.eup %5165  ;;  %v170_v62 = vsel %vm6492_vm5, %v6412_v43, %v166_v52  ;;  %v254_v52 = vsub.f32 1.0, %v253_v38  ;;  %v6533_v43 = vpop.xlane.xlu0 %503  ;;  %v238_v20 = vmul.f32 %v6504_v2, %v6442_v32  ;;  %vm6608_vm5 = vmor %vm212_vm9, %vm213_vm1 }
 0x281   :  { %5171 = vpow2.f32 %v4939_v25  ;;  %v6528_v25 = vor.u32 1.1754944e-38, %v233_v30  ;;  %v6543_v30 = vsel %vm6460_vm2, %v6454_v47, %v170_v62  ;;  %v200_v47 = vsel %vm6523_vm10, %v6428_v22, %v196_v27  ;;  %vm6579_vm2 = vmor %vm182_vm4, %vm183_vm11 }
 0x282   :  { %v6484_v17 = vpop.f32.mrf.mxu2  ;;  %5173 = vpow2.f32 %v4940_v10  ;;  %v255_v26 = vmul.f32 %v6472_v63, %v254_v52  ;;  %v181_v22 = vadd.f32 %v6449_v58, %v180_v16  ;;  %v239_v18 = vsub.f32 1.0, %v238_v20  ;;  %v6599_v20 = vpop.xlane.xlu2 %519 }
 0x283   :  { %v1386_v21 = vmul.f32 %v6099_v24, %v6484_v17  ;;  %v226_v52 = vadd.f32 %v6451_v45, %v225_v50  ;;  %vm258_vm4 = vweird.f32 %v6472_v63  ;;  %v205_v50 = vsel %vm6497_vm7, %v6466_v4, %v200_v47  ;;  %v6620_v4 = vpop.xlane.xlu1 %505 }
 0x284   :  { %v256_v42 = vadd.f32 %v6472_v63, %v255_v26  ;;  %vm6631_vm7 = vmor %vm257_vm14, %vm258_vm4  ;;  %v240_v47 = vmul.f32 %v6504_v2, %v239_v18  ;;  %vm243_vm9 = vweird.f32 %v6504_v2  ;;  %v248_v27 = vand.u32 2147483648, %v6442_v32 }
 0x285   :  { %1407 = vadd.xlane.f32.xlu2 %v1386_v21  ;;  %v5168_v7 = vpop.eup %5167  ;;  %v6538_v21 = vadd.f32 1.0, %v5166_v8  ;;  %v210_v8 = vmul.f32 %v6457_v54, %v209_v56  ;;  %v230_v60 = vsel %vm6591_vm3, %v6451_v45, %v226_v52  ;;  %vm6673_vm10 = vmor %vm242_vm8, %vm243_vm9  ;;  %v6686_v35 = vmul.f32 %v6543_v30, %v6042_v15 }
 0x286   :  { %v5170_v39 = vpop.eup %5169  ;;  %v6572_v62 = vadd.f32 1.0, %v5168_v7  ;;  %v235_v48 = vsel %vm6550_vm13, %v6528_v25, %v230_v60  ;;  %v241_v52 = vadd.f32 %v6504_v2, %v240_v47  ;;  %v6689_v34 = vmul.f32 %v205_v50, %v6028_v13 }
 0x287   :  { %v5172_v33 = vpop.eup %5171  ;;  %5175 = vrcp.f32 %v6538_v21  ;;  %v6584_v19 = vadd.f32 1.0, %v5170_v39  ;;  %v211_v44 = vadd.f32 %v6457_v54, %v210_v8  ;;  %v219_v8 = vor.u32 1.1754944e-38, %v218_v40 }
 0x288   :  { %v6597_v16 = vadd.f32 1.0, %v5172_v33  ;;  %v5174_v39 = vpop.eup %5173  ;;  %v4944_v33 = vmul.f32 -1.442695, %v6468_v3  ;;  %5177 = vrcp.f32 %v6572_v62  ;;  %v6622_v23 = vpop.xlane.xlu0 %521  ;;  %v185_v40 = vsel %vm6579_vm2, %v6449_v58, %v181_v22 }
 0x289   :  { %5179 = vrcp.f32 %v6584_v19  ;;  %v215_v58 = vsel %vm6608_vm5, %v6457_v54, %v211_v44  ;;  %v6644_v0 = vadd.f32 1.0, %v5174_v39  ;;  %v260_v54 = vsel %vm6631_vm7, %v6472_v63, %v256_v42  ;;  %v5841_v42 = vld [vmem:[%s10601_s1 + $0x28] sm:$0xff] }
 0x28a   :  { %v6556_v10 = vpop.f32.mrf.mxu2  ;;  %5181 = vrcp.f32 %v6597_v16  ;;  %v246_v22 = vand.u32 2147483647, %v6442_v32  ;;  %v190_v18 = vsel %vm6545_vm12, %v6506_v31, %v185_v40  ;;  %v220_v63 = vsel %vm6562_vm0, %v219_v8, %v215_v58  ;;  %v6680_v25 = vpop.xlane.xlu2 %507 }
 0x28b   :  { %v1387_v56 = vmul.f32 %v6099_v24, %v6556_v10  ;;  %10726 = vst [vmem:[#allocation34_spill] sm:$0xff] %v6644_v0  ;;  %5183 = vpow2.f32 %v4944_v33  ;;  %v265_v32 = vsel %vm6612_vm6, %v264_v29, %v260_v54  ;;  %v6696_v39 = vmul.f32 %v190_v18, %v6035_v14  ;;  %v6705_v30 = vpop.xlane.xlu1 %523 }
 0x28c   :  { %5185 = vpow2.f32 %v4952_v59  ;;  %v6699_v6 = vmul.f32 %v235_v48, %v6016_v11  ;;  %vm6701_vm11 = vcmp.eq.f32.partialorder %v246_v22, 8.507059e+37  ;;  %v249_v15 = vor.u32 1.1754944e-38, %v248_v27 }
 0x28d   :  { %1409 = vadd.xlane.f32.xlu0 %v1387_v56  ;;  %v6649_v26 = vpop.eup %5175  ;;  %5187 = vrcp.f32 %v6644_v0  ;;  %v6710_v29 = vmul.f32 %v220_v63, %v6021_v12  ;;  %v245_v14 = vsel %vm6673_vm10, %v6504_v2, %v241_v52  ;;  %v4953_v56 = vmul.f32 -1.442695, %v6531_v46 }
 0x28e   :  { %v6667_v7 = vpop.eup %5177  ;;  %v298_v31 = vmul.f32 %v6649_v26, %v6538_v21  ;;  %5189 = vpow2.f32 %v4945_v37  ;;  %10730 = vst [vmem:[#allocation36_spill] sm:$0xff] %v6699_v6  ;;  %v6719_v59 = vmul.f32 %v265_v32, %v6004_v9  ;;  %v4946_v12 = vmul.f32 -1.442695, %v6533_v43 }
 0x28f   :  { %v6682_v38 = vpop.eup %5179  ;;  %v283_v11 = vmul.f32 %v6667_v7, %v6572_v62  ;;  %vm302_vm12 = vweird.f32 %v6538_v21  ;;  %v306_v2 = vand.u32 2147483647, %v6538_v21  ;;  %v308_v60 = vand.u32 2147483648, %v6538_v21 }
 0x290   :  { %v6693_v44 = vpop.eup %5181  ;;  %v6707_v13 = vpop.xlane.xlu0 %509  ;;  %10733 = vst [vmem:[#allocation37_spill] sm:$0xff] %v6719_v59  ;;  %v299_v40 = vsub.f32 1.0, %v298_v31  ;;  %v313_v3 = vmul.f32 %v6682_v38, %v6584_v19  ;;  %v250_v9 = vsel %vm6701_vm11, %v249_v15, %v245_v14  ;;  %v291_v37 = vand.u32 2147483647, %v6572_v62 }
 0x291   :  { %v5184_v50 = vpop.eup %5183  ;;  %v328_v43 = vmul.f32 %v6693_v44, %v6597_v16  ;;  %v284_v22 = vsub.f32 1.0, %v283_v11  ;;  %v293_v27 = vand.u32 2147483648, %v6572_v62  ;;  %5191 = vpow2.f32 %v4953_v56 }
 0x292   :  { %v6647_v28 = vpop.f32.mrf.mxu2  ;;  %v5186_v33 = vpop.eup %5185  ;;  %v300_v48 = vmul.f32 %v6649_v26, %v299_v40  ;;  %vm287_vm13 = vweird.f32 %v6572_v62  ;;  %v314_v52 = vsub.f32 1.0, %v313_v3  ;;  %5193 = vpow2.f32 %v4946_v12 }
 0x293   :  { %10727 = vst [vmem:[#allocation35_spill] sm:$0xff] %v6647_v28  ;;  %v1388_v45 = vmul.f32 %v6099_v24, %v6647_v28  ;;  %v6731_v58 = vpop.eup %5187  ;;  %v6741_v18 = vadd.f32 1.0, %v5186_v33  ;;  %v6745_v63 = vpop.xlane.xlu2 %525  ;;  %v6750_v31 = vmul.f32 %v5841_v42, %v250_v9  ;;  %vm303_vm14 = vweird.f32 %v6649_v26 }
 0x294   :  { %10734 = vst [vmem:[#allocation38_spill] sm:$0xff] %v6731_v58  ;;  %v5190_v54 = vpop.eup %5189  ;;  %vm6753_vm15 = vcmp.eq.f32.partialorder %v306_v2, 8.507059e+37  ;;  %v309_v8 = vor.u32 1.1754944e-38, %v308_v60  ;;  %v343_v15 = vmul.f32 %v6731_v58, %v6644_v0  ;;  %v6762_v11 = vpop.xlane.xlu1 %511  ;;  %v285_v33 = vmul.f32 %v6667_v7, %v284_v22  ;;  %vm6783_vm2 = vmor %vm302_vm12, %vm303_vm14 }
 0x295   :  { %1411 = vadd.xlane.f32.xlu1 %v1388_v45  ;;  %v6738_v45 = vadd.f32 1.0, %v5184_v50  ;;  %10735 = vst [vmem:[#allocation39_spill] sm:$0xff] %v6745_v63  ;;  %v329_v50 = vsub.f32 1.0, %v328_v43  ;;  %v6760_v14 = vadd.f32 1.0, %v5190_v54  ;;  %vm6767_vm0 = vcmp.eq.f32.partialorder %v291_v37, 8.507059e+37 }
 0x296   :  { %10736 = vst [vmem:[#allocation40_spill] sm:$0xff] %v6750_v31  ;;  %v294_v3 = vor.u32 1.1754944e-38, %v293_v27  ;;  %v321_v12 = vand.u32 2147483647, %v6584_v19  ;;  %v301_v2 = vadd.f32 %v6649_v26, %v300_v48  ;;  %v315_v60 = vmul.f32 %v6682_v38, %v314_v52 }
 0x297   :  { %5195 = vrcp.f32 %v6738_v45  ;;  %vm317_vm1 = vweird.f32 %v6584_v19  ;;  %v5192_v43 = vpop.eup %5191  ;;  %vm288_vm3 = vweird.f32 %v6667_v7  ;;  %vm347_vm4 = vweird.f32 %v6644_v0 }
 0x298   :  { %v6764_v56 = vpop.xlane.xlu0 %527  ;;  %5197 = vrcp.f32 %v6741_v18  ;;  %v4947_v54 = vmul.f32 -1.442695, %v6620_v4  ;;  %v5194_v27 = vpop.eup %5193  ;;  %vm318_vm5 = vweird.f32 %v6682_v38  ;;  %v344_v48 = vsub.f32 1.0, %v343_v15  ;;  %vm6811_vm8 = vmor %vm287_vm13, %vm288_vm3 }
 0x299   :  { %10739 = vst [vmem:[#allocation41_spill] sm:$0xff] %v6764_v56  ;;  %v330_v52 = vmul.f32 %v6693_v44, %v329_v50  ;;  %5199 = vrcp.f32 %v6760_v14  ;;  %v286_v21 = vadd.f32 %v6667_v7, %v285_v33  ;;  %vm6796_vm6 = vcmp.eq.f32.partialorder %v321_v12, 8.507059e+37  ;;  %vm6827_vm10 = vmor %vm317_vm1, %vm318_vm5 }
 0x29a   :  { %v6724_v47 = vpop.f32.mrf.mxu2  ;;  %vm332_vm7 = vweird.f32 %v6597_v16  ;;  %v336_v4 = vand.u32 2147483647, %v6597_v16  ;;  %v305_v15 = vsel %vm6783_vm2, %v6649_v26, %v301_v2  ;;  %v316_v33 = vadd.f32 %v6682_v38, %v315_v60 }
 0x29b   :  { %v1389_v46 = vmul.f32 %v6099_v24, %v6724_v47  ;;  %vm333_vm9 = vweird.f32 %v6693_v44  ;;  %v6817_v12 = vadd.f32 1.0, %v5192_v43  ;;  %v338_v2 = vand.u32 2147483648, %v6597_v16 }
 0x29c   :  { %v6832_v60 = vadd.f32 1.0, %v5194_v27  ;;  %5201 = vpow2.f32 %v4947_v54  ;;  %v345_v43 = vmul.f32 %v6731_v58, %v344_v48  ;;  %v353_v37 = vand.u32 2147483648, %v6644_v0  ;;  %v6838_v59 = vpop.xlane.xlu1 %529  ;;  %vm6852_vm12 = vmor %vm332_vm7, %vm333_vm9 }
 0x29d   :  { %1413 = vadd.xlane.f32.xlu2 %v1389_v46  ;;  %v323_v46 = vand.u32 2147483648, %v6584_v19  ;;  %v331_v63 = vadd.f32 %v6693_v44, %v330_v52  ;;  %10751 = vst [vmem:[#allocation43_spill] sm:$0xff] %v6838_v59  ;;  %v290_v27 = vsel %vm6811_vm8, %v6667_v7, %v286_v21  ;;  %vm348_vm11 = vweird.f32 %v6731_v58 }
 0x29e   :  { %v320_v32 = vsel %vm6827_vm10, %v6682_v38, %v316_v33  ;;  %vm6863_vm13 = vcmp.eq.f32.partialorder %v336_v4, 8.507059e+37  ;;  %5203 = vrcp.f32 %v6817_v12  ;;  %v339_v52 = vor.u32 1.1754944e-38, %v338_v2  ;;  %v6877_v38 = vld [vmem:[%s10602_s2] ss:$0 sm:$0xff]  ;;  %vm6895_vm14 = vmor %vm347_vm4, %vm348_vm11 }
 0x29f   :  { %v324_v26 = vor.u32 1.1754944e-38, %v323_v46  ;;  %v310_v46 = vsel %vm6753_vm15, %v309_v8, %v305_v15  ;;  %5205 = vrcp.f32 %v6832_v60  ;;  %v4948_v21 = vmul.f32 -1.442695, %v6680_v25 }
 0x2a0   :  { %v6840_v19 = vpop.xlane.xlu0 %950  ;;  %v295_v15 = vsel %vm6767_vm0, %v294_v3, %v290_v27  ;;  %v6884_v50 = vadd.f32 %v6731_v58, %v345_v43  ;;  %v335_v33 = vsel %vm6852_vm12, %v6693_v44, %v331_v63  ;;  %v10757_v2 = vmov 0  ;;  %v5843_v27 = vld [vmem:[%s10601_s1 + $0x48] sm:$0xff] }
 0x2a1   :  { %v325_v62 = vsel %vm6796_vm6, %v324_v26, %v320_v32  ;;  %v10758_v2 = vsel %vm6895_vm14, 4294967295, %v10757_v2  ;;  %v4949_v43 = vmul.f32 -1.442695, %v6707_v13  ;;  %v6903_v63 = vor.u32 1.1754944e-38, %v353_v37  ;;  %v5844_v37 = vld [vmem:[%s10601_s1 + $0x40] sm:$0xff] }
 0x2a2   :  { %v6777_v9 = vpop.f32.mrf.mxu2  ;;  %10756 = vst [vmem:[#allocation44_spill] sm:$0xff] %v6884_v50  ;;  %v604_v42 = vand.u32 2147483647, %v6738_v45  ;;  %v6909_v54 = vmul.f32 %v5843_v27, %v310_v46  ;;  %v606_v13 = vand.u32 2147483648, %v6738_v45  ;;  %vm600_vm15 = vweird.f32 %v6738_v45 }
 0x2a3   :  { %v1390_v22 = vmul.f32 %v6099_v24, %v6777_v9  ;;  %v6802_v24 = vpop.eup %5195  ;;  %10759 = vst [vmem:[#allocation45_spill] sm:$0xff] %v10758_v2  ;;  %vm720_vm2 = vweird.f32 %v6741_v18  ;;  %vm615_vm5 = vweird.f32 %v6760_v14  ;;  %vm630_vm11 = vweird.f32 %v6832_v60 }
 0x2a4   :  { %v6821_v56 = vpop.eup %5197  ;;  %10760 = vst [vmem:[#allocation46_spill] sm:$0xff] %v6903_v63  ;;  %vm6945_vm0 = vcmp.eq.f32.partialorder %v604_v42, 8.507059e+37  ;;  %vm601_vm1 = vweird.f32 %v6802_v24 }
 0x2a5   :  { %1415 = vadd.xlane.f32.xlu0 %v1390_v22  ;;  %v6819_v22 = vpop.xlane.xlu2 %513  ;;  %v6858_v48 = vpop.eup %5199  ;;  %v716_v16 = vmul.f32 %v6821_v56, %v6741_v18  ;;  %vm6968_vm3 = vmor %vm600_vm15, %vm601_vm1  ;;  %vm721_vm4 = vweird.f32 %v6821_v56  ;;  %vm735_vm15 = vweird.f32 %v6817_v12 }
 0x2a6   :  { %10748 = vst [vmem:[#allocation42_spill] sm:$0xff] %v6819_v22  ;;  %v4954_v22 = vmul.f32 -1.442695, %v6599_v20  ;;  %v596_v20 = vmul.f32 %v6802_v24, %v6738_v45  ;;  %v5202_v25 = vpop.eup %5201  ;;  %v611_v3 = vmul.f32 %v6858_v48, %v6760_v14  ;;  %vm616_vm6 = vweird.f32 %v6858_v48  ;;  %vm6995_vm7 = vmor %vm720_vm2, %vm721_vm4 }
 0x2a7   :  { %v6914_v32 = vpop.eup %5203  ;;  %v621_v45 = vand.u32 2147483648, %v6760_v14  ;;  %vm7011_vm9 = vmor %vm615_vm5, %vm616_vm6 }
 0x2a8   :  { %5207 = vpow2.f32 %v4954_v22  ;;  %v597_v40 = vsub.f32 1.0, %v596_v20  ;;  %v717_v22 = vsub.f32 1.0, %v716_v16  ;;  %v340_v20 = vsel %vm6863_vm13, %v339_v52, %v335_v33  ;;  %v6934_v33 = vpop.xlane.xlu0 %968  ;;  %v6936_v27 = vpop.eup %5205 }
 0x2a9   :  { %5209 = vpow2.f32 %v4948_v21  ;;  %v6919_v16 = vmul.f32 %v5844_v37, %v295_v15  ;;  %v6930_v52 = vadd.f32 1.0, %v5202_v25  ;;  %v6932_v21 = vpop.xlane.xlu1 %964  ;;  %10762 = vst [vmem:[#allocation48_spill] sm:$0xff] %v6934_v33  ;;  %v612_v37 = vsub.f32 1.0, %v611_v3 }
 0x2aa   :  { %v6870_v8 = vpop.f32.mrf.mxu2  ;;  %v598_v15 = vmul.f32 %v6802_v24, %v597_v40  ;;  %5211 = vpow2.f32 %v4949_v43  ;;  %v718_v7 = vmul.f32 %v6821_v56, %v717_v22  ;;  %v607_v40 = vor.u32 1.1754944e-38, %v606_v13 }
 0x2ab   :  { %v1391_v4 = vmul.f32 %v6877_v38, %v6870_v8  ;;  %v731_v43 = vmul.f32 %v6914_v32, %v6817_v12  ;;  %v626_v42 = vmul.f32 %v6936_v27, %v6832_v60  ;;  %5213 = vrcp.f32 %v6930_v52 }
 0x2ac   :  { %v4955_v22 = vmul.f32 -1.442695, %v6622_v23  ;;  %v613_v13 = vmul.f32 %v6858_v48, %v612_v37  ;;  %v719_v50 = vadd.f32 %v6821_v56, %v718_v7  ;;  %v724_v23 = vand.u32 2147483647, %v6741_v18 }
 0x2ad   :  { %1417 = vadd.xlane.f32.xlu1 %v1391_v4  ;;  %v949_v26 = vpop.xlane.xlu2 %948  ;;  %v5845_v4 = vld [vmem:[%s10601_s1 + $0x50] sm:$0xff]  ;;  %v622_v31 = vor.u32 1.1754944e-38, %v621_v45  ;;  %vm631_vm12 = vweird.f32 %v6936_v27  ;;  %v739_v45 = vand.u32 2147483647, %v6817_v12  ;;  %vm736_vm13 = vweird.f32 %v6914_v32 }
 0x2ae   :  { %v6924_v46 = vmul.f32 %v5845_v4, %v325_v62  ;;  %v4960_v44 = vmul.f32 -1.442695, %v949_v26  ;;  %v5208_v62 = vpop.eup %5207  ;;  %v5846_v4 = vld [vmem:[%s10601_s1 + $0x58] sm:$0xff]  ;;  %vm725_vm8 = vcmp.eq.f32.partialorder %v724_v23, 8.507059e+37  ;;  %vm7078_vm1 = vmor %vm735_vm15, %vm736_vm13  ;;  %vm645_vm4 = vweird.f32 %v6930_v52 }
 0x2af   :  { %v6942_v59 = vmul.f32 %v5846_v4, %v340_v20  ;;  %v5210_v26 = vpop.eup %5209  ;;  %v599_v20 = vadd.f32 %v6802_v24, %v598_v15  ;;  %v6964_v4 = vadd.f32 1.0, %v5208_v62  ;;  %v726_v15 = vand.u32 2147483648, %v6741_v18 }
 0x2b0   :  { %10761 = vst [vmem:[#allocation47_spill] sm:$0xff] %v6924_v46  ;;  %5215 = vpow2.f32 %v4960_v44  ;;  %v5212_v58 = vpop.eup %5211  ;;  %v619_v44 = vand.u32 2147483647, %v6760_v14  ;;  %v732_v62 = vsub.f32 1.0, %v731_v43  ;;  %v6982_v7 = vadd.f32 1.0, %v5210_v26  ;;  %v6986_v0 = vpop.xlane.xlu0 %956 }
 0x2b1   :  { %10763 = vst [vmem:[#allocation49_spill] sm:$0xff] %v6942_v59  ;;  %5217 = vpow2.f32 %v4955_v22  ;;  %v6984_v2 = vpop.xlane.xlu1 %952  ;;  %v603_v46 = vsel %vm6968_vm3, %v6802_v24, %v599_v20  ;;  %v614_v43 = vadd.f32 %v6858_v48, %v613_v13  ;;  %v7002_v22 = vpop.eup %5213  ;;  %v723_v59 = vsel %vm6995_vm7, %v6821_v56, %v719_v50 }
 0x2b2   :  { %v6950_v63 = vpop.f32.mrf.mxu2  ;;  %5219 = vrcp.f32 %v6964_v4  ;;  %v727_v24 = vor.u32 1.1754944e-38, %v726_v15  ;;  %v7015_v26 = vadd.f32 1.0, %v5212_v58  ;;  %vm7019_vm10 = vcmp.eq.f32.partialorder %v619_v44, 8.507059e+37 }
 0x2b3   :  { %v1392_v3 = vmul.f32 %v6877_v38, %v6950_v63  ;;  %v4961_v56 = vmul.f32 -1.442695, %v6840_v19  ;;  %v608_v14 = vsel %vm6945_vm0, %v607_v40, %v603_v46  ;;  %v733_v23 = vmul.f32 %v6914_v32, %v732_v62  ;;  %vm7063_vm0 = vmor %vm630_vm11, %vm631_vm12 }
 0x2b4   :  { %5221 = vrcp.f32 %v6982_v7  ;;  %v728_v15 = vsel %vm725_vm8, %v727_v24, %v723_v59  ;;  %v618_v44 = vsel %vm7011_vm9, %v6858_v48, %v614_v43  ;;  %v641_v46 = vmul.f32 %v7002_v22, %v6930_v52 }
 0x2b5   :  { %1419 = vadd.xlane.f32.xlu2 %v1392_v3  ;;  %v6980_v37 = vpop.xlane.xlu2 %966  ;;  %v627_v3 = vsub.f32 1.0, %v626_v42  ;;  %v4950_v42 = vmul.f32 -1.442695, %v6762_v11  ;;  %v741_v48 = vand.u32 2147483648, %v6817_v12  ;;  %v636_v62 = vand.u32 2147483648, %v6832_v60 }
 0x2b6   :  { %v5216_v11 = vpop.eup %5215  ;;  %v734_v43 = vadd.f32 %v6914_v32, %v733_v23  ;;  %v634_v59 = vand.u32 2147483647, %v6832_v60  ;;  %vm7082_vm2 = vcmp.eq.f32.partialorder %v739_v45, 8.507059e+37  ;;  %v4962_v45 = vmul.f32 -1.442695, %v6984_v2 }
 0x2b7   :  { %v628_v58 = vmul.f32 %v6936_v27, %v627_v3  ;;  %5223 = vpow2.f32 %v4950_v42  ;;  %v5218_v19 = vpop.eup %5217  ;;  %v7039_v25 = vadd.f32 1.0, %v5216_v11  ;;  %v835_v11 = vmul.f32 %v608_v14, %v6180_v49 }
 0x2b8   :  { %5225 = vrcp.f32 %v7015_v26  ;;  %v7041_v40 = vpop.eup %5219  ;;  %v7052_v18 = vpop.xlane.xlu0 %974  ;;  %v642_v14 = vsub.f32 1.0, %v641_v46  ;;  %vm635_vm3 = vcmp.eq.f32.partialorder %v634_v59, 8.507059e+37  ;;  %vm646_vm5 = vweird.f32 %v7002_v22 }
 0x2b9   :  { %5227 = vpow2.f32 %v4961_v56  ;;  %v629_v42 = vadd.f32 %v6936_v27, %v628_v58  ;;  %v7050_v24 = vpop.xlane.xlu1 %970  ;;  %10775 = vst [vmem:[#allocation51_spill] sm:$0xff] %v7052_v18  ;;  %v623_v56 = vsel %vm7019_vm10, %v622_v31, %v618_v44  ;;  %v746_v49 = vmul.f32 %v7041_v40, %v6964_v4  ;;  %vm7141_vm6 = vmor %vm645_vm4, %vm646_vm5 }
 0x2ba   :  { %v7017_v20 = vpop.f32.mrf.mxu2  ;;  %10774 = vst [vmem:[#allocation50_spill] sm:$0xff] %v7050_v24  ;;  %v7067_v58 = vpop.eup %5221  ;;  %5229 = vrcp.f32 %v7039_v25  ;;  %v637_v44 = vor.u32 1.1754944e-38, %v636_v62  ;;  %v738_v18 = vsel %vm7078_vm1, %v6914_v32, %v734_v43  ;;  %v836_v33 = vmul.f32 %v623_v56, %v6188_v53 }
 0x2bb   :  { %v1393_v50 = vmul.f32 %v6877_v38, %v7017_v20  ;;  %v633_v24 = vsel %vm7063_vm0, %v6936_v27, %v629_v42  ;;  %v747_v32 = vsub.f32 1.0, %v746_v49  ;;  %v643_v43 = vmul.f32 %v7002_v22, %v642_v14 }
 0x2bc   :  { %v656_v42 = vmul.f32 %v7067_v58, %v6982_v7  ;;  %v649_v56 = vand.u32 2147483647, %v6930_v52  ;;  %v651_v23 = vand.u32 2147483648, %v6930_v52  ;;  %vm660_vm8 = vweird.f32 %v6982_v7 }
 0x2bd   :  { %1421 = vadd.xlane.f32.xlu0 %v1393_v50  ;;  %v955_v3 = vpop.xlane.xlu2 %954  ;;  %v843_v50 = vmul.f32 %v728_v15, %v6184_v51  ;;  %v7071_v51 = vadd.f32 1.0, %v5218_v19  ;;  %v5224_v12 = vpop.eup %5223  ;;  %v742_v15 = vor.u32 1.1754944e-38, %v741_v48  ;;  %v7098_v48 = vadd.f32 %v835_v11, %v6686_v35 }
 0x2be   :  { %v7088_v46 = vpop.eup %5225  ;;  %v638_v35 = vsel %vm635_vm3, %v637_v44, %v633_v24  ;;  %v4963_v49 = vmul.f32 -1.442695, %v955_v3  ;;  %v644_v60 = vadd.f32 %v7002_v22, %v643_v43  ;;  %vm7158_vm7 = vcmp.eq.f32.partialorder %v649_v56, 8.507059e+37 }
 0x2bf   :  { %v5228_v6 = vpop.eup %5227  ;;  %v7101_v62 = vadd.f32 %v843_v50, %v6919_v16  ;;  %5231 = vrcp.f32 %v7071_v51  ;;  %v743_v2 = vsel %vm7082_vm2, %v742_v15, %v738_v18  ;;  %v7111_v16 = vadd.f32 1.0, %v5224_v12 }
 0x2c0   :  { %v7115_v53 = vpop.eup %5229  ;;  %v671_v59 = vmul.f32 %v7088_v46, %v7015_v26  ;;  %v7121_v11 = vadd.f32 1.0, %v5228_v6  ;;  %5233 = vpow2.f32 %v4962_v45  ;;  %v7125_v24 = vpop.xlane.xlu0 %962  ;;  %v756_v18 = vand.u32 2147483648, %v6964_v4 }
 0x2c1   :  { %v7123_v50 = vpop.xlane.xlu1 %958  ;;  %10783 = vst [vmem:[#allocation53_spill] sm:$0xff] %v7125_v24  ;;  %v844_v14 = vmul.f32 %v743_v2, %v6192_v55  ;;  %v748_v12 = vmul.f32 %v7041_v40, %v747_v32  ;;  %v4956_v6 = vmul.f32 -1.442695, %v6705_v30  ;;  %v837_v15 = vmul.f32 %v638_v35, %v6196_v57 }
 0x2c2   :  { %v7074_v13 = vpop.f32.mrf.mxu2  ;;  %5235 = vrcp.f32 %v7111_v16  ;;  %v1045_v55 = vmul.f32 %v7115_v53, %v7039_v25  ;;  %v7153_v57 = vadd.f32 %v836_v33, %v6696_v39  ;;  %v672_v45 = vsub.f32 1.0, %v671_v59 }
 0x2c3   :  { %10778 = vst [vmem:[#allocation52_spill] sm:$0xff] %v7074_v13  ;;  %v1394_v19 = vmul.f32 %v6877_v38, %v7074_v13  ;;  %5237 = vrcp.f32 %v7121_v11  ;;  %v7156_v52 = vor.u32 1.1754944e-38, %v756_v18  ;;  %v652_v43 = vor.u32 1.1754944e-38, %v651_v23 }
 0x2c4   :  { %5239 = vpow2.f32 %v4963_v49  ;;  %v7163_v35 = vadd.f32 %v844_v14, %v6909_v54  ;;  %v648_v39 = vsel %vm7141_vm6, %v7002_v22, %v644_v60  ;;  %v7173_v59 = vadd.f32 %v7041_v40, %v748_v12 }
 0x2c5   :  { %1423 = vadd.xlane.f32.xlu1 %v1394_v19  ;;  %v7113_v27 = vpop.xlane.xlu2 %972  ;;  %v7150_v3 = vpop.eup %5231  ;;  %v657_v19 = vsub.f32 1.0, %v656_v42  ;;  %5241 = vpow2.f32 %v4956_v6  ;;  %v7170_v42 = vadd.f32 %v837_v15, %v6689_v34  ;;  %v1046_v56 = vsub.f32 1.0, %v1045_v55 }
 0x2c6   :  { %v5234_v2 = vpop.eup %5233  ;;  %v7177_v18 = vmul.f32 %v7150_v3, %v7071_v51  ;;  %v664_v22 = vand.u32 2147483647, %v6982_v7  ;;  %v673_v49 = vmul.f32 %v7088_v46, %v672_v45  ;;  %vm751_vm9 = vweird.f32 %v7041_v40 }
 0x2c7   :  { %v658_v23 = vmul.f32 %v7067_v58, %v657_v19  ;;  %v653_v60 = vsel %vm7158_vm7, %v652_v43, %v648_v39  ;;  %v666_v6 = vand.u32 2147483648, %v6982_v7  ;;  %v7193_v15 = vadd.f32 1.0, %v5234_v2 }
 0x2c8   :  { %v7187_v12 = vpop.eup %5235  ;;  %vm661_vm10 = vweird.f32 %v7067_v58  ;;  %vm675_vm11 = vweird.f32 %v7015_v26  ;;  %v681_v19 = vand.u32 2147483648, %v7015_v26  ;;  %vm750_vm12 = vweird.f32 %v6964_v4 }
 0x2c9   :  { %v7185_v34 = vpop.xlane.xlu1 %976  ;;  %v7195_v55 = vpop.eup %5237  ;;  %vm676_vm13 = vweird.f32 %v7088_v46  ;;  %v1047_v32 = vmul.f32 %v7115_v53, %v1046_v56  ;;  %v659_v39 = vadd.f32 %v7067_v58, %v658_v23  ;;  %v686_v41 = vmul.f32 %v7187_v12, %v7111_v16  ;;  %vm7220_vm15 = vmor %vm660_vm8, %vm661_vm10 }
 0x2ca   :  { %v7134_v31 = vpop.f32.mrf.mxu2  ;;  %10789 = vst [vmem:[#allocation55_spill] sm:$0xff] %v7185_v34  ;;  %v5240_v33 = vpop.eup %5239  ;;  %v4968_v34 = vmul.f32 -1.442695, %v6932_v21  ;;  %vm1049_vm0 = vweird.f32 %v7039_v25  ;;  %vm1050_vm1 = vweird.f32 %v7115_v53  ;;  %vm7229_vm2 = vcmp.eq.f32.partialorder %v664_v22, 8.507059e+37  ;;  %vm7237_vm3 = vmor %vm675_vm11, %vm676_vm13 }
 0x2cb   :  { %10784 = vst [vmem:[#allocation54_spill] sm:$0xff] %v7134_v31  ;;  %v1395_v30 = vmul.f32 %v6877_v38, %v7134_v31  ;;  %v7209_v2 = vpop.eup %5241  ;;  %v1055_v23 = vand.u32 2147483648, %v7039_v25  ;;  %v838_v22 = vmul.f32 %v653_v60, %v6204_v61  ;;  %v687_v24 = vsub.f32 1.0, %v686_v41  ;;  %vm7258_vm5 = vmor %vm1049_vm0, %vm1050_vm1 }
 0x2cc   :  { %vm7285_vm7 = vmor %vm750_vm12, %vm751_vm9  ;;  %vm1064_vm8 = vweird.f32 %v7121_v11  ;;  %vm1065_vm9 = vweird.f32 %v7195_v55  ;;  %vm1079_vm12 = vweird.f32 %v7193_v15 }
 0x2cd   :  { %1425 = vadd.xlane.f32.xlu2 %v1395_v30  ;;  %v7179_v54 = vpop.xlane.xlu2 %960  ;;  %v679_v30 = vand.u32 2147483647, %v7015_v26  ;;  %v7300_v56 = vadd.f32 %v838_v22, %v6710_v29  ;;  %v1068_v26 = vand.u32 2147483647, %v7121_v11  ;;  %vm7339_vm10 = vmor %vm1064_vm8, %vm1065_vm9  ;;  %vm690_vm9 = vweird.f32 %v7111_v16 }
 0x2cf   :  { %vm7250_vm4 = vcmp.eq.f32.partialorder %v679_v30, 8.507059e+37  ;;  %v663_v30 = vsel %vm7220_vm15, %v7067_v58, %v659_v39  ;;  %vm7343_vm11 = vcmp.eq.f32.partialorder %v1068_v26, 8.507059e+37  ;;  %v4966_v26 = vmul.f32 -1.442695, %v7179_v54 }
 0x2d0   :  { %v1398_v14 = vpop.xlane.xlu0 %1397 }
 0x2d1   :  { %v4976_v44 = vmul.f32 -1.442695, %v1398_v14  ;;  %v674_v14 = vadd.f32 %v7088_v46, %v673_v49  ;;  %v7244_v49 = vadd.f32 1.0, %v5240_v33 }
 0x2d2   :  { %v7201_v45 = vpop.f32.mrf.mxu2 }
 0x2d3   :  { %10790 = vst [vmem:[#allocation56_spill] sm:$0xff] %v7201_v45  ;;  %5243 = vpow2.f32 %v4976_v44  ;;  %1765 = vmatpush.msrb.mxu3 %v7201_v45  ;;  %v1396_v43 = vmul.f32 %v6877_v38, %v7201_v45  ;;  %v4964_v38 = vmul.f32 -1.442695, %v6986_v0  ;;  %v1060_v0 = vmul.f32 %v7195_v55, %v7121_v11 }
 0x2d4   :  { %5245 = vrcp.f32 %v7193_v15  ;;  %v667_v44 = vor.u32 1.1754944e-38, %v666_v6  ;;  %v1053_v45 = vand.u32 2147483647, %v7039_v25  ;;  %v678_v41 = vsel %vm7237_vm3, %v7088_v46, %v674_v14  ;;  %v10853_v46 = vld [vmem:[#allocation21_spill] sm:$0xff] }
 0x2d5   :  { %1766 = vmatpush.msrb.mxu3 %v7134_v31  ;;  %1427 = vadd.xlane.f32.xlu0 %v1396_v43  ;;  %v1048_v43 = vadd.f32 %v7115_v53, %v1047_v32  ;;  %v682_v31 = vor.u32 1.1754944e-38, %v681_v19  ;;  %5247 = vpow2.f32 %v4968_v34  ;;  %v7262_v61 = vpop.xlane.xlu2 %978  ;;  %v1056_v25 = vor.u32 1.1754944e-38, %v1055_v23 }
 0x2d6   :  { %10801 = vst [vmem:[#allocation57_spill] sm:$0xff] %v7262_v61  ;;  %5249 = vpow2.f32 %v4964_v38  ;;  %v1061_v32 = vsub.f32 1.0, %v1060_v0  ;;  %v696_v61 = vand.u32 2147483648, %v7111_v16  ;;  %vm1054_vm6 = vcmp.eq.f32.partialorder %v1053_v45, 8.507059e+37 }
 0x2d7   :  { %1767 = vmatpush.msrb.mxu3 %v7074_v13  ;;  %5251 = vrcp.f32 %v7244_v49  ;;  %v1052_v58 = vsel %vm7258_vm5, %v7115_v53, %v1048_v43  ;;  %v668_v39 = vsel %vm7229_vm2, %v667_v44, %v663_v30  ;;  %v683_v14 = vsel %vm7250_vm4, %v682_v31, %v678_v41 }
 0x2d8   :  { %v1400_v60 = vpop.xlane.xlu1 %1399  ;;  %v688_v53 = vmul.f32 %v7187_v12, %v687_v24  ;;  %v1057_v31 = vsel %vm1054_vm6, %v1056_v25, %v1052_v58  ;;  %v1062_v24 = vmul.f32 %v7195_v55, %v1061_v32  ;;  %v4965_v0 = vmul.f32 -1.442695, %v7123_v50 }
 0x2d9   :  { %v5244_v6 = vpop.eup %5243  ;;  %v4977_v19 = vmul.f32 -1.442695, %v1400_v60  ;;  %1768 = vmatpush.msrb.mxu3 %v7017_v20  ;;  %v7310_v43 = vmul.f32 %v668_v39, %v6212_v1  ;;  %v7313_v29 = vmul.f32 %v683_v14, %v6220_v5  ;;  %v7315_v22 = vor.u32 1.1754944e-38, %v696_v61 }
 0x2da   :  { %v7272_v34 = vadd.f32 1.0, %v5244_v6  ;;  %v7274_v13 = vpop.eup %5245  ;;  %v7322_v60 = vadd.f32 %v7187_v12, %v688_v53  ;;  %v7327_v1 = vmul.f32 -1.442695, %v6980_v37  ;;  %v1284_v61 = vmul.f32 %v1057_v31, %v6292_v36 }
 0x2db   :  { %5253 = vpow2.f32 %v4977_v19  ;;  %1769 = vmatpush.msrb.mxu3 %v6950_v63  ;;  %v5248_v7 = vpop.eup %5247  ;;  %v1075_v23 = vmul.f32 %v7274_v13, %v7193_v15  ;;  %v1070_v30 = vand.u32 2147483648, %v7121_v11  ;;  %v1063_v25 = vadd.f32 %v7195_v55, %v1062_v24 }
 0x2dc   :  { %5255 = vrcp.f32 %v7272_v34  ;;  %v5250_v44 = vpop.eup %5249  ;;  %v7330_v6 = vadd.f32 1.0, %v5248_v7  ;;  %v1083_v53 = vand.u32 2147483647, %v7193_v15  ;;  %v1085_v7 = vand.u32 2147483648, %v7193_v15 }
 0x2dd   :  { %1770 = vmatpush.msrb.mxu3 %v6870_v8  ;;  %v7319_v33 = vpop.eup %5251  ;;  %v1076_v32 = vsub.f32 1.0, %v1075_v23  ;;  %5257 = vpow2.f32 %v4965_v0  ;;  %v7347_v39 = vadd.f32 1.0, %v5250_v44  ;;  %v1300_v31 = vadd.f32 %v1284_v61, %v7098_v48 }
 0x2de   :  { %v1090_v11 = vmul.f32 %v7319_v33, %v7244_v49  ;;  %v1071_v24 = vor.u32 1.1754944e-38, %v1070_v30  ;;  %v1067_v0 = vsel %vm7339_vm10, %v7195_v55, %v1063_v25  ;;  %v1502_v48 = vand.u32 2147483647, %v7272_v34 }
 0x2df   :  { %1771 = vmatpush.msrb.mxu3 %v6777_v9  ;;  %v1077_v44 = vmul.f32 %v7274_v13, %v1076_v32  ;;  %vm1080_vm15 = vweird.f32 %v7274_v13  ;;  %vm7369_vm0 = vcmp.eq.f32.partialorder %v1083_v53, 8.507059e+37  ;;  %v1086_v55 = vor.u32 1.1754944e-38, %v1085_v7 }
 0x2e0   :  { %v1402_v5 = vpop.xlane.xlu2 %1401  ;;  %v1072_v32 = vsel %vm7343_vm11, %v1071_v24, %v1067_v0  ;;  %vm1498_vm1 = vweird.f32 %v7272_v34  ;;  %vm7385_vm3 = vmor %vm1079_vm12, %vm1080_vm15  ;;  %vm1503_vm4 = vcmp.eq.f32.partialorder %v1502_v48, 8.507059e+37  ;;  %v10813_v24 = vld [vmem:[#allocation29_spill] sm:$0xff]  ;;  %v10814_v0 = vld [vmem:[#allocation11_spill] sm:$0xff]  ;;  %vm1094_vm5 = vweird.f32 %v7244_v49 }
 0x2e1   :  { %v5254_v50 = vpop.eup %5253  ;;  %v4978_v41 = vmul.f32 -1.442695, %v1402_v5  ;;  %1772 = vmatpush.msrb.mxu3 %v6724_v47  ;;  %v1504_v5 = vand.u32 2147483648, %v7272_v34  ;;  %v1078_v45 = vadd.f32 %v7274_v13, %v1077_v44  ;;  %v1285_v44 = vmul.f32 %v1072_v32, %v10814_v0 }
 0x2e2   :  { %v5256_v19 = vpop.eup %5255  ;;  %v7335_v58 = vadd.f32 1.0, %v5254_v50  ;;  %vm1095_vm6 = vweird.f32 %v7319_v33  ;;  %vm691_vm10 = vweird.f32 %v7187_v12  ;;  %v1100_v36 = vand.u32 2147483648, %v7244_v49 }
 0x2e3   :  { %v1494_v14 = vmul.f32 %v5256_v19, %v7272_v34  ;;  %5259 = vpow2.f32 %v4978_v41  ;;  %1773 = vmatpush.msrb.mxu3 %v6647_v28  ;;  %vm1499_vm13 = vweird.f32 %v5256_v19  ;;  %v5258_v61 = vpop.eup %5257  ;;  %v1091_v41 = vsub.f32 1.0, %v1090_v11  ;;  %vm7422_vm11 = vmor %vm1094_vm5, %vm1095_vm6 }
 0x2e4   :  { %5261 = vrcp.f32 %v7335_v58  ;;  %vm1500_vm2 = vmor %vm1498_vm1, %vm1499_vm13  ;;  %v1505_v53 = vor.u32 1.1754944e-38, %v1504_v5  ;;  %v7397_v15 = vadd.f32 1.0, %v5258_v61  ;;  %v1082_v32 = vsel %vm7385_vm3, %v7274_v13, %v1078_v45 }
 0x2e5   :  { %v1495_v23 = vsub.f32 1.0, %v1494_v14  ;;  %1774 = vmatpush.msrb.mxu3 %v6556_v10  ;;  %5263 = vrcp.f32 %v7347_v39  ;;  %v1517_v61 = vand.u32 2147483647, %v7335_v58  ;;  %v1301_v13 = vadd.f32 %v1285_v44, %v7153_v57  ;;  %vm7478_vm6 = vmor %vm690_vm9, %vm691_vm10 }
 0x2e6   :  { %5265 = vpow2.f32 %v4966_v26  ;;  %v1092_v26 = vmul.f32 %v7319_v33, %v1091_v41  ;;  %v1098_v41 = vand.u32 2147483647, %v7244_v49  ;;  %vm1513_vm12 = vweird.f32 %v7335_v58 }
 0x2e7   :  { %v1496_v50 = vmul.f32 %v5256_v19, %v1495_v23  ;;  %1775 = vmatpush.msrb.mxu3 %v6484_v17  ;;  %v10810_v23 = vld [vmem:[#allocation32_spill] sm:$0xff]  ;;  %vm1518_vm1 = vcmp.eq.f32.partialorder %v1517_v61, 8.507059e+37  ;;  %v1101_v30 = vor.u32 1.1754944e-38, %v1100_v36 }
 0x2e8   :  { %v1404_v54 = vpop.xlane.xlu0 %1403  ;;  %v1093_v45 = vadd.f32 %v7319_v33, %v1092_v26  ;;  %vm7431_vm13 = vcmp.eq.f32.partialorder %v1098_v41, 8.507059e+37 }
 0x2e9   :  { %v5260_v25 = vpop.eup %5259  ;;  %v1497_v37 = vadd.f32 %v5256_v19, %v1496_v50  ;;  %v4979_v14 = vmul.f32 -1.442695, %v1404_v54  ;;  %1776 = vmatpush.msrb.mxu3 %v10810_v23 }
 0x2ea   :  { %v5262_v38 = vpop.eup %5261  ;;  %v7379_v7 = vadd.f32 1.0, %v5260_v25  ;;  %v10816_v25 = vld [vmem:[#allocation28_spill] sm:$0xff]  ;;  %v1097_v41 = vsel %vm7422_vm11, %v7319_v33, %v1093_v45 }
 0x2eb   :  { %v1501_v34 = vsel %vm1500_vm2, %v5256_v19, %v1497_v37  ;;  %v1509_v11 = vmul.f32 %v5262_v38, %v7335_v58  ;;  %5267 = vpow2.f32 %v4979_v14  ;;  %1777 = vmatpush.msrb.mxu3 %v10813_v24  ;;  %v7394_v50 = vpop.eup %5263  ;;  %v10815_v19 = vld [vmem:[#allocation25_spill] sm:$0xff]  ;;  %v1519_v37 = vand.u32 2147483648, %v7335_v58  ;;  %v5847_v58 = vld [vmem:[%s10603_s0] sm:$0xff] }
 0x2ec   :  { %v1506_v5 = vsel %vm1503_vm4, %v1505_v53, %v1501_v34  ;;  %5269 = vrcp.f32 %v7379_v7  ;;  %vm1514_vm8 = vweird.f32 %v5262_v38  ;;  %v10817_v34 = vld [vmem:[#allocation27_spill] sm:$0xff]  ;;  %v1534_v36 = vand.u32 2147483648, %v7379_v7 }
 0x2ed   :  { %v1733_v48 = vmul.f32 %v1506_v5, %v10815_v19  ;;  %v1510_v54 = vsub.f32 1.0, %v1509_v11  ;;  %1778 = vmatpush.msrb.mxu3 %v10816_v25  ;;  %v5266_v11 = vpop.eup %5265  ;;  %5271 = vrcp.f32 %v7397_v15  ;;  %vm1515_vm15 = vmor %vm1513_vm12, %vm1514_vm8  ;;  %v1520_v49 = vor.u32 1.1754944e-38, %v1519_v37 }
 0x2ee   :  { %v7446_v37 = vadd.f32 1.0, %v5266_v11  ;;  %v1532_v33 = vand.u32 2147483647, %v7379_v7  ;;  %vm1109_vm2 = vweird.f32 %v7347_v39  ;;  %vm1528_vm3 = vweird.f32 %v7379_v7 }
 0x2ef   :  { %v7407_v14 = vadd.f32 %v1733_v48, %v1300_v31  ;;  %v1511_v53 = vmul.f32 %v5262_v38, %v1510_v54  ;;  %1779 = vmatpush.msrb.mxu3 %v10817_v34  ;;  %v1105_v31 = vmul.f32 %v7394_v50, %v7347_v39  ;;  %v1087_v54 = vsel %vm7369_vm0, %v1086_v55, %v1082_v32 }
 0x2f0   :  { %v1406_v0 = vpop.xlane.xlu1 %1405  ;;  %vm1110_vm4 = vweird.f32 %v7394_v50  ;;  %vm1533_vm8 = vcmp.eq.f32.partialorder %v1532_v33, 8.507059e+37 }
 0x2f1   :  { %v5268_v5 = vpop.eup %5267  ;;  %v1512_v57 = vadd.f32 %v5262_v38, %v1511_v53  ;;  %v4980_v44 = vmul.f32 -1.442695, %v1406_v0  ;;  %1780 = vmatpush.msrb.mxu3 %v10815_v19  ;;  %v1106_v55 = vsub.f32 1.0, %v1105_v31  ;;  %vm7506_vm10 = vmor %vm1109_vm2, %vm1110_vm4 }
 0x2f2   :  { %v5270_v26 = vpop.eup %5269  ;;  %v7436_v28 = vadd.f32 1.0, %v5268_v5  ;;  %1781 = vmatmul.f32.vlgmr.msrb.gmra.mxu3 %v5847_v58 }
 0x2f3   :  { %v1516_v53 = vsel %vm1515_vm15, %v5262_v38, %v1512_v57  ;;  %v1524_v19 = vmul.f32 %v5270_v26, %v7379_v7  ;;  %5273 = vpow2.f32 %v4980_v44  ;;  %v10822_v38 = vld [vmem:[#allocation13_spill] sm:$0xff]  ;;  %v10823_v57 = vld [vmem:[#allocation48_spill] sm:$0xff]  ;;  %v7453_v31 = vpop.eup %5271  ;;  %vm1529_vm0 = vweird.f32 %v5270_v26 }
 0x2f4   :  { %v1521_v32 = vsel %vm1518_vm1, %v1520_v49, %v1516_v53  ;;  %5275 = vrcp.f32 %v7436_v28  ;;  %v1286_v61 = vmul.f32 %v1087_v54, %v10822_v38  ;;  %v4970_v44 = vmul.f32 -1.442695, %v10823_v57  ;;  %vm1530_vm5 = vmor %vm1528_vm3, %vm1529_vm0 }
 0x2f5   :  { %v1734_v0 = vmul.f32 %v1521_v32, %v10817_v34  ;;  %v1525_v5 = vsub.f32 1.0, %v1524_v19  ;;  %5277 = vpow2.f32 %v7327_v1  ;;  %v1102_v34 = vsel %vm7431_vm13, %v1101_v30, %v1097_v41 }
 0x2f6   :  { %v1107_v11 = vmul.f32 %v7394_v50, %v1106_v55  ;;  %v1113_v1 = vand.u32 2147483647, %v7347_v39  ;;  %5279 = vrcp.f32 %v7446_v37  ;;  %v1120_v21 = vmul.f32 %v7453_v31, %v7397_v15  ;;  %v5848_v55 = vld [vmem:[%s10603_s0 + $0x8] sm:$0xff] }
 0x2f7   :  { %v7455_v49 = vadd.f32 %v1734_v0, %v1301_v13  ;;  %v1526_v58 = vmul.f32 %v5270_v26, %v1525_v5  ;;  %v1535_v19 = vor.u32 1.1754944e-38, %v1534_v36  ;;  %v10826_v5 = vld [vmem:[#allocation15_spill] sm:$0xff]  ;;  %v1115_v57 = vand.u32 2147483648, %v7347_v39 }
 0x2f8   :  { %v1408_v45 = vpop.xlane.xlu2 %1407  ;;  %v1287_v38 = vmul.f32 %v1102_v34, %v10826_v5  ;;  %v1108_v33 = vadd.f32 %v7394_v50, %v1107_v11  ;;  %v693_v34 = vsel %vm7478_vm6, %v7187_v12, %v7322_v60  ;;  %v1547_v12 = vand.u32 2147483647, %v7436_v28 }
 0x2f9   :  { %v5274_v48 = vpop.eup %5273  ;;  %v1527_v54 = vadd.f32 %v5270_v26, %v1526_v58  ;;  %v4981_v13 = vmul.f32 -1.442695, %v1408_v45  ;;  %v10827_v58 = vand.u32 2147483647, %v7111_v16  ;;  %vm7517_vm12 = vcmp.eq.f32.partialorder %v1113_v1, 8.507059e+37 }
 0x2fa   :  { %v5276_v53 = vpop.eup %5275  ;;  %v7469_v30 = vadd.f32 1.0, %v5274_v48  ;;  %1784 = vmatmul.f32.gmra.mxu3 %v5848_v55  ;;  %v1303_v60 = vadd.f32 %v1287_v38, %v7300_v56  ;;  %v1112_v7 = vsel %vm7506_vm10, %v7394_v50, %v1108_v33  ;;  %vm1543_vm13 = vweird.f32 %v7436_v28 }
 0x2fb   :  { %v1531_v32 = vsel %vm1530_vm5, %v5270_v26, %v1527_v54  ;;  %v1539_v41 = vmul.f32 %v5276_v53, %v7436_v28  ;;  %5281 = vpow2.f32 %v4981_v13  ;;  %v7483_v0 = vpop.eup %5277  ;;  %vm7490_vm9 = vcmp.eq.f32.partialorder %v10827_v58, 8.507059e+37 }
 0x2fc   :  { %v1536_v36 = vsel %vm1533_vm8, %v1535_v19, %v1531_v32  ;;  %5283 = vrcp.f32 %v7469_v30  ;;  %v1302_v26 = vadd.f32 %v1286_v61, %v7170_v42  ;;  %v1121_v42 = vsub.f32 1.0, %v1120_v21 }
 0x2fd   :  { %v1735_v48 = vmul.f32 %v1536_v36, %v10816_v25  ;;  %v1540_v54 = vsub.f32 1.0, %v1539_v41  ;;  %5285 = vrcp.f32 %v7330_v6  ;;  %v1549_v61 = vand.u32 2147483648, %v7436_v28  ;;  %v7511_v25 = vpop.eup %5279 }
 0x2fe   :  { %vm1544_vm11 = vweird.f32 %v5276_v53  ;;  %5287 = vpow2.f32 %v4970_v44  ;;  %v1116_v19 = vor.u32 1.1754944e-38, %v1115_v57  ;;  %v1122_v44 = vmul.f32 %v7453_v31, %v1121_v42  ;;  %v5849_v57 = vld [vmem:[%s10603_s0 + $0x10] sm:$0xff] }
 0x2ff   :  { %v7513_v11 = vadd.f32 %v1735_v48, %v1302_v26  ;;  %v1541_v13 = vmul.f32 %v5276_v53, %v1540_v54  ;;  %v1135_v56 = vmul.f32 %v7511_v25, %v7446_v37  ;;  %vm1545_vm15 = vmor %vm1543_vm13, %vm1544_vm11  ;;  %v1550_v1 = vor.u32 1.1754944e-38, %v1549_v61 }
 0x300   :  { %v1410_v55 = vpop.xlane.xlu0 %1409  ;;  %vm1548_vm1 = vcmp.eq.f32.partialorder %v1547_v12, 8.507059e+37  ;;  %vm1124_vm0 = vweird.f32 %v7397_v15  ;;  %v1128_v58 = vand.u32 2147483647, %v7397_v15  ;;  %vm1125_vm2 = vweird.f32 %v7453_v31 }
 0x301   :  { %v5282_v21 = vpop.eup %5281  ;;  %v1542_v32 = vadd.f32 %v5276_v53, %v1541_v13  ;;  %v4982_v41 = vmul.f32 -1.442695, %v1410_v55  ;;  %v1130_v33 = vand.u32 2147483648, %v7397_v15  ;;  %v1117_v16 = vsel %vm7517_vm12, %v1116_v19, %v1112_v7  ;;  %vm7568_vm4 = vmor %vm1124_vm0, %vm1125_vm2  ;;  %v10838_v7 = vld [vmem:[#allocation17_spill] sm:$0xff] }
 0x302   :  { %v5284_v5 = vpop.eup %5283  ;;  %v7529_v38 = vadd.f32 1.0, %v5282_v21  ;;  %1787 = vmatmul.f32.gmra.mxu3 %v5849_v57  ;;  %v1123_v42 = vadd.f32 %v7453_v31, %v1122_v44  ;;  %v1136_v61 = vsub.f32 1.0, %v1135_v56  ;;  %v1564_v13 = vand.u32 2147483648, %v7469_v30  ;;  %v5850_v57 = vld [vmem:[%s10603_s0 + $0x18] sm:$0xff] }
 0x303   :  { %v1546_v50 = vsel %vm1545_vm15, %v5276_v53, %v1542_v32  ;;  %v1554_v28 = vmul.f32 %v5284_v5, %v7469_v30  ;;  %5289 = vpow2.f32 %v4982_v41  ;;  %v7535_v36 = vpop.eup %5285  ;;  %vm1559_vm3 = vweird.f32 %v5284_v5  ;;  %v10834_v32 = vld [vmem:[#allocation36_spill] sm:$0xff] }
 0x304   :  { %v1551_v26 = vsel %vm1548_vm1, %v1550_v1, %v1546_v50  ;;  %5291 = vrcp.f32 %v7529_v38  ;;  %v5288_v54 = vpop.eup %5287  ;;  %v1562_v21 = vand.u32 2147483647, %v7469_v30  ;;  %v855_v41 = vadd.f32 %v7310_v43, %v10834_v32 }
 0x305   :  { %v1736_v48 = vmul.f32 %v1551_v26, %v10813_v24  ;;  %v1555_v53 = vsub.f32 1.0, %v1554_v28  ;;  %v10835_v24 = vld [vmem:[#allocation40_spill] sm:$0xff]  ;;  %v7559_v39 = vsel %vm7490_vm9, %v7315_v22, %v693_v34  ;;  %v7562_v19 = vadd.f32 1.0, %v7483_v0 }
 0x306   :  { %v7554_v1 = vadd.f32 %v7313_v29, %v10835_v24  ;;  %v1288_v29 = vmul.f32 %v1117_v16, %v10838_v7  ;;  %vm7573_vm5 = vcmp.eq.f32.partialorder %v1128_v58, 8.507059e+37  ;;  %vm1558_vm6 = vweird.f32 %v7469_v30 }
 0x307   :  { %v7547_v12 = vadd.f32 %v1736_v48, %v1303_v60  ;;  %v1556_v55 = vmul.f32 %v5284_v5, %v1555_v53  ;;  %v1131_v45 = vor.u32 1.1754944e-38, %v1130_v33  ;;  %v1137_v34 = vmul.f32 %v7511_v25, %v1136_v61  ;;  %vm1560_vm8 = vmor %vm1558_vm6, %vm1559_vm3 }
 0x308   :  { %v1565_v15 = vor.u32 1.1754944e-38, %v1564_v13  ;;  %v1127_v50 = vsel %vm7568_vm4, %v7453_v31, %v1123_v42  ;;  %vm1563_vm9 = vcmp.eq.f32.partialorder %v1562_v21, 8.507059e+37  ;;  %vm1139_vm10 = vweird.f32 %v7446_v37 }
 0x309   :  { %v5290_v43 = vpop.eup %5289  ;;  %v1557_v22 = vadd.f32 %v5284_v5, %v1556_v55  ;;  %vm1140_vm11 = vweird.f32 %v7511_v25  ;;  %v1304_v26 = vadd.f32 %v1288_v29, %v855_v41  ;;  %v1143_v33 = vand.u32 2147483647, %v7446_v37  ;;  %v10846_v41 = vld [vmem:[#allocation50_spill] sm:$0xff] }
 0x30a   :  { %v5292_v0 = vpop.eup %5291  ;;  %v7580_v56 = vadd.f32 1.0, %v5290_v43  ;;  %1790 = vmatmul.f32.gmra.mxu3 %v5850_v57  ;;  %v1132_v31 = vsel %vm7573_vm5, %v1131_v45, %v1127_v50  ;;  %v1145_v16 = vand.u32 2147483648, %v7446_v37  ;;  %v1579_v42 = vand.u32 2147483648, %v7529_v38  ;;  %vm7605_vm13 = vmor %vm1139_vm10, %vm1140_vm11  ;;  %v10847_v43 = vld [vmem:[#allocation19_spill] sm:$0xff]  ;;  %v5851_v57 = vld [vmem:[%s10603_s0 + $0x20] sm:$0xff] }
 0x30b   :  { %v1561_v28 = vsel %vm1560_vm8, %v5284_v5, %v1557_v22  ;;  %v1569_v30 = vmul.f32 %v5292_v0, %v7529_v38  ;;  %v1138_v5 = vadd.f32 %v7511_v25, %v1137_v34  ;;  %v10841_v61 = vand.u32 2147483647, %v6964_v4 }
 0x30c   :  { %v1566_v58 = vsel %vm1563_vm9, %v1565_v15, %v1561_v28  ;;  %5293 = vrcp.f32 %v7580_v56  ;;  %vm1574_vm15 = vweird.f32 %v5292_v0  ;;  %v1577_v32 = vand.u32 2147483647, %v7529_v38 }
 0x30d   :  { %v1737_v48 = vmul.f32 %v1566_v58, %v10810_v23  ;;  %v1570_v53 = vsub.f32 1.0, %v1569_v30  ;;  %vm7601_vm12 = vcmp.eq.f32.partialorder %v10841_v61, 8.507059e+37  ;;  %v1165_v37 = vmul.f32 %v7535_v36, %v7330_v6  ;;  %v10850_v58 = vld [vmem:[#allocation6_spill] sm:$0xff] }
 0x30e   :  { %5295 = vrcp.f32 %v7562_v19  ;;  %v7615_v4 = vadd.f32 1.0, %v5288_v54  ;;  %v4971_v24 = vmul.f32 -1.442695, %v10846_v41  ;;  %v1289_v7 = vmul.f32 %v1132_v31, %v10847_v43  ;;  %v10854_v43 = vld [vmem:[#allocation37_spill] sm:$0xff] }
 0x30f   :  { %v7609_v23 = vadd.f32 %v1737_v48, %v1304_v26  ;;  %v1571_v21 = vmul.f32 %v5292_v0, %v1570_v53  ;;  %vm1573_vm1 = vweird.f32 %v7529_v38  ;;  %v1142_v45 = vsel %vm7605_vm13, %v7511_v25, %v1138_v5 }
 0x310   :  { %v1414_v60 = vpop.xlane.xlu2 %1413  ;;  %vm7623_vm0 = vcmp.eq.f32.partialorder %v1143_v33, 8.507059e+37  ;;  %v1146_v54 = vor.u32 1.1754944e-38, %v1145_v16  ;;  %vm1575_vm2 = vmor %vm1573_vm1, %vm1574_vm15  ;;  %v1580_v15 = vor.u32 1.1754944e-38, %v1579_v42  ;;  %vm1578_vm3 = vcmp.eq.f32.partialorder %v1577_v32, 8.507059e+37 }
 0x311   :  { %v1572_v29 = vadd.f32 %v5292_v0, %v1571_v21  ;;  %v4984_v44 = vmul.f32 -1.442695, %v1414_v60  ;;  %v7633_v25 = vadd.f32 1.0, %v7209_v2  ;;  %v1166_v28 = vsub.f32 1.0, %v1165_v37  ;;  %v7662_v21 = vpop.xlane.xlu1 %1411  ;;  %v5852_v60 = vld [vmem:[%s10603_s0 + $0x28] sm:$0xff] }
 0x312   :  { %v5294_v22 = vpop.eup %5293  ;;  %1793 = vmatmul.f32.gmra.mxu3 %v5851_v57  ;;  %v841_v26 = vmul.f32 %v7559_v39, %v10850_v58  ;;  %v1305_v33 = vadd.f32 %v1289_v7, %v7554_v1  ;;  %v1147_v2 = vsel %vm7623_vm0, %v1146_v54, %v1142_v45  ;;  %v1594_v5 = vand.u32 2147483648, %v7580_v56 }
 0x313   :  { %v1576_v38 = vsel %vm1575_vm2, %v5292_v0, %v1572_v29  ;;  %v1584_v50 = vmul.f32 %v5294_v22, %v7580_v56  ;;  %5297 = vpow2.f32 %v4984_v44  ;;  %v4972_v0 = vmul.f32 -1.442695, %v7113_v27  ;;  %v10855_v44 = vld [vmem:[#allocation2_spill] sm:$0xff] }
 0x314   :  { %5299 = vpow2.f32 %v4971_v24  ;;  %v1581_v30 = vsel %vm1578_vm3, %v1580_v15, %v1576_v38  ;;  %v7639_v31 = vpop.eup %5295  ;;  %vm1589_vm4 = vweird.f32 %v5294_v22  ;;  %v1592_v1 = vand.u32 2147483647, %v7580_v56 }
 0x315   :  { %v1738_v48 = vmul.f32 %v1581_v30, %v6484_v17  ;;  %v1585_v53 = vsub.f32 1.0, %v1584_v50  ;;  %5301 = vrcp.f32 %v7615_v4  ;;  %v10851_v17 = vsel %vm7285_vm7, %v7041_v40, %v7173_v59 }
 0x316   :  { %v758_v27 = vsel %vm7601_vm12, %v7156_v52, %v10851_v17  ;;  %v10852_v39 = vsub.f32 1.0, %v7177_v18  ;;  %5303 = vrcp.f32 %v7633_v25  ;;  %v1167_v55 = vmul.f32 %v7535_v36, %v1166_v28 }
 0x317   :  { %v7646_v16 = vadd.f32 %v1738_v48, %v1305_v33  ;;  %v1586_v42 = vmul.f32 %v5294_v22, %v1585_v53  ;;  %v1290_v41 = vmul.f32 %v1147_v2, %v10853_v46  ;;  %vm1588_vm7 = vweird.f32 %v7580_v56  ;;  %v10857_v53 = vld [vmem:[#allocation47_spill] sm:$0xff] }
 0x318   :  { %v763_v61 = vmul.f32 %v7150_v3, %v10852_v39  ;;  %v1416_v32 = vpop.xlane.xlu0 %1415  ;;  %v1180_v52 = vmul.f32 %v7639_v31, %v7562_v19  ;;  %5305 = vpow2.f32 %v4972_v0  ;;  %vm1590_vm5 = vmor %vm1588_vm7, %vm1589_vm4  ;;  %v1595_v18 = vor.u32 1.1754944e-38, %v1594_v5 }
 0x319   :  { %v5298_v37 = vpop.eup %5297  ;;  %v1587_v24 = vadd.f32 %v5294_v22, %v1586_v42  ;;  %v4985_v40 = vmul.f32 -1.442695, %v1416_v32  ;;  %v857_v7 = vadd.f32 %v841_v26, %v10854_v43  ;;  %vm1593_vm6 = vcmp.eq.f32.partialorder %v1592_v1, 8.507059e+37 }
 0x31a   :  { %v5300_v59 = vpop.eup %5299  ;;  %v7669_v13 = vadd.f32 1.0, %v5298_v37  ;;  %1796 = vmatmul.f32.gmra.mxu3 %v5852_v60  ;;  %v845_v45 = vmul.f32 %v758_v27, %v10855_v44  ;;  %vm765_vm8 = vweird.f32 %v7071_v51  ;;  %vm766_vm9 = vweird.f32 %v7150_v3 }
 0x31b   :  { %v1591_v29 = vsel %vm1590_vm5, %v5294_v22, %v1587_v24  ;;  %5307 = vpow2.f32 %v4985_v40  ;;  %v7675_v56 = vpop.eup %5301  ;;  %v7681_v54 = vadd.f32 1.0, %v5300_v59  ;;  %v1306_v15 = vadd.f32 %v1290_v41, %v857_v7  ;;  %vm7706_vm11 = vmor %vm765_vm8, %vm766_vm9  ;;  %v5853_v41 = vld [vmem:[%s10603_s0 + $0x30] sm:$0xff] }
 0x31c   :  { %v1596_v34 = vsel %vm1593_vm6, %v1595_v18, %v1591_v29  ;;  %5309 = vrcp.f32 %v7669_v13  ;;  %v7684_v38 = vpop.eup %5303  ;;  %v7687_v22 = vadd.f32 %v7150_v3, %v763_v61  ;;  %v1168_v50 = vadd.f32 %v7535_v36, %v1167_v55 }
 0x31d   :  { %v1739_v57 = vmul.f32 %v1596_v34, %v6556_v10  ;;  %vm1170_vm10 = vweird.f32 %v7535_v36  ;;  %v1181_v28 = vsub.f32 1.0, %v1180_v52  ;;  %v769_v30 = vand.u32 2147483647, %v7071_v51 }
 0x31e   :  { %v10856_v58 = vand.u32 2147483648, %v7071_v51  ;;  %v1175_v33 = vand.u32 2147483648, %v7330_v6  ;;  %v5306_v10 = vpop.eup %5305  ;;  %v7700_v0 = vadd.f32 %v845_v45, %v10857_v53  ;;  %vm1169_vm12 = vweird.f32 %v7330_v6 }
 0x31f   :  { %v7697_v48 = vadd.f32 %v1739_v57, %v1306_v15  ;;  %v1173_v5 = vand.u32 2147483647, %v7330_v6  ;;  %v1195_v42 = vmul.f32 %v7675_v56, %v7615_v4  ;;  %v784_v27 = vand.u32 2147483647, %v7633_v25  ;;  %vm7718_vm13 = vmor %vm1169_vm12, %vm1170_vm10 }
 0x320   :  { %v7694_v26 = vor.u32 1.1754944e-38, %v10856_v58  ;;  %v1418_v1 = vpop.xlane.xlu1 %1417  ;;  %v786_v39 = vand.u32 2147483648, %v7633_v25  ;;  %5311 = vrcp.f32 %v7681_v54  ;;  %v768_v6 = vsel %vm7706_vm11, %v7150_v3, %v7687_v22  ;;  %v10866_v22 = vld [vmem:[#allocation10_spill] sm:$0xff] }
 0x321   :  { %v5308_v17 = vpop.eup %5307  ;;  %v4986_v61 = vmul.f32 -1.442695, %v1418_v1  ;;  %v1172_v32 = vsel %vm7718_vm13, %v7535_v36, %v1168_v50  ;;  %v1182_v37 = vmul.f32 %v7639_v31, %v1181_v28  ;;  %v1176_v24 = vor.u32 1.1754944e-38, %v1175_v33 }
 0x322   :  { %v5310_v55 = vpop.eup %5309  ;;  %v7731_v46 = vadd.f32 1.0, %v5308_v17  ;;  %1799 = vmatmul.f32.gmra.mxu3 %v5853_v41  ;;  %v1188_v40 = vand.u32 2147483647, %v7562_v19  ;;  %vm1174_vm15 = vcmp.eq.f32.partialorder %v1173_v5, 8.507059e+37  ;;  %v1190_v3 = vand.u32 2147483648, %v7562_v19 }
 0x323   :  { %v1614_v59 = vmul.f32 %v5310_v55, %v7669_v13  ;;  %5313 = vpow2.f32 %v4986_v61  ;;  %v1196_v52 = vsub.f32 1.0, %v1195_v42  ;;  %vm7740_vm1 = vcmp.eq.f32.partialorder %v769_v30, 8.507059e+37  ;;  %v5854_v61 = vld [vmem:[%s10603_s0 + $0x38] sm:$0xff] }
 0x324   :  { %5315 = vrcp.f32 %v7731_v46  ;;  %v7746_v18 = vmul.f32 %v7684_v38, %v7633_v25  ;;  %v1177_v60 = vsel %vm1174_vm15, %v1176_v24, %v1172_v32  ;;  %v7748_v43 = vadd.f32 1.0, %v5306_v10 }
 0x325   :  { %v1615_v7 = vsub.f32 1.0, %v1614_v59  ;;  %v1183_v29 = vadd.f32 %v7639_v31, %v1182_v37  ;;  %vm1184_vm0 = vweird.f32 %v7562_v19  ;;  %vm1185_vm2 = vweird.f32 %v7639_v31 }
 0x326   :  { %v1624_v44 = vand.u32 2147483648, %v7669_v13  ;;  %v7754_v45 = vpop.eup %5311  ;;  %vm7756_vm3 = vcmp.eq.f32.partialorder %v1188_v40, 8.507059e+37  ;;  %vm1619_vm4 = vweird.f32 %v5310_v55  ;;  %v1622_v57 = vand.u32 2147483647, %v7669_v13  ;;  %vm7764_vm7 = vmor %vm1184_vm0, %vm1185_vm2 }
 0x327   :  { %v1616_v15 = vmul.f32 %v5310_v55, %v1615_v7  ;;  %v1292_v50 = vmul.f32 %v1177_v60, %v10866_v22  ;;  %v1191_v28 = vor.u32 1.1754944e-38, %v1190_v3  ;;  %v1197_v30 = vmul.f32 %v7675_v56, %v1196_v52 }
 0x328   :  { %v1205_v19 = vand.u32 2147483648, %v7615_v4  ;;  %v1420_v58 = vpop.xlane.xlu2 %1419  ;;  %5317 = vrcp.f32 %v7748_v43  ;;  %vm1618_vm5 = vweird.f32 %v7669_v13  ;;  %v1187_v42 = vsel %vm7764_vm7, %v7639_v31, %v1183_v29 }
 0x329   :  { %v5314_v33 = vpop.eup %5313  ;;  %v1617_v53 = vadd.f32 %v5310_v55, %v1616_v15  ;;  %v4987_v2 = vmul.f32 -1.442695, %v1420_v58  ;;  %v1210_v1 = vmul.f32 %v7754_v45, %v7681_v54  ;;  %vm1620_vm6 = vmor %vm1618_vm5, %vm1619_vm4  ;;  %v1625_v17 = vor.u32 1.1754944e-38, %v1624_v44  ;;  %v10869_v44 = vld [vmem:[#allocation12_spill] sm:$0xff] }
 0x32a   :  { %v5316_v5 = vpop.eup %5315  ;;  %v7776_v51 = vadd.f32 1.0, %v5314_v33  ;;  %1802 = vmatmul.f32.gmra.mxu3 %v5854_v61  ;;  %vm1623_vm8 = vcmp.eq.f32.partialorder %v1622_v57, 8.507059e+37  ;;  %v1308_v31 = vadd.f32 %v1292_v50, %v7101_v62  ;;  %vm1200_vm9 = vweird.f32 %v7675_v56 }
 0x32b   :  { %v1621_v13 = vsel %vm1620_vm6, %v5310_v55, %v1617_v53  ;;  %v1629_v32 = vmul.f32 %v5316_v5, %v7731_v46  ;;  %5319 = vpow2.f32 %v4987_v2  ;;  %v1192_v41 = vsel %vm7756_vm3, %v1191_v28, %v1187_v42 }
 0x32c   :  { %v1626_v37 = vsel %vm1623_vm8, %v1625_v17, %v1621_v13  ;;  %5321 = vrcp.f32 %v7776_v51  ;;  %v1198_v24 = vadd.f32 %v7675_v56, %v1197_v30  ;;  %v773_v55 = vsel %vm7740_vm1, %v7694_v26, %v768_v6 }
 0x32d   :  { %v1741_v40 = vmul.f32 %v1626_v37, %v6724_v47  ;;  %v1630_v59 = vsub.f32 1.0, %v1629_v32  ;;  %vm1199_vm10 = vweird.f32 %v7615_v4  ;;  %v1211_v62 = vsub.f32 1.0, %v1210_v1  ;;  %v10872_v32 = vld [vmem:[#allocation34_spill] sm:$0xff] }
 0x32e   :  { %v1639_v3 = vand.u32 2147483648, %v7731_v46  ;;  %v7794_v52 = vpop.eup %5317  ;;  %vm1634_vm11 = vweird.f32 %v5316_v5  ;;  %v1637_v29 = vand.u32 2147483647, %v7731_v46  ;;  %v777_v47 = vsub.f32 1.0, %v7746_v18  ;;  %vm7803_vm12 = vmor %vm1199_vm10, %vm1200_vm9 }
 0x32f   :  { %v7796_v60 = vadd.f32 %v1741_v40, %v1308_v31  ;;  %v1631_v7 = vmul.f32 %v5316_v5, %v1630_v59  ;;  %v1293_v34 = vmul.f32 %v1192_v41, %v10869_v44  ;;  %v1203_v6 = vand.u32 2147483647, %v7615_v4 }
 0x330   :  { %v1206_v36 = vor.u32 1.1754944e-38, %v1205_v19  ;;  %v1422_v15 = vpop.xlane.xlu0 %1421  ;;  %v1202_v22 = vsel %vm7803_vm12, %v7675_v56, %v1198_v24  ;;  %vm1633_vm13 = vweird.f32 %v7731_v46  ;;  %vm780_vm15 = vweird.f32 %v7633_v25  ;;  %v7822_v56 = vld [vmem:[%s10603_s0 + $0x40] sm:$0xff] }
 0x331   :  { %v5320_v57 = vpop.eup %5319  ;;  %v1632_v50 = vadd.f32 %v5316_v5, %v1631_v7  ;;  %v4988_v18 = vmul.f32 -1.442695, %v1422_v15  ;;  %v1212_v30 = vmul.f32 %v7754_v45, %v1211_v62  ;;  %v1225_v58 = vmul.f32 %v7794_v52, %v7748_v43  ;;  %vm1635_vm1 = vmor %vm1633_vm13, %vm1634_vm11  ;;  %v10876_v62 = vld [vmem:[#allocation14_spill] sm:$0xff] }
 0x332   :  { %v5322_v28 = vpop.eup %5321  ;;  %v1640_v4 = vor.u32 1.1754944e-38, %v1639_v3  ;;  %v7817_v19 = vadd.f32 1.0, %v5320_v57  ;;  %1805 = vmatmul.f32.gmra.mxu3 %v7822_v56  ;;  %vm1638_vm0 = vcmp.eq.f32.partialorder %v1637_v29, 8.507059e+37  ;;  %v778_v10 = vmul.f32 %v7684_v38, %v777_v47  ;;  %v7861_v57 = vld [vmem:[%s10603_s0 + $0x48] sm:$0xff]  ;;  %v10886_v25 = vld [vmem:[#allocation38_spill] sm:$0xff] }
 0x333   :  { %v1636_v46 = vsel %vm1635_vm1, %v5316_v5, %v1632_v50  ;;  %v1644_v33 = vmul.f32 %v5322_v28, %v7776_v51  ;;  %5323 = vpow2.f32 %v4988_v18  ;;  %vm1204_vm2 = vcmp.eq.f32.partialorder %v1203_v6, 8.507059e+37 }
 0x334   :  { %v1641_v53 = vsel %vm1638_vm0, %v1640_v4, %v1636_v46  ;;  %5325 = vrcp.f32 %v7817_v19  ;;  %v1309_v2 = vadd.f32 %v1293_v34, %v7163_v35  ;;  %v1207_v42 = vsel %vm1204_vm2, %v1206_v36, %v1202_v22  ;;  %v10879_v34 = vld [vmem:[#allocation3_spill] sm:$0xff] }
 0x335   :  { %v1742_v1 = vmul.f32 %v1641_v53, %v6777_v9  ;;  %v1645_v17 = vsub.f32 1.0, %v1644_v33  ;;  %v1213_v61 = vadd.f32 %v7754_v45, %v1212_v30  ;;  %vm1215_vm3 = vweird.f32 %v7754_v45 }
 0x336   :  { %v1226_v5 = vsub.f32 1.0, %v1225_v58  ;;  %v1654_v13 = vand.u32 2147483648, %v7776_v51  ;;  %v10873_v31 = vand.u32 2147483647, %v10872_v32  ;;  %vm1649_vm7 = vweird.f32 %v5322_v28  ;;  %v10889_v32 = vld [vmem:[#allocation46_spill] sm:$0xff] }
 0x337   :  { %v7839_v41 = vadd.f32 %v1742_v1, %v1309_v2  ;;  %v1646_v35 = vmul.f32 %v5322_v28, %v1645_v17  ;;  %v1652_v9 = vand.u32 2147483647, %v7776_v51  ;;  %v779_v24 = vadd.f32 %v7684_v38, %v778_v10  ;;  %v10882_v2 = vld [vmem:[#allocation16_spill] sm:$0xff] }
 0x338   :  { %vm7835_vm4 = vcmp.eq.f32.partialorder %v10873_v31, 8.507059e+37  ;;  %vm781_vm5 = vweird.f32 %v7684_v38  ;;  %vm1214_vm6 = vweird.f32 %v7681_v54  ;;  %v1220_v40 = vand.u32 2147483648, %v7681_v54 }
 0x339   :  { %v5324_v59 = vpop.eup %5323  ;;  %v1294_v3 = vmul.f32 %v1207_v42, %v10876_v62  ;;  %vm7847_vm8 = vmor %vm1214_vm6, %vm1215_vm3  ;;  %v1218_v29 = vand.u32 2147483647, %v7681_v54  ;;  %v1647_v47 = vadd.f32 %v5322_v28, %v1646_v35  ;;  %vm1648_vm9 = vweird.f32 %v7776_v51  ;;  %v10890_v35 = vld [vmem:[#allocation49_spill] sm:$0xff] }
 0x33a   :  { %v5326_v44 = vpop.eup %5325  ;;  %v846_v26 = vmul.f32 %v773_v55, %v10879_v34  ;;  %v1227_v6 = vmul.f32 %v7794_v52, %v1226_v5  ;;  %vm1650_vm10 = vmor %vm1648_vm9, %vm1649_vm7  ;;  %v1655_v36 = vor.u32 1.1754944e-38, %v1654_v13  ;;  %v7856_v15 = vadd.f32 1.0, %v5324_v59  ;;  %1808 = vmatmul.f32.gmra.mxu3 %v7861_v57  ;;  %v5858_v34 = vld [vmem:[%s10601_s1 + $0x60] sm:$0xff] }
 0x33b   :  { %vm7868_vm11 = vmor %vm780_vm15, %vm781_vm5  ;;  %v1217_v51 = vsel %vm7847_vm8, %v7754_v45, %v1213_v61  ;;  %v1651_v55 = vsel %vm1650_vm10, %v5322_v28, %v1647_v47  ;;  %vm1653_vm12 = vcmp.eq.f32.partialorder %v1652_v9, 8.507059e+37  ;;  %v1659_v22 = vmul.f32 %v5326_v44, %v7817_v19 }
 0x33c   :  { %v783_v50 = vsel %vm7868_vm11, %v7684_v38, %v779_v24  ;;  %v1221_v18 = vor.u32 1.1754944e-38, %v1220_v40  ;;  %v1656_v30 = vsel %vm1653_vm12, %v1655_v36, %v1651_v55  ;;  %5327 = vrcp.f32 %v7856_v15 }
 0x33d   :  { %v1310_v58 = vadd.f32 %v1294_v3, %v7700_v0  ;;  %vm1219_vm13 = vcmp.eq.f32.partialorder %v1218_v29, 8.507059e+37  ;;  %v1743_v4 = vmul.f32 %v1656_v30, %v6870_v8  ;;  %v1660_v46 = vsub.f32 1.0, %v1659_v22  ;;  %v10892_v22 = vld [vmem:[#allocation18_spill] sm:$0xff]  ;;  %v7935_v30 = vld [vmem:[%s10603_s0 + $0x58] sm:$0xff] }
 0x33e   :  { %v1222_v33 = vsel %vm1219_vm13, %v1221_v18, %v1217_v51  ;;  %v1228_v45 = vadd.f32 %v7794_v52, %v1227_v6  ;;  %vm1230_vm15 = vweird.f32 %v7794_v52  ;;  %v1669_v28 = vand.u32 2147483648, %v7817_v19  ;;  %v10891_v6 = vld [vmem:[#allocation4_spill] sm:$0xff] }
 0x33f   :  { %v7885_v10 = vadd.f32 %v1743_v4, %v1310_v58  ;;  %v1661_v38 = vmul.f32 %v5326_v44, %v1660_v46  ;;  %vm1664_vm1 = vweird.f32 %v5326_v44  ;;  %v1667_v53 = vand.u32 2147483647, %v7817_v19 }
 0x340   :  { %vm785_vm0 = vcmp.eq.f32.partialorder %v784_v27, 8.507059e+37  ;;  %v787_v8 = vor.u32 1.1754944e-38, %v786_v39  ;;  %vm1229_vm2 = vweird.f32 %v7748_v43  ;;  %v1235_v0 = vand.u32 2147483648, %v7748_v43  ;;  %v10887_v39 = vld [vmem:[#allocation44_spill] sm:$0xff] }
 0x341   :  { %v1295_v42 = vmul.f32 %v1222_v33, %v10882_v2  ;;  %vm7895_vm3 = vmor %vm1229_vm2, %vm1230_vm15  ;;  %v1233_v17 = vand.u32 2147483647, %v7748_v43  ;;  %v1662_v61 = vadd.f32 %v5326_v44, %v1661_v38  ;;  %vm1663_vm7 = vweird.f32 %v7817_v19  ;;  %v7914_v43 = vld [vmem:[%s10603_s0 + $0x50] sm:$0xff]  ;;  %v7950_v38 = vld [vmem:[%s10603_s0 + $0x68] sm:$0xff] }
 0x342   :  { %v5328_v5 = vpop.eup %5327  ;;  %v10888_v13 = vsel %vm6895_vm14, %v10886_v25, %v10887_v39  ;;  %v862_v9 = vadd.f32 %v846_v26, %v10890_v35  ;;  %v788_v24 = vsel %vm785_vm0, %v787_v8, %v783_v50  ;;  %vm1665_vm5 = vmor %vm1663_vm7, %vm1664_vm1  ;;  %v1670_v40 = vor.u32 1.1754944e-38, %v1669_v28  ;;  %1811 = vmatmul.f32.gmra.mxu3 %v7914_v43 }
 0x343   :  { %v355_v31 = vsel %vm7835_vm4, %v10889_v32, %v10888_v13  ;;  %v1232_v19 = vsel %vm7895_vm3, %v7794_v52, %v1228_v45  ;;  %v1666_v59 = vsel %vm1665_vm5, %v5326_v44, %v1662_v61  ;;  %vm1668_vm14 = vcmp.eq.f32.partialorder %v1667_v53, 8.507059e+37  ;;  %v7962_v53 = vld [vmem:[%s10603_s0 + $0x78] sm:$0xff] }
 0x344   :  { %v1674_v37 = vmul.f32 %v5328_v5, %v7856_v15  ;;  %v1236_v62 = vor.u32 1.1754944e-38, %v1235_v0  ;;  %v1671_v3 = vsel %vm1668_vm14, %v1670_v40, %v1666_v59  ;;  %v1311_v7 = vadd.f32 %v1295_v42, %v862_v9  ;;  %v7970_v0 = vld [vmem:[%s10602_s2] ss:$0 sm:$0xff] }
 0x345   :  { %vm1234_vm4 = vcmp.eq.f32.partialorder %v1233_v17, 8.507059e+37  ;;  %v1744_v29 = vmul.f32 %v1671_v3, %v6950_v63  ;;  %v414_v26 = vmul.f32 %v5858_v34, %v355_v31  ;;  %v847_v36 = vmul.f32 %v788_v24, %v10891_v6 }
 0x346   :  { %v1675_v47 = vsub.f32 1.0, %v1674_v37  ;;  %v1237_v54 = vsel %vm1234_vm4, %v1236_v62, %v1232_v19  ;;  %v1684_v52 = vand.u32 2147483648, %v7856_v15  ;;  %vm1679_vm6 = vweird.f32 %v5328_v5 }
 0x347   :  { %v7927_v44 = vadd.f32 %v1744_v29, %v1311_v7  ;;  %v1682_v55 = vand.u32 2147483647, %v7856_v15  ;;  %v1296_v50 = vmul.f32 %v1237_v54, %v10892_v22  ;;  %vm1678_vm8 = vweird.f32 %v7856_v15  ;;  %v7944_v15 = vld [vmem:[%s10603_s0 + $0x60] sm:$0xff] }
 0x348   :  { %v1676_v51 = vmul.f32 %v5328_v5, %v1675_v47  ;;  %vm1680_vm9 = vmor %vm1678_vm8, %vm1679_vm6  ;;  %v1685_v18 = vor.u32 1.1754944e-38, %v1684_v52  ;;  %v863_v58 = vadd.f32 %v847_v36, %v414_v26  ;;  %v8026_v36 = vpop.xlane.xlu1 %1423 }
 0x349   :  { %vm1683_vm10 = vcmp.eq.f32.partialorder %v1682_v55, 8.507059e+37  ;;  %10894 = vst [vmem:[#allocation29_spill] sm:$0xff] %v8026_v36 }
 0x34a   :  { %v1677_v63 = vadd.f32 %v5328_v5, %v1676_v51  ;;  %1814 = vmatmul.f32.gmra.mxu3 %v7935_v30  ;;  %v1312_v33 = vadd.f32 %v1296_v50, %v863_v58  ;;  %v8032_v51 = vpop.xlane.xlu2 %1425 }
 0x34b   :  { %10896 = vst [vmem:[#allocation25_spill] sm:$0xff] %v8032_v51 }
 0x34c   :  { %v1681_v4 = vsel %vm1680_vm9, %v5328_v5, %v1677_v63 }
 0x34d   :  { %v1686_v46 = vsel %vm1683_vm10, %v1685_v18, %v1681_v4  ;;  %v8041_v18 = vpop.xlane.xlu0 %1427 }
 0x34e   :  { %v1745_v45 = vmul.f32 %v1686_v46, %v7017_v20  ;;  %v7956_v20 = vld [vmem:[%s10603_s0 + $0x70] sm:$0xff]  ;;  %10898 = vst [vmem:[#allocation27_spill] sm:$0xff] %v8041_v18  ;;  %v10899_v46 = vld [vmem:[#allocation26_spill] sm:$0xff] }
 0x350   :  { %v7939_v28 = vadd.f32 %v1745_v45, %v1312_v33  ;;  %v4935_v33 = vmul.f32 -1.442695, %v10899_v46 }
 0x352   :  { %1817 = vmatmul.f32.gmra.mxu3 %v7944_v15 }
 0x35a   :  { %1820 = vmatmul.f32.gmra.mxu3 %v7950_v38 }
 0x362   :  { %1823 = vmatmul.f32.gmra.mxu3 %v7956_v20 }
 0x36a   :  { %1826 = vmatmul.f32.gmra.mxu3 %v7962_v53 }
 0x375   :  { %v7965_v8 = vpop.f32.mrf.mxu3 }
 0x376   :  { %v1830_v2 = vmul.f32 %v7970_v0, %v7965_v8 }
 0x378   :  { %1846 = vadd.xlane.f32.xlu1 %v1830_v2 }
 0x37d   :  { %v7974_v42 = vpop.f32.mrf.mxu3 }
 0x37e   :  { %v1831_v1 = vmul.f32 %v7970_v0, %v7974_v42 }
 0x380   :  { %1848 = vadd.xlane.f32.xlu2 %v1831_v1 }
 0x385   :  { %v7978_v17 = vpop.f32.mrf.mxu3 }
 0x386   :  { %v1832_v61 = vmul.f32 %v7970_v0, %v7978_v17 }
 0x388   :  { %1850 = vadd.xlane.f32.xlu0 %v1832_v61 }
 0x38d   :  { %v7982_v5 = vpop.f32.mrf.mxu3 }
 0x38e   :  { %v1833_v27 = vmul.f32 %v7970_v0, %v7982_v5 }
 0x390   :  { %1852 = vadd.xlane.f32.xlu1 %v1833_v27 }
 0x395   :  { %v7986_v25 = vpop.f32.mrf.mxu3 }
 0x396   :  { %v1834_v39 = vmul.f32 %v7970_v0, %v7986_v25 }
 0x398   :  { %1854 = vadd.xlane.f32.xlu2 %v1834_v39 }
 0x39d   :  { %v7990_v13 = vpop.f32.mrf.mxu3 }
 0x39e   :  { %v1835_v32 = vmul.f32 %v7970_v0, %v7990_v13 }
 0x3a0   :  { %1856 = vadd.xlane.f32.xlu0 %v1835_v32 }
 0x3a5   :  { %v7994_v31 = vpop.f32.mrf.mxu3 }
 0x3a6   :  { %v1836_v35 = vmul.f32 %v7970_v0, %v7994_v31 }
 0x3a8   :  { %1858 = vadd.xlane.f32.xlu1 %v1836_v35 }
 0x3ad   :  { %v7998_v9 = vpop.f32.mrf.mxu3 }
 0x3ae   :  { %v1837_v24 = vmul.f32 %v7970_v0, %v7998_v9 }
 0x3b0   :  { %1860 = vadd.xlane.f32.xlu2 %v1837_v24 }
 0x3b5   :  { %v8002_v40 = vpop.f32.mrf.mxu3 }
 0x3b6   :  { %v1838_v19 = vmul.f32 %v7970_v0, %v8002_v40 }
 0x3b8   :  { %1862 = vadd.xlane.f32.xlu0 %v1838_v19 }
 0x3bd   :  { %v8006_v59 = vpop.f32.mrf.mxu3 }
 0x3be   :  { %v1839_v37 = vmul.f32 %v7970_v0, %v8006_v59 }
 0x3c0   :  { %1864 = vadd.xlane.f32.xlu1 %v1839_v37 }
 0x3c5   :  { %v8010_v62 = vpop.f32.mrf.mxu3 }
 0x3c6   :  { %v1840_v3 = vmul.f32 %v7970_v0, %v8010_v62 }
 0x3c8   :  { %1866 = vadd.xlane.f32.xlu2 %v1840_v3 }
 0x3cd   :  { %v8014_v7 = vpop.f32.mrf.mxu3 }
 0x3ce   :  { %v1841_v29 = vmul.f32 %v7970_v0, %v8014_v7 }
 0x3d0   :  { %1868 = vadd.xlane.f32.xlu0 %v1841_v29 }
 0x3d5   :  { %v8018_v47 = vpop.f32.mrf.mxu3 }
 0x3d6   :  { %v1842_v34 = vmul.f32 %v7970_v0, %v8018_v47 }
 0x3d8   :  { %1870 = vadd.xlane.f32.xlu1 %v1842_v34 }
 0x3dd   :  { %v8022_v26 = vpop.f32.mrf.mxu3 }
 0x3de   :  { %10893 = vst [vmem:[#allocation32_spill] sm:$0xff] %v8022_v26  ;;  %v1843_v6 = vmul.f32 %v7970_v0, %v8022_v26 }
 0x3e0   :  { %1872 = vadd.xlane.f32.xlu2 %v1843_v6 }
 0x3e5   :  { %v8028_v54 = vpop.f32.mrf.mxu3 }
 0x3e6   :  { %10895 = vst [vmem:[#allocation11_spill] sm:$0xff] %v8028_v54  ;;  %v1844_v52 = vmul.f32 %v7970_v0, %v8028_v54 }
 0x3e8   :  { %1874 = vadd.xlane.f32.xlu0 %v1844_v52 }
 0x3eb   :  { %v1847_v55 = vpop.xlane.xlu1 %1846 }
 0x3ec   :  { %v4992_v22 = vmul.f32 -1.442695, %v1847_v55  ;;  %v10900_v55 = vld [vmem:[#allocation42_spill] sm:$0xff] }
 0x3ed   :  { %v8034_v50 = vpop.f32.mrf.mxu3 }
 0x3ee   :  { %10897 = vst [vmem:[#allocation28_spill] sm:$0xff] %v8034_v50  ;;  %5329 = vpow2.f32 %v4992_v22  ;;  %2214 = vmatpush.msrb.mxu0 %v8034_v50  ;;  %v1845_v63 = vmul.f32 %v7970_v0, %v8034_v50  ;;  %v4951_v22 = vmul.f32 -1.442695, %v10900_v55 }
 0x3f0   :  { %2215 = vmatpush.msrb.mxu0 %v8028_v54  ;;  %1876 = vadd.xlane.f32.xlu1 %v1845_v63 }
 0x3f2   :  { %2216 = vmatpush.msrb.mxu0 %v8022_v26 }
 0x3f3   :  { %v1849_v58 = vpop.xlane.xlu2 %1848 }
 0x3f4   :  { %v5330_v4 = vpop.eup %5329  ;;  %v4993_v45 = vmul.f32 -1.442695, %v1849_v58  ;;  %2217 = vmatpush.msrb.mxu0 %v8018_v47 }
 0x3f5   :  { %v1926_v2 = vadd.f32 1.0, %v5330_v4 }
 0x3f6   :  { %5331 = vpow2.f32 %v4993_v45  ;;  %2218 = vmatpush.msrb.mxu0 %v8014_v7 }
 0x3f7   :  { %5333 = vrcp.f32 %v1926_v2  ;;  %v1953_v3 = vand.u32 2147483648, %v1926_v2  ;;  %v1951_v34 = vand.u32 2147483647, %v1926_v2  ;;  %vm1947_vm12 = vweird.f32 %v1926_v2 }
 0x3f8   :  { %5335 = vpow2.f32 %v4935_v33  ;;  %2219 = vmatpush.msrb.mxu0 %v8010_v62 }
 0x3f9   :  { %v1954_v46 = vor.u32 1.1754944e-38, %v1953_v3  ;;  %vm1952_vm15 = vcmp.eq.f32.partialorder %v1951_v34, 8.507059e+37 }
 0x3fa   :  { %2220 = vmatpush.msrb.mxu0 %v8006_v59 }
 0x3fb   :  { %v1851_v1 = vpop.xlane.xlu0 %1850 }
 0x3fc   :  { %v5332_v61 = vpop.eup %5331  ;;  %v4994_v27 = vmul.f32 -1.442695, %v1851_v1  ;;  %2221 = vmatpush.msrb.mxu0 %v8002_v40 }
 0x3fd   :  { %v5334_v39 = vpop.eup %5333  ;;  %v8049_v32 = vadd.f32 1.0, %v5332_v61  ;;  %v10901_v61 = vld [vmem:[#allocation53_spill] sm:$0xff] }
 0x3fe   :  { %v5336_v35 = vpop.eup %5335  ;;  %v1943_v24 = vmul.f32 %v5334_v39, %v1926_v2  ;;  %5337 = vpow2.f32 %v4994_v27  ;;  %2222 = vmatpush.msrb.mxu0 %v7998_v9  ;;  %vm1948_vm11 = vweird.f32 %v5334_v39  ;;  %v4967_v27 = vmul.f32 -1.442695, %v10901_v61 }
 0x3ff   :  { %5339 = vrcp.f32 %v8049_v32  ;;  %v8054_v37 = vadd.f32 1.0, %v5336_v35  ;;  %vm1949_vm13 = vmor %vm1947_vm12, %vm1948_vm11  ;;  %v1966_v34 = vand.u32 2147483647, %v8049_v32  ;;  %vm1962_vm0 = vweird.f32 %v8049_v32 }
 0x400   :  { %v1944_v19 = vsub.f32 1.0, %v1943_v24  ;;  %2223 = vmatpush.msrb.mxu0 %v7994_v31 }
 0x401   :  { %5341 = vrcp.f32 %v8054_v37  ;;  %vm1967_vm3 = vcmp.eq.f32.partialorder %v1966_v34, 8.507059e+37  ;;  %vm272_vm6 = vweird.f32 %v8054_v37 }
 0x402   :  { %v1945_v29 = vmul.f32 %v5334_v39, %v1944_v19  ;;  %2224 = vmatpush.msrb.mxu0 %v7990_v13  ;;  %v4983_v19 = vmul.f32 -1.442695, %v7662_v21 }
 0x403   :  { %v1853_v6 = vpop.xlane.xlu1 %1852 }
 0x404   :  { %v5338_v52 = vpop.eup %5337  ;;  %v1946_v63 = vadd.f32 %v5334_v39, %v1945_v29  ;;  %v4995_v58 = vmul.f32 -1.442695, %v1853_v6  ;;  %2225 = vmatpush.msrb.mxu0 %v7986_v25 }
 0x405   :  { %v5340_v4 = vpop.eup %5339  ;;  %v8060_v33 = vadd.f32 1.0, %v5338_v52 }
 0x406   :  { %v1950_v45 = vsel %vm1949_vm13, %v5334_v39, %v1946_v63  ;;  %v1958_v1 = vmul.f32 %v5340_v4, %v8049_v32  ;;  %5343 = vpow2.f32 %v4995_v58  ;;  %2226 = vmatpush.msrb.mxu0 %v7982_v5  ;;  %v1968_v39 = vand.u32 2147483648, %v8049_v32 }
 0x407   :  { %v1955_v2 = vsel %vm1952_vm15, %v1954_v46, %v1950_v45  ;;  %5345 = vrcp.f32 %v8060_v33  ;;  %vm1963_vm1 = vweird.f32 %v5340_v4  ;;  %v8075_v6 = vpop.eup %5341  ;;  %v8084_v46 = vld [vmem:[%s10603_s0] sm:$0xff]  ;;  %vm1977_vm5 = vweird.f32 %v8060_v33 }
 0x408   :  { %5347 = vpow2.f32 %v4951_v22  ;;  %v2182_v35 = vmul.f32 %v1955_v2, %v7965_v8  ;;  %v1959_v24 = vsub.f32 1.0, %v1958_v1  ;;  %2227 = vmatpush.msrb.mxu0 %v7978_v17  ;;  %vm1964_vm2 = vmor %vm1962_vm0, %vm1963_vm1  ;;  %vm273_vm8 = vweird.f32 %v8075_v6 }
 0x409   :  { %5349 = vpow2.f32 %v4967_v27  ;;  %vm8130_vm10 = vmor %vm272_vm6, %vm273_vm8 }
 0x40a   :  { %v8071_v3 = vadd.f32 %v2182_v35, %v7407_v14  ;;  %v1960_v29 = vmul.f32 %v5340_v4, %v1959_v24  ;;  %2228 = vmatpush.msrb.mxu0 %v7974_v42  ;;  %5351 = vpow2.f32 %v4983_v19  ;;  %v1969_v14 = vor.u32 1.1754944e-38, %v1968_v39 }
 0x40b   :  { %v1855_v52 = vpop.xlane.xlu2 %1854  ;;  %v1983_v19 = vand.u32 2147483648, %v8060_v33 }
 0x40c   :  { %v5344_v55 = vpop.eup %5343  ;;  %v1961_v22 = vadd.f32 %v5340_v4, %v1960_v29  ;;  %v4996_v21 = vmul.f32 -1.442695, %v1855_v52  ;;  %2229 = vmatpush.msrb.mxu0 %v7965_v8  ;;  %v268_v8 = vmul.f32 %v8075_v6, %v8054_v37  ;;  %v1981_v29 = vand.u32 2147483647, %v8060_v33 }
 0x40d   :  { %v5346_v63 = vpop.eup %5345  ;;  %v8079_v58 = vadd.f32 1.0, %v5344_v55  ;;  %2230 = vmatmul.f32.vlgmr.msrb.gmra.mxu0 %v8084_v46 }
 0x40e   :  { %v5348_v45 = vpop.eup %5347  ;;  %v1965_v1 = vsel %vm1964_vm2, %v5340_v4, %v1961_v22  ;;  %v1973_v32 = vmul.f32 %v5346_v63, %v8060_v33  ;;  %5353 = vpow2.f32 %v4996_v21  ;;  %vm1978_vm7 = vweird.f32 %v5346_v63 }
 0x40f   :  { %v1970_v61 = vsel %vm1967_vm3, %v1969_v14, %v1965_v1  ;;  %5355 = vrcp.f32 %v8079_v58  ;;  %v5350_v35 = vpop.eup %5349  ;;  %v8092_v24 = vadd.f32 1.0, %v5348_v45  ;;  %v269_v52 = vsub.f32 1.0, %v268_v8  ;;  %vm1979_vm14 = vmor %vm1977_vm5, %vm1978_vm7 }
 0x410   :  { %v2183_v27 = vmul.f32 %v1970_v61, %v7974_v42  ;;  %v1974_v2 = vsub.f32 1.0, %v1973_v32  ;;  %v5352_v34 = vpop.eup %5351  ;;  %v8099_v21 = vadd.f32 1.0, %v5350_v35  ;;  %v8108_v32 = vld [vmem:[%s10603_s0 + $0x8] sm:$0xff]  ;;  %vm1982_vm4 = vcmp.eq.f32.partialorder %v1981_v29, 8.507059e+37 }
 0x411   :  { %5357 = vrcp.f32 %v8092_v24  ;;  %v270_v33 = vmul.f32 %v8075_v6, %v269_v52  ;;  %v1996_v52 = vand.u32 2147483647, %v8079_v58  ;;  %vm1992_vm11 = vweird.f32 %v8079_v58 }
 0x412   :  { %v8096_v4 = vadd.f32 %v2183_v27, %v7455_v49  ;;  %v1975_v39 = vmul.f32 %v5346_v63, %v1974_v2  ;;  %v1984_v49 = vor.u32 1.1754944e-38, %v1983_v19  ;;  %v8115_v2 = vadd.f32 1.0, %v5352_v34 }
 0x413   :  { %v1857_v55 = vpop.xlane.xlu0 %1856  ;;  %v271_v34 = vadd.f32 %v8075_v6, %v270_v33  ;;  %vm1997_vm13 = vcmp.eq.f32.partialorder %v1996_v52, 8.507059e+37  ;;  %vm705_vm7 = vweird.f32 %v8092_v24  ;;  %vm1154_vm6 = vweird.f32 %v8099_v21 }
 0x414   :  { %v5354_v22 = vpop.eup %5353  ;;  %v1976_v42 = vadd.f32 %v5346_v63, %v1975_v39  ;;  %v4997_v14 = vmul.f32 -1.442695, %v1857_v55 }
 0x415   :  { %v5356_v45 = vpop.eup %5355  ;;  %v8103_v1 = vadd.f32 1.0, %v5354_v22  ;;  %2233 = vmatmul.f32.gmra.mxu0 %v8108_v32  ;;  %v278_v22 = vand.u32 2147483648, %v8054_v37 }
 0x416   :  { %v1980_v8 = vsel %vm1979_vm14, %v5346_v63, %v1976_v42  ;;  %v1988_v61 = vmul.f32 %v5356_v45, %v8079_v58  ;;  %5359 = vpow2.f32 %v4997_v14  ;;  %v1998_v63 = vand.u32 2147483648, %v8079_v58 }
 0x417   :  { %v1985_v27 = vsel %vm1982_vm4, %v1984_v49, %v1980_v8  ;;  %5361 = vrcp.f32 %v8103_v1  ;;  %vm1993_vm9 = vweird.f32 %v5356_v45  ;;  %v8125_v55 = vpop.eup %5357  ;;  %v279_v58 = vor.u32 1.1754944e-38, %v278_v22 }
 0x418   :  { %5363 = vrcp.f32 %v8099_v21  ;;  %v2184_v35 = vmul.f32 %v1985_v27, %v7978_v17  ;;  %v1989_v19 = vsub.f32 1.0, %v1988_v61  ;;  %v276_v17 = vand.u32 2147483647, %v8054_v37  ;;  %vm1994_vm12 = vmor %vm1992_vm11, %vm1993_vm9  ;;  %v8141_v37 = vld [vmem:[%s10603_s0 + $0x10] sm:$0xff] }
 0x419   :  { %5365 = vrcp.f32 %v8115_v2  ;;  %v1999_v27 = vor.u32 1.1754944e-38, %v1998_v63  ;;  %v701_v63 = vmul.f32 %v8125_v55, %v8092_v24  ;;  %v2013_v52 = vand.u32 2147483648, %v8103_v1 }
 0x41a   :  { %v8122_v39 = vadd.f32 %v2184_v35, %v7513_v11  ;;  %v1990_v29 = vmul.f32 %v5356_v45, %v1989_v19  ;;  %vm277_vm15 = vcmp.eq.f32.partialorder %v276_v17, 8.507059e+37  ;;  %v709_v17 = vand.u32 2147483647, %v8092_v24 }
 0x41b   :  { %v1859_v42 = vpop.xlane.xlu1 %1858  ;;  %vm2007_vm0 = vweird.f32 %v8103_v1  ;;  %vm706_vm14 = vweird.f32 %v8125_v55 }
 0x41c   :  { %v5360_v14 = vpop.eup %5359  ;;  %v1991_v11 = vadd.f32 %v5356_v45, %v1990_v29  ;;  %v4998_v8 = vmul.f32 -1.442695, %v1859_v42  ;;  %vm8181_vm5 = vcmp.eq.f32.partialorder %v709_v17, 8.507059e+37  ;;  %vm8200_vm9 = vmor %vm705_vm7, %vm706_vm14 }
 0x41d   :  { %v5362_v61 = vpop.eup %5361  ;;  %v8136_v33 = vadd.f32 1.0, %v5360_v14  ;;  %2236 = vmatmul.f32.gmra.mxu0 %v8141_v37  ;;  %v275_v14 = vsel %vm8130_vm10, %v8075_v6, %v271_v34  ;;  %v702_v6 = vsub.f32 1.0, %v701_v63 }
 0x41e   :  { %v8144_v35 = vpop.eup %5363  ;;  %v1995_v19 = vsel %vm1994_vm12, %v5356_v45, %v1991_v11  ;;  %v2003_v29 = vmul.f32 %v5362_v61, %v8103_v1  ;;  %5367 = vpow2.f32 %v4998_v8  ;;  %vm2008_vm1 = vweird.f32 %v5362_v61 }
 0x41f   :  { %v2000_v42 = vsel %vm1997_vm13, %v1999_v27, %v1995_v19  ;;  %5369 = vrcp.f32 %v8136_v33  ;;  %v1150_v45 = vmul.f32 %v8144_v35, %v8099_v21  ;;  %v8157_v22 = vpop.eup %5365  ;;  %v2011_v27 = vand.u32 2147483647, %v8103_v1  ;;  %vm2009_vm2 = vmor %vm2007_vm0, %vm2008_vm1 }
 0x420   :  { %v2185_v50 = vmul.f32 %v2000_v42, %v7982_v5  ;;  %v2004_v54 = vsub.f32 1.0, %v2003_v29  ;;  %v8163_v49 = vsel %vm277_vm15, %v279_v58, %v275_v14  ;;  %v8174_v58 = vld [vmem:[%s10603_s0 + $0x18] sm:$0xff]  ;;  %v703_v14 = vmul.f32 %v8125_v55, %v702_v6 }
 0x421   :  { %v1151_v26 = vsub.f32 1.0, %v1150_v45  ;;  %vm2012_vm3 = vcmp.eq.f32.partialorder %v2011_v27, 8.507059e+37  ;;  %v2028_v6 = vand.u32 2147483648, %v8136_v33  ;;  %v2026_v17 = vand.u32 2147483647, %v8136_v33 }
 0x422   :  { %v8160_v11 = vadd.f32 %v2185_v50, %v7547_v12  ;;  %v2005_v8 = vmul.f32 %v5362_v61, %v2004_v54  ;;  %v1599_v12 = vmul.f32 %v8157_v22, %v8115_v2  ;;  %v2014_v54 = vor.u32 1.1754944e-38, %v2013_v52 }
 0x423   :  { %v1861_v34 = vpop.xlane.xlu2 %1860  ;;  %v1152_v27 = vmul.f32 %v8144_v35, %v1151_v26  ;;  %vm1155_vm8 = vweird.f32 %v8144_v35  ;;  %vm2022_vm10 = vweird.f32 %v8136_v33  ;;  %v2029_v18 = vor.u32 1.1754944e-38, %v2028_v6 }
 0x424   :  { %v5368_v5 = vpop.eup %5367  ;;  %v2006_v19 = vadd.f32 %v5362_v61, %v2005_v8  ;;  %v4999_v29 = vmul.f32 -1.442695, %v1861_v34  ;;  %v711_v8 = vand.u32 2147483648, %v8092_v24  ;;  %v8214_v24 = vld [vmem:[%s10603_s0 + $0x20] sm:$0xff]  ;;  %vm8221_vm12 = vmor %vm1154_vm6, %vm1155_vm8  ;;  %vm2027_vm13 = vcmp.eq.f32.partialorder %v2026_v17, 8.507059e+37 }
 0x425   :  { %v5370_v42 = vpop.eup %5369  ;;  %v8169_v50 = vadd.f32 1.0, %v5368_v5  ;;  %2239 = vmatmul.f32.gmra.mxu0 %v8174_v58  ;;  %v1600_v5 = vsub.f32 1.0, %v1599_v12  ;;  %vm1604_vm1 = vweird.f32 %v8157_v22  ;;  %v1609_v12 = vand.u32 2147483648, %v8115_v2 }
 0x426   :  { %v2010_v63 = vsel %vm2009_vm2, %v5362_v61, %v2006_v19  ;;  %v2018_v1 = vmul.f32 %v5370_v42, %v8136_v33  ;;  %5371 = vpow2.f32 %v4999_v29  ;;  %vm2023_vm4 = vweird.f32 %v5370_v42 }
 0x427   :  { %v2015_v45 = vsel %vm2012_vm3, %v2014_v54, %v2010_v63  ;;  %5373 = vrcp.f32 %v8169_v50  ;;  %v704_v54 = vadd.f32 %v8125_v55, %v703_v14  ;;  %vm2024_vm11 = vmor %vm2022_vm10, %vm2023_vm4  ;;  %vm1603_vm2 = vweird.f32 %v8115_v2 }
 0x428   :  { %v2186_v34 = vmul.f32 %v2015_v45, %v7986_v25  ;;  %v2019_v61 = vsub.f32 1.0, %v2018_v1  ;;  %v1158_v25 = vand.u32 2147483647, %v8099_v21  ;;  %vm8253_vm3 = vmor %vm1603_vm2, %vm1604_vm1  ;;  %vm2037_vm7 = vweird.f32 %v8169_v50 }
 0x429   :  { %v708_v6 = vsel %vm8200_vm9, %v8125_v55, %v704_v54  ;;  %v2041_v54 = vand.u32 2147483647, %v8169_v50 }
 0x42a   :  { %v8191_v19 = vadd.f32 %v2186_v34, %v7609_v23  ;;  %v2020_v29 = vmul.f32 %v5370_v42, %v2019_v61  ;;  %v1160_v23 = vand.u32 2147483648, %v8099_v21  ;;  %v1153_v34 = vadd.f32 %v8144_v35, %v1152_v27 }
 0x42b   :  { %v1863_v63 = vpop.xlane.xlu0 %1862  ;;  %v1601_v61 = vmul.f32 %v8157_v22, %v1600_v5  ;;  %vm8230_vm15 = vcmp.eq.f32.partialorder %v1158_v25, 8.507059e+37  ;;  %vm2042_vm14 = vcmp.eq.f32.partialorder %v2041_v54, 8.507059e+37 }
 0x42c   :  { %v5372_v26 = vpop.eup %5371  ;;  %v2021_v1 = vadd.f32 %v5370_v42, %v2020_v29  ;;  %v5000_v14 = vmul.f32 -1.442695, %v1863_v63  ;;  %v712_v29 = vor.u32 1.1754944e-38, %v711_v8  ;;  %v1161_v21 = vor.u32 1.1754944e-38, %v1160_v23 }
 0x42d   :  { %v5374_v45 = vpop.eup %5373  ;;  %v8209_v51 = vadd.f32 1.0, %v5372_v26  ;;  %2242 = vmatmul.f32.gmra.mxu0 %v8214_v24  ;;  %v1157_v17 = vsel %vm8221_vm12, %v8144_v35, %v1153_v34  ;;  %v1610_v26 = vor.u32 1.1754944e-38, %v1609_v12 }
 0x42e   :  { %v2025_v27 = vsel %vm2024_vm11, %v5370_v42, %v2021_v1  ;;  %v2033_v5 = vmul.f32 %v5374_v45, %v8169_v50  ;;  %5375 = vpow2.f32 %v5000_v14  ;;  %v1602_v1 = vadd.f32 %v8157_v22, %v1601_v61 }
 0x42f   :  { %v2030_v63 = vsel %vm2027_vm13, %v2029_v18, %v2025_v27  ;;  %5377 = vrcp.f32 %v8209_v51  ;;  %v2043_v18 = vand.u32 2147483648, %v8169_v50  ;;  %vm2038_vm0 = vweird.f32 %v5374_v45 }
 0x430   :  { %v2187_v36 = vmul.f32 %v2030_v63, %v7990_v13  ;;  %v2034_v42 = vsub.f32 1.0, %v2033_v5  ;;  %v5870_v13 = vld [vmem:[%s10601_s1 + $0x38] sm:$0xff]  ;;  %v713_v35 = vsel %vm8181_vm5, %v712_v29, %v708_v6  ;;  %v1607_v14 = vand.u32 2147483647, %v8115_v2  ;;  %vm2039_vm5 = vmor %vm2037_vm7, %vm2038_vm0  ;;  %v8268_v2 = vld [vmem:[%s10603_s0 + $0x28] sm:$0xff] }
 0x431   :  { %v409_v25 = vmul.f32 %v5870_v13, %v8163_v49  ;;  %v1162_v52 = vsel %vm8230_vm15, %v1161_v21, %v1157_v17  ;;  %v1606_v33 = vsel %vm8253_vm3, %v8157_v22, %v1602_v1  ;;  %v2044_v27 = vor.u32 1.1754944e-38, %v2043_v18  ;;  %v10914_v29 = vld [vmem:[#allocation8_spill] sm:$0xff]  ;;  %v10915_v17 = vld [vmem:[#allocation23_spill] sm:$0xff] }
 0x432   :  { %v8242_v55 = vadd.f32 %v2187_v36, %v7646_v16  ;;  %v2035_v8 = vmul.f32 %v5374_v45, %v2034_v42  ;;  %v842_v63 = vmul.f32 %v713_v35, %v10914_v29  ;;  %vm1608_vm4 = vcmp.eq.f32.partialorder %v1607_v14, 8.507059e+37 }
 0x433   :  { %v1865_v23 = vpop.xlane.xlu1 %1864  ;;  %v1291_v1 = vmul.f32 %v1162_v52, %v10915_v17  ;;  %v1611_v18 = vsel %vm1608_vm4, %v1610_v26, %v1606_v33  ;;  %v2056_v13 = vand.u32 2147483647, %v8209_v51  ;;  %vm2052_vm8 = vweird.f32 %v8209_v51 }
 0x434   :  { %v5376_v16 = vpop.eup %5375  ;;  %v2036_v34 = vadd.f32 %v5374_v45, %v2035_v8  ;;  %v5001_v61 = vmul.f32 -1.442695, %v1865_v23  ;;  %v2058_v8 = vand.u32 2147483648, %v8209_v51  ;;  %v858_v35 = vadd.f32 %v842_v63, %v409_v25 }
 0x435   :  { %v5378_v49 = vpop.eup %5377  ;;  %v1934_v5 = vadd.f32 1.0, %v5376_v16  ;;  %2245 = vmatmul.f32.gmra.mxu0 %v8268_v2  ;;  %v10916_v16 = vld [vmem:[#allocation35_spill] sm:$0xff]  ;;  %vm2057_vm10 = vcmp.eq.f32.partialorder %v2056_v13, 8.507059e+37 }
 0x436   :  { %v2040_v50 = vsel %vm2039_vm5, %v5374_v45, %v2036_v34  ;;  %v2048_v6 = vmul.f32 %v5378_v49, %v8209_v51  ;;  %5379 = vpow2.f32 %v5001_v61  ;;  %vm2053_vm6 = vweird.f32 %v5378_v49 }
 0x437   :  { %v2045_v22 = vsel %vm2042_vm14, %v2044_v27, %v2040_v50  ;;  %5381 = vrcp.f32 %v1934_v5  ;;  %v1740_v36 = vmul.f32 %v1611_v18, %v10916_v16  ;;  %v1307_v61 = vadd.f32 %v1291_v1, %v858_v35  ;;  %vm2054_vm9 = vmor %vm2052_vm8, %vm2053_vm6 }
 0x438   :  { %v2188_v21 = vmul.f32 %v2045_v22, %v7994_v31  ;;  %v2049_v42 = vsub.f32 1.0, %v2048_v6  ;;  %v2059_v52 = vor.u32 1.1754944e-38, %v2058_v8  ;;  %v2073_v63 = vand.u32 2147483648, %v1934_v5 }
 0x439   :  { %v1756_v51 = vadd.f32 %v1740_v36, %v1307_v61  ;;  %vm2067_vm12 = vweird.f32 %v1934_v5 }
 0x43a   :  { %v8277_v45 = vadd.f32 %v2188_v21, %v7697_v48  ;;  %v2050_v54 = vmul.f32 %v5378_v49, %v2049_v42  ;;  %v8285_v48 = vld [vmem:[%s10603_s0 + $0x30] sm:$0xff]  ;;  %v2071_v21 = vand.u32 2147483647, %v1934_v5  ;;  %v2074_v8 = vor.u32 1.1754944e-38, %v2073_v63 }
 0x43b   :  { %v1867_v12 = vpop.xlane.xlu2 %1866 }
 0x43c   :  { %v5380_v23 = vpop.eup %5379  ;;  %v2051_v14 = vadd.f32 %v5378_v49, %v2050_v54  ;;  %v5002_v31 = vmul.f32 -1.442695, %v1867_v12  ;;  %vm2072_vm15 = vcmp.eq.f32.partialorder %v2071_v21, 8.507059e+37 }
 0x43d   :  { %v5382_v34 = vpop.eup %5381  ;;  %v1935_v33 = vadd.f32 1.0, %v5380_v23  ;;  %2248 = vmatmul.f32.gmra.mxu0 %v8285_v48 }
 0x43e   :  { %v2055_v25 = vsel %vm2054_vm9, %v5378_v49, %v2051_v14  ;;  %v2063_v27 = vmul.f32 %v5382_v34, %v1934_v5  ;;  %5383 = vpow2.f32 %v5002_v31  ;;  %vm2068_vm11 = vweird.f32 %v5382_v34 }
 0x43f   :  { %v2060_v50 = vsel %vm2057_vm10, %v2059_v52, %v2055_v25  ;;  %5385 = vrcp.f32 %v1935_v33  ;;  %vm2069_vm13 = vmor %vm2067_vm12, %vm2068_vm11  ;;  %v2088_v16 = vand.u32 2147483648, %v1935_v33  ;;  %v2086_v31 = vand.u32 2147483647, %v1935_v33 }
 0x440   :  { %v2189_v6 = vmul.f32 %v2060_v50, %v7998_v9  ;;  %v2064_v29 = vsub.f32 1.0, %v2063_v27  ;;  %v8294_v9 = vld [vmem:[%s10603_s0 + $0x38] sm:$0xff]  ;;  %vm2082_vm0 = vweird.f32 %v1935_v33 }
 0x441   :  { %v2089_v50 = vor.u32 1.1754944e-38, %v2088_v16  ;;  %vm2087_vm3 = vcmp.eq.f32.partialorder %v2086_v31, 8.507059e+37 }
 0x442   :  { %v8289_v26 = vadd.f32 %v2189_v6, %v1756_v51  ;;  %v2065_v22 = vmul.f32 %v5382_v34, %v2064_v29 }
 0x443   :  { %v1869_v42 = vpop.xlane.xlu0 %1868 }
 0x444   :  { %v5384_v17 = vpop.eup %5383  ;;  %v2066_v1 = vadd.f32 %v5382_v34, %v2065_v22  ;;  %v5003_v49 = vmul.f32 -1.442695, %v1869_v42 }
 0x445   :  { %v5386_v18 = vpop.eup %5385  ;;  %v1936_v54 = vadd.f32 1.0, %v5384_v17  ;;  %2251 = vmatmul.f32.gmra.mxu0 %v8294_v9 }
 0x446   :  { %v2070_v13 = vsel %vm2069_vm13, %v5382_v34, %v2066_v1  ;;  %v2078_v35 = vmul.f32 %v5386_v18, %v1935_v33  ;;  %5387 = vpow2.f32 %v5003_v49  ;;  %vm2083_vm1 = vweird.f32 %v5386_v18 }
 0x447   :  { %v2075_v12 = vsel %vm2072_vm15, %v2074_v8, %v2070_v13  ;;  %5389 = vrcp.f32 %v1936_v54  ;;  %vm2084_vm2 = vmor %vm2082_vm0, %vm2083_vm1  ;;  %v2103_v22 = vand.u32 2147483648, %v1936_v54  ;;  %v2101_v42 = vand.u32 2147483647, %v1936_v54 }
 0x448   :  { %v2190_v5 = vmul.f32 %v2075_v12, %v8002_v40  ;;  %v2079_v23 = vsub.f32 1.0, %v2078_v35  ;;  %vm2097_vm5 = vweird.f32 %v1936_v54 }
 0x449   :  { %v2104_v49 = vor.u32 1.1754944e-38, %v2103_v22  ;;  %vm2102_vm4 = vcmp.eq.f32.partialorder %v2101_v42, 8.507059e+37 }
 0x44a   :  { %v8299_v36 = vadd.f32 %v2190_v5, %v7796_v60  ;;  %v2080_v14 = vmul.f32 %v5386_v18, %v2079_v23 }
 0x44b   :  { %v1871_v61 = vpop.xlane.xlu1 %1870 }
 0x44c   :  { %v5388_v52 = vpop.eup %5387  ;;  %v2081_v25 = vadd.f32 %v5386_v18, %v2080_v14  ;;  %v5004_v34 = vmul.f32 -1.442695, %v1871_v61 }
 0x44d   :  { %v5390_v27 = vpop.eup %5389  ;;  %v1937_v51 = vadd.f32 1.0, %v5388_v52  ;;  %2254 = vmatmul.f32.gmra.mxu0 %v7822_v56 }
 0x44e   :  { %v2085_v40 = vsel %vm2084_vm2, %v5386_v18, %v2081_v25  ;;  %v2093_v6 = vmul.f32 %v5390_v27, %v1936_v54  ;;  %5391 = vpow2.f32 %v5004_v34  ;;  %vm2098_vm7 = vweird.f32 %v5390_v27 }
 0x44f   :  { %v2090_v60 = vsel %vm2087_vm3, %v2089_v50, %v2085_v40  ;;  %5393 = vrcp.f32 %v1937_v51  ;;  %vm2099_vm14 = vmor %vm2097_vm5, %vm2098_vm7  ;;  %v2118_v12 = vand.u32 2147483648, %v1937_v51  ;;  %v2116_v54 = vand.u32 2147483647, %v1937_v51 }
 0x450   :  { %v2191_v29 = vmul.f32 %v2090_v60, %v8006_v59  ;;  %v2094_v63 = vsub.f32 1.0, %v2093_v6  ;;  %vm2112_vm8 = vweird.f32 %v1937_v51 }
 0x451   :  { %vm2117_vm10 = vcmp.eq.f32.partialorder %v2116_v54, 8.507059e+37 }
 0x452   :  { %v8304_v21 = vadd.f32 %v2191_v29, %v7839_v41  ;;  %v2095_v33 = vmul.f32 %v5390_v27, %v2094_v63 }
 0x454   :  { %v5392_v17 = vpop.eup %5391  ;;  %v2096_v1 = vadd.f32 %v5390_v27, %v2095_v33 }
 0x455   :  { %v5394_v56 = vpop.eup %5393  ;;  %v1938_v18 = vadd.f32 1.0, %v5392_v17  ;;  %2257 = vmatmul.f32.gmra.mxu0 %v7861_v57  ;;  %v2119_v57 = vor.u32 1.1754944e-38, %v2118_v12 }
 0x456   :  { %v2100_v8 = vsel %vm2099_vm14, %v5390_v27, %v2096_v1  ;;  %v2108_v59 = vmul.f32 %v5394_v56, %v1937_v51  ;;  %vm2113_vm6 = vweird.f32 %v5394_v56 }
 0x457   :  { %v2105_v13 = vsel %vm2102_vm4, %v2104_v49, %v2100_v8  ;;  %5395 = vrcp.f32 %v1938_v18  ;;  %vm2114_vm9 = vmor %vm2112_vm8, %vm2113_vm6  ;;  %v2133_v34 = vand.u32 2147483648, %v1938_v18  ;;  %v2131_v50 = vand.u32 2147483647, %v1938_v18 }
 0x458   :  { %v2192_v41 = vmul.f32 %v2105_v13, %v8010_v62  ;;  %v2109_v35 = vsub.f32 1.0, %v2108_v59  ;;  %vm2127_vm12 = vweird.f32 %v1938_v18 }
 0x459   :  { %v2134_v40 = vor.u32 1.1754944e-38, %v2133_v34  ;;  %vm2132_vm15 = vcmp.eq.f32.partialorder %v2131_v50, 8.507059e+37 }
 0x45a   :  { %v8309_v5 = vadd.f32 %v2192_v41, %v7885_v10  ;;  %v2110_v23 = vmul.f32 %v5394_v56, %v2109_v35 }
 0x45c   :  { %v2111_v16 = vadd.f32 %v5394_v56, %v2110_v23 }
 0x45d   :  { %v5396_v14 = vpop.eup %5395  ;;  %2260 = vmatmul.f32.gmra.mxu0 %v7914_v43 }
 0x45e   :  { %v2115_v31 = vsel %vm2114_vm9, %v5394_v56, %v2111_v16  ;;  %v2123_v61 = vmul.f32 %v5396_v14, %v1938_v18  ;;  %vm2128_vm11 = vweird.f32 %v5396_v14 }
 0x45f   :  { %v2120_v52 = vsel %vm2117_vm10, %v2119_v57, %v2115_v31  ;;  %vm2129_vm13 = vmor %vm2127_vm12, %vm2128_vm11  ;;  %v8381_v57 = vpop.xlane.xlu2 %1872 }
 0x460   :  { %v2193_v62 = vmul.f32 %v2120_v52, %v8014_v7  ;;  %v2124_v25 = vsub.f32 1.0, %v2123_v61  ;;  %v8387_v52 = vpop.xlane.xlu0 %1874 }
 0x462   :  { %v8314_v10 = vadd.f32 %v2193_v62, %v7927_v44  ;;  %v2125_v27 = vmul.f32 %v5396_v14, %v2124_v25 }
 0x463   :  { %v8396_v50 = vpop.xlane.xlu1 %1876 }
 0x464   :  { %v2126_v51 = vadd.f32 %v5396_v14, %v2125_v27 }
 0x465   :  { %2263 = vmatmul.f32.gmra.mxu0 %v7935_v30 }
 0x466   :  { %v2130_v43 = vsel %vm2129_vm13, %v5396_v14, %v2126_v51 }
 0x467   :  { %v2135_v6 = vsel %vm2132_vm15, %v2134_v40, %v2130_v43 }
 0x468   :  { %v2194_v60 = vmul.f32 %v2135_v6, %v8018_v47 }
 0x46a   :  { %v8319_v7 = vadd.f32 %v2194_v60, %v7939_v28 }
 0x46d   :  { %2266 = vmatmul.f32.gmra.mxu0 %v7944_v15 }
 0x475   :  { %2269 = vmatmul.f32.gmra.mxu0 %v7950_v38 }
 0x47d   :  { %2272 = vmatmul.f32.gmra.mxu0 %v7956_v20 }
 0x485   :  { %2275 = vmatmul.f32.gmra.mxu0 %v7962_v53 }
 0x48a   :  { %v8325_v44 = vpop.f32.mrf.mxu0 }
 0x48b   :  { %v2279_v30 = vmul.f32 %v7970_v0, %v8325_v44 }
 0x48d   :  { %2295 = vadd.xlane.f32.xlu2 %v2279_v30 }
 0x492   :  { %v8329_v29 = vpop.f32.mrf.mxu0 }
 0x493   :  { %v2280_v28 = vmul.f32 %v7970_v0, %v8329_v29 }
 0x495   :  { %2297 = vadd.xlane.f32.xlu0 %v2280_v28 }
 0x49a   :  { %v8333_v47 = vpop.f32.mrf.mxu0 }
 0x49b   :  { %v2281_v15 = vmul.f32 %v7970_v0, %v8333_v47 }
 0x49d   :  { %2299 = vadd.xlane.f32.xlu1 %v2281_v15 }
 0x4a2   :  { %v8337_v38 = vpop.f32.mrf.mxu0 }
 0x4a3   :  { %v2282_v20 = vmul.f32 %v7970_v0, %v8337_v38 }
 0x4a5   :  { %2301 = vadd.xlane.f32.xlu2 %v2282_v20 }
 0x4aa   :  { %v8341_v53 = vpop.f32.mrf.mxu0 }
 0x4ab   :  { %v2283_v63 = vmul.f32 %v7970_v0, %v8341_v53 }
 0x4ad   :  { %2303 = vadd.xlane.f32.xlu0 %v2283_v63 }
 0x4b2   :  { %v8345_v22 = vpop.f32.mrf.mxu0 }
 0x4b3   :  { %v2284_v33 = vmul.f32 %v7970_v0, %v8345_v22 }
 0x4b5   :  { %2305 = vadd.xlane.f32.xlu1 %v2284_v33 }
 0x4ba   :  { %v8349_v42 = vpop.f32.mrf.mxu0 }
 0x4bb   :  { %v2285_v17 = vmul.f32 %v7970_v0, %v8349_v42 }
 0x4bd   :  { %2307 = vadd.xlane.f32.xlu2 %v2285_v17 }
 0x4c2   :  { %v8353_v1 = vpop.f32.mrf.mxu0 }
 0x4c3   :  { %v2286_v56 = vmul.f32 %v7970_v0, %v8353_v1 }
 0x4c5   :  { %2309 = vadd.xlane.f32.xlu0 %v2286_v56 }
 0x4ca   :  { %v8357_v49 = vpop.f32.mrf.mxu0 }
 0x4cb   :  { %v2287_v18 = vmul.f32 %v7970_v0, %v8357_v49 }
 0x4cd   :  { %2311 = vadd.xlane.f32.xlu1 %v2287_v18 }
 0x4d2   :  { %v8361_v8 = vpop.f32.mrf.mxu0 }
 0x4d3   :  { %v2288_v59 = vmul.f32 %v7970_v0, %v8361_v8 }
 0x4d5   :  { %2313 = vadd.xlane.f32.xlu2 %v2288_v59 }
 0x4da   :  { %v8365_v13 = vpop.f32.mrf.mxu0 }
 0x4db   :  { %v2289_v41 = vmul.f32 %v7970_v0, %v8365_v13 }
 0x4dd   :  { %2315 = vadd.xlane.f32.xlu0 %v2289_v41 }
 0x4e2   :  { %v8369_v35 = vpop.f32.mrf.mxu0 }
 0x4e3   :  { %v2290_v12 = vmul.f32 %v7970_v0, %v8369_v35 }
 0x4e5   :  { %2317 = vadd.xlane.f32.xlu1 %v2290_v12 }
 0x4ea   :  { %v8373_v23 = vpop.f32.mrf.mxu0 }
 0x4eb   :  { %v2291_v54 = vmul.f32 %v7970_v0, %v8373_v23 }
 0x4ed   :  { %2319 = vadd.xlane.f32.xlu2 %v2291_v54 }
 0x4f2   :  { %v8377_v16 = vpop.f32.mrf.mxu0 }
 0x4f3   :  { %10917 = vst [vmem:[#allocation13_spill] sm:$0xff] %v8377_v16  ;;  %v2292_v14 = vmul.f32 %v7970_v0, %v8377_v16 }
 0x4f5   :  { %2321 = vadd.xlane.f32.xlu0 %v2292_v14 }
 0x4fa   :  { %v8383_v31 = vpop.f32.mrf.mxu0 }
 0x4fb   :  { %10918 = vst [vmem:[#allocation48_spill] sm:$0xff] %v8383_v31  ;;  %v2293_v61 = vmul.f32 %v7970_v0, %v8383_v31 }
 0x4fd   :  { %2323 = vadd.xlane.f32.xlu1 %v2293_v61 }
 0x500   :  { %v2296_v62 = vpop.xlane.xlu2 %2295 }
 0x501   :  { %v5008_v25 = vmul.f32 -1.442695, %v2296_v62 }
 0x502   :  { %v8389_v34 = vpop.f32.mrf.mxu0 }
 0x503   :  { %10919 = vst [vmem:[#allocation15_spill] sm:$0xff] %v8389_v34  ;;  %5397 = vpow2.f32 %v5008_v25  ;;  %2663 = vmatpush.msrb.mxu1 %v8389_v34  ;;  %v2294_v27 = vmul.f32 %v7970_v0, %v8389_v34 }
 0x505   :  { %2664 = vmatpush.msrb.mxu1 %v8383_v31  ;;  %2325 = vadd.xlane.f32.xlu2 %v2294_v27 }
 0x507   :  { %2665 = vmatpush.msrb.mxu1 %v8377_v16 }
 0x508   :  { %v2298_v51 = vpop.xlane.xlu0 %2297 }
 0x509   :  { %v5398_v40 = vpop.eup %5397  ;;  %v5009_v43 = vmul.f32 -1.442695, %v2298_v51  ;;  %2666 = vmatpush.msrb.mxu1 %v8373_v23 }
 0x50a   :  { %v2375_v6 = vadd.f32 1.0, %v5398_v40 }
 0x50b   :  { %5399 = vpow2.f32 %v5009_v43  ;;  %2667 = vmatpush.msrb.mxu1 %v8369_v35 }
 0x50c   :  { %5401 = vrcp.f32 %v2375_v6  ;;  %v2402_v33 = vand.u32 2147483648, %v2375_v6  ;;  %v2400_v56 = vand.u32 2147483647, %v2375_v6  ;;  %vm2396_vm0 = vweird.f32 %v2375_v6 }
 0x50d   :  { %2668 = vmatpush.msrb.mxu1 %v8365_v13 }
 0x50e   :  { %v2403_v14 = vor.u32 1.1754944e-38, %v2402_v33  ;;  %vm2401_vm3 = vcmp.eq.f32.partialorder %v2400_v56, 8.507059e+37 }
 0x50f   :  { %2669 = vmatpush.msrb.mxu1 %v8361_v8 }
 0x510   :  { %v2300_v0 = vpop.xlane.xlu1 %2299 }
 0x511   :  { %v5400_v60 = vpop.eup %5399  ;;  %v5010_v30 = vmul.f32 -1.442695, %v2300_v0  ;;  %2670 = vmatpush.msrb.mxu1 %v8357_v49 }
 0x512   :  { %v5402_v28 = vpop.eup %5401  ;;  %v2376_v15 = vadd.f32 1.0, %v5400_v60 }
 0x513   :  { %v2392_v20 = vmul.f32 %v5402_v28, %v2375_v6  ;;  %5403 = vpow2.f32 %v5010_v30  ;;  %2671 = vmatpush.msrb.mxu1 %v8353_v1  ;;  %vm2397_vm1 = vweird.f32 %v5402_v28 }
 0x514   :  { %5405 = vrcp.f32 %v2376_v15  ;;  %vm2398_vm2 = vmor %vm2396_vm0, %vm2397_vm1  ;;  %v2417_v43 = vand.u32 2147483648, %v2376_v15  ;;  %v2415_v60 = vand.u32 2147483647, %v2376_v15  ;;  %vm2411_vm5 = vweird.f32 %v2376_v15 }
 0x515   :  { %v2393_v63 = vsub.f32 1.0, %v2392_v20  ;;  %2672 = vmatpush.msrb.mxu1 %v8349_v42 }
 0x516   :  { %vm2416_vm4 = vcmp.eq.f32.partialorder %v2415_v60, 8.507059e+37 }
 0x517   :  { %v2394_v17 = vmul.f32 %v5402_v28, %v2393_v63  ;;  %2673 = vmatpush.msrb.mxu1 %v8345_v22 }
 0x518   :  { %v2302_v18 = vpop.xlane.xlu2 %2301 }
 0x519   :  { %v5404_v59 = vpop.eup %5403  ;;  %v2395_v41 = vadd.f32 %v5402_v28, %v2394_v17  ;;  %v5011_v12 = vmul.f32 -1.442695, %v2302_v18  ;;  %2674 = vmatpush.msrb.mxu1 %v8341_v53  ;;  %v2418_v17 = vor.u32 1.1754944e-38, %v2417_v43 }
 0x51a   :  { %v5406_v54 = vpop.eup %5405  ;;  %v2377_v61 = vadd.f32 1.0, %v5404_v59 }
 0x51b   :  { %v2399_v62 = vsel %vm2398_vm2, %v5402_v28, %v2395_v41  ;;  %v2407_v25 = vmul.f32 %v5406_v54, %v2376_v15  ;;  %5407 = vpow2.f32 %v5011_v12  ;;  %2675 = vmatpush.msrb.mxu1 %v8337_v38  ;;  %vm2412_vm7 = vweird.f32 %v5406_v54 }
 0x51c   :  { %v2404_v27 = vsel %vm2401_vm3, %v2403_v14, %v2399_v62  ;;  %5409 = vrcp.f32 %v2377_v61  ;;  %vm2413_vm14 = vmor %vm2411_vm5, %vm2412_vm7  ;;  %v2432_v14 = vand.u32 2147483648, %v2377_v61  ;;  %v2430_v62 = vand.u32 2147483647, %v2377_v61 }
 0x51d   :  { %v2631_v51 = vmul.f32 %v2404_v27, %v8325_v44  ;;  %v2408_v40 = vsub.f32 1.0, %v2407_v25  ;;  %2676 = vmatpush.msrb.mxu1 %v8333_v47  ;;  %vm2426_vm8 = vweird.f32 %v2377_v61 }
 0x51e   :  { %vm2431_vm10 = vcmp.eq.f32.partialorder %v2430_v62, 8.507059e+37 }
 0x51f   :  { %v8411_v6 = vadd.f32 %v2631_v51, %v8071_v3  ;;  %v2409_v0 = vmul.f32 %v5406_v54, %v2408_v40  ;;  %2677 = vmatpush.msrb.mxu1 %v8329_v29  ;;  %v2433_v40 = vor.u32 1.1754944e-38, %v2432_v14 }
 0x520   :  { %v2304_v30 = vpop.xlane.xlu0 %2303 }
 0x521   :  { %v5408_v28 = vpop.eup %5407  ;;  %v2410_v20 = vadd.f32 %v5406_v54, %v2409_v0  ;;  %v5012_v63 = vmul.f32 -1.442695, %v2304_v30  ;;  %2678 = vmatpush.msrb.mxu1 %v8325_v44 }
 0x522   :  { %v5410_v33 = vpop.eup %5409  ;;  %v2378_v56 = vadd.f32 1.0, %v5408_v28  ;;  %2679 = vmatmul.f32.vlgmr.msrb.gmra.mxu1 %v8084_v46 }
 0x523   :  { %v2414_v3 = vsel %vm2413_vm14, %v5406_v54, %v2410_v20  ;;  %v2422_v18 = vmul.f32 %v5410_v33, %v2377_v61  ;;  %5411 = vpow2.f32 %v5012_v63  ;;  %vm2427_vm6 = vweird.f32 %v5410_v33 }
 0x524   :  { %v2419_v59 = vsel %vm2416_vm4, %v2418_v17, %v2414_v3  ;;  %5413 = vrcp.f32 %v2378_v56  ;;  %vm2428_vm9 = vmor %vm2426_vm8, %vm2427_vm6  ;;  %v2447_v28 = vand.u32 2147483648, %v2378_v56  ;;  %v2445_v63 = vand.u32 2147483647, %v2378_v56 }
 0x525   :  { %v2632_v41 = vmul.f32 %v2419_v59, %v8329_v29  ;;  %v2423_v12 = vsub.f32 1.0, %v2422_v18  ;;  %vm2441_vm12 = vweird.f32 %v2378_v56 }
 0x526   :  { %v2448_v59 = vor.u32 1.1754944e-38, %v2447_v28  ;;  %vm2446_vm15 = vcmp.eq.f32.partialorder %v2445_v63, 8.507059e+37 }
 0x527   :  { %v8418_v15 = vadd.f32 %v2632_v41, %v8096_v4  ;;  %v2424_v44 = vmul.f32 %v5410_v33, %v2423_v12 }
 0x528   :  { %v2306_v25 = vpop.xlane.xlu1 %2305 }
 0x529   :  { %v5412_v27 = vpop.eup %5411  ;;  %v2425_v51 = vadd.f32 %v5410_v33, %v2424_v44  ;;  %v5013_v46 = vmul.f32 -1.442695, %v2306_v25 }
 0x52a   :  { %v5414_v54 = vpop.eup %5413  ;;  %v2379_v43 = vadd.f32 1.0, %v5412_v27  ;;  %2682 = vmatmul.f32.gmra.mxu1 %v8108_v32 }
 0x52b   :  { %v2429_v29 = vsel %vm2428_vm9, %v5410_v33, %v2425_v51  ;;  %v2437_v0 = vmul.f32 %v5414_v54, %v2378_v56  ;;  %5415 = vpow2.f32 %v5013_v46  ;;  %vm2442_vm11 = vweird.f32 %v5414_v54 }
 0x52c   :  { %v2434_v4 = vsel %vm2431_vm10, %v2433_v40, %v2429_v29  ;;  %5417 = vrcp.f32 %v2379_v43  ;;  %vm2443_vm13 = vmor %vm2441_vm12, %vm2442_vm11  ;;  %v2462_v62 = vand.u32 2147483648, %v2379_v43  ;;  %v2460_v27 = vand.u32 2147483647, %v2379_v43 }
 0x52d   :  { %v2633_v60 = vmul.f32 %v2434_v4, %v8333_v47  ;;  %v2438_v30 = vsub.f32 1.0, %v2437_v0  ;;  %vm2456_vm0 = vweird.f32 %v2379_v43 }
 0x52e   :  { %v2463_v29 = vor.u32 1.1754944e-38, %v2462_v62  ;;  %vm2461_vm3 = vcmp.eq.f32.partialorder %v2460_v27, 8.507059e+37 }
 0x52f   :  { %v8423_v20 = vadd.f32 %v2633_v60, %v8122_v39  ;;  %v2439_v61 = vmul.f32 %v5414_v54, %v2438_v30 }
 0x530   :  { %v2308_v17 = vpop.xlane.xlu2 %2307 }
 0x531   :  { %v5416_v3 = vpop.eup %5415  ;;  %v2440_v18 = vadd.f32 %v5414_v54, %v2439_v61  ;;  %v5014_v32 = vmul.f32 -1.442695, %v2308_v17 }
 0x532   :  { %v5418_v33 = vpop.eup %5417  ;;  %v2380_v41 = vadd.f32 1.0, %v5416_v3  ;;  %2685 = vmatmul.f32.gmra.mxu1 %v8141_v37 }
 0x533   :  { %v2444_v47 = vsel %vm2443_vm13, %v5414_v54, %v2440_v18  ;;  %v2452_v12 = vmul.f32 %v5418_v33, %v2379_v43  ;;  %5419 = vpow2.f32 %v5014_v32  ;;  %vm2457_vm1 = vweird.f32 %v5418_v33 }
 0x534   :  { %v2449_v39 = vsel %vm2446_vm15, %v2448_v59, %v2444_v47  ;;  %5421 = vrcp.f32 %v2380_v41  ;;  %vm2458_vm2 = vmor %vm2456_vm0, %vm2457_vm1  ;;  %v2477_v28 = vand.u32 2147483648, %v2380_v41  ;;  %v2475_v63 = vand.u32 2147483647, %v2380_v41 }
 0x535   :  { %v2634_v14 = vmul.f32 %v2449_v39, %v8337_v38  ;;  %v2453_v44 = vsub.f32 1.0, %v2452_v12  ;;  %vm2471_vm5 = vweird.f32 %v2380_v41 }
 0x536   :  { %vm2476_vm4 = vcmp.eq.f32.partialorder %v2475_v63, 8.507059e+37 }
 0x537   :  { %v8428_v25 = vadd.f32 %v2634_v14, %v8160_v11  ;;  %v2454_v56 = vmul.f32 %v5418_v33, %v2453_v44 }
 0x538   :  { %v2310_v51 = vpop.xlane.xlu0 %2309 }
 0x539   :  { %v5420_v46 = vpop.eup %5419  ;;  %v2455_v40 = vadd.f32 %v5418_v33, %v2454_v56  ;;  %v5015_v37 = vmul.f32 -1.442695, %v2310_v51 }
 0x53a   :  { %v5422_v54 = vpop.eup %5421  ;;  %v2381_v0 = vadd.f32 1.0, %v5420_v46  ;;  %2688 = vmatmul.f32.gmra.mxu1 %v8174_v58 }
 0x53b   :  { %v2459_v38 = vsel %vm2458_vm2, %v5418_v33, %v2455_v40  ;;  %v2467_v4 = vmul.f32 %v5422_v54, %v2380_v41  ;;  %5423 = vpow2.f32 %v5015_v37  ;;  %vm2472_vm7 = vweird.f32 %v5422_v54 }
 0x53c   :  { %v2464_v11 = vsel %vm2461_vm3, %v2463_v29, %v2459_v38  ;;  %5425 = vrcp.f32 %v2381_v0  ;;  %vm2473_vm14 = vmor %vm2471_vm5, %vm2472_vm7  ;;  %v2478_v33 = vor.u32 1.1754944e-38, %v2477_v28  ;;  %v2492_v14 = vand.u32 2147483648, %v2381_v0 }
 0x53d   :  { %v2635_v60 = vmul.f32 %v2464_v11, %v8341_v53  ;;  %v2468_v30 = vsub.f32 1.0, %v2467_v4  ;;  %v2490_v62 = vand.u32 2147483647, %v2381_v0  ;;  %vm2486_vm8 = vweird.f32 %v2381_v0 }
 0x53e   :  { %v2493_v40 = vor.u32 1.1754944e-38, %v2492_v14 }
 0x53f   :  { %v8433_v61 = vadd.f32 %v2635_v60, %v8191_v19  ;;  %v2469_v43 = vmul.f32 %v5422_v54, %v2468_v30  ;;  %vm2491_vm10 = vcmp.eq.f32.partialorder %v2490_v62, 8.507059e+37 }
 0x540   :  { %v2312_v17 = vpop.xlane.xlu1 %2311 }
 0x541   :  { %v5424_v3 = vpop.eup %5423  ;;  %v2470_v18 = vadd.f32 %v5422_v54, %v2469_v43  ;;  %v5016_v58 = vmul.f32 -1.442695, %v2312_v17 }
 0x542   :  { %v5426_v32 = vpop.eup %5425  ;;  %v2382_v59 = vadd.f32 1.0, %v5424_v3  ;;  %2691 = vmatmul.f32.gmra.mxu1 %v8214_v24 }
 0x543   :  { %v2474_v53 = vsel %vm2473_vm14, %v5422_v54, %v2470_v18  ;;  %v2482_v47 = vmul.f32 %v5426_v32, %v2381_v0  ;;  %5427 = vpow2.f32 %v5016_v58  ;;  %vm2487_vm6 = vweird.f32 %v5426_v32 }
 0x544   :  { %v2479_v19 = vsel %vm2476_vm4, %v2478_v33, %v2474_v53  ;;  %5429 = vrcp.f32 %v2382_v59  ;;  %vm2488_vm9 = vmor %vm2486_vm8, %vm2487_vm6  ;;  %v2507_v4 = vand.u32 2147483648, %v2382_v59  ;;  %v2505_v60 = vand.u32 2147483647, %v2382_v59 }
 0x545   :  { %v2636_v12 = vmul.f32 %v2479_v19, %v8345_v22  ;;  %v2483_v39 = vsub.f32 1.0, %v2482_v47  ;;  %vm2501_vm12 = vweird.f32 %v2382_v59 }
 0x546   :  { %v2508_v17 = vor.u32 1.1754944e-38, %v2507_v4  ;;  %vm2506_vm15 = vcmp.eq.f32.partialorder %v2505_v60, 8.507059e+37 }
 0x547   :  { %v8438_v44 = vadd.f32 %v2636_v12, %v8242_v55  ;;  %v2484_v41 = vmul.f32 %v5426_v32, %v2483_v39 }
 0x548   :  { %v2314_v56 = vpop.xlane.xlu2 %2313 }
 0x549   :  { %v5428_v27 = vpop.eup %5427  ;;  %v2485_v51 = vadd.f32 %v5426_v32, %v2484_v41  ;;  %v5017_v24 = vmul.f32 -1.442695, %v2314_v56 }
 0x54a   :  { %v5430_v46 = vpop.eup %5429  ;;  %v2383_v37 = vadd.f32 1.0, %v5428_v27  ;;  %2694 = vmatmul.f32.gmra.mxu1 %v8268_v2 }
 0x54b   :  { %v2489_v22 = vsel %vm2488_vm9, %v5426_v32, %v2485_v51  ;;  %v2497_v54 = vmul.f32 %v5430_v46, %v2382_v59  ;;  %5431 = vpow2.f32 %v5017_v24  ;;  %vm2502_vm11 = vweird.f32 %v5430_v46 }
 0x54c   :  { %v2494_v55 = vsel %vm2491_vm10, %v2493_v40, %v2489_v22  ;;  %5433 = vrcp.f32 %v2383_v37  ;;  %vm2503_vm13 = vmor %vm2501_vm12, %vm2502_vm11  ;;  %v2522_v33 = vand.u32 2147483648, %v2383_v37  ;;  %v2520_v47 = vand.u32 2147483647, %v2383_v37 }
 0x54d   :  { %v2637_v29 = vmul.f32 %v2494_v55, %v8349_v42  ;;  %v2498_v38 = vsub.f32 1.0, %v2497_v54  ;;  %vm2516_vm0 = vweird.f32 %v2383_v37 }
 0x54e   :  { %v2523_v41 = vor.u32 1.1754944e-38, %v2522_v33  ;;  %vm2521_vm3 = vcmp.eq.f32.partialorder %v2520_v47, 8.507059e+37 }
 0x54f   :  { %v8443_v11 = vadd.f32 %v2637_v29, %v8277_v45  ;;  %v2499_v0 = vmul.f32 %v5430_v46, %v2498_v38 }
 0x550   :  { %v2316_v30 = vpop.xlane.xlu0 %2315 }
 0x551   :  { %v5432_v28 = vpop.eup %5431  ;;  %v2500_v43 = vadd.f32 %v5430_v46, %v2499_v0  ;;  %v5018_v2 = vmul.f32 -1.442695, %v2316_v30 }
 0x552   :  { %v5434_v63 = vpop.eup %5433  ;;  %v2384_v3 = vadd.f32 1.0, %v5432_v28  ;;  %2697 = vmatmul.f32.gmra.mxu1 %v8285_v48 }
 0x553   :  { %v2504_v42 = vsel %vm2503_vm13, %v5430_v46, %v2500_v43  ;;  %v2512_v18 = vmul.f32 %v5434_v63, %v2383_v37  ;;  %5435 = vpow2.f32 %v5018_v2  ;;  %vm2517_vm1 = vweird.f32 %v5434_v63 }
 0x554   :  { %v2509_v45 = vsel %vm2506_vm15, %v2508_v17, %v2504_v42  ;;  %5437 = vrcp.f32 %v2384_v3  ;;  %vm2518_vm2 = vmor %vm2516_vm0, %vm2517_vm1  ;;  %v2537_v24 = vand.u32 2147483648, %v2384_v3  ;;  %v2535_v37 = vand.u32 2147483647, %v2384_v3 }
 0x555   :  { %v2638_v58 = vmul.f32 %v2509_v45, %v8353_v1  ;;  %v2513_v32 = vsub.f32 1.0, %v2512_v18  ;;  %vm2531_vm5 = vweird.f32 %v2384_v3 }
 0x556   :  { %v2538_v38 = vor.u32 1.1754944e-38, %v2537_v24  ;;  %vm2536_vm4 = vcmp.eq.f32.partialorder %v2535_v37, 8.507059e+37 }
 0x557   :  { %v8448_v53 = vadd.f32 %v2638_v58, %v8289_v26  ;;  %v2514_v59 = vmul.f32 %v5434_v63, %v2513_v32  ;;  %v8468_v32 = vld [vmem:[%s10603_s0 + $0x48] sm:$0xff] }
 0x558   :  { %v2318_v19 = vpop.xlane.xlu1 %2317 }
 0x559   :  { %v5436_v12 = vpop.eup %5435  ;;  %v2515_v39 = vadd.f32 %v5434_v63, %v2514_v59  ;;  %v5019_v48 = vmul.f32 -1.442695, %v2318_v19 }
 0x55a   :  { %v5438_v14 = vpop.eup %5437  ;;  %v2385_v62 = vadd.f32 1.0, %v5436_v12  ;;  %2700 = vmatmul.f32.gmra.mxu1 %v8294_v9 }
 0x55b   :  { %v2519_v1 = vsel %vm2518_vm2, %v5434_v63, %v2515_v39  ;;  %v2527_v56 = vmul.f32 %v5438_v14, %v2384_v3  ;;  %5439 = vpow2.f32 %v5019_v48  ;;  %vm2532_vm7 = vweird.f32 %v5438_v14 }
 0x55c   :  { %v2524_v26 = vsel %vm2521_vm3, %v2523_v41, %v2519_v1  ;;  %5441 = vrcp.f32 %v2385_v62  ;;  %vm2533_vm14 = vmor %vm2531_vm5, %vm2532_vm7  ;;  %v2552_v43 = vand.u32 2147483648, %v2385_v62  ;;  %v2550_v17 = vand.u32 2147483647, %v2385_v62  ;;  %v8478_v1 = vld [vmem:[%s10603_s0 + $0x50] sm:$0xff] }
 0x55d   :  { %v2639_v27 = vmul.f32 %v2524_v26, %v8357_v49  ;;  %v2528_v51 = vsub.f32 1.0, %v2527_v56  ;;  %v8458_v49 = vld [vmem:[%s10603_s0 + $0x40] sm:$0xff]  ;;  %vm2546_vm8 = vweird.f32 %v2385_v62 }
 0x55e   :  { %v2553_v45 = vor.u32 1.1754944e-38, %v2552_v43  ;;  %vm2551_vm10 = vcmp.eq.f32.partialorder %v2550_v17, 8.507059e+37 }
 0x55f   :  { %v8453_v46 = vadd.f32 %v2639_v27, %v8299_v36  ;;  %v2529_v40 = vmul.f32 %v5438_v14, %v2528_v51 }
 0x560   :  { %v2320_v22 = vpop.xlane.xlu2 %2319 }
 0x561   :  { %v5440_v54 = vpop.eup %5439  ;;  %v2530_v55 = vadd.f32 %v5438_v14, %v2529_v40  ;;  %v5020_v9 = vmul.f32 -1.442695, %v2320_v22 }
 0x562   :  { %v5442_v29 = vpop.eup %5441  ;;  %v2386_v4 = vadd.f32 1.0, %v5440_v54  ;;  %2703 = vmatmul.f32.gmra.mxu1 %v8458_v49 }
 0x563   :  { %v2534_v36 = vsel %vm2533_vm14, %v5438_v14, %v2530_v55  ;;  %v2542_v0 = vmul.f32 %v5442_v29, %v2385_v62  ;;  %5443 = vpow2.f32 %v5020_v9  ;;  %vm2547_vm6 = vweird.f32 %v5442_v29  ;;  %v8488_v55 = vld [vmem:[%s10603_s0 + $0x58] sm:$0xff] }
 0x564   :  { %v2539_v60 = vsel %vm2536_vm4, %v2538_v38, %v2534_v36  ;;  %5445 = vrcp.f32 %v2386_v4  ;;  %vm2548_vm9 = vmor %vm2546_vm8, %vm2547_vm6  ;;  %v2567_v19 = vand.u32 2147483648, %v2386_v4  ;;  %v2565_v48 = vand.u32 2147483647, %v2386_v4  ;;  %v8498_v38 = vld [vmem:[%s10603_s0 + $0x60] sm:$0xff] }
 0x565   :  { %v2640_v30 = vmul.f32 %v2539_v60, %v8361_v8  ;;  %v2543_v28 = vsub.f32 1.0, %v2542_v0  ;;  %vm2561_vm12 = vweird.f32 %v2386_v4  ;;  %v8524_v0 = vld [vmem:[%s10602_s2] ss:$0 sm:$0xff] }
 0x566   :  { %v2568_v62 = vor.u32 1.1754944e-38, %v2567_v19  ;;  %vm2566_vm15 = vcmp.eq.f32.partialorder %v2565_v48, 8.507059e+37 }
 0x567   :  { %v8463_v2 = vadd.f32 %v2640_v30, %v8304_v21  ;;  %v2544_v63 = vmul.f32 %v5442_v29, %v2543_v28 }
 0x569   :  { %v5444_v3 = vpop.eup %5443  ;;  %v2545_v42 = vadd.f32 %v5442_v29, %v2544_v63 }
 0x56a   :  { %v5446_v18 = vpop.eup %5445  ;;  %v2387_v58 = vadd.f32 1.0, %v5444_v3  ;;  %2706 = vmatmul.f32.gmra.mxu1 %v8468_v32 }
 0x56b   :  { %v2549_v8 = vsel %vm2548_vm9, %v5442_v29, %v2545_v42  ;;  %v2557_v21 = vmul.f32 %v5446_v18, %v2386_v4  ;;  %vm2562_vm11 = vweird.f32 %v5446_v18  ;;  %v8504_v4 = vld [vmem:[%s10603_s0 + $0x68] sm:$0xff] }
 0x56c   :  { %v2554_v33 = vsel %vm2551_vm10, %v2553_v45, %v2549_v8  ;;  %5447 = vrcp.f32 %v2387_v58  ;;  %vm2563_vm13 = vmor %vm2561_vm12, %vm2562_vm11  ;;  %v2582_v51 = vand.u32 2147483648, %v2387_v58  ;;  %v2580_v37 = vand.u32 2147483647, %v2387_v58 }
 0x56d   :  { %v2641_v59 = vmul.f32 %v2554_v33, %v8365_v13  ;;  %v2558_v47 = vsub.f32 1.0, %v2557_v21  ;;  %vm2576_vm0 = vweird.f32 %v2387_v58 }
 0x56e   :  { %v2583_v54 = vor.u32 1.1754944e-38, %v2582_v51  ;;  %vm2581_vm3 = vcmp.eq.f32.partialorder %v2580_v37, 8.507059e+37  ;;  %v8580_v51 = vpop.xlane.xlu0 %2321 }
 0x56f   :  { %v8473_v12 = vadd.f32 %v2641_v59, %v8309_v5  ;;  %v2559_v39 = vmul.f32 %v5446_v18, %v2558_v47 }
 0x571   :  { %v2560_v14 = vadd.f32 %v5446_v18, %v2559_v39 }
 0x572   :  { %v5448_v41 = vpop.eup %5447  ;;  %2709 = vmatmul.f32.gmra.mxu1 %v8478_v1 }
 0x573   :  { %v2564_v13 = vsel %vm2563_vm13, %v5446_v18, %v2560_v14  ;;  %v2572_v56 = vmul.f32 %v5448_v41, %v2387_v58  ;;  %vm2577_vm1 = vweird.f32 %v5448_v41 }
 0x574   :  { %v2569_v5 = vsel %vm2566_vm15, %v2568_v62, %v2564_v13  ;;  %vm2578_vm2 = vmor %vm2576_vm0, %vm2577_vm1 }
 0x575   :  { %v2642_v26 = vmul.f32 %v2569_v5, %v8369_v35  ;;  %v2573_v27 = vsub.f32 1.0, %v2572_v56 }
 0x577   :  { %v8483_v24 = vadd.f32 %v2642_v26, %v8314_v10  ;;  %v2574_v40 = vmul.f32 %v5448_v41, %v2573_v27 }
 0x579   :  { %v2575_v22 = vadd.f32 %v5448_v41, %v2574_v40 }
 0x57a   :  { %2712 = vmatmul.f32.gmra.mxu1 %v8488_v55 }
 0x57b   :  { %v2579_v35 = vsel %vm2578_vm2, %v5448_v41, %v2575_v22  ;;  %v8586_v22 = vpop.xlane.xlu1 %2323 }
 0x57c   :  { %v2584_v9 = vsel %vm2581_vm3, %v2583_v54, %v2579_v35 }
 0x57d   :  { %v2643_v10 = vmul.f32 %v2584_v9, %v8373_v23  ;;  %v8510_v23 = vld [vmem:[%s10603_s0 + $0x70] sm:$0xff] }
 0x57f   :  { %v8493_v29 = vadd.f32 %v2643_v10, %v8319_v7  ;;  %v8516_v7 = vld [vmem:[%s10603_s0 + $0x78] sm:$0xff] }
 0x582   :  { %2715 = vmatmul.f32.gmra.mxu1 %v8498_v38 }
 0x58a   :  { %2718 = vmatmul.f32.gmra.mxu1 %v8504_v4 }
 0x592   :  { %2721 = vmatmul.f32.gmra.mxu1 %v8510_v23 }
 0x59a   :  { %2724 = vmatmul.f32.gmra.mxu1 %v8516_v7 }
 0x59f   :  { %v8519_v36 = vpop.f32.mrf.mxu1 }
 0x5a0   :  { %v2728_v60 = vmul.f32 %v8524_v0, %v8519_v36 }
 0x5a2   :  { %2744 = vadd.xlane.f32.xlu0 %v2728_v60  ;;  %v8595_v60 = vpop.xlane.xlu2 %2325 }
 0x5a7   :  { %v8528_v30 = vpop.f32.mrf.mxu1 }
 0x5a8   :  { %v2729_v28 = vmul.f32 %v8524_v0, %v8528_v30 }
 0x5aa   :  { %2746 = vadd.xlane.f32.xlu1 %v2729_v28 }
 0x5af   :  { %v8532_v43 = vpop.f32.mrf.mxu1 }
 0x5b0   :  { %v2730_v63 = vmul.f32 %v8524_v0, %v8532_v43 }
 0x5b2   :  { %2748 = vadd.xlane.f32.xlu2 %v2730_v63 }
 0x5b7   :  { %v8536_v17 = vpop.f32.mrf.mxu1 }
 0x5b8   :  { %v2731_v3 = vmul.f32 %v8524_v0, %v8536_v17 }
 0x5ba   :  { %2750 = vadd.xlane.f32.xlu0 %v2731_v3 }
 0x5bf   :  { %v8540_v42 = vpop.f32.mrf.mxu1 }
 0x5c0   :  { %v2732_v18 = vmul.f32 %v8524_v0, %v8540_v42 }
 0x5c2   :  { %2752 = vadd.xlane.f32.xlu1 %v2732_v18 }
 0x5c7   :  { %v8544_v45 = vpop.f32.mrf.mxu1 }
 0x5c8   :  { %v2733_v58 = vmul.f32 %v8524_v0, %v8544_v45 }
 0x5ca   :  { %2754 = vadd.xlane.f32.xlu2 %v2733_v58 }
 0x5cf   :  { %v8548_v8 = vpop.f32.mrf.mxu1 }
 0x5d0   :  { %v2734_v21 = vmul.f32 %v8524_v0, %v8548_v8 }
 0x5d2   :  { %2756 = vadd.xlane.f32.xlu0 %v2734_v21 }
 0x5d7   :  { %v8552_v33 = vpop.f32.mrf.mxu1 }
 0x5d8   :  { %v2735_v59 = vmul.f32 %v8524_v0, %v8552_v33 }
 0x5da   :  { %2758 = vadd.xlane.f32.xlu1 %v2735_v59 }
 0x5df   :  { %v8556_v47 = vpop.f32.mrf.mxu1 }
 0x5e0   :  { %v2736_v19 = vmul.f32 %v8524_v0, %v8556_v47 }
 0x5e2   :  { %2760 = vadd.xlane.f32.xlu2 %v2736_v19 }
 0x5e7   :  { %v8560_v39 = vpop.f32.mrf.mxu1 }
 0x5e8   :  { %v2737_v48 = vmul.f32 %v8524_v0, %v8560_v39 }
 0x5ea   :  { %2762 = vadd.xlane.f32.xlu0 %v2737_v48 }
 0x5ef   :  { %v8564_v14 = vpop.f32.mrf.mxu1 }
 0x5f0   :  { %v2738_v41 = vmul.f32 %v8524_v0, %v8564_v14 }
 0x5f2   :  { %2764 = vadd.xlane.f32.xlu1 %v2738_v41 }
 0x5f7   :  { %v8568_v62 = vpop.f32.mrf.mxu1 }
 0x5f8   :  { %v2739_v13 = vmul.f32 %v8524_v0, %v8568_v62 }
 0x5fa   :  { %2766 = vadd.xlane.f32.xlu2 %v2739_v13 }
 0x5ff   :  { %v8572_v56 = vpop.f32.mrf.mxu1 }
 0x600   :  { %v2740_v5 = vmul.f32 %v8524_v0, %v8572_v56 }
 0x602   :  { %2768 = vadd.xlane.f32.xlu0 %v2740_v5 }
 0x607   :  { %v8576_v26 = vpop.f32.mrf.mxu1 }
 0x608   :  { %10920 = vst [vmem:[#allocation36_spill] sm:$0xff] %v8576_v26  ;;  %v2741_v27 = vmul.f32 %v8524_v0, %v8576_v26 }
 0x60a   :  { %2770 = vadd.xlane.f32.xlu1 %v2741_v27 }
 0x60f   :  { %v8582_v40 = vpop.f32.mrf.mxu1 }
 0x610   :  { %10921 = vst [vmem:[#allocation40_spill] sm:$0xff] %v8582_v40  ;;  %v2742_v37 = vmul.f32 %v8524_v0, %v8582_v40 }
 0x612   :  { %2772 = vadd.xlane.f32.xlu2 %v2742_v37 }
 0x615   :  { %v2745_v54 = vpop.xlane.xlu0 %2744 }
 0x616   :  { %v5024_v35 = vmul.f32 -1.442695, %v2745_v54 }
 0x617   :  { %v8588_v9 = vpop.f32.mrf.mxu1 }
 0x618   :  { %10922 = vst [vmem:[#allocation17_spill] sm:$0xff] %v8588_v9  ;;  %5449 = vpow2.f32 %v5024_v35  ;;  %3112 = vmatpush.msra.mxu2 %v8588_v9  ;;  %v2743_v10 = vmul.f32 %v8524_v0, %v8588_v9 }
 0x61a   :  { %3113 = vmatpush.msra.mxu2 %v8582_v40  ;;  %2774 = vadd.xlane.f32.xlu0 %v2743_v10 }
 0x61c   :  { %3114 = vmatpush.msra.mxu2 %v8576_v26 }
 0x61d   :  { %v2747_v28 = vpop.xlane.xlu1 %2746 }
 0x61e   :  { %v5450_v63 = vpop.eup %5449  ;;  %v5025_v3 = vmul.f32 -1.442695, %v2747_v28  ;;  %3115 = vmatpush.msra.mxu2 %v8572_v56 }
 0x61f   :  { %v2824_v18 = vadd.f32 1.0, %v5450_v63 }
 0x620   :  { %5451 = vpow2.f32 %v5025_v3  ;;  %3116 = vmatpush.msra.mxu2 %v8568_v62 }
 0x621   :  { %5453 = vrcp.f32 %v2824_v18  ;;  %v2851_v5 = vand.u32 2147483648, %v2824_v18  ;;  %v2849_v37 = vand.u32 2147483647, %v2824_v18  ;;  %vm2845_vm5 = vweird.f32 %v2824_v18 }
 0x622   :  { %3117 = vmatpush.msra.mxu2 %v8564_v14 }
 0x623   :  { %v2852_v3 = vor.u32 1.1754944e-38, %v2851_v5  ;;  %vm2850_vm4 = vcmp.eq.f32.partialorder %v2849_v37, 8.507059e+37 }
 0x624   :  { %3118 = vmatpush.msra.mxu2 %v8560_v39 }
 0x625   :  { %v2749_v58 = vpop.xlane.xlu2 %2748 }
 0x626   :  { %v5452_v21 = vpop.eup %5451  ;;  %v5026_v59 = vmul.f32 -1.442695, %v2749_v58  ;;  %3119 = vmatpush.msra.mxu2 %v8556_v47 }
 0x627   :  { %v5454_v19 = vpop.eup %5453  ;;  %v2825_v48 = vadd.f32 1.0, %v5452_v21 }
 0x628   :  { %v2841_v41 = vmul.f32 %v5454_v19, %v2824_v18  ;;  %5455 = vpow2.f32 %v5026_v59  ;;  %3120 = vmatpush.msra.mxu2 %v8552_v33  ;;  %vm2846_vm7 = vweird.f32 %v5454_v19 }
 0x629   :  { %5457 = vrcp.f32 %v2825_v48  ;;  %vm2847_vm14 = vmor %vm2845_vm5, %vm2846_vm7  ;;  %v2866_v18 = vand.u32 2147483648, %v2825_v48  ;;  %v2864_v5 = vand.u32 2147483647, %v2825_v48  ;;  %vm2860_vm8 = vweird.f32 %v2825_v48 }
 0x62a   :  { %v2842_v13 = vsub.f32 1.0, %v2841_v41  ;;  %3121 = vmatpush.msra.mxu2 %v8548_v8 }
 0x62b   :  { %vm2865_vm10 = vcmp.eq.f32.partialorder %v2864_v5, 8.507059e+37 }
 0x62c   :  { %v2843_v27 = vmul.f32 %v5454_v19, %v2842_v13  ;;  %3122 = vmatpush.msra.mxu2 %v8544_v45 }
 0x62d   :  { %v2751_v54 = vpop.xlane.xlu0 %2750 }
 0x62e   :  { %v5456_v35 = vpop.eup %5455  ;;  %v2844_v10 = vadd.f32 %v5454_v19, %v2843_v27  ;;  %v5027_v28 = vmul.f32 -1.442695, %v2751_v54  ;;  %3123 = vmatpush.msra.mxu2 %v8540_v42 }
 0x62f   :  { %v5458_v63 = vpop.eup %5457  ;;  %v2826_v58 = vadd.f32 1.0, %v5456_v35 }
 0x630   :  { %v2848_v21 = vsel %vm2847_vm14, %v5454_v19, %v2844_v10  ;;  %v2856_v59 = vmul.f32 %v5458_v63, %v2825_v48  ;;  %5459 = vpow2.f32 %v5027_v28  ;;  %3124 = vmatpush.msra.mxu2 %v8536_v17  ;;  %vm2861_vm6 = vweird.f32 %v5458_v63 }
 0x631   :  { %v2853_v41 = vsel %vm2850_vm4, %v2852_v3, %v2848_v21  ;;  %5461 = vrcp.f32 %v2826_v58  ;;  %vm2862_vm9 = vmor %vm2860_vm8, %vm2861_vm6  ;;  %v2867_v3 = vor.u32 1.1754944e-38, %v2866_v18  ;;  %vm2875_vm12 = vweird.f32 %v2826_v58 }
 0x632   :  { %v3080_v13 = vmul.f32 %v2853_v41, %v8519_v36  ;;  %v2857_v9 = vsub.f32 1.0, %v2856_v59  ;;  %3125 = vmatpush.msra.mxu2 %v8532_v43 }
 0x634   :  { %v8610_v27 = vadd.f32 %v3080_v13, %v8411_v6  ;;  %v2858_v54 = vmul.f32 %v5458_v63, %v2857_v9  ;;  %3126 = vmatpush.msra.mxu2 %v8528_v30  ;;  %v8617_v6 = vld [vmem:[%s10603_s0] sm:$0xff]  ;;  %v2881_v13 = vand.u32 2147483648, %v2826_v58 }
 0x635   :  { %v2753_v19 = vpop.xlane.xlu1 %2752 }
 0x636   :  { %v5460_v37 = vpop.eup %5459  ;;  %v2859_v35 = vadd.f32 %v5458_v63, %v2858_v54  ;;  %v5028_v10 = vmul.f32 -1.442695, %v2753_v19  ;;  %3127 = vmatpush.msra.mxu2 %v8519_v36  ;;  %v2879_v19 = vand.u32 2147483647, %v2826_v58 }
 0x637   :  { %v5462_v28 = vpop.eup %5461  ;;  %v2827_v21 = vadd.f32 1.0, %v5460_v37  ;;  %3128 = vmatmul.f32.vlgmr.msra.gmra.mxu2 %v8617_v6 }
 0x638   :  { %v2863_v9 = vsel %vm2862_vm9, %v5458_v63, %v2859_v35  ;;  %v2871_v59 = vmul.f32 %v5462_v28, %v2826_v58  ;;  %5463 = vpow2.f32 %v5028_v10  ;;  %vm2876_vm11 = vweird.f32 %v5462_v28 }
 0x639   :  { %v2868_v41 = vsel %vm2865_vm10, %v2867_v3, %v2863_v9  ;;  %5465 = vrcp.f32 %v2827_v21  ;;  %vm2877_vm13 = vmor %vm2875_vm12, %vm2876_vm11  ;;  %v2882_v35 = vor.u32 1.1754944e-38, %v2881_v13  ;;  %vm2880_vm15 = vcmp.eq.f32.partialorder %v2879_v19, 8.507059e+37 }
 0x63a   :  { %v3081_v48 = vmul.f32 %v2868_v41, %v8528_v30  ;;  %v2872_v36 = vsub.f32 1.0, %v2871_v59  ;;  %v8627_v30 = vld [vmem:[%s10603_s0 + $0x8] sm:$0xff]  ;;  %v2896_v41 = vand.u32 2147483648, %v2827_v21  ;;  %vm2890_vm0 = vweird.f32 %v2827_v21 }
 0x63c   :  { %v8622_v18 = vadd.f32 %v3081_v48, %v8418_v15  ;;  %v2873_v54 = vmul.f32 %v5462_v28, %v2872_v36  ;;  %v2894_v36 = vand.u32 2147483647, %v2827_v21  ;;  %v2897_v19 = vor.u32 1.1754944e-38, %v2896_v41 }
 0x63d   :  { %v2755_v37 = vpop.xlane.xlu2 %2754 }
 0x63e   :  { %v5464_v34 = vpop.eup %5463  ;;  %v2874_v40 = vadd.f32 %v5462_v28, %v2873_v54  ;;  %v5029_v63 = vmul.f32 -1.442695, %v2755_v37  ;;  %vm2895_vm3 = vcmp.eq.f32.partialorder %v2894_v36, 8.507059e+37 }
 0x63f   :  { %v5466_v5 = vpop.eup %5465  ;;  %v2828_v10 = vadd.f32 1.0, %v5464_v34  ;;  %3131 = vmatmul.f32.gmra.mxu2 %v8627_v30 }
 0x640   :  { %v2878_v15 = vsel %vm2877_vm13, %v5462_v28, %v2874_v40  ;;  %v2886_v3 = vmul.f32 %v5466_v5, %v2827_v21  ;;  %5467 = vpow2.f32 %v5029_v63  ;;  %vm2891_vm1 = vweird.f32 %v5466_v5 }
 0x641   :  { %v2883_v9 = vsel %vm2880_vm15, %v2882_v35, %v2878_v15  ;;  %5469 = vrcp.f32 %v2828_v10  ;;  %vm2892_vm2 = vmor %vm2890_vm0, %vm2891_vm1  ;;  %v2909_v41 = vand.u32 2147483647, %v2828_v10  ;;  %vm2905_vm5 = vweird.f32 %v2828_v10 }
 0x642   :  { %v3082_v58 = vmul.f32 %v2883_v9, %v8532_v43  ;;  %v2887_v59 = vsub.f32 1.0, %v2886_v3  ;;  %v8637_v43 = vld [vmem:[%s10603_s0 + $0x10] sm:$0xff]  ;;  %v2911_v9 = vand.u32 2147483648, %v2828_v10 }
 0x643   :  { %vm2910_vm4 = vcmp.eq.f32.partialorder %v2909_v41, 8.507059e+37 }
 0x644   :  { %v8632_v48 = vadd.f32 %v3082_v58, %v8423_v20  ;;  %v2888_v34 = vmul.f32 %v5466_v5, %v2887_v59 }
 0x645   :  { %v2757_v13 = vpop.xlane.xlu0 %2756 }
 0x646   :  { %v5468_v54 = vpop.eup %5467  ;;  %v2889_v37 = vadd.f32 %v5466_v5, %v2888_v34  ;;  %v5030_v40 = vmul.f32 -1.442695, %v2757_v13 }
 0x647   :  { %v5470_v28 = vpop.eup %5469  ;;  %v2829_v63 = vadd.f32 1.0, %v5468_v54  ;;  %3134 = vmatmul.f32.gmra.mxu2 %v8637_v43 }
 0x648   :  { %v2893_v20 = vsel %vm2892_vm2, %v5466_v5, %v2889_v37  ;;  %v2901_v35 = vmul.f32 %v5470_v28, %v2828_v10  ;;  %5471 = vpow2.f32 %v5030_v40  ;;  %vm2906_vm7 = vweird.f32 %v5470_v28 }
 0x649   :  { %v2898_v15 = vsel %vm2895_vm3, %v2897_v19, %v2893_v20  ;;  %5473 = vrcp.f32 %v2829_v63  ;;  %vm2907_vm14 = vmor %vm2905_vm5, %vm2906_vm7  ;;  %v2912_v37 = vor.u32 1.1754944e-38, %v2911_v9  ;;  %v2924_v9 = vand.u32 2147483647, %v2829_v63 }
 0x64a   :  { %v3083_v21 = vmul.f32 %v2898_v15, %v8536_v17  ;;  %v2902_v3 = vsub.f32 1.0, %v2901_v35  ;;  %v8647_v17 = vld [vmem:[%s10603_s0 + $0x18] sm:$0xff]  ;;  %v2926_v15 = vand.u32 2147483648, %v2829_v63  ;;  %vm2920_vm8 = vweird.f32 %v2829_v63 }
 0x64b   :  { %vm2925_vm10 = vcmp.eq.f32.partialorder %v2924_v9, 8.507059e+37 }
 0x64c   :  { %v8642_v58 = vadd.f32 %v3083_v21, %v8428_v25  ;;  %v2903_v59 = vmul.f32 %v5470_v28, %v2902_v3 }
 0x64d   :  { %v2759_v34 = vpop.xlane.xlu1 %2758 }
 0x64e   :  { %v5472_v13 = vpop.eup %5471  ;;  %v2904_v54 = vadd.f32 %v5470_v28, %v2903_v59  ;;  %v5031_v5 = vmul.f32 -1.442695, %v2759_v34 }
 0x64f   :  { %v5474_v36 = vpop.eup %5473  ;;  %v2830_v40 = vadd.f32 1.0, %v5472_v13  ;;  %3137 = vmatmul.f32.gmra.mxu2 %v8647_v17 }
 0x650   :  { %v2908_v25 = vsel %vm2907_vm14, %v5470_v28, %v2904_v54  ;;  %v2916_v19 = vmul.f32 %v5474_v36, %v2829_v63  ;;  %5475 = vpow2.f32 %v5031_v5  ;;  %vm2921_vm6 = vweird.f32 %v5474_v36 }
 0x651   :  { %v2913_v20 = vsel %vm2910_vm4, %v2912_v37, %v2908_v25  ;;  %5477 = vrcp.f32 %v2830_v40  ;;  %vm2922_vm9 = vmor %vm2920_vm8, %vm2921_vm6  ;;  %v2927_v54 = vor.u32 1.1754944e-38, %v2926_v15  ;;  %v2939_v15 = vand.u32 2147483647, %v2830_v40 }
 0x652   :  { %v3084_v10 = vmul.f32 %v2913_v20, %v8540_v42  ;;  %v2917_v35 = vsub.f32 1.0, %v2916_v19  ;;  %v8657_v42 = vld [vmem:[%s10603_s0 + $0x20] sm:$0xff]  ;;  %v2941_v20 = vand.u32 2147483648, %v2830_v40  ;;  %vm2935_vm12 = vweird.f32 %v2830_v40 }
 0x653   :  { %vm2940_vm15 = vcmp.eq.f32.partialorder %v2939_v15, 8.507059e+37 }
 0x654   :  { %v8652_v21 = vadd.f32 %v3084_v10, %v8433_v61  ;;  %v2918_v3 = vmul.f32 %v5474_v36, %v2917_v35 }
 0x655   :  { %v2761_v59 = vpop.xlane.xlu2 %2760 }
 0x656   :  { %v5476_v34 = vpop.eup %5475  ;;  %v2919_v13 = vadd.f32 %v5474_v36, %v2918_v3  ;;  %v5032_v28 = vmul.f32 -1.442695, %v2761_v59 }
 0x657   :  { %v5478_v41 = vpop.eup %5477  ;;  %v2831_v5 = vadd.f32 1.0, %v5476_v34  ;;  %3140 = vmatmul.f32.gmra.mxu2 %v8657_v42 }
 0x658   :  { %v2923_v61 = vsel %vm2922_vm9, %v5474_v36, %v2919_v13  ;;  %v2931_v37 = vmul.f32 %v5478_v41, %v2830_v40  ;;  %5479 = vpow2.f32 %v5032_v28  ;;  %vm2936_vm11 = vweird.f32 %v5478_v41 }
 0x659   :  { %v2928_v25 = vsel %vm2925_vm10, %v2927_v54, %v2923_v61  ;;  %5481 = vrcp.f32 %v2831_v5  ;;  %vm2937_vm13 = vmor %vm2935_vm12, %vm2936_vm11  ;;  %v2942_v13 = vor.u32 1.1754944e-38, %v2941_v20  ;;  %v2954_v20 = vand.u32 2147483647, %v2831_v5 }
 0x65a   :  { %v3085_v63 = vmul.f32 %v2928_v25, %v8544_v45  ;;  %v2932_v19 = vsub.f32 1.0, %v2931_v37  ;;  %v8667_v45 = vld [vmem:[%s10603_s0 + $0x28] sm:$0xff]  ;;  %v2956_v25 = vand.u32 2147483648, %v2831_v5  ;;  %vm2950_vm0 = vweird.f32 %v2831_v5 }
 0x65b   :  { %vm2955_vm3 = vcmp.eq.f32.partialorder %v2954_v20, 8.507059e+37 }
 0x65c   :  { %v8662_v10 = vadd.f32 %v3085_v63, %v8438_v44  ;;  %v2933_v35 = vmul.f32 %v5478_v41, %v2932_v19 }
 0x65d   :  { %v2763_v3 = vpop.xlane.xlu0 %2762 }
 0x65e   :  { %v5480_v59 = vpop.eup %5479  ;;  %v2934_v34 = vadd.f32 %v5478_v41, %v2933_v35  ;;  %v5033_v36 = vmul.f32 -1.442695, %v2763_v3 }
 0x65f   :  { %v5482_v9 = vpop.eup %5481  ;;  %v2832_v28 = vadd.f32 1.0, %v5480_v59  ;;  %3143 = vmatmul.f32.gmra.mxu2 %v8667_v45 }
 0x660   :  { %v2938_v44 = vsel %vm2937_vm13, %v5478_v41, %v2934_v34  ;;  %v2946_v54 = vmul.f32 %v5482_v9, %v2831_v5  ;;  %5483 = vpow2.f32 %v5033_v36  ;;  %vm2951_vm1 = vweird.f32 %v5482_v9 }
 0x661   :  { %v2943_v61 = vsel %vm2940_vm15, %v2942_v13, %v2938_v44  ;;  %5485 = vrcp.f32 %v2832_v28  ;;  %vm2952_vm2 = vmor %vm2950_vm0, %vm2951_vm1  ;;  %v2957_v34 = vor.u32 1.1754944e-38, %v2956_v25  ;;  %v2969_v25 = vand.u32 2147483647, %v2832_v28 }
 0x662   :  { %v3086_v40 = vmul.f32 %v2943_v61, %v8548_v8  ;;  %v2947_v37 = vsub.f32 1.0, %v2946_v54  ;;  %v8677_v8 = vld [vmem:[%s10603_s0 + $0x30] sm:$0xff]  ;;  %v2971_v61 = vand.u32 2147483648, %v2832_v28  ;;  %vm2965_vm5 = vweird.f32 %v2832_v28 }
 0x663   :  { %vm2970_vm4 = vcmp.eq.f32.partialorder %v2969_v25, 8.507059e+37 }
 0x664   :  { %v8672_v63 = vadd.f32 %v3086_v40, %v8443_v11  ;;  %v2948_v19 = vmul.f32 %v5482_v9, %v2947_v37 }
 0x665   :  { %v2765_v35 = vpop.xlane.xlu1 %2764 }
 0x666   :  { %v5484_v3 = vpop.eup %5483  ;;  %v2949_v59 = vadd.f32 %v5482_v9, %v2948_v19  ;;  %v5034_v41 = vmul.f32 -1.442695, %v2765_v35 }
 0x667   :  { %v5486_v15 = vpop.eup %5485  ;;  %v2833_v36 = vadd.f32 1.0, %v5484_v3  ;;  %3146 = vmatmul.f32.gmra.mxu2 %v8677_v8 }
 0x668   :  { %v2953_v11 = vsel %vm2952_vm2, %v5482_v9, %v2949_v59  ;;  %v2961_v13 = vmul.f32 %v5486_v15, %v2832_v28  ;;  %5487 = vpow2.f32 %v5034_v41  ;;  %vm2966_vm7 = vweird.f32 %v5486_v15 }
 0x669   :  { %v2958_v44 = vsel %vm2955_vm3, %v2957_v34, %v2953_v11  ;;  %5489 = vrcp.f32 %v2833_v36  ;;  %vm2967_vm14 = vmor %vm2965_vm5, %vm2966_vm7  ;;  %v2972_v59 = vor.u32 1.1754944e-38, %v2971_v61  ;;  %v2984_v61 = vand.u32 2147483647, %v2833_v36 }
 0x66a   :  { %v3087_v5 = vmul.f32 %v2958_v44, %v8552_v33  ;;  %v2962_v54 = vsub.f32 1.0, %v2961_v13  ;;  %v8687_v33 = vld [vmem:[%s10603_s0 + $0x38] sm:$0xff]  ;;  %v2986_v44 = vand.u32 2147483648, %v2833_v36  ;;  %vm2980_vm8 = vweird.f32 %v2833_v36 }
 0x66b   :  { %vm2985_vm10 = vcmp.eq.f32.partialorder %v2984_v61, 8.507059e+37 }
 0x66c   :  { %v8682_v40 = vadd.f32 %v3087_v5, %v8448_v53  ;;  %v2963_v37 = vmul.f32 %v5486_v15, %v2962_v54 }
 0x66d   :  { %v2767_v19 = vpop.xlane.xlu2 %2766 }
 0x66e   :  { %v5488_v35 = vpop.eup %5487  ;;  %v2964_v3 = vadd.f32 %v5486_v15, %v2963_v37  ;;  %v5035_v9 = vmul.f32 -1.442695, %v2767_v19 }
 0x66f   :  { %v5490_v20 = vpop.eup %5489  ;;  %v2834_v41 = vadd.f32 1.0, %v5488_v35  ;;  %3149 = vmatmul.f32.gmra.mxu2 %v8687_v33 }
 0x670   :  { %v2968_v53 = vsel %vm2967_vm14, %v5486_v15, %v2964_v3  ;;  %v2976_v34 = vmul.f32 %v5490_v20, %v2833_v36  ;;  %5491 = vpow2.f32 %v5035_v9  ;;  %vm2981_vm6 = vweird.f32 %v5490_v20 }
 0x671   :  { %v2973_v11 = vsel %vm2970_vm4, %v2972_v59, %v2968_v53  ;;  %5493 = vrcp.f32 %v2834_v41  ;;  %vm2982_vm9 = vmor %vm2980_vm8, %vm2981_vm6  ;;  %v2987_v3 = vor.u32 1.1754944e-38, %v2986_v44  ;;  %vm2995_vm12 = vweird.f32 %v2834_v41 }
 0x672   :  { %v3088_v28 = vmul.f32 %v2973_v11, %v8556_v47  ;;  %v2977_v13 = vsub.f32 1.0, %v2976_v34  ;;  %v3001_v11 = vand.u32 2147483648, %v2834_v41 }
 0x674   :  { %v8692_v5 = vadd.f32 %v3088_v28, %v8453_v46  ;;  %v2978_v54 = vmul.f32 %v5490_v20, %v2977_v13  ;;  %v2999_v13 = vand.u32 2147483647, %v2834_v41 }
 0x675   :  { %v2769_v37 = vpop.xlane.xlu0 %2768 }
 0x676   :  { %v5492_v19 = vpop.eup %5491  ;;  %v2979_v35 = vadd.f32 %v5490_v20, %v2978_v54  ;;  %v5036_v15 = vmul.f32 -1.442695, %v2769_v37  ;;  %vm3000_vm15 = vcmp.eq.f32.partialorder %v2999_v13, 8.507059e+37 }
 0x677   :  { %v5494_v25 = vpop.eup %5493  ;;  %v2835_v9 = vadd.f32 1.0, %v5492_v19  ;;  %3152 = vmatmul.f32.gmra.mxu2 %v8458_v49 }
 0x678   :  { %v2983_v47 = vsel %vm2982_vm9, %v5490_v20, %v2979_v35  ;;  %v2991_v59 = vmul.f32 %v5494_v25, %v2834_v41  ;;  %5495 = vpow2.f32 %v5036_v15  ;;  %vm2996_vm11 = vweird.f32 %v5494_v25 }
 0x679   :  { %v2988_v46 = vsel %vm2985_vm10, %v2987_v3, %v2983_v47  ;;  %5497 = vrcp.f32 %v2835_v9  ;;  %vm2997_vm13 = vmor %vm2995_vm12, %vm2996_vm11  ;;  %v3002_v20 = vor.u32 1.1754944e-38, %v3001_v11  ;;  %v3016_v15 = vand.u32 2147483648, %v2835_v9 }
 0x67a   :  { %v3089_v53 = vmul.f32 %v2988_v46, %v8560_v39  ;;  %v2992_v34 = vsub.f32 1.0, %v2991_v59  ;;  %v3014_v41 = vand.u32 2147483647, %v2835_v9  ;;  %vm3010_vm0 = vweird.f32 %v2835_v9 }
 0x67c   :  { %v8697_v28 = vadd.f32 %v3089_v53, %v8463_v2  ;;  %v2993_v36 = vmul.f32 %v5494_v25, %v2992_v34  ;;  %vm3015_vm3 = vcmp.eq.f32.partialorder %v3014_v41, 8.507059e+37 }
 0x67e   :  { %v5496_v44 = vpop.eup %5495  ;;  %v2994_v54 = vadd.f32 %v5494_v25, %v2993_v36 }
 0x67f   :  { %v5498_v49 = vpop.eup %5497  ;;  %v2836_v61 = vadd.f32 1.0, %v5496_v44  ;;  %3155 = vmatmul.f32.gmra.mxu2 %v8468_v32  ;;  %v3017_v32 = vor.u32 1.1754944e-38, %v3016_v15 }
 0x680   :  { %v2998_v37 = vsel %vm2997_vm13, %v5494_v25, %v2994_v54  ;;  %v3006_v39 = vmul.f32 %v5498_v49, %v2835_v9  ;;  %vm3011_vm1 = vweird.f32 %v5498_v49 }
 0x681   :  { %v3003_v19 = vsel %vm3000_vm15, %v3002_v20, %v2998_v37  ;;  %5499 = vrcp.f32 %v2836_v61  ;;  %vm3012_vm2 = vmor %vm3010_vm0, %vm3011_vm1  ;;  %v3031_v36 = vand.u32 2147483648, %v2836_v61  ;;  %v3029_v44 = vand.u32 2147483647, %v2836_v61 }
 0x682   :  { %v3090_v2 = vmul.f32 %v3003_v19, %v8564_v14  ;;  %v3007_v35 = vsub.f32 1.0, %v3006_v39  ;;  %vm3025_vm5 = vweird.f32 %v2836_v61 }
 0x683   :  { %v3032_v54 = vor.u32 1.1754944e-38, %v3031_v36  ;;  %vm3030_vm4 = vcmp.eq.f32.partialorder %v3029_v44, 8.507059e+37 }
 0x684   :  { %v8702_v3 = vadd.f32 %v3090_v2, %v8473_v12  ;;  %v3008_v47 = vmul.f32 %v5498_v49, %v3007_v35 }
 0x686   :  { %v3009_v59 = vadd.f32 %v5498_v49, %v3008_v47 }
 0x687   :  { %v5500_v46 = vpop.eup %5499  ;;  %3158 = vmatmul.f32.gmra.mxu2 %v8478_v1 }
 0x688   :  { %v3013_v25 = vsel %vm3012_vm2, %v5498_v49, %v3009_v59  ;;  %v3021_v53 = vmul.f32 %v5500_v46, %v2836_v61  ;;  %vm3026_vm7 = vweird.f32 %v5500_v46 }
 0x689   :  { %v3018_v34 = vsel %vm3015_vm3, %v3017_v32, %v3013_v25  ;;  %vm3027_vm14 = vmor %vm3025_vm5, %vm3026_vm7 }
 0x68a   :  { %v3091_v14 = vmul.f32 %v3018_v34, %v8568_v62  ;;  %v3022_v11 = vsub.f32 1.0, %v3021_v53 }
 0x68c   :  { %v8707_v12 = vadd.f32 %v3091_v14, %v8483_v24  ;;  %v3023_v13 = vmul.f32 %v5500_v46, %v3022_v11 }
 0x68e   :  { %v3024_v9 = vadd.f32 %v5500_v46, %v3023_v13 }
 0x68f   :  { %3161 = vmatmul.f32.gmra.mxu2 %v8488_v55 }
 0x690   :  { %v3028_v1 = vsel %vm3027_vm14, %v5500_v46, %v3024_v9  ;;  %v8774_v9 = vpop.xlane.xlu1 %2770 }
 0x691   :  { %v3033_v49 = vsel %vm3030_vm4, %v3032_v54, %v3028_v1 }
 0x692   :  { %v3092_v20 = vmul.f32 %v3033_v49, %v8572_v56  ;;  %v8780_v49 = vpop.xlane.xlu2 %2772 }
 0x694   :  { %v8712_v62 = vadd.f32 %v3092_v20, %v8493_v29 }
 0x697   :  { %3164 = vmatmul.f32.gmra.mxu2 %v8498_v38 }
 0x69f   :  { %3167 = vmatmul.f32.gmra.mxu2 %v8504_v4 }
 0x6a7   :  { %3170 = vmatmul.f32.gmra.mxu2 %v8510_v23 }
 0x6af   :  { %3173 = vmatmul.f32.gmra.mxu2 %v8516_v7 }
 0x6ba   :  { %v8718_v24 = vpop.f32.mrf.mxu2 }
 0x6bb   :  { %v3177_v55 = vmul.f32 %v8524_v0, %v8718_v24 }
 0x6bd   :  { %3193 = vadd.xlane.f32.xlu1 %v3177_v55 }
 0x6c2   :  { %v8722_v61 = vpop.f32.mrf.mxu2 }
 0x6c3   :  { %v3178_v29 = vmul.f32 %v8524_v0, %v8722_v61 }
 0x6c5   :  { %3195 = vadd.xlane.f32.xlu2 %v3178_v29 }
 0x6ca   :  { %v8726_v56 = vpop.f32.mrf.mxu2 }
 0x6cb   :  { %v3179_v38 = vmul.f32 %v8524_v0, %v8726_v56 }
 0x6cd   :  { %3197 = vadd.xlane.f32.xlu0 %v3179_v38 }
 0x6d2   :  { %v8730_v4 = vpop.f32.mrf.mxu2 }
 0x6d3   :  { %v3180_v23 = vmul.f32 %v8524_v0, %v8730_v4 }
 0x6d5   :  { %3199 = vadd.xlane.f32.xlu1 %v3180_v23  ;;  %v8789_v23 = vpop.xlane.xlu0 %2774 }
 0x6da   :  { %v8734_v7 = vpop.f32.mrf.mxu2 }
 0x6db   :  { %v3181_v37 = vmul.f32 %v8524_v0, %v8734_v7 }
 0x6dd   :  { %3201 = vadd.xlane.f32.xlu2 %v3181_v37 }
 0x6e2   :  { %v8738_v39 = vpop.f32.mrf.mxu2 }
 0x6e3   :  { %v3182_v19 = vmul.f32 %v8524_v0, %v8738_v39 }
 0x6e5   :  { %3203 = vadd.xlane.f32.xlu0 %v3182_v19 }
 0x6ea   :  { %v8742_v2 = vpop.f32.mrf.mxu2 }
 0x6eb   :  { %v3183_v35 = vmul.f32 %v8524_v0, %v8742_v2 }
 0x6ed   :  { %3205 = vadd.xlane.f32.xlu1 %v3183_v35 }
 0x6f2   :  { %v8746_v15 = vpop.f32.mrf.mxu2 }
 0x6f3   :  { %v3184_v47 = vmul.f32 %v8524_v0, %v8746_v15 }
 0x6f5   :  { %3207 = vadd.xlane.f32.xlu2 %v3184_v47 }
 0x6fa   :  { %v8750_v41 = vpop.f32.mrf.mxu2 }
 0x6fb   :  { %v3185_v59 = vmul.f32 %v8524_v0, %v8750_v41 }
 0x6fd   :  { %3209 = vadd.xlane.f32.xlu0 %v3185_v59 }
 0x702   :  { %v8754_v46 = vpop.f32.mrf.mxu2 }
 0x703   :  { %v3186_v32 = vmul.f32 %v8524_v0, %v8754_v46 }
 0x705   :  { %3211 = vadd.xlane.f32.xlu1 %v3186_v32 }
 0x70a   :  { %v8758_v25 = vpop.f32.mrf.mxu2 }
 0x70b   :  { %v3187_v53 = vmul.f32 %v8524_v0, %v8758_v25 }
 0x70d   :  { %3213 = vadd.xlane.f32.xlu2 %v3187_v53 }
 0x712   :  { %v8762_v34 = vpop.f32.mrf.mxu2 }
 0x713   :  { %v3188_v14 = vmul.f32 %v8524_v0, %v8762_v34 }
 0x715   :  { %3215 = vadd.xlane.f32.xlu0 %v3188_v14 }
 0x71a   :  { %v8766_v11 = vpop.f32.mrf.mxu2 }
 0x71b   :  { %v3189_v36 = vmul.f32 %v8524_v0, %v8766_v11 }
 0x71d   :  { %3217 = vadd.xlane.f32.xlu1 %v3189_v36 }
 0x722   :  { %v8770_v13 = vpop.f32.mrf.mxu2 }
 0x723   :  { %10923 = vst [vmem:[#allocation50_spill] sm:$0xff] %v8770_v13  ;;  %v3190_v44 = vmul.f32 %v8524_v0, %v8770_v13 }
 0x725   :  { %3219 = vadd.xlane.f32.xlu2 %v3190_v44 }
 0x72a   :  { %v8776_v54 = vpop.f32.mrf.mxu2 }
 0x72b   :  { %10924 = vst [vmem:[#allocation19_spill] sm:$0xff] %v8776_v54  ;;  %v3191_v1 = vmul.f32 %v8524_v0, %v8776_v54 }
 0x72d   :  { %3221 = vadd.xlane.f32.xlu0 %v3191_v1 }
 0x730   :  { %v3194_v20 = vpop.xlane.xlu1 %3193 }
 0x731   :  { %v5040_v55 = vmul.f32 -1.442695, %v3194_v20 }
 0x732   :  { %v8782_v29 = vpop.f32.mrf.mxu2 }
 0x733   :  { %10925 = vst [vmem:[#allocation6_spill] sm:$0xff] %v8782_v29  ;;  %5501 = vpow2.f32 %v5040_v55  ;;  %3561 = vmatpush.msra.mxu3 %v8782_v29  ;;  %v3192_v38 = vmul.f32 %v8524_v0, %v8782_v29 }
 0x735   :  { %3562 = vmatpush.msra.mxu3 %v8776_v54  ;;  %3223 = vadd.xlane.f32.xlu1 %v3192_v38 }
 0x737   :  { %3563 = vmatpush.msra.mxu3 %v8770_v13 }
 0x738   :  { %v3196_v37 = vpop.xlane.xlu2 %3195 }
 0x739   :  { %v5502_v19 = vpop.eup %5501  ;;  %v5041_v35 = vmul.f32 -1.442695, %v3196_v37  ;;  %3564 = vmatpush.msra.mxu3 %v8766_v11 }
 0x73a   :  { %v3273_v47 = vadd.f32 1.0, %v5502_v19 }
 0x73b   :  { %5503 = vpow2.f32 %v5041_v35  ;;  %3565 = vmatpush.msra.mxu3 %v8762_v34 }
 0x73c   :  { %5505 = vrcp.f32 %v3273_v47  ;;  %v3300_v1 = vand.u32 2147483648, %v3273_v47  ;;  %v3298_v55 = vand.u32 2147483647, %v3273_v47  ;;  %vm3294_vm8 = vweird.f32 %v3273_v47 }
 0x73d   :  { %3566 = vmatpush.msra.mxu3 %v8758_v25 }
 0x73e   :  { %vm3299_vm10 = vcmp.eq.f32.partialorder %v3298_v55, 8.507059e+37 }
 0x73f   :  { %3567 = vmatpush.msra.mxu3 %v8754_v46 }
 0x740   :  { %v3198_v0 = vpop.xlane.xlu0 %3197 }
 0x741   :  { %v5504_v59 = vpop.eup %5503  ;;  %v5042_v32 = vmul.f32 -1.442695, %v3198_v0  ;;  %3568 = vmatpush.msra.mxu3 %v8750_v41 }
 0x742   :  { %v5506_v53 = vpop.eup %5505  ;;  %v3274_v14 = vadd.f32 1.0, %v5504_v59  ;;  %v3301_v59 = vor.u32 1.1754944e-38, %v3300_v1 }
 0x743   :  { %v3290_v36 = vmul.f32 %v5506_v53, %v3273_v47  ;;  %5507 = vpow2.f32 %v5042_v32  ;;  %3569 = vmatpush.msra.mxu3 %v8746_v15  ;;  %vm3295_vm6 = vweird.f32 %v5506_v53 }
 0x744   :  { %5509 = vrcp.f32 %v3274_v14  ;;  %vm3296_vm9 = vmor %vm3294_vm8, %vm3295_vm6  ;;  %v3315_v47 = vand.u32 2147483648, %v3274_v14  ;;  %v3313_v1 = vand.u32 2147483647, %v3274_v14  ;;  %vm3309_vm12 = vweird.f32 %v3274_v14 }
 0x745   :  { %v3291_v44 = vsub.f32 1.0, %v3290_v36  ;;  %3570 = vmatpush.msra.mxu3 %v8742_v2 }
 0x746   :  { %vm3314_vm15 = vcmp.eq.f32.partialorder %v3313_v1, 8.507059e+37 }
 0x747   :  { %v3292_v20 = vmul.f32 %v5506_v53, %v3291_v44  ;;  %3571 = vmatpush.msra.mxu3 %v8738_v39 }
 0x748   :  { %v3200_v38 = vpop.xlane.xlu1 %3199 }
 0x749   :  { %v5508_v37 = vpop.eup %5507  ;;  %v3293_v19 = vadd.f32 %v5506_v53, %v3292_v20  ;;  %v5043_v35 = vmul.f32 -1.442695, %v3200_v38  ;;  %3572 = vmatpush.msra.mxu3 %v8734_v7 }
 0x74a   :  { %v5510_v0 = vpop.eup %5509  ;;  %v3275_v32 = vadd.f32 1.0, %v5508_v37 }
 0x74b   :  { %v3297_v36 = vsel %vm3296_vm9, %v5506_v53, %v3293_v19  ;;  %v3305_v29 = vmul.f32 %v5510_v0, %v3274_v14  ;;  %5511 = vpow2.f32 %v5043_v35  ;;  %3573 = vmatpush.msra.mxu3 %v8730_v4  ;;  %vm3310_vm11 = vweird.f32 %v5510_v0 }
 0x74c   :  { %v3302_v44 = vsel %vm3299_vm10, %v3301_v59, %v3297_v36  ;;  %5513 = vrcp.f32 %v3275_v32  ;;  %vm3311_vm13 = vmor %vm3309_vm12, %vm3310_vm11  ;;  %vm3324_vm0 = vweird.f32 %v3275_v32 }
 0x74d   :  { %v3529_v54 = vmul.f32 %v3302_v44, %v8718_v24  ;;  %v3306_v13 = vsub.f32 1.0, %v3305_v29  ;;  %3574 = vmatpush.msra.mxu3 %v8726_v56  ;;  %v3316_v29 = vor.u32 1.1754944e-38, %v3315_v47 }
 0x74f   :  { %v8804_v20 = vadd.f32 %v3529_v54, %v8610_v27  ;;  %v3307_v38 = vmul.f32 %v5510_v0, %v3306_v13  ;;  %3575 = vmatpush.msra.mxu3 %v8722_v61 }
 0x750   :  { %v3202_v53 = vpop.xlane.xlu2 %3201 }
 0x751   :  { %v5512_v55 = vpop.eup %5511  ;;  %v3308_v37 = vadd.f32 %v5510_v0, %v3307_v38  ;;  %v5044_v19 = vmul.f32 -1.442695, %v3202_v53  ;;  %3576 = vmatpush.msra.mxu3 %v8718_v24  ;;  %v3330_v38 = vand.u32 2147483648, %v3275_v32  ;;  %v3328_v53 = vand.u32 2147483647, %v3275_v32 }
 0x752   :  { %v5514_v35 = vpop.eup %5513  ;;  %v3276_v59 = vadd.f32 1.0, %v5512_v55  ;;  %3577 = vmatmul.f32.vlgmr.msra.gmra.mxu3 %v8617_v6 }
 0x753   :  { %v3312_v27 = vsel %vm3311_vm13, %v5510_v0, %v3308_v37  ;;  %v3320_v13 = vmul.f32 %v5514_v35, %v3275_v32  ;;  %5515 = vpow2.f32 %v5044_v19  ;;  %vm3325_vm1 = vweird.f32 %v5514_v35 }
 0x754   :  { %v3317_v54 = vsel %vm3314_vm15, %v3316_v29, %v3312_v27  ;;  %5517 = vrcp.f32 %v3276_v59  ;;  %vm3326_vm2 = vmor %vm3324_vm0, %vm3325_vm1  ;;  %v3331_v1 = vor.u32 1.1754944e-38, %v3330_v38  ;;  %vm3329_vm3 = vcmp.eq.f32.partialorder %v3328_v53, 8.507059e+37 }
 0x755   :  { %v3530_v36 = vmul.f32 %v3317_v54, %v8722_v61  ;;  %v3321_v44 = vsub.f32 1.0, %v3320_v13  ;;  %v3345_v13 = vand.u32 2147483648, %v3276_v59  ;;  %vm3339_vm5 = vweird.f32 %v3276_v59 }
 0x757   :  { %v8811_v14 = vadd.f32 %v3530_v36, %v8622_v18  ;;  %v3322_v24 = vmul.f32 %v5514_v35, %v3321_v44  ;;  %v3343_v36 = vand.u32 2147483647, %v3276_v59 }
 0x758   :  { %v3204_v47 = vpop.xlane.xlu0 %3203 }
 0x759   :  { %v5516_v55 = vpop.eup %5515  ;;  %v3323_v26 = vadd.f32 %v5514_v35, %v3322_v24  ;;  %v5045_v6 = vmul.f32 -1.442695, %v3204_v47  ;;  %vm3344_vm4 = vcmp.eq.f32.partialorder %v3343_v36, 8.507059e+37 }
 0x75a   :  { %v5518_v0 = vpop.eup %5517  ;;  %v3277_v37 = vadd.f32 1.0, %v5516_v55  ;;  %3580 = vmatmul.f32.gmra.mxu3 %v8627_v30 }
 0x75b   :  { %v3327_v61 = vsel %vm3326_vm2, %v5514_v35, %v3323_v26  ;;  %v3335_v19 = vmul.f32 %v5518_v0, %v3276_v59  ;;  %5519 = vpow2.f32 %v5045_v6  ;;  %vm3340_vm7 = vweird.f32 %v5518_v0 }
 0x75c   :  { %v3332_v18 = vsel %vm3329_vm3, %v3331_v1, %v3327_v61  ;;  %5521 = vrcp.f32 %v3277_v37  ;;  %vm3341_vm14 = vmor %vm3339_vm5, %vm3340_vm7  ;;  %v3346_v35 = vor.u32 1.1754944e-38, %v3345_v13  ;;  %v3360_v1 = vand.u32 2147483648, %v3277_v37 }
 0x75d   :  { %v3531_v29 = vmul.f32 %v3332_v18, %v8726_v56  ;;  %v3336_v27 = vsub.f32 1.0, %v3335_v19  ;;  %v3358_v19 = vand.u32 2147483647, %v3277_v37  ;;  %vm3354_vm8 = vweird.f32 %v3277_v37 }
 0x75e   :  { %v3361_v13 = vor.u32 1.1754944e-38, %v3360_v1 }
 0x75f   :  { %v8816_v54 = vadd.f32 %v3531_v29, %v8632_v48  ;;  %v3337_v32 = vmul.f32 %v5518_v0, %v3336_v27  ;;  %vm3359_vm10 = vcmp.eq.f32.partialorder %v3358_v19, 8.507059e+37 }
 0x760   :  { %v3206_v44 = vpop.xlane.xlu1 %3205 }
 0x761   :  { %v5520_v38 = vpop.eup %5519  ;;  %v3338_v24 = vadd.f32 %v5518_v0, %v3337_v32  ;;  %v5046_v26 = vmul.f32 -1.442695, %v3206_v44 }
 0x762   :  { %v5522_v30 = vpop.eup %5521  ;;  %v3278_v53 = vadd.f32 1.0, %v5520_v38  ;;  %3583 = vmatmul.f32.gmra.mxu3 %v8637_v43 }
 0x763   :  { %v3342_v56 = vsel %vm3341_vm14, %v5518_v0, %v3338_v24  ;;  %v3350_v47 = vmul.f32 %v5522_v30, %v3277_v37  ;;  %5523 = vpow2.f32 %v5046_v26  ;;  %vm3355_vm6 = vweird.f32 %v5522_v30 }
 0x764   :  { %v3347_v48 = vsel %vm3344_vm4, %v3346_v35, %v3342_v56  ;;  %5525 = vrcp.f32 %v3278_v53  ;;  %vm3356_vm9 = vmor %vm3354_vm8, %vm3355_vm6  ;;  %v3375_v24 = vand.u32 2147483648, %v3278_v53  ;;  %v3373_v35 = vand.u32 2147483647, %v3278_v53 }
 0x765   :  { %v3532_v55 = vmul.f32 %v3347_v48, %v8730_v4  ;;  %v3351_v6 = vsub.f32 1.0, %v3350_v47  ;;  %vm3369_vm12 = vweird.f32 %v3278_v53 }
 0x766   :  { %vm3374_vm15 = vcmp.eq.f32.partialorder %v3373_v35, 8.507059e+37 }
 0x767   :  { %v8821_v61 = vadd.f32 %v3532_v55, %v8642_v58  ;;  %v3352_v59 = vmul.f32 %v5522_v30, %v3351_v6  ;;  %v3376_v55 = vor.u32 1.1754944e-38, %v3375_v24 }
 0x768   :  { %v3208_v18 = vpop.xlane.xlu2 %3207 }
 0x769   :  { %v5524_v29 = vpop.eup %5523  ;;  %v3353_v27 = vadd.f32 %v5522_v30, %v3352_v59  ;;  %v5047_v43 = vmul.f32 -1.442695, %v3208_v18 }
 0x76a   :  { %v5526_v0 = vpop.eup %5525  ;;  %v3279_v32 = vadd.f32 1.0, %v5524_v29  ;;  %3586 = vmatmul.f32.gmra.mxu3 %v8647_v17 }
 0x76b   :  { %v3357_v4 = vsel %vm3356_vm9, %v5522_v30, %v3353_v27  ;;  %v3365_v36 = vmul.f32 %v5526_v0, %v3278_v53  ;;  %5527 = vpow2.f32 %v5047_v43  ;;  %vm3370_vm11 = vweird.f32 %v5526_v0 }
 0x76c   :  { %v3362_v58 = vsel %vm3359_vm10, %v3361_v13, %v3357_v4  ;;  %5529 = vrcp.f32 %v3279_v32  ;;  %vm3371_vm13 = vmor %vm3369_vm12, %vm3370_vm11  ;;  %v3390_v18 = vand.u32 2147483648, %v3279_v32  ;;  %v3388_v27 = vand.u32 2147483647, %v3279_v32 }
 0x76d   :  { %v3533_v44 = vmul.f32 %v3362_v58, %v8734_v7  ;;  %v3366_v38 = vsub.f32 1.0, %v3365_v36  ;;  %vm3384_vm0 = vweird.f32 %v3279_v32 }
 0x76e   :  { %v3391_v36 = vor.u32 1.1754944e-38, %v3390_v18  ;;  %vm3389_vm3 = vcmp.eq.f32.partialorder %v3388_v27, 8.507059e+37 }
 0x76f   :  { %v8826_v26 = vadd.f32 %v3533_v44, %v8652_v21  ;;  %v3367_v37 = vmul.f32 %v5526_v0, %v3366_v38 }
 0x770   :  { %v3210_v56 = vpop.xlane.xlu0 %3209 }
 0x771   :  { %v5528_v47 = vpop.eup %5527  ;;  %v3368_v48 = vadd.f32 %v5526_v0, %v3367_v37  ;;  %v5048_v17 = vmul.f32 -1.442695, %v3210_v56 }
 0x772   :  { %v5530_v30 = vpop.eup %5529  ;;  %v3280_v6 = vadd.f32 1.0, %v5528_v47  ;;  %3589 = vmatmul.f32.gmra.mxu3 %v8657_v42 }
 0x773   :  { %v3372_v7 = vsel %vm3371_vm13, %v5526_v0, %v3368_v48  ;;  %v3380_v1 = vmul.f32 %v5530_v30, %v3279_v32  ;;  %5531 = vpow2.f32 %v5048_v17  ;;  %vm3385_vm1 = vweird.f32 %v5530_v30 }
 0x774   :  { %v3377_v21 = vsel %vm3374_vm15, %v3376_v55, %v3372_v7  ;;  %5533 = vrcp.f32 %v3280_v6  ;;  %vm3386_vm2 = vmor %vm3384_vm0, %vm3385_vm1  ;;  %v3405_v37 = vand.u32 2147483648, %v3280_v6  ;;  %v3403_v56 = vand.u32 2147483647, %v3280_v6 }
 0x775   :  { %v3534_v59 = vmul.f32 %v3377_v21, %v8738_v39  ;;  %v3381_v19 = vsub.f32 1.0, %v3380_v1  ;;  %vm3399_vm5 = vweird.f32 %v3280_v6 }
 0x776   :  { %v3406_v55 = vor.u32 1.1754944e-38, %v3405_v37  ;;  %vm3404_vm4 = vcmp.eq.f32.partialorder %v3403_v56, 8.507059e+37 }
 0x777   :  { %v8831_v29 = vadd.f32 %v3534_v59, %v8662_v10  ;;  %v3382_v53 = vmul.f32 %v5530_v30, %v3381_v19 }
 0x778   :  { %v3212_v43 = vpop.xlane.xlu1 %3211 }
 0x779   :  { %v5532_v13 = vpop.eup %5531  ;;  %v3383_v4 = vadd.f32 %v5530_v30, %v3382_v53  ;;  %v5049_v42 = vmul.f32 -1.442695, %v3212_v43 }
 0x77a   :  { %v5534_v0 = vpop.eup %5533  ;;  %v3281_v58 = vadd.f32 1.0, %v5532_v13  ;;  %3592 = vmatmul.f32.gmra.mxu3 %v8667_v45 }
 0x77b   :  { %v3387_v39 = vsel %vm3386_vm2, %v5530_v30, %v3383_v4  ;;  %v3395_v44 = vmul.f32 %v5534_v0, %v3280_v6  ;;  %5535 = vpow2.f32 %v5049_v42  ;;  %vm3400_vm7 = vweird.f32 %v5534_v0 }
 0x77c   :  { %v3392_v10 = vsel %vm3389_vm3, %v3391_v36, %v3387_v39  ;;  %5537 = vrcp.f32 %v3281_v58  ;;  %vm3401_vm14 = vmor %vm3399_vm5, %vm3400_vm7  ;;  %v3420_v19 = vand.u32 2147483648, %v3281_v58  ;;  %v3418_v53 = vand.u32 2147483647, %v3281_v58 }
 0x77d   :  { %v3535_v38 = vmul.f32 %v3392_v10, %v8742_v2  ;;  %v3396_v24 = vsub.f32 1.0, %v3395_v44  ;;  %vm3414_vm8 = vweird.f32 %v3281_v58 }
 0x77e   :  { %v3421_v42 = vor.u32 1.1754944e-38, %v3420_v19  ;;  %vm3419_vm10 = vcmp.eq.f32.partialorder %v3418_v53, 8.507059e+37 }
 0x77f   :  { %v8836_v35 = vadd.f32 %v3535_v38, %v8672_v63  ;;  %v3397_v32 = vmul.f32 %v5534_v0, %v3396_v24 }
 0x780   :  { %v3214_v47 = vpop.xlane.xlu2 %3213 }
 0x781   :  { %v5536_v48 = vpop.eup %5535  ;;  %v3398_v17 = vadd.f32 %v5534_v0, %v3397_v32  ;;  %v5050_v45 = vmul.f32 -1.442695, %v3214_v47 }
 0x782   :  { %v5538_v30 = vpop.eup %5537  ;;  %v3282_v7 = vadd.f32 1.0, %v5536_v48  ;;  %3595 = vmatmul.f32.gmra.mxu3 %v8677_v8 }
 0x783   :  { %v3402_v2 = vsel %vm3401_vm14, %v5534_v0, %v3398_v17  ;;  %v3410_v1 = vmul.f32 %v5538_v30, %v3281_v58  ;;  %5539 = vpow2.f32 %v5050_v45  ;;  %vm3415_vm6 = vweird.f32 %v5538_v30 }
 0x784   :  { %v3407_v63 = vsel %vm3404_vm4, %v3406_v55, %v3402_v2  ;;  %5541 = vrcp.f32 %v3282_v7  ;;  %vm3416_vm9 = vmor %vm3414_vm8, %vm3415_vm6  ;;  %v3435_v10 = vand.u32 2147483648, %v3282_v7  ;;  %v3433_v24 = vand.u32 2147483647, %v3282_v7 }
 0x785   :  { %v3536_v21 = vmul.f32 %v3407_v63, %v8746_v15  ;;  %v3411_v59 = vsub.f32 1.0, %v3410_v1  ;;  %vm3429_vm12 = vweird.f32 %v3282_v7 }
 0x786   :  { %v3436_v48 = vor.u32 1.1754944e-38, %v3435_v10  ;;  %vm3434_vm15 = vcmp.eq.f32.partialorder %v3433_v24, 8.507059e+37  ;;  %v8871_v10 = vld [vmem:[%s10603_s0 + $0x50] sm:$0xff] }
 0x787   :  { %v8841_v18 = vadd.f32 %v3536_v21, %v8682_v40  ;;  %v3412_v6 = vmul.f32 %v5538_v30, %v3411_v59 }
 0x788   :  { %v3216_v27 = vpop.xlane.xlu0 %3215 }
 0x789   :  { %v5540_v43 = vpop.eup %5539  ;;  %v3413_v13 = vadd.f32 %v5538_v30, %v3412_v6  ;;  %v5051_v8 = vmul.f32 -1.442695, %v3216_v27 }
 0x78a   :  { %v5542_v4 = vpop.eup %5541  ;;  %v3283_v0 = vadd.f32 1.0, %v5540_v43  ;;  %3598 = vmatmul.f32.gmra.mxu3 %v8687_v33  ;;  %v8861_v43 = vld [vmem:[%s10603_s0 + $0x48] sm:$0xff] }
 0x78b   :  { %v3417_v15 = vsel %vm3416_vm9, %v5538_v30, %v3413_v13  ;;  %v3425_v36 = vmul.f32 %v5542_v4, %v3282_v7  ;;  %5543 = vpow2.f32 %v5051_v8  ;;  %vm3430_vm11 = vweird.f32 %v5542_v4 }
 0x78c   :  { %v3422_v40 = vsel %vm3419_vm10, %v3421_v42, %v3417_v15  ;;  %5545 = vrcp.f32 %v3283_v0  ;;  %vm3431_vm13 = vmor %vm3429_vm12, %vm3430_vm11  ;;  %v3450_v2 = vand.u32 2147483648, %v3283_v0  ;;  %v3448_v21 = vand.u32 2147483647, %v3283_v0 }
 0x78d   :  { %v3537_v39 = vmul.f32 %v3422_v40, %v8750_v41  ;;  %v3426_v44 = vsub.f32 1.0, %v3425_v36  ;;  %v8851_v41 = vld [vmem:[%s10603_s0 + $0x40] sm:$0xff]  ;;  %vm3444_vm0 = vweird.f32 %v3283_v0 }
 0x78e   :  { %v3451_v53 = vor.u32 1.1754944e-38, %v3450_v2  ;;  %vm3449_vm3 = vcmp.eq.f32.partialorder %v3448_v21, 8.507059e+37 }
 0x78f   :  { %v8846_v38 = vadd.f32 %v3537_v39, %v8692_v5  ;;  %v3427_v58 = vmul.f32 %v5542_v4, %v3426_v44 }
 0x790   :  { %v3218_v37 = vpop.xlane.xlu1 %3217 }
 0x791   :  { %v5544_v32 = vpop.eup %5543  ;;  %v3428_v56 = vadd.f32 %v5542_v4, %v3427_v58  ;;  %v5052_v33 = vmul.f32 -1.442695, %v3218_v37 }
 0x792   :  { %v5546_v47 = vpop.eup %5545  ;;  %v3284_v17 = vadd.f32 1.0, %v5544_v32  ;;  %3601 = vmatmul.f32.gmra.mxu3 %v8851_v41 }
 0x793   :  { %v3432_v5 = vsel %vm3431_vm13, %v5542_v4, %v3428_v56  ;;  %v3440_v45 = vmul.f32 %v5546_v47, %v3283_v0  ;;  %5547 = vpow2.f32 %v5052_v33  ;;  %vm3445_vm1 = vweird.f32 %v5546_v47 }
 0x794   :  { %v3437_v30 = vsel %vm3434_vm15, %v3436_v48, %v3432_v5  ;;  %5549 = vrcp.f32 %v3284_v17  ;;  %vm3446_vm2 = vmor %vm3444_vm0, %vm3445_vm1  ;;  %v3465_v42 = vand.u32 2147483648, %v3284_v17  ;;  %v3463_v36 = vand.u32 2147483647, %v3284_v17  ;;  %v8881_v5 = vld [vmem:[%s10603_s0 + $0x58] sm:$0xff] }
 0x795   :  { %v3538_v55 = vmul.f32 %v3437_v30, %v8754_v46  ;;  %v3441_v7 = vsub.f32 1.0, %v3440_v45  ;;  %vm3459_vm5 = vweird.f32 %v3284_v17 }
 0x796   :  { %v3466_v44 = vor.u32 1.1754944e-38, %v3465_v42  ;;  %vm3464_vm4 = vcmp.eq.f32.partialorder %v3463_v36, 8.507059e+37 }
 0x797   :  { %v8856_v1 = vadd.f32 %v3538_v55, %v8697_v28  ;;  %v3442_v63 = vmul.f32 %v5546_v47, %v3441_v7  ;;  %v8891_v55 = vld [vmem:[%s10603_s0 + $0x60] sm:$0xff]  ;;  %v8897_v7 = vld [vmem:[%s10603_s0 + $0x68] sm:$0xff] }
 0x799   :  { %v5548_v59 = vpop.eup %5547  ;;  %v3443_v19 = vadd.f32 %v5546_v47, %v3442_v63  ;;  %v8917_v63 = vld [vmem:[%s10602_s2] ss:$0 sm:$0xff] }
 0x79a   :  { %v5550_v6 = vpop.eup %5549  ;;  %v3285_v27 = vadd.f32 1.0, %v5548_v59  ;;  %3604 = vmatmul.f32.gmra.mxu3 %v8861_v43 }
 0x79b   :  { %v3447_v46 = vsel %vm3446_vm2, %v5546_v47, %v3443_v19  ;;  %v3455_v28 = vmul.f32 %v5550_v6, %v3284_v17  ;;  %vm3460_vm7 = vweird.f32 %v5550_v6 }
 0x79c   :  { %v3452_v13 = vsel %vm3449_vm3, %v3451_v53, %v3447_v46  ;;  %5551 = vrcp.f32 %v3285_v27  ;;  %vm3461_vm14 = vmor %vm3459_vm5, %vm3460_vm7  ;;  %v3480_v32 = vand.u32 2147483648, %v3285_v27  ;;  %v3478_v47 = vand.u32 2147483647, %v3285_v27 }
 0x79d   :  { %v3539_v8 = vmul.f32 %v3452_v13, %v8758_v25  ;;  %v3456_v4 = vsub.f32 1.0, %v3455_v28  ;;  %vm3474_vm8 = vweird.f32 %v3285_v27 }
 0x79e   :  { %v3481_v17 = vor.u32 1.1754944e-38, %v3480_v32  ;;  %vm3479_vm10 = vcmp.eq.f32.partialorder %v3478_v47, 8.507059e+37 }
 0x79f   :  { %v8866_v0 = vadd.f32 %v3539_v8, %v8702_v3  ;;  %v3457_v15 = vmul.f32 %v5550_v6, %v3456_v4 }
 0x7a1   :  { %v3458_v40 = vadd.f32 %v5550_v6, %v3457_v15 }
 0x7a2   :  { %v5552_v39 = vpop.eup %5551  ;;  %3607 = vmatmul.f32.gmra.mxu3 %v8871_v10 }
 0x7a3   :  { %v3462_v25 = vsel %vm3461_vm14, %v5550_v6, %v3458_v40  ;;  %v3470_v58 = vmul.f32 %v5552_v39, %v3285_v27  ;;  %vm3475_vm6 = vweird.f32 %v5552_v39 }
 0x7a4   :  { %v3467_v3 = vsel %vm3464_vm4, %v3466_v44, %v3462_v25  ;;  %vm3476_vm9 = vmor %vm3474_vm8, %vm3475_vm6 }
 0x7a5   :  { %v3540_v24 = vmul.f32 %v3467_v3, %v8762_v34  ;;  %v3471_v37 = vsub.f32 1.0, %v3470_v58 }
 0x7a7   :  { %v8876_v56 = vadd.f32 %v3540_v24, %v8707_v12  ;;  %v3472_v33 = vmul.f32 %v5552_v39, %v3471_v37 }
 0x7a9   :  { %v3473_v48 = vadd.f32 %v5552_v39, %v3472_v33 }
 0x7aa   :  { %3610 = vmatmul.f32.gmra.mxu3 %v8881_v5 }
 0x7ab   :  { %v3477_v34 = vsel %vm3476_vm9, %v5552_v39, %v3473_v48 }
 0x7ac   :  { %v3482_v45 = vsel %vm3479_vm10, %v3481_v17, %v3477_v34  ;;  %v8973_v34 = vpop.xlane.xlu2 %3219 }
 0x7ad   :  { %v3541_v12 = vmul.f32 %v3482_v45, %v8766_v11  ;;  %v8903_v11 = vld [vmem:[%s10603_s0 + $0x70] sm:$0xff] }
 0x7af   :  { %v8886_v30 = vadd.f32 %v3541_v12, %v8712_v62  ;;  %v8909_v62 = vld [vmem:[%s10603_s0 + $0x78] sm:$0xff] }
 0x7b2   :  { %3613 = vmatmul.f32.gmra.mxu3 %v8891_v55 }
 0x7ba   :  { %3616 = vmatmul.f32.gmra.mxu3 %v8897_v7 }
 0x7c2   :  { %3619 = vmatmul.f32.gmra.mxu3 %v8903_v11 }
 0x7ca   :  { %3622 = vmatmul.f32.gmra.mxu3 %v8909_v62 }
 0x7d5   :  { %v8912_v2 = vpop.f32.mrf.mxu3 }
 0x7d6   :  { %v3626_v21 = vmul.f32 %v8917_v63, %v8912_v2 }
 0x7d8   :  { %3642 = vadd.xlane.f32.xlu2 %v3626_v21  ;;  %v8979_v21 = vpop.xlane.xlu0 %3221 }
 0x7d9   :  { %10928 = vst [vmem:[#allocation2_spill] sm:$0xff] %v8979_v21 }
 0x7dd   :  { %v8921_v59 = vpop.f32.mrf.mxu3 }
 0x7de   :  { %v3627_v19 = vmul.f32 %v8917_v63, %v8921_v59 }
 0x7e0   :  { %3644 = vadd.xlane.f32.xlu0 %v3627_v19 }
 0x7e5   :  { %v8925_v6 = vpop.f32.mrf.mxu3 }
 0x7e6   :  { %v3628_v53 = vmul.f32 %v8917_v63, %v8925_v6 }
 0x7e8   :  { %3646 = vadd.xlane.f32.xlu1 %v3628_v53 }
 0x7ed   :  { %v8929_v27 = vpop.f32.mrf.mxu3 }
 0x7ee   :  { %v3629_v46 = vmul.f32 %v8917_v63, %v8929_v27 }
 0x7f0   :  { %3648 = vadd.xlane.f32.xlu2 %v3629_v46 }
 0x7f5   :  { %v8933_v28 = vpop.f32.mrf.mxu3 }
 0x7f6   :  { %v3630_v13 = vmul.f32 %v8917_v63, %v8933_v28 }
 0x7f8   :  { %3650 = vadd.xlane.f32.xlu0 %v3630_v13 }
 0x7fd   :  { %v8937_v8 = vpop.f32.mrf.mxu3 }
 0x7fe   :  { %v3631_v4 = vmul.f32 %v8917_v63, %v8937_v8 }
 0x800   :  { %3652 = vadd.xlane.f32.xlu1 %v3631_v4  ;;  %v8988_v4 = vpop.xlane.xlu1 %3223 }
 0x801   :  { %10930 = vst [vmem:[#allocation10_spill] sm:$0xff] %v8988_v4 }
 0x805   :  { %v8941_v42 = vpop.f32.mrf.mxu3 }
 0x806   :  { %v3632_v15 = vmul.f32 %v8917_v63, %v8941_v42 }
 0x808   :  { %3654 = vadd.xlane.f32.xlu2 %v3632_v15 }
 0x80d   :  { %v8945_v36 = vpop.f32.mrf.mxu3 }
 0x80e   :  { %v3633_v40 = vmul.f32 %v8917_v63, %v8945_v36 }
 0x810   :  { %3656 = vadd.xlane.f32.xlu0 %v3633_v40 }
 0x815   :  { %v8949_v39 = vpop.f32.mrf.mxu3 }
 0x816   :  { %v3634_v44 = vmul.f32 %v8917_v63, %v8949_v39 }
 0x818   :  { %3658 = vadd.xlane.f32.xlu1 %v3634_v44 }
 0x81d   :  { %v8953_v25 = vpop.f32.mrf.mxu3 }
 0x81e   :  { %v3635_v58 = vmul.f32 %v8917_v63, %v8953_v25 }
 0x820   :  { %3660 = vadd.xlane.f32.xlu2 %v3635_v58 }
 0x825   :  { %v8957_v3 = vpop.f32.mrf.mxu3 }
 0x826   :  { %v3636_v24 = vmul.f32 %v8917_v63, %v8957_v3 }
 0x828   :  { %3662 = vadd.xlane.f32.xlu0 %v3636_v24 }
 0x82d   :  { %v8961_v37 = vpop.f32.mrf.mxu3 }
 0x82e   :  { %v3637_v32 = vmul.f32 %v8917_v63, %v8961_v37 }
 0x830   :  { %3664 = vadd.xlane.f32.xlu1 %v3637_v32 }
 0x835   :  { %v8965_v33 = vpop.f32.mrf.mxu3 }
 0x836   :  { %v3638_v47 = vmul.f32 %v8917_v63, %v8965_v33 }
 0x838   :  { %3666 = vadd.xlane.f32.xlu2 %v3638_v47 }
 0x83d   :  { %v8969_v48 = vpop.f32.mrf.mxu3 }
 0x83e   :  { %10926 = vst [vmem:[#allocation21_spill] sm:$0xff] %v8969_v48  ;;  %v3639_v17 = vmul.f32 %v8917_v63, %v8969_v48 }
 0x840   :  { %3668 = vadd.xlane.f32.xlu0 %v3639_v17 }
 0x845   :  { %v8975_v45 = vpop.f32.mrf.mxu3 }
 0x846   :  { %10927 = vst [vmem:[#allocation37_spill] sm:$0xff] %v8975_v45  ;;  %v3640_v12 = vmul.f32 %v8917_v63, %v8975_v45 }
 0x848   :  { %3670 = vadd.xlane.f32.xlu1 %v3640_v12 }
 0x84b   :  { %v3643_v19 = vpop.xlane.xlu2 %3642 }
 0x84c   :  { %v5056_v53 = vmul.f32 -1.442695, %v3643_v19 }
 0x84d   :  { %v8981_v46 = vpop.f32.mrf.mxu3 }
 0x84e   :  { %10929 = vst [vmem:[#allocation47_spill] sm:$0xff] %v8981_v46  ;;  %5553 = vpow2.f32 %v5056_v53  ;;  %4010 = vmatpush.msra.mxu0 %v8981_v46  ;;  %v3641_v13 = vmul.f32 %v8917_v63, %v8981_v46 }
 0x850   :  { %4011 = vmatpush.msra.mxu0 %v8975_v45  ;;  %3672 = vadd.xlane.f32.xlu2 %v3641_v13 }
 0x852   :  { %4012 = vmatpush.msra.mxu0 %v8969_v48 }
 0x853   :  { %v3645_v15 = vpop.xlane.xlu0 %3644 }
 0x854   :  { %v5554_v40 = vpop.eup %5553  ;;  %v5057_v44 = vmul.f32 -1.442695, %v3645_v15  ;;  %4013 = vmatpush.msra.mxu0 %v8965_v33 }
 0x855   :  { %v3722_v58 = vadd.f32 1.0, %v5554_v40 }
 0x856   :  { %5555 = vpow2.f32 %v5057_v44  ;;  %4014 = vmatpush.msra.mxu0 %v8961_v37 }
 0x857   :  { %5557 = vrcp.f32 %v3722_v58  ;;  %v3749_v13 = vand.u32 2147483648, %v3722_v58  ;;  %v3747_v40 = vand.u32 2147483647, %v3722_v58  ;;  %vm3743_vm12 = vweird.f32 %v3722_v58 }
 0x858   :  { %4015 = vmatpush.msra.mxu0 %v8957_v3 }
 0x859   :  { %vm3748_vm15 = vcmp.eq.f32.partialorder %v3747_v40, 8.507059e+37 }
 0x85a   :  { %4016 = vmatpush.msra.mxu0 %v8953_v25 }
 0x85b   :  { %v3647_v24 = vpop.xlane.xlu1 %3646 }
 0x85c   :  { %v5556_v32 = vpop.eup %5555  ;;  %v5058_v47 = vmul.f32 -1.442695, %v3647_v24  ;;  %4017 = vmatpush.msra.mxu0 %v8949_v39 }
 0x85d   :  { %v5558_v17 = vpop.eup %5557  ;;  %v3723_v12 = vadd.f32 1.0, %v5556_v32 }
 0x85e   :  { %v3739_v19 = vmul.f32 %v5558_v17, %v3722_v58  ;;  %5559 = vpow2.f32 %v5058_v47  ;;  %4018 = vmatpush.msra.mxu0 %v8945_v36  ;;  %vm3744_vm11 = vweird.f32 %v5558_v17  ;;  %v3750_v47 = vor.u32 1.1754944e-38, %v3749_v13 }
 0x85f   :  { %5561 = vrcp.f32 %v3723_v12  ;;  %vm3745_vm13 = vmor %vm3743_vm12, %vm3744_vm11  ;;  %v3764_v58 = vand.u32 2147483648, %v3723_v12  ;;  %v3762_v13 = vand.u32 2147483647, %v3723_v12  ;;  %vm3758_vm0 = vweird.f32 %v3723_v12 }
 0x860   :  { %v3740_v53 = vsub.f32 1.0, %v3739_v19  ;;  %4019 = vmatpush.msra.mxu0 %v8941_v42 }
 0x861   :  { %vm3763_vm3 = vcmp.eq.f32.partialorder %v3762_v13, 8.507059e+37 }
 0x862   :  { %v3741_v15 = vmul.f32 %v5558_v17, %v3740_v53  ;;  %4020 = vmatpush.msra.mxu0 %v8937_v8 }
 0x863   :  { %v3649_v44 = vpop.xlane.xlu2 %3648 }
 0x864   :  { %v5560_v24 = vpop.eup %5559  ;;  %v3742_v46 = vadd.f32 %v5558_v17, %v3741_v15  ;;  %v5059_v45 = vmul.f32 -1.442695, %v3649_v44  ;;  %4021 = vmatpush.msra.mxu0 %v8933_v28 }
 0x865   :  { %v5562_v32 = vpop.eup %5561  ;;  %v3724_v48 = vadd.f32 1.0, %v5560_v24 }
 0x866   :  { %v3746_v19 = vsel %vm3745_vm13, %v5558_v17, %v3742_v46  ;;  %v3754_v4 = vmul.f32 %v5562_v32, %v3723_v12  ;;  %5563 = vpow2.f32 %v5059_v45  ;;  %4022 = vmatpush.msra.mxu0 %v8929_v27  ;;  %vm3759_vm1 = vweird.f32 %v5562_v32 }
 0x867   :  { %v3751_v53 = vsel %vm3748_vm15, %v3750_v47, %v3746_v19  ;;  %5565 = vrcp.f32 %v3724_v48  ;;  %vm3760_vm2 = vmor %vm3758_vm0, %vm3759_vm1  ;;  %vm3773_vm5 = vweird.f32 %v3724_v48 }
 0x868   :  { %v3978_v31 = vmul.f32 %v3751_v53, %v8912_v2  ;;  %v3755_v21 = vsub.f32 1.0, %v3754_v4  ;;  %4023 = vmatpush.msra.mxu0 %v8925_v6  ;;  %v3765_v4 = vor.u32 1.1754944e-38, %v3764_v58  ;;  %v3779_v53 = vand.u32 2147483648, %v3724_v48 }
 0x86a   :  { %v9003_v15 = vadd.f32 %v3978_v31, %v8804_v20  ;;  %v3756_v44 = vmul.f32 %v5562_v32, %v3755_v21  ;;  %4024 = vmatpush.msra.mxu0 %v8921_v59  ;;  %v9010_v31 = vld [vmem:[%s10603_s0] sm:$0xff] }
 0x86b   :  { %v3651_v46 = vpop.xlane.xlu0 %3650 }
 0x86c   :  { %10931 = vst [vmem:[#allocation12_spill] sm:$0xff] %v9003_v15  ;;  %v5564_v45 = vpop.eup %5563  ;;  %v3757_v17 = vadd.f32 %v5562_v32, %v3756_v44  ;;  %v5060_v40 = vmul.f32 -1.442695, %v3651_v46  ;;  %4025 = vmatpush.msra.mxu0 %v8912_v2  ;;  %v3777_v46 = vand.u32 2147483647, %v3724_v48 }
 0x86d   :  { %v5566_v24 = vpop.eup %5565  ;;  %v3725_v47 = vadd.f32 1.0, %v5564_v45  ;;  %4026 = vmatmul.f32.vlgmr.msra.gmra.mxu0 %v9010_v31 }
 0x86e   :  { %v3761_v20 = vsel %vm3760_vm2, %v5562_v32, %v3757_v17  ;;  %v3769_v21 = vmul.f32 %v5566_v24, %v3724_v48  ;;  %5567 = vpow2.f32 %v5060_v40  ;;  %vm3774_vm7 = vweird.f32 %v5566_v24 }
 0x86f   :  { %v3766_v19 = vsel %vm3763_vm3, %v3765_v4, %v3761_v20  ;;  %5569 = vrcp.f32 %v3725_v47  ;;  %vm3775_vm14 = vmor %vm3773_vm5, %vm3774_vm7  ;;  %v3780_v17 = vor.u32 1.1754944e-38, %v3779_v53  ;;  %vm3778_vm4 = vcmp.eq.f32.partialorder %v3777_v46, 8.507059e+37 }
 0x870   :  { %v3979_v12 = vmul.f32 %v3766_v19, %v8921_v59  ;;  %v3770_v2 = vsub.f32 1.0, %v3769_v21  ;;  %v9020_v59 = vld [vmem:[%s10603_s0 + $0x8] sm:$0xff]  ;;  %v3794_v19 = vand.u32 2147483648, %v3725_v47  ;;  %vm3788_vm8 = vweird.f32 %v3725_v47 }
 0x872   :  { %v9015_v58 = vadd.f32 %v3979_v12, %v8811_v14  ;;  %v3771_v44 = vmul.f32 %v5566_v24, %v3770_v2  ;;  %v3792_v2 = vand.u32 2147483647, %v3725_v47  ;;  %v3795_v46 = vor.u32 1.1754944e-38, %v3794_v19 }
 0x873   :  { %v3653_v45 = vpop.xlane.xlu1 %3652 }
 0x874   :  { %v5568_v15 = vpop.eup %5567  ;;  %v3772_v16 = vadd.f32 %v5566_v24, %v3771_v44  ;;  %v5061_v32 = vmul.f32 -1.442695, %v3653_v45  ;;  %vm3793_vm10 = vcmp.eq.f32.partialorder %v3792_v2, 8.507059e+37 }
 0x875   :  { %v5570_v13 = vpop.eup %5569  ;;  %v3726_v40 = vadd.f32 1.0, %v5568_v15  ;;  %4029 = vmatmul.f32.gmra.mxu0 %v9020_v59 }
 0x876   :  { %v3776_v14 = vsel %vm3775_vm14, %v5566_v24, %v3772_v16  ;;  %v3784_v4 = vmul.f32 %v5570_v13, %v3725_v47  ;;  %5571 = vpow2.f32 %v5061_v32  ;;  %vm3789_vm6 = vweird.f32 %v5570_v13 }
 0x877   :  { %v3781_v20 = vsel %vm3778_vm4, %v3780_v17, %v3776_v14  ;;  %5573 = vrcp.f32 %v3726_v40  ;;  %vm3790_vm9 = vmor %vm3788_vm8, %vm3789_vm6  ;;  %v3807_v19 = vand.u32 2147483647, %v3726_v40  ;;  %vm3803_vm12 = vweird.f32 %v3726_v40 }
 0x878   :  { %v3980_v48 = vmul.f32 %v3781_v20, %v8925_v6  ;;  %v3785_v21 = vsub.f32 1.0, %v3784_v4  ;;  %v9030_v6 = vld [vmem:[%s10603_s0 + $0x10] sm:$0xff]  ;;  %v3809_v20 = vand.u32 2147483648, %v3726_v40 }
 0x879   :  { %vm3808_vm15 = vcmp.eq.f32.partialorder %v3807_v19, 8.507059e+37 }
 0x87a   :  { %v9025_v12 = vadd.f32 %v3980_v48, %v8816_v54  ;;  %v3786_v15 = vmul.f32 %v5570_v13, %v3785_v21 }
 0x87b   :  { %v3655_v53 = vpop.xlane.xlu2 %3654 }
 0x87c   :  { %v5572_v44 = vpop.eup %5571  ;;  %v3787_v45 = vadd.f32 %v5570_v13, %v3786_v15  ;;  %v5062_v16 = vmul.f32 -1.442695, %v3655_v53 }
 0x87d   :  { %v5574_v24 = vpop.eup %5573  ;;  %v3727_v32 = vadd.f32 1.0, %v5572_v44  ;;  %4032 = vmatmul.f32.gmra.mxu0 %v9030_v6 }
 0x87e   :  { %v3791_v54 = vsel %vm3790_vm9, %v5570_v13, %v3787_v45  ;;  %v3799_v17 = vmul.f32 %v5574_v24, %v3726_v40  ;;  %5575 = vpow2.f32 %v5062_v16  ;;  %vm3804_vm11 = vweird.f32 %v5574_v24 }
 0x87f   :  { %v3796_v14 = vsel %vm3793_vm10, %v3795_v46, %v3791_v54  ;;  %5577 = vrcp.f32 %v3727_v32  ;;  %vm3805_vm13 = vmor %vm3803_vm12, %vm3804_vm11  ;;  %v3810_v45 = vor.u32 1.1754944e-38, %v3809_v20  ;;  %v3822_v20 = vand.u32 2147483647, %v3727_v32 }
 0x880   :  { %v3981_v47 = vmul.f32 %v3796_v14, %v8929_v27  ;;  %v3800_v4 = vsub.f32 1.0, %v3799_v17  ;;  %v9040_v27 = vld [vmem:[%s10603_s0 + $0x18] sm:$0xff]  ;;  %v3824_v14 = vand.u32 2147483648, %v3727_v32  ;;  %vm3818_vm0 = vweird.f32 %v3727_v32 }
 0x881   :  { %vm3823_vm3 = vcmp.eq.f32.partialorder %v3822_v20, 8.507059e+37 }
 0x882   :  { %v9035_v48 = vadd.f32 %v3981_v47, %v8821_v61  ;;  %v3801_v21 = vmul.f32 %v5574_v24, %v3800_v4 }
 0x883   :  { %v3657_v15 = vpop.xlane.xlu0 %3656 }
 0x884   :  { %v5576_v53 = vpop.eup %5575  ;;  %v3802_v44 = vadd.f32 %v5574_v24, %v3801_v21  ;;  %v5063_v13 = vmul.f32 -1.442695, %v3657_v15 }
 0x885   :  { %v5578_v2 = vpop.eup %5577  ;;  %v3728_v16 = vadd.f32 1.0, %v5576_v53  ;;  %4035 = vmatmul.f32.gmra.mxu0 %v9040_v27 }
 0x886   :  { %v3806_v61 = vsel %vm3805_vm13, %v5574_v24, %v3802_v44  ;;  %v3814_v46 = vmul.f32 %v5578_v2, %v3727_v32  ;;  %5579 = vpow2.f32 %v5063_v13  ;;  %vm3819_vm1 = vweird.f32 %v5578_v2 }
 0x887   :  { %v3811_v54 = vsel %vm3808_vm15, %v3810_v45, %v3806_v61  ;;  %5581 = vrcp.f32 %v3728_v16  ;;  %vm3820_vm2 = vmor %vm3818_vm0, %vm3819_vm1  ;;  %v3825_v44 = vor.u32 1.1754944e-38, %v3824_v14  ;;  %v3837_v14 = vand.u32 2147483647, %v3728_v16 }
 0x888   :  { %v3982_v40 = vmul.f32 %v3811_v54, %v8933_v28  ;;  %v3815_v17 = vsub.f32 1.0, %v3814_v46  ;;  %v9050_v28 = vld [vmem:[%s10603_s0 + $0x20] sm:$0xff]  ;;  %v3839_v54 = vand.u32 2147483648, %v3728_v16  ;;  %vm3833_vm5 = vweird.f32 %v3728_v16 }
 0x889   :  { %vm3838_vm4 = vcmp.eq.f32.partialorder %v3837_v14, 8.507059e+37 }
 0x88a   :  { %v9045_v47 = vadd.f32 %v3982_v40, %v8826_v26  ;;  %v3816_v4 = vmul.f32 %v5578_v2, %v3815_v17 }
 0x88b   :  { %v3659_v21 = vpop.xlane.xlu1 %3658 }
 0x88c   :  { %10932 = vst [vmem:[#allocation34_spill] sm:$0xff] %v9045_v47  ;;  %v5580_v15 = vpop.eup %5579  ;;  %v3817_v53 = vadd.f32 %v5578_v2, %v3816_v4  ;;  %v5064_v24 = vmul.f32 -1.442695, %v3659_v21 }
 0x88d   :  { %v5582_v19 = vpop.eup %5581  ;;  %v3729_v13 = vadd.f32 1.0, %v5580_v15  ;;  %4038 = vmatmul.f32.gmra.mxu0 %v9050_v28 }
 0x88e   :  { %v3821_v26 = vsel %vm3820_vm2, %v5578_v2, %v3817_v53  ;;  %v3829_v45 = vmul.f32 %v5582_v19, %v3728_v16  ;;  %5583 = vpow2.f32 %v5064_v24  ;;  %vm3834_vm7 = vweird.f32 %v5582_v19 }
 0x88f   :  { %v3826_v61 = vsel %vm3823_vm3, %v3825_v44, %v3821_v26  ;;  %5585 = vrcp.f32 %v3729_v13  ;;  %vm3835_vm14 = vmor %vm3833_vm5, %vm3834_vm7  ;;  %v3840_v53 = vor.u32 1.1754944e-38, %v3839_v54  ;;  %v3852_v54 = vand.u32 2147483647, %v3729_v13 }
 0x890   :  { %v3983_v32 = vmul.f32 %v3826_v61, %v8937_v8  ;;  %v3830_v46 = vsub.f32 1.0, %v3829_v45  ;;  %v9060_v8 = vld [vmem:[%s10603_s0 + $0x28] sm:$0xff]  ;;  %v3854_v61 = vand.u32 2147483648, %v3729_v13  ;;  %vm3848_vm8 = vweird.f32 %v3729_v13 }
 0x891   :  { %vm3853_vm10 = vcmp.eq.f32.partialorder %v3852_v54, 8.507059e+37 }
 0x892   :  { %v9055_v40 = vadd.f32 %v3983_v32, %v8831_v29  ;;  %v3831_v17 = vmul.f32 %v5582_v19, %v3830_v46 }
 0x893   :  { %v3661_v4 = vpop.xlane.xlu2 %3660 }
 0x894   :  { %10933 = vst [vmem:[#allocation14_spill] sm:$0xff] %v9055_v40  ;;  %v5584_v21 = vpop.eup %5583  ;;  %v3832_v15 = vadd.f32 %v5582_v19, %v3831_v17  ;;  %v5065_v2 = vmul.f32 -1.442695, %v3661_v4 }
 0x895   :  { %v5586_v20 = vpop.eup %5585  ;;  %v3730_v24 = vadd.f32 1.0, %v5584_v21  ;;  %4041 = vmatmul.f32.gmra.mxu0 %v9060_v8 }
 0x896   :  { %v3836_v29 = vsel %vm3835_vm14, %v5582_v19, %v3832_v15  ;;  %v3844_v44 = vmul.f32 %v5586_v20, %v3729_v13  ;;  %5587 = vpow2.f32 %v5065_v2  ;;  %vm3849_vm6 = vweird.f32 %v5586_v20 }
 0x897   :  { %v3841_v26 = vsel %vm3838_vm4, %v3840_v53, %v3836_v29  ;;  %5589 = vrcp.f32 %v3730_v24  ;;  %vm3850_vm9 = vmor %vm3848_vm8, %vm3849_vm6  ;;  %v3855_v15 = vor.u32 1.1754944e-38, %v3854_v61  ;;  %v3867_v61 = vand.u32 2147483647, %v3730_v24 }
 0x898   :  { %v3984_v16 = vmul.f32 %v3841_v26, %v8941_v42  ;;  %v3845_v45 = vsub.f32 1.0, %v3844_v44  ;;  %v9070_v42 = vld [vmem:[%s10603_s0 + $0x30] sm:$0xff]  ;;  %v3869_v26 = vand.u32 2147483648, %v3730_v24  ;;  %vm3863_vm12 = vweird.f32 %v3730_v24 }
 0x899   :  { %vm3868_vm15 = vcmp.eq.f32.partialorder %v3867_v61, 8.507059e+37 }
 0x89a   :  { %v9065_v32 = vadd.f32 %v3984_v16, %v8836_v35  ;;  %v3846_v46 = vmul.f32 %v5586_v20, %v3845_v45 }
 0x89b   :  { %v3663_v17 = vpop.xlane.xlu0 %3662 }
 0x89c   :  { %10934 = vst [vmem:[#allocation3_spill] sm:$0xff] %v9065_v32  ;;  %v5588_v4 = vpop.eup %5587  ;;  %v3847_v21 = vadd.f32 %v5586_v20, %v3846_v46  ;;  %v5066_v19 = vmul.f32 -1.442695, %v3663_v17 }
 0x89d   :  { %v5590_v14 = vpop.eup %5589  ;;  %v3731_v2 = vadd.f32 1.0, %v5588_v4  ;;  %4044 = vmatmul.f32.gmra.mxu0 %v9070_v42 }
 0x89e   :  { %v3851_v35 = vsel %vm3850_vm9, %v5586_v20, %v3847_v21  ;;  %v3859_v53 = vmul.f32 %v5590_v14, %v3730_v24  ;;  %5591 = vpow2.f32 %v5066_v19  ;;  %vm3864_vm11 = vweird.f32 %v5590_v14 }
 0x89f   :  { %v3856_v29 = vsel %vm3853_vm10, %v3855_v15, %v3851_v35  ;;  %5593 = vrcp.f32 %v3731_v2  ;;  %vm3865_vm13 = vmor %vm3863_vm12, %vm3864_vm11  ;;  %v3870_v21 = vor.u32 1.1754944e-38, %v3869_v26  ;;  %v3882_v26 = vand.u32 2147483647, %v3731_v2 }
 0x8a0   :  { %v3985_v13 = vmul.f32 %v3856_v29, %v8945_v36  ;;  %v3860_v44 = vsub.f32 1.0, %v3859_v53  ;;  %v9080_v36 = vld [vmem:[%s10603_s0 + $0x38] sm:$0xff]  ;;  %v3884_v29 = vand.u32 2147483648, %v3731_v2  ;;  %vm3878_vm0 = vweird.f32 %v3731_v2 }
 0x8a1   :  { %vm3883_vm3 = vcmp.eq.f32.partialorder %v3882_v26, 8.507059e+37 }
 0x8a2   :  { %v9075_v16 = vadd.f32 %v3985_v13, %v8841_v18  ;;  %v3861_v45 = vmul.f32 %v5590_v14, %v3860_v44 }
 0x8a3   :  { %v3665_v46 = vpop.xlane.xlu1 %3664 }
 0x8a4   :  { %v5592_v17 = vpop.eup %5591  ;;  %v3862_v4 = vadd.f32 %v5590_v14, %v3861_v45  ;;  %v5067_v20 = vmul.f32 -1.442695, %v3665_v46 }
 0x8a5   :  { %v5594_v54 = vpop.eup %5593  ;;  %v3732_v19 = vadd.f32 1.0, %v5592_v17  ;;  %4047 = vmatmul.f32.gmra.mxu0 %v9080_v36 }
 0x8a6   :  { %v3866_v18 = vsel %vm3865_vm13, %v5590_v14, %v3862_v4  ;;  %v3874_v15 = vmul.f32 %v5594_v54, %v3731_v2  ;;  %5595 = vpow2.f32 %v5067_v20  ;;  %vm3879_vm1 = vweird.f32 %v5594_v54 }
 0x8a7   :  { %v3871_v35 = vsel %vm3868_vm15, %v3870_v21, %v3866_v18  ;;  %5597 = vrcp.f32 %v3732_v19  ;;  %vm3880_vm2 = vmor %vm3878_vm0, %vm3879_vm1  ;;  %v3885_v4 = vor.u32 1.1754944e-38, %v3884_v29  ;;  %vm3893_vm5 = vweird.f32 %v3732_v19 }
 0x8a8   :  { %v3986_v24 = vmul.f32 %v3871_v35, %v8949_v39  ;;  %v3875_v53 = vsub.f32 1.0, %v3874_v15  ;;  %v3899_v35 = vand.u32 2147483648, %v3732_v19 }
 0x8aa   :  { %v9085_v13 = vadd.f32 %v3986_v24, %v8846_v38  ;;  %v3876_v44 = vmul.f32 %v5594_v54, %v3875_v53  ;;  %v3897_v53 = vand.u32 2147483647, %v3732_v19 }
 0x8ab   :  { %v3667_v45 = vpop.xlane.xlu2 %3666 }
 0x8ac   :  { %v5596_v46 = vpop.eup %5595  ;;  %v3877_v17 = vadd.f32 %v5594_v54, %v3876_v44  ;;  %v5068_v14 = vmul.f32 -1.442695, %v3667_v45  ;;  %vm3898_vm4 = vcmp.eq.f32.partialorder %v3897_v53, 8.507059e+37 }
 0x8ad   :  { %v5598_v61 = vpop.eup %5597  ;;  %v3733_v20 = vadd.f32 1.0, %v5596_v46  ;;  %4050 = vmatmul.f32.gmra.mxu0 %v8851_v41 }
 0x8ae   :  { %v3881_v39 = vsel %vm3880_vm2, %v5594_v54, %v3877_v17  ;;  %v3889_v21 = vmul.f32 %v5598_v61, %v3732_v19  ;;  %5599 = vpow2.f32 %v5068_v14  ;;  %vm3894_vm7 = vweird.f32 %v5598_v61 }
 0x8af   :  { %v3886_v38 = vsel %vm3883_vm3, %v3885_v4, %v3881_v39  ;;  %5601 = vrcp.f32 %v3733_v20  ;;  %vm3895_vm14 = vmor %vm3893_vm5, %vm3894_vm7  ;;  %v3900_v54 = vor.u32 1.1754944e-38, %v3899_v35  ;;  %v3914_v14 = vand.u32 2147483648, %v3733_v20 }
 0x8b0   :  { %v3987_v18 = vmul.f32 %v3886_v38, %v8953_v25  ;;  %v3890_v15 = vsub.f32 1.0, %v3889_v21  ;;  %v3912_v19 = vand.u32 2147483647, %v3733_v20  ;;  %vm3908_vm8 = vweird.f32 %v3733_v20 }
 0x8b2   :  { %v9090_v24 = vadd.f32 %v3987_v18, %v8856_v1  ;;  %v3891_v2 = vmul.f32 %v5598_v61, %v3890_v15  ;;  %vm3913_vm10 = vcmp.eq.f32.partialorder %v3912_v19, 8.507059e+37 }
 0x8b4   :  { %v5600_v29 = vpop.eup %5599  ;;  %v3892_v44 = vadd.f32 %v5598_v61, %v3891_v2 }
 0x8b5   :  { %v5602_v41 = vpop.eup %5601  ;;  %v3734_v26 = vadd.f32 1.0, %v5600_v29  ;;  %4053 = vmatmul.f32.gmra.mxu0 %v8861_v43  ;;  %v3915_v43 = vor.u32 1.1754944e-38, %v3914_v14 }
 0x8b6   :  { %v3896_v45 = vsel %vm3895_vm14, %v5598_v61, %v3892_v44  ;;  %v3904_v25 = vmul.f32 %v5602_v41, %v3733_v20  ;;  %vm3909_vm6 = vweird.f32 %v5602_v41 }
 0x8b7   :  { %v3901_v46 = vsel %vm3898_vm4, %v3900_v54, %v3896_v45  ;;  %5603 = vrcp.f32 %v3734_v26  ;;  %vm3910_vm9 = vmor %vm3908_vm8, %vm3909_vm6  ;;  %v3929_v2 = vand.u32 2147483648, %v3734_v26  ;;  %v3927_v29 = vand.u32 2147483647, %v3734_v26 }
 0x8b8   :  { %v3988_v1 = vmul.f32 %v3901_v46, %v8957_v3  ;;  %v3905_v17 = vsub.f32 1.0, %v3904_v25  ;;  %vm3923_vm12 = vweird.f32 %v3734_v26 }
 0x8b9   :  { %v3930_v44 = vor.u32 1.1754944e-38, %v3929_v2  ;;  %vm3928_vm15 = vcmp.eq.f32.partialorder %v3927_v29, 8.507059e+37 }
 0x8ba   :  { %v9095_v4 = vadd.f32 %v3988_v1, %v8866_v0  ;;  %v3906_v39 = vmul.f32 %v5602_v41, %v3905_v17 }
 0x8bc   :  { %v3907_v21 = vadd.f32 %v5602_v41, %v3906_v39 }
 0x8bd   :  { %v5604_v38 = vpop.eup %5603  ;;  %4056 = vmatmul.f32.gmra.mxu0 %v8871_v10 }
 0x8be   :  { %v3911_v61 = vsel %vm3910_vm9, %v5602_v41, %v3907_v21  ;;  %v3919_v18 = vmul.f32 %v5604_v38, %v3734_v26  ;;  %vm3924_vm11 = vweird.f32 %v5604_v38 }
 0x8bf   :  { %v3916_v15 = vsel %vm3913_vm10, %v3915_v43, %v3911_v61  ;;  %vm3925_vm13 = vmor %vm3923_vm12, %vm3924_vm11 }
 0x8c0   :  { %v3989_v3 = vmul.f32 %v3916_v15, %v8961_v37  ;;  %v3920_v35 = vsub.f32 1.0, %v3919_v18 }
 0x8c2   :  { %v9100_v0 = vadd.f32 %v3989_v3, %v8876_v56  ;;  %v3921_v53 = vmul.f32 %v5604_v38, %v3920_v35 }
 0x8c4   :  { %v3922_v20 = vadd.f32 %v5604_v38, %v3921_v53 }
 0x8c5   :  { %4059 = vmatmul.f32.gmra.mxu0 %v8881_v5 }
 0x8c6   :  { %v3926_v10 = vsel %vm3925_vm13, %v5604_v38, %v3922_v20 }
 0x8c7   :  { %v3931_v41 = vsel %vm3928_vm15, %v3930_v44, %v3926_v10 }
 0x8c8   :  { %v3990_v54 = vmul.f32 %v3931_v41, %v8965_v33 }
 0x8ca   :  { %v9105_v37 = vadd.f32 %v3990_v54, %v8886_v30  ;;  %v9194_v54 = vpop.xlane.xlu0 %3668 }
 0x8cb   :  { %10942 = vst [vmem:[#allocation18_spill] sm:$0xff] %v9194_v54 }
 0x8cd   :  { %4062 = vmatmul.f32.gmra.mxu0 %v8891_v55 }
 0x8d5   :  { %4065 = vmatmul.f32.gmra.mxu0 %v8897_v7 }
 0x8dd   :  { %4068 = vmatmul.f32.gmra.mxu0 %v8903_v11 }
 0x8e5   :  { %4071 = vmatmul.f32.gmra.mxu0 %v8909_v62 }
 0x8ea   :  { %v9111_v56 = vpop.f32.mrf.mxu0 }
 0x8eb   :  { %v4075_v5 = vmul.f32 %v8917_v63, %v9111_v56 }
 0x8ed   :  { %4091 = vadd.xlane.f32.xlu0 %v4075_v5  ;;  %v9196_v5 = vpop.xlane.xlu2 %3672 }
 0x8ee   :  { %10943 = vst [vmem:[#allocation26_spill] sm:$0xff] %v9196_v5 }
 0x8f2   :  { %v9115_v26 = vpop.f32.mrf.mxu0 }
 0x8f3   :  { %v4076_v30 = vmul.f32 %v8917_v63, %v9115_v26 }
 0x8f5   :  { %4093 = vadd.xlane.f32.xlu1 %v4076_v30 }
 0x8fa   :  { %v9119_v33 = vpop.f32.mrf.mxu0 }
 0x8fb   :  { %v4077_v55 = vmul.f32 %v8917_v63, %v9119_v33 }
 0x8fd   :  { %4095 = vadd.xlane.f32.xlu2 %v4077_v55 }
 0x902   :  { %v9123_v7 = vpop.f32.mrf.mxu0 }
 0x903   :  { %v4078_v11 = vmul.f32 %v8917_v63, %v9123_v7 }
 0x905   :  { %4097 = vadd.xlane.f32.xlu0 %v4078_v11 }
 0x90a   :  { %v9127_v62 = vpop.f32.mrf.mxu0 }
 0x90b   :  { %10935 = vst [vmem:[#allocation16_spill] sm:$0xff] %v9127_v62  ;;  %v4079_v45 = vmul.f32 %v8917_v63, %v9127_v62 }
 0x90d   :  { %4099 = vadd.xlane.f32.xlu1 %v4079_v45 }
 0x912   :  { %v9131_v25 = vpop.f32.mrf.mxu0 }
 0x913   :  { %10936 = vst [vmem:[#allocation45_spill] sm:$0xff] %v9131_v25  ;;  %v4080_v46 = vmul.f32 %v8917_v63, %v9131_v25 }
 0x915   :  { %4101 = vadd.xlane.f32.xlu2 %v4080_v46 }
 0x91a   :  { %v9135_v1 = vpop.f32.mrf.mxu0 }
 0x91b   :  { %10937 = vst [vmem:[#allocation38_spill] sm:$0xff] %v9135_v1  ;;  %v4081_v17 = vmul.f32 %v8917_v63, %v9135_v1 }
 0x91d   :  { %4103 = vadd.xlane.f32.xlu0 %v4081_v17 }
 0x922   :  { %v9139_v14 = vpop.f32.mrf.mxu0 }
 0x923   :  { %v4082_v39 = vmul.f32 %v8917_v63, %v9139_v14 }
 0x925   :  { %4105 = vadd.xlane.f32.xlu1 %v4082_v39 }
 0x92a   :  { %v9143_v19 = vpop.f32.mrf.mxu0 }
 0x92b   :  { %v4083_v21 = vmul.f32 %v8917_v63, %v9143_v19 }
 0x92d   :  { %4107 = vadd.xlane.f32.xlu2 %v4083_v21 }
 0x932   :  { %v9147_v38 = vpop.f32.mrf.mxu0 }
 0x933   :  { %v4084_v43 = vmul.f32 %v8917_v63, %v9147_v38 }
 0x935   :  { %4109 = vadd.xlane.f32.xlu0 %v4084_v43 }
 0x93a   :  { %v9151_v61 = vpop.f32.mrf.mxu0 }
 0x93b   :  { %v4085_v18 = vmul.f32 %v8917_v63, %v9151_v61 }
 0x93d   :  { %4111 = vadd.xlane.f32.xlu1 %v4085_v18 }
 0x942   :  { %v9155_v15 = vpop.f32.mrf.mxu0 }
 0x943   :  { %v4086_v3 = vmul.f32 %v8917_v63, %v9155_v15 }
 0x945   :  { %4113 = vadd.xlane.f32.xlu2 %v4086_v3 }
 0x94a   :  { %v9159_v35 = vpop.f32.mrf.mxu0 }
 0x94b   :  { %v4087_v2 = vmul.f32 %v8917_v63, %v9159_v35 }
 0x94d   :  { %4115 = vadd.xlane.f32.xlu0 %v4087_v2 }
 0x952   :  { %v9163_v53 = vpop.f32.mrf.mxu0 }
 0x953   :  { %10938 = vst [vmem:[#allocation44_spill] sm:$0xff] %v9163_v53  ;;  %v4088_v29 = vmul.f32 %v8917_v63, %v9163_v53 }
 0x955   :  { %4117 = vadd.xlane.f32.xlu1 %v4088_v29 }
 0x95a   :  { %v9167_v20 = vpop.f32.mrf.mxu0 }
 0x95b   :  { %10939 = vst [vmem:[#allocation46_spill] sm:$0xff] %v9167_v20  ;;  %v4089_v44 = vmul.f32 %v8917_v63, %v9167_v20 }
 0x95d   :  { %4119 = vadd.xlane.f32.xlu2 %v4089_v44 }
 0x960   :  { %v9201_v55 = vpop.xlane.xlu0 %4091 }
 0x962   :  { %v9171_v10 = vpop.f32.mrf.mxu0 }
 0x963   :  { %10940 = vst [vmem:[#allocation49_spill] sm:$0xff] %v9171_v10  ;;  %v4090_v41 = vmul.f32 %v8917_v63, %v9171_v10  ;;  %4459 = vmatpush.msra.mxu1 %v9171_v10  ;;  %v9190_v63 = vpop.xlane.xlu1 %3670 }
 0x964   :  { %10941 = vst [vmem:[#allocation4_spill] sm:$0xff] %v9190_v63 }
 0x965   :  { %4460 = vmatpush.msra.mxu1 %v9167_v20  ;;  %4121 = vadd.xlane.f32.xlu0 %v4090_v41 }
 0x967   :  { %4461 = vmatpush.msra.mxu1 %v9163_v53 }
 0x969   :  { %4462 = vmatpush.msra.mxu1 %v9159_v35 }
 0x96b   :  { %4463 = vmatpush.msra.mxu1 %v9155_v15  ;;  %v9198_v30 = vpop.xlane.xlu1 %4093 }
 0x96d   :  { %4464 = vmatpush.msra.mxu1 %v9151_v61 }
 0x96f   :  { %4465 = vmatpush.msra.mxu1 %v9147_v38 }
 0x970   :  { %v9203_v11 = vpop.xlane.xlu2 %4095 }
 0x971   :  { %4466 = vmatpush.msra.mxu1 %v9143_v19 }
 0x973   :  { %4467 = vmatpush.msra.mxu1 %v9139_v14 }
 0x975   :  { %4468 = vmatpush.msra.mxu1 %v9135_v1 }
 0x977   :  { %4469 = vmatpush.msra.mxu1 %v9131_v25 }
 0x978   :  { %v9208_v46 = vpop.xlane.xlu0 %4097 }
 0x979   :  { %4470 = vmatpush.msra.mxu1 %v9127_v62 }
 0x97b   :  { %4471 = vmatpush.msra.mxu1 %v9123_v7 }
 0x97d   :  { %4472 = vmatpush.msra.mxu1 %v9119_v33 }
 0x97f   :  { %4473 = vmatpush.msra.mxu1 %v9115_v26 }
 0x980   :  { %v9205_v45 = vpop.xlane.xlu1 %4099 }
 0x981   :  { %4474 = vmatpush.msra.mxu1 %v9111_v56 }
 0x982   :  { %4475 = vmatmul.f32.vlgmr.msra.gmra.mxu1 %v9010_v31 }
 0x988   :  { %v9210_v17 = vpop.xlane.xlu2 %4101 }
 0x98a   :  { %4478 = vmatmul.f32.gmra.mxu1 %v9020_v59 }
 0x990   :  { %v9213_v21 = vpop.xlane.xlu0 %4103 }
 0x992   :  { %4481 = vmatmul.f32.gmra.mxu1 %v9030_v6 }
 0x998   :  { %v4106_v31 = vpop.xlane.xlu1 %4105 }
 0x999   :  { %v5079_v39 = vmul.f32 -1.442695, %v4106_v31 }
 0x99a   :  { %4484 = vmatmul.f32.gmra.mxu1 %v9040_v27 }
 0x99b   :  { %5605 = vpow2.f32 %v5079_v39 }
 0x9a0   :  { %v4108_v59 = vpop.xlane.xlu2 %4107 }
 0x9a1   :  { %v5606_v43 = vpop.eup %5605  ;;  %v5080_v18 = vmul.f32 -1.442695, %v4108_v59 }
 0x9a2   :  { %v4178_v3 = vadd.f32 1.0, %v5606_v43  ;;  %4487 = vmatmul.f32.gmra.mxu1 %v9050_v28 }
 0x9a3   :  { %5607 = vpow2.f32 %v5080_v18 }
 0x9a4   :  { %5609 = vrcp.f32 %v4178_v3  ;;  %v4303_v39 = vand.u32 2147483648, %v4178_v3  ;;  %v4301_v59 = vand.u32 2147483647, %v4178_v3  ;;  %vm4297_vm0 = vweird.f32 %v4178_v3 }
 0x9a6   :  { %vm4302_vm3 = vcmp.eq.f32.partialorder %v4301_v59, 8.507059e+37 }
 0x9a8   :  { %v4110_v6 = vpop.xlane.xlu0 %4109 }
 0x9a9   :  { %v5608_v2 = vpop.eup %5607  ;;  %v5081_v29 = vmul.f32 -1.442695, %v4110_v6  ;;  %v4304_v6 = vor.u32 1.1754944e-38, %v4303_v39 }
 0x9aa   :  { %v5610_v44 = vpop.eup %5609  ;;  %v4179_v41 = vadd.f32 1.0, %v5608_v2  ;;  %4490 = vmatmul.f32.gmra.mxu1 %v9060_v8 }
 0x9ab   :  { %v4293_v31 = vmul.f32 %v5610_v44, %v4178_v3  ;;  %5611 = vpow2.f32 %v5081_v29  ;;  %vm4298_vm1 = vweird.f32 %v5610_v44 }
 0x9ac   :  { %5613 = vrcp.f32 %v4179_v41  ;;  %vm4299_vm2 = vmor %vm4297_vm0, %vm4298_vm1  ;;  %v4318_v32 = vand.u32 2147483648, %v4179_v41  ;;  %vm4312_vm5 = vweird.f32 %v4179_v41 }
 0x9ad   :  { %v4294_v27 = vsub.f32 1.0, %v4293_v31 }
 0x9ae   :  { %v4319_v59 = vor.u32 1.1754944e-38, %v4318_v32 }
 0x9af   :  { %v4295_v10 = vmul.f32 %v5610_v44, %v4294_v27 }
 0x9b0   :  { %v4112_v43 = vpop.xlane.xlu1 %4111 }
 0x9b1   :  { %v5612_v20 = vpop.eup %5611  ;;  %v4296_v28 = vadd.f32 %v5610_v44, %v4295_v10  ;;  %v5082_v18 = vmul.f32 -1.442695, %v4112_v43  ;;  %v4316_v43 = vand.u32 2147483647, %v4179_v41 }
 0x9b2   :  { %v5614_v53 = vpop.eup %5613  ;;  %v4180_v5 = vadd.f32 1.0, %v5612_v20  ;;  %4493 = vmatmul.f32.gmra.mxu1 %v9070_v42 }
 0x9b3   :  { %v4300_v8 = vsel %vm4299_vm2, %v5610_v44, %v4296_v28  ;;  %v4308_v2 = vmul.f32 %v5614_v53, %v4179_v41  ;;  %5615 = vpow2.f32 %v5082_v18  ;;  %vm4313_vm7 = vweird.f32 %v5614_v53 }
 0x9b4   :  { %v4305_v29 = vsel %vm4302_vm3, %v4304_v6, %v4300_v8  ;;  %5617 = vrcp.f32 %v4180_v5  ;;  %vm4314_vm14 = vmor %vm4312_vm5, %vm4313_vm7  ;;  %vm4317_vm4 = vcmp.eq.f32.partialorder %v4316_v43, 8.507059e+37  ;;  %vm4327_vm8 = vweird.f32 %v4180_v5 }
 0x9b5   :  { %v4434_v31 = vmul.f32 %v4305_v29, %v9139_v14  ;;  %v4309_v27 = vsub.f32 1.0, %v4308_v2  ;;  %v4333_v2 = vand.u32 2147483648, %v4180_v5 }
 0x9b7   :  { %v9220_v10 = vadd.f32 %v4434_v31, %v9075_v16  ;;  %v4310_v3 = vmul.f32 %v5614_v53, %v4309_v27  ;;  %v4331_v31 = vand.u32 2147483647, %v4180_v5 }
 0x9b8   :  { %v4114_v39 = vpop.xlane.xlu2 %4113 }
 0x9b9   :  { %10944 = vst [vmem:[#allocation42_spill] sm:$0xff] %v9220_v10  ;;  %v5616_v20 = vpop.eup %5615  ;;  %v4311_v1 = vadd.f32 %v5614_v53, %v4310_v3  ;;  %v5083_v42 = vmul.f32 -1.442695, %v4114_v39  ;;  %vm4332_vm10 = vcmp.eq.f32.partialorder %v4331_v31, 8.507059e+37  ;;  %v5909_v31 = vld [vmem:[%s10603_s0 + $0x48] sm:$0xff] }
 0x9ba   :  { %v5618_v44 = vpop.eup %5617  ;;  %v4181_v28 = vadd.f32 1.0, %v5616_v20  ;;  %4496 = vmatmul.f32.gmra.mxu1 %v9080_v36 }
 0x9bb   :  { %v4315_v14 = vsel %vm4314_vm14, %v5614_v53, %v4311_v1  ;;  %v4323_v18 = vmul.f32 %v5618_v44, %v4180_v5  ;;  %5619 = vpow2.f32 %v5083_v42  ;;  %vm4328_vm6 = vweird.f32 %v5618_v44 }
 0x9bc   :  { %v4320_v16 = vsel %vm4317_vm4, %v4319_v59, %v4315_v14  ;;  %5621 = vrcp.f32 %v4181_v28  ;;  %vm4329_vm9 = vmor %vm4327_vm8, %vm4328_vm6  ;;  %v4334_v53 = vor.u32 1.1754944e-38, %v4333_v2  ;;  %v4348_v5 = vand.u32 2147483648, %v4181_v28 }
 0x9bd   :  { %v4435_v6 = vmul.f32 %v4320_v16, %v9143_v19  ;;  %v4324_v8 = vsub.f32 1.0, %v4323_v18  ;;  %v5908_v19 = vld [vmem:[%s10603_s0 + $0x40] sm:$0xff]  ;;  %v4346_v16 = vand.u32 2147483647, %v4181_v28  ;;  %vm4342_vm12 = vweird.f32 %v4181_v28 }
 0x9bf   :  { %v9225_v29 = vadd.f32 %v4435_v6, %v9085_v13  ;;  %v4325_v41 = vmul.f32 %v5618_v44, %v4324_v8  ;;  %vm4347_vm15 = vcmp.eq.f32.partialorder %v4346_v16, 8.507059e+37 }
 0x9c0   :  { %v4116_v32 = vpop.xlane.xlu0 %4115 }
 0x9c1   :  { %10945 = vst [vmem:[#allocation53_spill] sm:$0xff] %v9225_v29  ;;  %v5620_v27 = vpop.eup %5619  ;;  %v4326_v3 = vadd.f32 %v5618_v44, %v4325_v41  ;;  %v5084_v36 = vmul.f32 -1.442695, %v4116_v32 }
 0x9c2   :  { %v5622_v1 = vpop.eup %5621  ;;  %v4182_v43 = vadd.f32 1.0, %v5620_v27  ;;  %4499 = vmatmul.f32.gmra.mxu1 %v5908_v19 }
 0x9c3   :  { %v4330_v39 = vsel %vm4329_vm9, %v5618_v44, %v4326_v3  ;;  %v4338_v13 = vmul.f32 %v5622_v1, %v4181_v28  ;;  %5623 = vpow2.f32 %v5084_v36  ;;  %vm4343_vm11 = vweird.f32 %v5622_v1 }
 0x9c4   :  { %v4335_v20 = vsel %vm4332_vm10, %v4334_v53, %v4330_v39  ;;  %5625 = vrcp.f32 %v4182_v43  ;;  %vm4344_vm13 = vmor %vm4342_vm12, %vm4343_vm11  ;;  %v4349_v44 = vor.u32 1.1754944e-38, %v4348_v5  ;;  %v4363_v36 = vand.u32 2147483648, %v4182_v43 }
 0x9c5   :  { %v4436_v42 = vmul.f32 %v4335_v20, %v9147_v38  ;;  %v4339_v59 = vsub.f32 1.0, %v4338_v13  ;;  %v4361_v19 = vand.u32 2147483647, %v4182_v43  ;;  %vm4357_vm0 = vweird.f32 %v4182_v43 }
 0x9c6   :  { %v4364_v20 = vor.u32 1.1754944e-38, %v4363_v36 }
 0x9c7   :  { %v9232_v14 = vadd.f32 %v4436_v42, %v9090_v24  ;;  %v4340_v18 = vmul.f32 %v5622_v1, %v4339_v59  ;;  %vm4362_vm3 = vcmp.eq.f32.partialorder %v4361_v19, 8.507059e+37  ;;  %v9274_v19 = vld [vmem:[%s10602_s2] ss:$0 sm:$0xff] }
 0x9c9   :  { %10946 = vst [vmem:[#allocation8_spill] sm:$0xff] %v9232_v14  ;;  %v5624_v6 = vpop.eup %5623  ;;  %v4341_v8 = vadd.f32 %v5622_v1, %v4340_v18 }
 0x9ca   :  { %v5626_v2 = vpop.eup %5625  ;;  %v4183_v41 = vadd.f32 1.0, %v5624_v6  ;;  %4502 = vmatmul.f32.gmra.mxu1 %v5909_v31 }
 0x9cb   :  { %v4345_v38 = vsel %vm4344_vm13, %v5622_v1, %v4341_v8  ;;  %v4353_v32 = vmul.f32 %v5626_v2, %v4182_v43  ;;  %vm4358_vm1 = vweird.f32 %v5626_v2  ;;  %v5910_v1 = vld [vmem:[%s10603_s0 + $0x50] sm:$0xff] }
 0x9cc   :  { %v4350_v24 = vsel %vm4347_vm15, %v4349_v44, %v4345_v38  ;;  %5627 = vrcp.f32 %v4183_v41  ;;  %vm4359_vm2 = vmor %vm4357_vm0, %vm4358_vm1  ;;  %v4378_v18 = vand.u32 2147483648, %v4183_v41  ;;  %v4376_v6 = vand.u32 2147483647, %v4183_v41 }
 0x9cd   :  { %v4437_v27 = vmul.f32 %v4350_v24, %v9151_v61  ;;  %v4354_v3 = vsub.f32 1.0, %v4353_v32  ;;  %vm4372_vm5 = vweird.f32 %v4183_v41  ;;  %v5912_v32 = vld [vmem:[%s10603_s0 + $0x60] sm:$0xff]  ;;  %v5914_v24 = vld [vmem:[%s10603_s0 + $0x70] sm:$0xff] }
 0x9ce   :  { %v4379_v44 = vor.u32 1.1754944e-38, %v4378_v18  ;;  %vm4377_vm4 = vcmp.eq.f32.partialorder %v4376_v6, 8.507059e+37  ;;  %v10954_v6 = vld [vmem:[#allocation41_spill] sm:$0xff] }
 0x9cf   :  { %v9239_v28 = vadd.f32 %v4437_v27, %v9095_v4  ;;  %v4355_v53 = vmul.f32 %v5626_v2, %v4354_v3  ;;  %v10951_v3 = vld [vmem:[#allocation31_spill] sm:$0xff] }
 0x9d0   :  { %v4943_v36 = vmul.f32 -1.442695, %v10951_v3 }
 0x9d1   :  { %10947 = vst [vmem:[#allocation23_spill] sm:$0xff] %v9239_v28  ;;  %v4356_v39 = vadd.f32 %v5626_v2, %v4355_v53 }
 0x9d2   :  { %v5628_v13 = vpop.eup %5627  ;;  %4505 = vmatmul.f32.gmra.mxu1 %v5910_v1 }
 0x9d3   :  { %v4360_v42 = vsel %vm4359_vm2, %v5626_v2, %v4356_v39  ;;  %v4368_v61 = vmul.f32 %v5628_v13, %v4183_v41  ;;  %vm4373_vm7 = vweird.f32 %v5628_v13  ;;  %v5911_v2 = vld [vmem:[%s10603_s0 + $0x58] sm:$0xff]  ;;  %v5913_v41 = vld [vmem:[%s10603_s0 + $0x68] sm:$0xff] }
 0x9d4   :  { %v4365_v59 = vsel %vm4362_vm3, %v4364_v20, %v4360_v42  ;;  %vm4374_vm14 = vmor %vm4372_vm5, %vm4373_vm7 }
 0x9d5   :  { %v4438_v4 = vmul.f32 %v4365_v59, %v9155_v15  ;;  %v4369_v5 = vsub.f32 1.0, %v4368_v61 }
 0x9d7   :  { %v9246_v16 = vadd.f32 %v4438_v4, %v9100_v0  ;;  %v4370_v43 = vmul.f32 %v5628_v13, %v4369_v5  ;;  %v10953_v5 = vld [vmem:[#allocation39_spill] sm:$0xff] }
 0x9d8   :  { %v4957_v18 = vmul.f32 -1.442695, %v10953_v5 }
 0x9d9   :  { %10948 = vst [vmem:[#allocation35_spill] sm:$0xff] %v9246_v16  ;;  %v4371_v8 = vadd.f32 %v5628_v13, %v4370_v43 }
 0x9da   :  { %4508 = vmatmul.f32.gmra.mxu1 %v5911_v2 }
 0x9db   :  { %v4375_v31 = vsel %vm4374_vm14, %v5628_v13, %v4371_v8  ;;  %v10952_v13 = vld [vmem:[#allocation33_spill] sm:$0xff]  ;;  %v4958_v8 = vmul.f32 -1.442695, %v10954_v6 }
 0x9dc   :  { %v4380_v15 = vsel %vm4377_vm4, %v4379_v44, %v4375_v31  ;;  %v4942_v20 = vmul.f32 -1.442695, %v10952_v13  ;;  %v10955_v44 = vld [vmem:[#allocation43_spill] sm:$0xff] }
 0x9dd   :  { %v4439_v38 = vmul.f32 %v4380_v15, %v9159_v35  ;;  %v10950_v35 = vld [vmem:[#allocation30_spill] sm:$0xff]  ;;  %v4959_v2 = vmul.f32 -1.442695, %v10955_v44 }
 0x9de   :  { %v4941_v27 = vmul.f32 -1.442695, %v10950_v35 }
 0x9df   :  { %v9253_v0 = vadd.f32 %v4439_v38, %v9105_v37  ;;  %v5915_v37 = vld [vmem:[%s10603_s0 + $0x78] sm:$0xff] }
 0x9e0   :  { %5629 = vpow2.f32 %v4941_v27 }
 0x9e1   :  { %10949 = vst [vmem:[#allocation58_spill] sm:$0xff] %v9253_v0  ;;  %5631 = vpow2.f32 %v4943_v36 }
 0x9e2   :  { %4511 = vmatmul.f32.gmra.mxu1 %v5912_v32  ;;  %5633 = vpow2.f32 %v4942_v20 }
 0x9e6   :  { %v5630_v1 = vpop.eup %5629 }
 0x9e7   :  { %v5632_v61 = vpop.eup %5631  ;;  %v9281_v59 = vadd.f32 1.0, %v5630_v1 }
 0x9e8   :  { %v9286_v43 = vadd.f32 1.0, %v5632_v61  ;;  %v5634_v31 = vpop.eup %5633 }
 0x9e9   :  { %5635 = vrcp.f32 %v9281_v59  ;;  %v9296_v32 = vadd.f32 1.0, %v5634_v31  ;;  %vm362_vm6 = vweird.f32 %v9281_v59 }
 0x9ea   :  { %4514 = vmatmul.f32.gmra.mxu1 %v5913_v41  ;;  %5637 = vpow2.f32 %v4957_v18  ;;  %vm392_vm10 = vweird.f32 %v9286_v43  ;;  %v396_v29 = vand.u32 2147483647, %v9286_v43 }
 0x9eb   :  { %5639 = vrcp.f32 %v9286_v43  ;;  %vm377_vm15 = vweird.f32 %v9296_v32  ;;  %v383_v25 = vand.u32 2147483648, %v9296_v32 }
 0x9ec   :  { %5641 = vpow2.f32 %v4958_v8  ;;  %vm397_vm0 = vcmp.eq.f32.partialorder %v396_v29, 8.507059e+37 }
 0x9ed   :  { %5643 = vpow2.f32 %v4959_v2  ;;  %v10957_v2 = vld [vmem:[#allocation55_spill] sm:$0xff] }
 0x9ee   :  { %5645 = vrcp.f32 %v9296_v32  ;;  %v4974_v31 = vmul.f32 -1.442695, %v10957_v2 }
 0x9ef   :  { %v9298_v41 = vpop.eup %5635 }
 0x9f0   :  { %v5638_v35 = vpop.eup %5637  ;;  %v358_v3 = vmul.f32 %v9298_v41, %v9281_v59  ;;  %vm363_vm8 = vweird.f32 %v9298_v41 }
 0x9f1   :  { %v9301_v27 = vpop.eup %5639  ;;  %v9306_v13 = vadd.f32 1.0, %v5638_v35  ;;  %vm9344_vm9 = vmor %vm362_vm6, %vm363_vm8 }
 0x9f2   :  { %4517 = vmatmul.f32.gmra.mxu1 %v5914_v24  ;;  %v10956_v24 = vld [vmem:[#allocation51_spill] sm:$0xff]  ;;  %v5642_v36 = vpop.eup %5641  ;;  %v359_v61 = vsub.f32 1.0, %v358_v3  ;;  %v388_v5 = vmul.f32 %v9301_v27, %v9286_v43  ;;  %vm393_vm11 = vweird.f32 %v9301_v27 }
 0x9f3   :  { %vm9367_vm13 = vmor %vm392_vm10, %vm393_vm11  ;;  %vm795_vm5 = vweird.f32 %v9306_v13 }
 0x9f4   :  { %v360_v44 = vmul.f32 %v9298_v41, %v359_v61  ;;  %v366_v61 = vand.u32 2147483647, %v9281_v59 }
 0x9f6   :  { %v361_v2 = vadd.f32 %v9298_v41, %v360_v44  ;;  %v10962_v44 = vld [vmem:[#allocation29_spill] sm:$0xff]  ;;  %vm9356_vm12 = vcmp.eq.f32.partialorder %v366_v61, 8.507059e+37  ;;  %v381_v61 = vand.u32 2147483647, %v9296_v32 }
 0x9f8   :  { %vm9407_vm3 = vcmp.eq.f32.partialorder %v381_v61, 8.507059e+37  ;;  %v799_v61 = vand.u32 2147483647, %v9306_v13 }
 0x9fa   :  { %4520 = vmatmul.f32.gmra.mxu1 %v5915_v37  ;;  %v4973_v37 = vmul.f32 -1.442695, %v10956_v24  ;;  %vm9438_vm14 = vcmp.eq.f32.partialorder %v799_v61, 8.507059e+37  ;;  %v10983_v61 = vld [vmem:[#allocation5_spill] sm:$0xff] }
 0x9fc   :  { %5647 = vpow2.f32 %v4973_v37  ;;  %v10958_v37 = vld [vmem:[#allocation57_spill] sm:$0xff] }
 0x9fd   :  { %5649 = vrcp.f32 %v9306_v13  ;;  %v4975_v35 = vmul.f32 -1.442695, %v10958_v37 }
 0x9ff   :  { %v9269_v53 = vpop.f32.mrf.mxu1 }
 0xa00   :  { %v4524_v39 = vmul.f32 %v9274_v19, %v9269_v53 }
 0xa02   :  { %4540 = vadd.xlane.f32.xlu1 %v4524_v39  ;;  %v5644_v39 = vpop.eup %5643 }
 0xa03   :  { %v9316_v18 = vadd.f32 1.0, %v5644_v39  ;;  %v9318_v6 = vpop.eup %5645 }
 0xa04   :  { %v5648_v8 = vpop.eup %5647  ;;  %v373_v24 = vmul.f32 %v9318_v6, %v9296_v32  ;;  %vm378_vm1 = vweird.f32 %v9318_v6  ;;  %v10972_v32 = vld [vmem:[#allocation27_spill] sm:$0xff] }
 0xa05   :  { %vm9396_vm2 = vmor %vm377_vm15, %vm378_vm1 }
 0xa06   :  { %v374_v0 = vsub.f32 1.0, %v373_v24 }
 0xa07   :  { %v9279_v42 = vpop.f32.mrf.mxu1 }
 0xa08   :  { %v4525_v4 = vmul.f32 %v9274_v19, %v9279_v42  ;;  %v375_v10 = vmul.f32 %v9318_v6, %v374_v0 }
 0xa0a   :  { %4542 = vadd.xlane.f32.xlu2 %v4525_v4  ;;  %v9312_v4 = vadd.f32 1.0, %v5642_v36  ;;  %v9332_v36 = vadd.f32 1.0, %v5648_v8 }
 0xa0c   :  { %5651 = vrcp.f32 %v9312_v4 }
 0xa0d   :  { %5653 = vrcp.f32 %v9316_v18 }
 0xa0e   :  { %5655 = vpow2.f32 %v4974_v31  ;;  %v4989_v31 = vmul.f32 -1.442695, %v10962_v44  ;;  %v384_v44 = vor.u32 1.1754944e-38, %v383_v25 }
 0xa0f   :  { %v9292_v15 = vpop.f32.mrf.mxu1  ;;  %5657 = vpow2.f32 %v4975_v35  ;;  %v398_v35 = vand.u32 2147483648, %v9286_v43 }
 0xa10   :  { %v4526_v38 = vmul.f32 %v9274_v19, %v9292_v15  ;;  %5659 = vrcp.f32 %v9332_v36 }
 0xa11   :  { %5661 = vpow2.f32 %v4989_v31  ;;  %v399_v40 = vor.u32 1.1754944e-38, %v398_v35 }
 0xa12   :  { %4544 = vadd.xlane.f32.xlu0 %v4526_v38  ;;  %v389_v38 = vsub.f32 1.0, %v388_v5  ;;  %v368_v5 = vand.u32 2147483648, %v9281_v59 }
 0xa14   :  { %v390_v37 = vmul.f32 %v9301_v27, %v389_v38  ;;  %v369_v24 = vor.u32 1.1754944e-38, %v368_v5 }
 0xa16   :  { %v391_v14 = vadd.f32 %v9301_v27, %v390_v37 }
 0xa17   :  { %v9308_v20 = vpop.f32.mrf.mxu1 }
 0xa18   :  { %v4527_v1 = vmul.f32 %v9274_v19, %v9308_v20  ;;  %v395_v62 = vsel %vm9367_vm13, %v9301_v27, %v391_v14  ;;  %v5917_v14 = vld [vmem:[%s10601_s1 + $0x68] sm:$0xff]  ;;  %v4991_v27 = vmul.f32 -1.442695, %v10972_v32 }
 0xa1a   :  { %4546 = vadd.xlane.f32.xlu1 %v4527_v1  ;;  %v9336_v1 = vpop.eup %5649 }
 0xa1b   :  { %v9342_v16 = vpop.eup %5651  ;;  %v791_v59 = vmul.f32 %v9336_v1, %v9306_v13  ;;  %vm796_vm7 = vweird.f32 %v9336_v1 }
 0xa1c   :  { %v9349_v28 = vpop.eup %5653  ;;  %v806_v5 = vmul.f32 %v9342_v16, %v9312_v4  ;;  %vm811_vm4 = vweird.f32 %v9342_v16  ;;  %vm9447_vm6 = vmor %vm795_vm5, %vm796_vm7 }
 0xa1d   :  { %v5656_v63 = vpop.eup %5655  ;;  %v792_v0 = vsub.f32 1.0, %v791_v59  ;;  %v376_v59 = vadd.f32 %v9318_v6, %v375_v10  ;;  %vm826_vm8 = vweird.f32 %v9349_v28 }
 0xa1e   :  { %v5658_v43 = vpop.eup %5657  ;;  %v9392_v31 = vadd.f32 1.0, %v5656_v63 }
 0xa1f   :  { %v9328_v3 = vpop.f32.mrf.mxu1  ;;  %v9386_v54 = vpop.eup %5659  ;;  %v9400_v35 = vadd.f32 1.0, %v5658_v43  ;;  %v793_v10 = vmul.f32 %v9336_v1, %v792_v0  ;;  %v380_v43 = vsel %vm9396_vm2, %v9318_v6, %v376_v59  ;;  %v814_v6 = vand.u32 2147483647, %v9312_v4 }
 0xa20   :  { %10959 = vst [vmem:[#allocation30_spill] sm:$0xff] %v9328_v3  ;;  %v4528_v39 = vmul.f32 %v9274_v19, %v9328_v3  ;;  %v10967_v3 = vld [vmem:[#allocation25_spill] sm:$0xff]  ;;  %vm1245_vm15 = vweird.f32 %v9386_v54 }
 0xa21   :  { %v4990_v47 = vmul.f32 -1.442695, %v10967_v3  ;;  %v794_v25 = vadd.f32 %v9336_v1, %v793_v10  ;;  %vm9460_vm10 = vcmp.eq.f32.partialorder %v814_v6, 8.507059e+37 }
 0xa22   :  { %4548 = vadd.xlane.f32.xlu2 %v4528_v39  ;;  %v365_v39 = vsel %vm9344_vm9, %v9298_v41, %v361_v2  ;;  %v821_v41 = vmul.f32 %v9349_v28, %v9316_v18  ;;  %vm810_vm9 = vweird.f32 %v9312_v4 }
 0xa23   :  { %v370_v8 = vsel %vm9356_vm12, %v369_v24, %v365_v39  ;;  %v807_v24 = vsub.f32 1.0, %v806_v5  ;;  %v9413_v39 = vsel %vm397_vm0, %v399_v40, %v395_v62  ;;  %v1240_v5 = vmul.f32 %v9386_v54, %v9332_v36  ;;  %vm9469_vm11 = vmor %vm810_vm9, %vm811_vm4 }
 0xa24   :  { %v822_v3 = vsub.f32 1.0, %v821_v41  ;;  %v9405_v29 = vmul.f32 %v5917_v14, %v370_v8  ;;  %5663 = vpow2.f32 %v4990_v47  ;;  %v5662_v41 = vpop.eup %5661  ;;  %v385_v8 = vsel %vm9407_vm3, %v384_v44, %v380_v43 }
 0xa25   :  { %5665 = vrcp.f32 %v9392_v31  ;;  %v808_v40 = vmul.f32 %v9342_v16, %v807_v24  ;;  %v1241_v59 = vsub.f32 1.0, %v1240_v5  ;;  %v9436_v38 = vadd.f32 1.0, %v5662_v41 }
 0xa26   :  { %v823_v62 = vmul.f32 %v9349_v28, %v822_v3  ;;  %5667 = vrcp.f32 %v9400_v35  ;;  %v816_v3 = vand.u32 2147483648, %v9312_v4  ;;  %v5005_v14 = vmul.f32 -1.442695, %v8381_v57 }
 0xa27   :  { %v9377_v2 = vpop.f32.mrf.mxu1  ;;  %5669 = vpow2.f32 %v4991_v27  ;;  %v809_v32 = vadd.f32 %v9342_v16, %v808_v40  ;;  %v798_v57 = vsel %vm9447_vm6, %v9336_v1, %v794_v25  ;;  %v5006_v41 = vmul.f32 -1.442695, %v8387_v52 }
 0xa28   :  { %v4529_v37 = vmul.f32 %v9274_v19, %v9377_v2  ;;  %v824_v27 = vadd.f32 %v9349_v28, %v823_v62  ;;  %vm825_vm12 = vweird.f32 %v9316_v18  ;;  %v1242_v1 = vmul.f32 %v9386_v54, %v1241_v59 }
 0xa29   :  { %5671 = vrcp.f32 %v9436_v38  ;;  %v5007_v4 = vmul.f32 -1.442695, %v8396_v50  ;;  %v817_v40 = vor.u32 1.1754944e-38, %v816_v3  ;;  %vm9477_vm13 = vmor %vm825_vm12, %vm826_vm8  ;;  %v831_v62 = vand.u32 2147483648, %v9316_v18 }
 0xa2a   :  { %4550 = vadd.xlane.f32.xlu0 %v4529_v37  ;;  %v801_v37 = vand.u32 2147483648, %v9306_v13  ;;  %v5664_v10 = vpop.eup %5663  ;;  %5673 = vpow2.f32 %v5005_v14  ;;  %v828_v50 = vsel %vm9477_vm13, %v9349_v28, %v824_v27  ;;  %v829_v59 = vand.u32 2147483647, %v9316_v18  ;;  %v5918_v27 = vld [vmem:[%s10601_s1 + $0x70] sm:$0xff] }
 0xa2b   :  { %v9454_v44 = vpop.eup %5665  ;;  %v9482_v25 = vadd.f32 1.0, %v5664_v10  ;;  %5675 = vpow2.f32 %v5006_v41  ;;  %v832_v18 = vor.u32 1.1754944e-38, %v831_v62  ;;  %vm1244_vm0 = vweird.f32 %v9332_v36  ;;  %v10986_v62 = vld [vmem:[#allocation7_spill] sm:$0xff] }
 0xa2c   :  { %v802_v13 = vor.u32 1.1754944e-38, %v801_v37  ;;  %v9465_v43 = vpop.eup %5667  ;;  %v1255_v10 = vmul.f32 %v9454_v44, %v9392_v31  ;;  %5677 = vpow2.f32 %v5007_v4  ;;  %vm830_vm1 = vcmp.eq.f32.partialorder %v829_v59, 8.507059e+37  ;;  %vm9519_vm2 = vmor %vm1244_vm0, %vm1245_vm15 }
 0xa2d   :  { %v5670_v37 = vpop.eup %5669  ;;  %v1270_v14 = vmul.f32 %v9465_v43, %v9400_v35  ;;  %5679 = vrcp.f32 %v9482_v25  ;;  %v1248_v41 = vand.u32 2147483647, %v9332_v36  ;;  %v833_v4 = vsel %vm830_vm1, %v832_v18, %v828_v50 }
 0xa2e   :  { %v803_v6 = vsel %vm9438_vm14, %v802_v13, %v798_v57  ;;  %v9503_v63 = vadd.f32 1.0, %v5670_v37  ;;  %v1250_v13 = vand.u32 2147483648, %v9332_v36  ;;  %v416_v57 = vmul.f32 %v5918_v27, %v385_v8 }
 0xa2f   :  { %v9427_v47 = vpop.f32.mrf.mxu1  ;;  %v1271_v52 = vsub.f32 1.0, %v1270_v14  ;;  %v5021_v36 = vmul.f32 -1.442695, %v8580_v51  ;;  %vm1249_vm3 = vcmp.eq.f32.partialorder %v1248_v41, 8.507059e+37  ;;  %v1263_v41 = vand.u32 2147483647, %v9392_v31 }
 0xa30   :  { %v4530_v0 = vmul.f32 %v9274_v19, %v9427_v47  ;;  %5681 = vrcp.f32 %v9503_v63  ;;  %v1251_v50 = vor.u32 1.1754944e-38, %v1250_v13  ;;  %vm1260_vm7 = vweird.f32 %v9454_v44 }
 0xa31   :  { %5683 = vpow2.f32 %v5021_v36  ;;  %vm1275_vm5 = vweird.f32 %v9465_v43  ;;  %vm1259_vm14 = vweird.f32 %v9392_v31  ;;  %v1278_v36 = vand.u32 2147483647, %v9400_v35 }
 0xa32   :  { %4552 = vadd.xlane.f32.xlu1 %v4530_v0  ;;  %v813_v0 = vsel %vm9469_vm11, %v9342_v16, %v809_v32  ;;  %v1243_v16 = vadd.f32 %v9386_v54, %v1242_v1  ;;  %v9509_v32 = vpop.eup %5671  ;;  %v848_v1 = vmul.f32 %v803_v6, %v10983_v61  ;;  %v1272_v61 = vmul.f32 %v9465_v43, %v1271_v52  ;;  %v10988_v52 = vld [vmem:[#allocation20_spill] sm:$0xff]  ;;  %vm9571_vm4 = vmor %vm1259_vm14, %vm1260_vm7 }
 0xa33   :  { %v818_v28 = vsel %vm9460_vm10, %v817_v40, %v813_v0  ;;  %v5674_v5 = vpop.eup %5673  ;;  %v1256_v40 = vsub.f32 1.0, %v1255_v10  ;;  %v1689_v59 = vmul.f32 %v9509_v32, %v9436_v38  ;;  %v5919_v10 = vld [vmem:[%s10601_s1 + $0x78] sm:$0xff]  ;;  %vm1274_vm6 = vweird.f32 %v9400_v35 }
 0xa34   :  { %v849_v0 = vmul.f32 %v818_v28, %v10986_v62  ;;  %v1247_v8 = vsel %vm9519_vm2, %v9386_v54, %v1243_v16  ;;  %v5676_v6 = vpop.eup %5675  ;;  %v417_v14 = vmul.f32 %v5919_v10, %v9413_v39  ;;  %v10987_v28 = vld [vmem:[#allocation9_spill] sm:$0xff]  ;;  %v9536_v54 = vadd.f32 1.0, %v5674_v5  ;;  %vm9586_vm9 = vmor %vm1274_vm6, %vm1275_vm5 }
 0xa35   :  { %v850_v18 = vmul.f32 %v833_v4, %v10987_v28  ;;  %v1252_v13 = vsel %vm1249_vm3, %v1251_v50, %v1247_v8  ;;  %v1257_v27 = vmul.f32 %v9454_v44, %v1256_v40  ;;  %v864_v62 = vadd.f32 %v848_v1, %v9405_v29 }
 0xa36   :  { %v9547_v39 = vadd.f32 %v849_v0, %v416_v57  ;;  %v9549_v4 = vadd.f32 1.0, %v5676_v6  ;;  %v1265_v5 = vand.u32 2147483648, %v9392_v31  ;;  %v1690_v10 = vsub.f32 1.0, %v1689_v59 }
 0xa37   :  { %v9493_v3 = vpop.f32.mrf.mxu1  ;;  %v1297_v50 = vmul.f32 %v1252_v13, %v10988_v52  ;;  %5685 = vrcp.f32 %v9536_v54  ;;  %v9562_v57 = vadd.f32 %v850_v18, %v417_v14  ;;  %v1258_v1 = vadd.f32 %v9454_v44, %v1257_v27  ;;  %v11003_v18 = vld [vmem:[#allocation24_spill] sm:$0xff] }
 0xa38   :  { %v4531_v24 = vmul.f32 %v9274_v19, %v9493_v3  ;;  %v1273_v0 = vadd.f32 %v9465_v43, %v1272_v61  ;;  %v1280_v6 = vand.u32 2147483648, %v9400_v35  ;;  %5687 = vrcp.f32 %v9549_v4 }
 0xa39   :  { %v9580_v28 = vadd.f32 %v1297_v50, %v864_v62  ;;  %vm9582_vm8 = vcmp.eq.f32.partialorder %v1263_v41, 8.507059e+37  ;;  %v1266_v13 = vor.u32 1.1754944e-38, %v1265_v5  ;;  %v5022_v41 = vmul.f32 -1.442695, %v8586_v22 }
 0xa3a   :  { %4554 = vadd.xlane.f32.xlu2 %v4531_v24  ;;  %v5678_v24 = vpop.eup %5677  ;;  %v1277_v62 = vsel %vm9586_vm9, %v9465_v43, %v1273_v0  ;;  %vm1279_vm10 = vcmp.eq.f32.partialorder %v1278_v36, 8.507059e+37  ;;  %v1281_v52 = vor.u32 1.1754944e-38, %v1280_v6  ;;  %v1697_v50 = vand.u32 2147483647, %v9436_v38 }
 0xa3b   :  { %v9540_v51 = vpop.eup %5679  ;;  %v9553_v8 = vadd.f32 1.0, %v5678_v24  ;;  %v1691_v24 = vmul.f32 %v9509_v32, %v1690_v10  ;;  %vm1694_vm11 = vweird.f32 %v9509_v32  ;;  %v5023_v6 = vmul.f32 -1.442695, %v8595_v60 }
 0xa3c   :  { %v9555_v40 = vpop.eup %5681  ;;  %v1704_v29 = vmul.f32 %v9540_v51, %v9482_v25  ;;  %v1282_v0 = vsel %vm1279_vm10, %v1281_v52, %v1277_v62  ;;  %vm1693_vm12 = vweird.f32 %v9436_v38  ;;  %vm9625_vm15 = vcmp.eq.f32.partialorder %v1697_v50, 8.507059e+37 }
 0xa3d   :  { %v1719_v14 = vmul.f32 %v9555_v40, %v9503_v63  ;;  %5689 = vrcp.f32 %v9553_v8  ;;  %v5684_v31 = vpop.eup %5683  ;;  %v1692_v59 = vadd.f32 %v9509_v32, %v1691_v24  ;;  %vm9621_vm13 = vmor %vm1693_vm12, %vm1694_vm11  ;;  %vm1708_vm1 = vweird.f32 %v9482_v25 }
 0xa3e   :  { %v1705_v35 = vsub.f32 1.0, %v1704_v29  ;;  %v9601_v10 = vpop.eup %5685  ;;  %v1699_v29 = vand.u32 2147483648, %v9436_v38  ;;  %5691 = vpow2.f32 %v5022_v41  ;;  %v5038_v60 = vmul.f32 -1.442695, %v8780_v49 }
 0xa3f   :  { %v9538_v16 = vpop.f32.mrf.mxu1  ;;  %v9609_v22 = vpop.eup %5687  ;;  %v2138_v24 = vmul.f32 %v9601_v10, %v9536_v54  ;;  %v1696_v38 = vsel %vm9621_vm13, %v9509_v32, %v1692_v59  ;;  %vm1709_vm0 = vweird.f32 %v9540_v51  ;;  %v1714_v41 = vand.u32 2147483648, %v9482_v25 }
 0xa40   :  { %v4532_v37 = vmul.f32 %v9274_v19, %v9538_v16  ;;  %v1706_v36 = vmul.f32 %v9540_v51, %v1705_v35  ;;  %v1712_v50 = vand.u32 2147483647, %v9482_v25  ;;  %vm9653_vm2 = vmor %vm1708_vm1, %vm1709_vm0  ;;  %vm1724_vm3 = vweird.f32 %v9555_v40 }
 0xa41   :  { %v2139_v32 = vsub.f32 1.0, %v2138_v24  ;;  %vm1723_vm7 = vweird.f32 %v9503_v63  ;;  %vm2142_vm6 = vweird.f32 %v9536_v54  ;;  %vm2157_vm9 = vweird.f32 %v9549_v4 }
 0xa42   :  { %4556 = vadd.xlane.f32.xlu0 %v4532_v37  ;;  %v1262_v37 = vsel %vm9571_vm4, %v9454_v44, %v1258_v1  ;;  %v1720_v44 = vsub.f32 1.0, %v1719_v14  ;;  %v9607_v1 = vadd.f32 1.0, %v5684_v31  ;;  %v5037_v14 = vmul.f32 -1.442695, %v8774_v9  ;;  %vm9679_vm14 = vmor %vm1723_vm7, %vm1724_vm3 }
 0xa43   :  { %v1267_v43 = vsel %vm9582_vm8, %v1266_v13, %v1262_v37  ;;  %v9615_v27 = vpop.eup %5689  ;;  %v1700_v13 = vor.u32 1.1754944e-38, %v1699_v29  ;;  %v2153_v9 = vmul.f32 %v9609_v22, %v9549_v4  ;;  %v1707_v37 = vadd.f32 %v9540_v51, %v1706_v36 }
 0xa44   :  { %v1721_v35 = vmul.f32 %v9555_v40, %v1720_v44  ;;  %5693 = vrcp.f32 %v9607_v1  ;;  %v2168_v62 = vmul.f32 %v9615_v27, %v9553_v8  ;;  %v1727_v29 = vand.u32 2147483647, %v9503_v63  ;;  %v5692_v59 = vpop.eup %5691 }
 0xa45   :  { %5695 = vpow2.f32 %v5023_v6  ;;  %v1701_v52 = vsel %vm9625_vm15, %v1700_v13, %v1696_v38  ;;  %v1729_v6 = vand.u32 2147483648, %v9503_v63  ;;  %v2154_v24 = vsub.f32 1.0, %v2153_v9 }
 0xa46   :  { %5697 = vpow2.f32 %v5037_v14  ;;  %v1722_v36 = vadd.f32 %v9555_v40, %v1721_v35  ;;  %v11002_v14 = vld [vmem:[#allocation22_spill] sm:$0xff]  ;;  %v9664_v13 = vmul.f32 %v1282_v0, %v11003_v18  ;;  %v1711_v25 = vsel %vm9653_vm2, %v9540_v51, %v1707_v37 }
 0xa47   :  { %v9590_v61 = vpop.f32.mrf.mxu1  ;;  %5699 = vpow2.f32 %v5038_v60  ;;  %v9661_v31 = vmul.f32 %v1267_v43, %v11002_v14  ;;  %v2169_v60 = vsub.f32 1.0, %v2168_v62  ;;  %v1715_v35 = vor.u32 1.1754944e-38, %v1714_v41  ;;  %v11004_v43 = vld [vmem:[#allocation52_spill] sm:$0xff] }
 0xa48   :  { %v4533_v5 = vmul.f32 %v9274_v19, %v9590_v61  ;;  %v5039_v9 = vmul.f32 -1.442695, %v8789_v23  ;;  %v9675_v14 = vmul.f32 %v1701_v52, %v11004_v43  ;;  %vm1713_vm5 = vcmp.eq.f32.partialorder %v1712_v50, 8.507059e+37 }
 0xa49   :  { %vm9683_vm4 = vcmp.eq.f32.partialorder %v1727_v29, 8.507059e+37  ;;  %v9687_v63 = vadd.f32 1.0, %v5692_v59  ;;  %v9689_v62 = vsel %vm1713_vm5, %v1715_v35, %v1711_v25  ;;  %v1726_v23 = vsel %vm9679_vm14, %v9555_v40, %v1722_v36 }
 0xa4a   :  { %4558 = vadd.xlane.f32.xlu1 %v4533_v5  ;;  %v9669_v38 = vpop.eup %5693  ;;  %v1730_v41 = vor.u32 1.1754944e-38, %v1729_v6  ;;  %vm2143_vm8 = vweird.f32 %v9601_v10  ;;  %v2146_v50 = vand.u32 2147483647, %v9536_v54  ;;  %v2170_v29 = vmul.f32 %v9615_v27, %v2169_v60 }
 0xa4b   :  { %5701 = vpow2.f32 %v5039_v9  ;;  %v2148_v36 = vand.u32 2147483648, %v9536_v54  ;;  %v2587_v6 = vmul.f32 %v9669_v38, %v9607_v1  ;;  %vm2158_vm10 = vweird.f32 %v9609_v22  ;;  %vm9721_vm11 = vmor %vm2142_vm6, %vm2143_vm8 }
 0xa4c   :  { %5703 = vrcp.f32 %v9687_v63  ;;  %v2161_v35 = vand.u32 2147483647, %v9549_v4  ;;  %v2163_v9 = vand.u32 2147483648, %v9549_v4  ;;  %vm2173_vm12 = vweird.f32 %v9615_v27  ;;  %vm9735_vm13 = vmor %vm2157_vm9, %vm2158_vm10 }
 0xa4d   :  { %v2176_v0 = vand.u32 2147483647, %v9553_v8  ;;  %v2178_v54 = vand.u32 2147483648, %v9553_v8  ;;  %vm2172_vm15 = vweird.f32 %v9553_v8  ;;  %v2588_v4 = vsub.f32 1.0, %v2587_v6 }
 0xa4e   :  { %vm9747_vm1 = vmor %vm2172_vm15, %vm2173_vm12  ;;  %vm2147_vm0 = vcmp.eq.f32.partialorder %v2146_v50, 8.507059e+37  ;;  %vm2162_vm2 = vcmp.eq.f32.partialorder %v2161_v35, 8.507059e+37  ;;  %vm2592_vm7 = vweird.f32 %v9669_v38  ;;  %vm2591_vm5 = vweird.f32 %v9607_v1 }
 0xa4f   :  { %v9642_v49 = vpop.f32.mrf.mxu1  ;;  %vm2177_vm3 = vcmp.eq.f32.partialorder %v2176_v0, 8.507059e+37  ;;  %v1315_v0 = vadd.f32 %v9664_v13, %v9562_v57  ;;  %vm9799_vm14 = vmor %vm2591_vm5, %vm2592_vm7  ;;  %vm2606_vm6 = vweird.f32 %v9687_v63 }
 0xa50   :  { %10999 = vst [vmem:[#allocation31_spill] sm:$0xff] %v9642_v49  ;;  %v4534_v5 = vmul.f32 %v9274_v19, %v9642_v49  ;;  %v2140_v49 = vmul.f32 %v9601_v10, %v2139_v32  ;;  %v2155_v32 = vmul.f32 %v9609_v22, %v2154_v24 }
 0xa52   :  { %4560 = vadd.xlane.f32.xlu2 %v4534_v5  ;;  %v5696_v5 = vpop.eup %5695  ;;  %v2141_v44 = vadd.f32 %v9601_v10, %v2140_v49  ;;  %v2156_v25 = vadd.f32 %v9609_v22, %v2155_v32  ;;  %v5072_v32 = vmul.f32 -1.442695, %v9201_v55  ;;  %v2164_v55 = vor.u32 1.1754944e-38, %v2163_v9 }
 0xa53   :  { %v5698_v37 = vpop.eup %5697  ;;  %v9702_v18 = vadd.f32 1.0, %v5696_v5  ;;  %v2171_v5 = vadd.f32 %v9615_v27, %v2170_v29  ;;  %v2149_v29 = vor.u32 1.1754944e-38, %v2148_v36  ;;  %v5053_v9 = vmul.f32 -1.442695, %v8973_v34  ;;  %v11016_v34 = vld [vmem:[#allocation56_spill] sm:$0xff] }
 0xa54   :  { %v5700_v52 = vpop.eup %5699  ;;  %v9710_v24 = vadd.f32 1.0, %v5698_v37  ;;  %v2145_v43 = vsel %vm9721_vm11, %v9601_v10, %v2141_v44  ;;  %v1731_v10 = vsel %vm9683_vm4, %v1730_v41, %v1726_v23  ;;  %v2160_v44 = vsel %vm9735_vm13, %v9609_v22, %v2156_v25 }
 0xa55   :  { %v9715_v49 = vadd.f32 1.0, %v5700_v52  ;;  %5705 = vrcp.f32 %v9702_v18  ;;  %v5702_v52 = vpop.eup %5701  ;;  %v2175_v51 = vsel %vm9747_vm1, %v9615_v27, %v2171_v5  ;;  %v2150_v41 = vsel %vm2147_vm0, %v2149_v29, %v2145_v43 }
 0xa56   :  { %5707 = vrcp.f32 %v9710_v24  ;;  %v9752_v8 = vpop.eup %5703  ;;  %v2179_v22 = vor.u32 1.1754944e-38, %v2178_v54  ;;  %v2165_v6 = vsel %vm2162_vm2, %v2164_v55, %v2160_v44  ;;  %v2589_v25 = vmul.f32 %v9669_v38, %v2588_v4  ;;  %v11017_v44 = vld [vmem:[#allocation32_spill] sm:$0xff]  ;;  %v11018_v55 = vld [vmem:[#allocation11_spill] sm:$0xff] }
 0xa57   :  { %v9699_v59 = vpop.f32.mrf.mxu1  ;;  %5709 = vrcp.f32 %v9715_v49  ;;  %v9762_v60 = vadd.f32 1.0, %v5702_v52  ;;  %v2602_v27 = vmul.f32 %v9752_v8, %v9687_v63  ;;  %v1314_v43 = vadd.f32 %v9661_v31, %v9547_v39  ;;  %v11019_v39 = vld [vmem:[#allocation28_spill] sm:$0xff] }
 0xa58   :  { %v4535_v40 = vmul.f32 %v9274_v19, %v9699_v59  ;;  %5711 = vpow2.f32 %v5072_v32  ;;  %v2180_v35 = vsel %vm2177_vm3, %v2179_v22, %v2175_v51  ;;  %v1762_v54 = vadd.f32 %v9675_v14, %v9580_v28  ;;  %v11015_v32 = vld [vmem:[#allocation54_spill] sm:$0xff] }
 0xa59   :  { %v5073_v37 = vmul.f32 -1.442695, %v9198_v30  ;;  %v1747_v52 = vmul.f32 %v9689_v62, %v11015_v32  ;;  %v1748_v29 = vmul.f32 %v1731_v10, %v11016_v34  ;;  %v2196_v51 = vmul.f32 %v2165_v6, %v11018_v55 }
 0xa5a   :  { %4562 = vadd.xlane.f32.xlu0 %v4535_v40  ;;  %v2195_v40 = vmul.f32 %v2150_v41, %v11017_v44  ;;  %v2197_v31 = vmul.f32 %v2180_v35, %v11019_v39  ;;  %v2590_v57 = vadd.f32 %v9669_v38, %v2589_v25  ;;  %5713 = vrcp.f32 %v9762_v60 }
 0xa5b   :  { %v9764_v50 = vpop.eup %5705  ;;  %v2603_v30 = vsub.f32 1.0, %v2602_v27  ;;  %5715 = vpow2.f32 %v5053_v9  ;;  %v2597_v62 = vand.u32 2147483648, %v9607_v1  ;;  %v1763_v22 = vadd.f32 %v1747_v52, %v1314_v43 }
 0xa5c   :  { %v9769_v5 = vpop.eup %5707  ;;  %v2617_v28 = vmul.f32 %v9764_v50, %v9702_v18  ;;  %5717 = vpow2.f32 %v5073_v37  ;;  %v2595_v6 = vand.u32 2147483647, %v9607_v1  ;;  %v1764_v35 = vadd.f32 %v1748_v29, %v1315_v0 }
 0xa5d   :  { %v9778_v4 = vpop.eup %5709  ;;  %v3036_v13 = vmul.f32 %v9769_v5, %v9710_v24  ;;  %v9806_v27 = vadd.f32 %v2195_v40, %v1762_v54  ;;  %v2594_v9 = vsel %vm9799_vm14, %v9669_v38, %v2590_v57  ;;  %v2610_v37 = vand.u32 2147483647, %v9687_v63 }
 0xa5e   :  { %v5712_v14 = vpop.eup %5711  ;;  %v3051_v10 = vmul.f32 %v9778_v4, %v9715_v49  ;;  %v2604_v43 = vmul.f32 %v9752_v8, %v2603_v30  ;;  %v2618_v32 = vsub.f32 1.0, %v2617_v28  ;;  %v9817_v44 = vadd.f32 %v2196_v51, %v1763_v22 }
 0xa5f   :  { %v9757_v23 = vpop.f32.mrf.mxu1  ;;  %v3037_v52 = vsub.f32 1.0, %v3036_v13  ;;  %v9813_v34 = vadd.f32 1.0, %v5712_v14  ;;  %v9819_v0 = vadd.f32 %v2197_v31, %v1764_v35  ;;  %v2598_v54 = vor.u32 1.1754944e-38, %v2597_v62  ;;  %v9830_v31 = vpop.xlane.xlu1 %4117 }
 0xa60   :  { %v4536_v36 = vmul.f32 %v9274_v19, %v9757_v23  ;;  %v9815_v1 = vpop.eup %5713  ;;  %v3052_v29 = vsub.f32 1.0, %v3051_v10  ;;  %vm2596_vm4 = vcmp.eq.f32.partialorder %v2595_v6, 8.507059e+37  ;;  %v2612_v38 = vand.u32 2147483648, %v9687_v63  ;;  %v11038_v63 = vld [vmem:[#allocation36_spill] sm:$0xff] }
 0xa61   :  { %v5716_v40 = vpop.eup %5715  ;;  %v5074_v55 = vmul.f32 -1.442695, %v9203_v11  ;;  %v2599_v57 = vsel %vm2596_vm4, %v2598_v54, %v2594_v9  ;;  %vm2607_vm8 = vweird.f32 %v9752_v8  ;;  %vm9825_vm9 = vcmp.eq.f32.partialorder %v2610_v37, 8.507059e+37  ;;  %v11024_v9 = vld [vmem:[#allocation13_spill] sm:$0xff] }
 0xa62   :  { %4564 = vadd.xlane.f32.xlu1 %v4536_v36  ;;  %v5718_v39 = vpop.eup %5717  ;;  %v2627_v51 = vand.u32 2147483648, %v9702_v18  ;;  %v2605_v28 = vadd.f32 %v9752_v8, %v2604_v43  ;;  %v2619_v13 = vmul.f32 %v9764_v50, %v2618_v32  ;;  %v3038_v14 = vmul.f32 %v9769_v5, %v3037_v52  ;;  %vm9853_vm10 = vmor %vm2606_vm6, %vm2607_vm8 }
 0xa63   :  { %5719 = vrcp.f32 %v9813_v34  ;;  %v2625_v11 = vand.u32 2147483647, %v9702_v18  ;;  %v3053_v62 = vmul.f32 %v9778_v4, %v3052_v29  ;;  %v3066_v10 = vmul.f32 %v9815_v1, %v9762_v60 }
 0xa64   :  { %v9840_v22 = vadd.f32 1.0, %v5716_v40  ;;  %v2613_v6 = vor.u32 1.1754944e-38, %v2612_v38  ;;  %5721 = vpow2.f32 %v5074_v55  ;;  %v2644_v37 = vmul.f32 %v2599_v57, %v11024_v9  ;;  %v11035_v9 = vld [vmem:[#allocation2_spill] sm:$0xff] }
 0xa65   :  { %vm2621_vm11 = vweird.f32 %v9702_v18  ;;  %vm2622_vm12 = vweird.f32 %v9764_v50  ;;  %v2628_v32 = vor.u32 1.1754944e-38, %v2627_v51  ;;  %v2609_v52 = vsel %vm9853_vm10, %v9752_v8, %v2605_v28 }
 0xa66   :  { %v2620_v54 = vadd.f32 %v9764_v50, %v2619_v13  ;;  %v3039_v29 = vadd.f32 %v9769_v5, %v3038_v14  ;;  %vm3041_vm13 = vweird.f32 %v9769_v5  ;;  %vm9865_vm15 = vcmp.eq.f32.partialorder %v2625_v11, 8.507059e+37  ;;  %vm9874_vm0 = vmor %vm2621_vm11, %vm2622_vm12  ;;  %v9890_v14 = vpop.xlane.xlu2 %4119 }
 0xa67   :  { %v9797_v41 = vpop.f32.mrf.mxu1  ;;  %v3054_v18 = vadd.f32 %v9778_v4, %v3053_v62  ;;  %vm3056_vm1 = vweird.f32 %v9778_v4  ;;  %v3067_v40 = vsub.f32 1.0, %v3066_v10  ;;  %5723 = vrcp.f32 %v9840_v22 }
 0xa68   :  { %v4537_v25 = vmul.f32 %v9274_v19, %v9797_v41  ;;  %vm3040_vm2 = vweird.f32 %v9710_v24  ;;  %v3046_v55 = vand.u32 2147483648, %v9710_v24  ;;  %v3044_v51 = vand.u32 2147483647, %v9710_v24 }
 0xa69   :  { %v9872_v38 = vpop.eup %5719  ;;  %vm9882_vm3 = vmor %vm3040_vm2, %vm3041_vm13  ;;  %vm3055_vm7 = vweird.f32 %v9715_v49  ;;  %v3059_v28 = vand.u32 2147483647, %v9715_v49  ;;  %v5075_v13 = vmul.f32 -1.442695, %v9208_v46  ;;  %v2614_v10 = vsel %vm9825_vm9, %v2613_v6, %v2609_v52 }
 0xa6a   :  { %4566 = vadd.xlane.f32.xlu2 %v4537_v25  ;;  %v9844_v25 = vadd.f32 1.0, %v5718_v39  ;;  %v3061_v39 = vand.u32 2147483648, %v9715_v49  ;;  %v5722_v62 = vpop.eup %5721  ;;  %v3043_v24 = vsel %vm9882_vm3, %v9769_v5, %v3039_v29  ;;  %vm9902_vm5 = vmor %vm3055_vm7, %vm3056_vm1  ;;  %v3068_v6 = vmul.f32 %v9815_v1, %v3067_v40  ;;  %v11037_v40 = vld [vmem:[#allocation48_spill] sm:$0xff] }
 0xa6b   :  { %v3058_v30 = vsel %vm9902_vm5, %v9778_v4, %v3054_v18  ;;  %v5054_v43 = vmul.f32 -1.442695, %v11035_v9  ;;  %v3047_v5 = vor.u32 1.1754944e-38, %v3046_v55  ;;  %vm3045_vm14 = vcmp.eq.f32.partialorder %v3044_v51, 8.507059e+37 }
 0xa6c   :  { %5725 = vrcp.f32 %v9844_v25  ;;  %vm3060_vm4 = vcmp.eq.f32.partialorder %v3059_v28, 8.507059e+37  ;;  %v9919_v4 = vadd.f32 1.0, %v5722_v62  ;;  %v2645_v57 = vmul.f32 %v2614_v10, %v11037_v40  ;;  %v11043_v40 = vld [vmem:[#allocation10_spill] sm:$0xff] }
 0xa6d   :  { %v9917_v8 = vpop.eup %5723  ;;  %vm3071_vm6 = vweird.f32 %v9815_v1  ;;  %v3069_v55 = vadd.f32 %v9815_v1, %v3068_v6  ;;  %v2660_v51 = vadd.f32 %v2644_v37, %v9806_v27  ;;  %vm3070_vm8 = vweird.f32 %v9762_v60 }
 0xa6e   :  { %v3074_v62 = vand.u32 2147483647, %v9762_v60  ;;  %v3485_v10 = vmul.f32 %v9917_v8, %v9840_v22  ;;  %vm9945_vm9 = vmor %vm3070_vm8, %vm3071_vm6  ;;  %vm4193_vm11 = vweird.f32 %v9872_v38  ;;  %vm4192_vm12 = vweird.f32 %v9813_v34 }
 0xa6f   :  { %v9842_v36 = vpop.f32.mrf.mxu1  ;;  %vm9984_vm13 = vmor %vm4192_vm12, %vm4193_vm11  ;;  %vm4222_vm5 = vweird.f32 %v9919_v4 }
 0xa70   :  { %v4538_v35 = vmul.f32 %v9274_v19, %v9842_v36  ;;  %vm3075_vm10 = vcmp.eq.f32.partialorder %v3074_v62, 8.507059e+37  ;;  %v5077_v62 = vmul.f32 -1.442695, %v9210_v17 }
 0xa72   :  { %4568 = vadd.xlane.f32.xlu0 %v4538_v35  ;;  %v2624_v35 = vsel %vm9874_vm0, %v9764_v50, %v2620_v54  ;;  %v4188_v50 = vmul.f32 %v9872_v38, %v9813_v34  ;;  %v3062_v54 = vor.u32 1.1754944e-38, %v3061_v39  ;;  %v9921_v18 = vpop.eup %5725  ;;  %v5076_v39 = vmul.f32 -1.442695, %v9205_v45  ;;  %v9938_v45 = vpop.xlane.xlu0 %4121 }
 0xa73   :  { %v2629_v28 = vsel %vm9865_vm15, %v2628_v32, %v2624_v35  ;;  %v2661_v32 = vadd.f32 %v2645_v57, %v9817_v44  ;;  %v5055_v57 = vmul.f32 -1.442695, %v11043_v40  ;;  %vm4208_vm1 = vweird.f32 %v9921_v18 }
 0xa74   :  { %v3063_v49 = vsel %vm3060_vm4, %v3062_v54, %v3058_v30  ;;  %vm4207_vm0 = vweird.f32 %v9844_v25 }
 0xa75   :  { %v4541_v11 = vpop.xlane.xlu1 %4540  ;;  %vm10015_vm3 = vmor %vm4207_vm0, %vm4208_vm1 }
 0xa76   :  { %v5088_v46 = vmul.f32 -1.442695, %v4541_v11  ;;  %v3048_v11 = vsel %vm3045_vm14, %v3047_v5, %v3043_v24  ;;  %v4203_v24 = vmul.f32 %v9921_v18, %v9844_v25  ;;  %v11042_v5 = vld [vmem:[#allocation15_spill] sm:$0xff] }
 0xa77   :  { %v9913_v52 = vpop.f32.mrf.mxu1  ;;  %v3093_v35 = vmul.f32 %v3048_v11, %v11038_v63  ;;  %v9956_v54 = vmul.f32 %v2629_v28, %v11042_v5  ;;  %v4213_v5 = vand.u32 2147483648, %v9844_v25 }
 0xa78   :  { %11036 = vst [vmem:[#allocation33_spill] sm:$0xff] %v9913_v52  ;;  %5727 = vpow2.f32 %v5088_v46  ;;  %v4539_v29 = vmul.f32 %v9274_v19, %v9913_v52  ;;  %v4189_v19 = vsub.f32 1.0, %v4188_v50  ;;  %v11039_v46 = vld [vmem:[#allocation40_spill] sm:$0xff] }
 0xa79   :  { %5729 = vpow2.f32 %v5075_v13  ;;  %v3076_v13 = vand.u32 2147483648, %v9762_v60  ;;  %v3094_v30 = vmul.f32 %v3063_v49, %v11039_v46  ;;  %v3486_v49 = vsub.f32 1.0, %v3485_v10 }
 0xa7a   :  { %4570 = vadd.xlane.f32.xlu1 %v4539_v29  ;;  %5731 = vpow2.f32 %v5054_v43  ;;  %v3073_v43 = vsel %vm9945_vm9, %v9815_v1, %v3069_v55  ;;  %v4190_v50 = vmul.f32 %v9872_v38, %v4189_v19  ;;  %v9960_v63 = vadd.f32 %v3093_v35, %v2660_v51 }
 0xa7b   :  { %5733 = vrcp.f32 %v9919_v4  ;;  %v3077_v29 = vor.u32 1.1754944e-38, %v3076_v13  ;;  %v9962_v1 = vadd.f32 %v3094_v30, %v2661_v32  ;;  %v9979_v32 = vmul.f32 %v9917_v8, %v3486_v49 }
 0xa7c   :  { %5735 = vpow2.f32 %v5076_v39  ;;  %v4191_v13 = vadd.f32 %v9872_v38, %v4190_v50  ;;  %v4196_v35 = vand.u32 2147483647, %v9813_v34 }
 0xa7d   :  { %v4543_v27 = vpop.xlane.xlu2 %4542  ;;  %v9964_v55 = vsel %vm3075_vm10, %v3077_v29, %v3073_v43 }
 0xa7e   :  { %v5728_v37 = vpop.eup %5727  ;;  %v5089_v6 = vmul.f32 -1.442695, %v4543_v27  ;;  %v4204_v27 = vsub.f32 1.0, %v4203_v24  ;;  %v4198_v24 = vand.u32 2147483648, %v9813_v34  ;;  %v4195_v34 = vsel %vm9984_vm13, %v9872_v38, %v4191_v13 }
 0xa7f   :  { %v5730_v9 = vpop.eup %5729  ;;  %v9953_v44 = vadd.f32 1.0, %v5728_v37  ;;  %vm4197_vm15 = vcmp.eq.f32.partialorder %v4196_v35, 8.507059e+37  ;;  %v5078_v35 = vmul.f32 -1.442695, %v9213_v21 }
 0xa80   :  { %5737 = vpow2.f32 %v5089_v6  ;;  %v5732_v11 = vpop.eup %5731  ;;  %v9966_v19 = vadd.f32 1.0, %v5730_v9  ;;  %v4205_v46 = vmul.f32 %v9921_v18, %v4204_v27  ;;  %v4211_v6 = vand.u32 2147483647, %v9844_v25 }
 0xa81   :  { %5739 = vrcp.f32 %v9953_v44  ;;  %v9968_v39 = vpop.eup %5733  ;;  %v9975_v51 = vadd.f32 1.0, %v5732_v11  ;;  %v4199_v40 = vor.u32 1.1754944e-38, %v4198_v24  ;;  %v4645_v17 = vand.u32 2147483647, %v9953_v44 }
 0xa82   :  { %5741 = vpow2.f32 %v5055_v57  ;;  %v5736_v37 = vpop.eup %5735  ;;  %v4218_v9 = vmul.f32 %v9968_v39, %v9919_v4  ;;  %v4206_v49 = vadd.f32 %v9921_v18, %v4205_v46  ;;  %vm10007_vm2 = vcmp.eq.f32.partialorder %v4211_v6, 8.507059e+37 }
 0xa83   :  { %5743 = vrcp.f32 %v9966_v19  ;;  %v9998_v57 = vadd.f32 1.0, %v5736_v37  ;;  %v4200_v38 = vsel %vm4197_vm15, %v4199_v40, %v4195_v34  ;;  %v4214_v37 = vor.u32 1.1754944e-38, %v4213_v5 }
 0xa84   :  { %5745 = vpow2.f32 %v5077_v62  ;;  %v4219_v13 = vsub.f32 1.0, %v4218_v9  ;;  %v4647_v46 = vand.u32 2147483648, %v9953_v44  ;;  %v4427_v9 = vmul.f32 %v4200_v38, %v9111_v56 }
 0xa85   :  { %v4545_v30 = vpop.xlane.xlu0 %4544  ;;  %v4210_v21 = vsel %vm10015_vm3, %v9921_v18, %v4206_v49  ;;  %v4228_v34 = vand.u32 2147483648, %v9919_v4  ;;  %vm4641_vm14 = vweird.f32 %v9953_v44  ;;  %vm4646_vm6 = vcmp.eq.f32.partialorder %v4645_v17, 8.507059e+37 }
 0xa86   :  { %v5738_v60 = vpop.eup %5737  ;;  %v5090_v43 = vmul.f32 -1.442695, %v4545_v30  ;;  %v4648_v18 = vor.u32 1.1754944e-38, %v4647_v46  ;;  %v4215_v46 = vsel %vm10007_vm2, %v4214_v37, %v4210_v21  ;;  %vm4223_vm9 = vweird.f32 %v9968_v39 }
 0xa87   :  { %v5740_v50 = vpop.eup %5739  ;;  %v9996_v29 = vadd.f32 1.0, %v5738_v60  ;;  %v4428_v24 = vmul.f32 %v4215_v46, %v9115_v26  ;;  %v4241_v37 = vand.u32 2147483647, %v9966_v19  ;;  %vm10062_vm11 = vmor %vm4222_vm5, %vm4223_vm9  ;;  %vm4237_vm1 = vweird.f32 %v9966_v19 }
 0xa88   :  { %v4637_v11 = vmul.f32 %v5740_v50, %v9953_v44  ;;  %5747 = vpow2.f32 %v5090_v43  ;;  %v10004_v27 = vpop.eup %5741  ;;  %vm4642_vm7 = vweird.f32 %v5740_v50  ;;  %v4226_v43 = vand.u32 2147483647, %v9919_v4 }
 0xa89   :  { %5749 = vrcp.f32 %v9996_v29  ;;  %v10013_v30 = vpop.eup %5743  ;;  %vm4643_vm4 = vmor %vm4641_vm14, %vm4642_vm7  ;;  %vm4656_vm12 = vweird.f32 %v9996_v29  ;;  %vm10094_vm3 = vcmp.eq.f32.partialorder %v4241_v37, 8.507059e+37 }
 0xa8a   :  { %v4638_v62 = vsub.f32 1.0, %v4637_v11  ;;  %5751 = vrcp.f32 %v9998_v57  ;;  %v5746_v6 = vpop.eup %5745  ;;  %v4220_v11 = vmul.f32 %v9968_v39, %v4219_v13  ;;  %v4233_v56 = vmul.f32 %v10013_v30, %v9966_v19  ;;  %v11050_v13 = vld [vmem:[#allocation12_spill] sm:$0xff] }
 0xa8b   :  { %5753 = vpow2.f32 %v5078_v35  ;;  %vm10037_vm8 = vcmp.eq.f32.partialorder %v4226_v43, 8.507059e+37  ;;  %vm4238_vm0 = vweird.f32 %v10013_v30 }
 0xa8c   :  { %v4639_v25 = vmul.f32 %v5740_v50, %v4638_v62  ;;  %v4234_v43 = vsub.f32 1.0, %v4233_v56  ;;  %vm10099_vm7 = vmor %vm4237_vm1, %vm4238_vm0 }
 0xa8d   :  { %v4547_v5 = vpop.xlane.xlu1 %4546 }
 0xa8e   :  { %v5748_v40 = vpop.eup %5747  ;;  %v4640_v62 = vadd.f32 %v5740_v50, %v4639_v25  ;;  %v5091_v10 = vmul.f32 -1.442695, %v4547_v5  ;;  %v4443_v25 = vadd.f32 %v4427_v9, %v11050_v13  ;;  %v4229_v5 = vor.u32 1.1754944e-38, %v4228_v34 }
 0xa8f   :  { %v5750_v28 = vpop.eup %5749  ;;  %v10033_v49 = vadd.f32 1.0, %v5748_v40  ;;  %v4221_v9 = vadd.f32 %v9968_v39, %v4220_v11  ;;  %v4662_v34 = vand.u32 2147483648, %v9996_v29  ;;  %v4235_v4 = vmul.f32 %v10013_v30, %v4234_v43 }
 0xa90   :  { %v4644_v38 = vsel %vm4643_vm4, %v5740_v50, %v4640_v62  ;;  %v4652_v60 = vmul.f32 %v5750_v28, %v9996_v29  ;;  %5755 = vpow2.f32 %v5091_v10  ;;  %v10042_v35 = vpop.eup %5751  ;;  %v10046_v50 = vadd.f32 1.0, %v5746_v6 }
 0xa91   :  { %v4649_v52 = vsel %vm4646_vm6, %v4648_v18, %v4644_v38  ;;  %5757 = vrcp.f32 %v10033_v49  ;;  %vm4657_vm10 = vweird.f32 %v5750_v28  ;;  %v4660_v18 = vand.u32 2147483647, %v9996_v29  ;;  %v5754_v38 = vpop.eup %5753 }
 0xa92   :  { %v4876_v17 = vmul.f32 %v4649_v52, %v9269_v53  ;;  %v4653_v10 = vsub.f32 1.0, %v4652_v60  ;;  %v4243_v53 = vand.u32 2147483648, %v9966_v19  ;;  %v4248_v52 = vmul.f32 %v10042_v35, %v9998_v57  ;;  %vm4658_vm13 = vmor %vm4656_vm12, %vm4657_vm10 }
 0xa93   :  { %5759 = vrcp.f32 %v10046_v50  ;;  %v4225_v13 = vsel %vm10062_vm11, %v9968_v39, %v4221_v9  ;;  %vm4661_vm15 = vcmp.eq.f32.partialorder %v4660_v18, 8.507059e+37  ;;  %v4444_v29 = vadd.f32 %v4428_v24, %v9015_v58 }
 0xa94   :  { %v4892_v40 = vadd.f32 %v4876_v17, %v4443_v25  ;;  %v4654_v62 = vmul.f32 %v5750_v28, %v4653_v10  ;;  %v4663_v25 = vor.u32 1.1754944e-38, %v4662_v34  ;;  %v4230_v39 = vsel %vm10037_vm8, %v4229_v5, %v4225_v13 }
 0xa95   :  { %v4549_v6 = vpop.xlane.xlu2 %4548  ;;  %v10083_v9 = vadd.f32 1.0, %v5754_v38  ;;  %v4677_v58 = vand.u32 2147483648, %v10033_v49  ;;  %v4675_v44 = vand.u32 2147483647, %v10033_v49  ;;  %v4429_v5 = vmul.f32 %v4230_v39, %v9119_v33 }
 0xa96   :  { %v5756_v21 = vpop.eup %5755  ;;  %4908 = vst [vmem:[%s10604_s3] sm:$0xff] %v4892_v40  ;;  %v4655_v26 = vadd.f32 %v5750_v28, %v4654_v62  ;;  %v5092_v56 = vmul.f32 -1.442695, %v4549_v6  ;;  %v4249_v40 = vsub.f32 1.0, %v4248_v52  ;;  %v4244_v38 = vor.u32 1.1754944e-38, %v4243_v53 }
 0xa97   :  { %v5758_v60 = vpop.eup %5757  ;;  %v10076_v46 = vadd.f32 1.0, %v5756_v21  ;;  %vm4671_vm5 = vweird.f32 %v10033_v49  ;;  %v4678_v13 = vor.u32 1.1754944e-38, %v4677_v58  ;;  %vm4676_vm4 = vcmp.eq.f32.partialorder %v4675_v44, 8.507059e+37 }
 0xa98   :  { %v4659_v17 = vsel %vm4658_vm13, %v5750_v28, %v4655_v26  ;;  %v4667_v10 = vmul.f32 %v5758_v60, %v10033_v49  ;;  %5761 = vpow2.f32 %v5092_v56  ;;  %v4236_v28 = vadd.f32 %v10013_v30, %v4235_v4 }
 0xa99   :  { %v4664_v62 = vsel %vm4661_vm15, %v4663_v25, %v4659_v17  ;;  %5763 = vrcp.f32 %v10076_v46  ;;  %v10090_v18 = vpop.eup %5759  ;;  %vm4672_vm2 = vweird.f32 %v5758_v60  ;;  %v4250_v19 = vmul.f32 %v10042_v35, %v4249_v40 }
 0xa9a   :  { %v4877_v43 = vmul.f32 %v4664_v62, %v9279_v42  ;;  %v4668_v34 = vsub.f32 1.0, %v4667_v10  ;;  %5765 = vrcp.f32 %v10083_v9  ;;  %v4240_v53 = vsel %vm10099_vm7, %v10013_v30, %v4236_v28  ;;  %vm4673_vm14 = vmor %vm4671_vm5, %vm4672_vm2 }
 0xa9b   :  { %v4263_v56 = vmul.f32 %v10090_v18, %v10046_v50  ;;  %v4445_v49 = vadd.f32 %v4429_v5, %v9025_v12  ;;  %vm4253_vm6 = vweird.f32 %v10042_v35  ;;  %v4245_v30 = vsel %vm10094_vm3, %v4244_v38, %v4240_v53 }
 0xa9c   :  { %v4893_v24 = vadd.f32 %v4877_v43, %v4444_v29  ;;  %v4669_v52 = vmul.f32 %v5758_v60, %v4668_v34  ;;  %v4251_v29 = vadd.f32 %v10042_v35, %v4250_v19  ;;  %vm4252_vm8 = vweird.f32 %v9998_v57 }
 0xa9d   :  { %v4551_v6 = vpop.xlane.xlu0 %4550  ;;  %v4692_v12 = vand.u32 2147483648, %v10076_v46  ;;  %v4690_v28 = vand.u32 2147483647, %v10076_v46  ;;  %v10132_v58 = vadd.f32 %v9917_v8, %v9979_v32  ;;  %vm10137_vm10 = vmor %vm4252_vm8, %vm4253_vm6  ;;  %v4258_v44 = vand.u32 2147483648, %v9998_v57 }
 0xa9e   :  { %v5762_v21 = vpop.eup %5761  ;;  %4909 = vst [vmem:[%s10604_s3 + $0x8] sm:$0xff] %v4893_v24  ;;  %v4670_v33 = vadd.f32 %v5758_v60, %v4669_v52  ;;  %v5093_v37 = vmul.f32 -1.442695, %v4551_v6  ;;  %v4256_v52 = vand.u32 2147483647, %v9998_v57  ;;  %v4255_v38 = vsel %vm10137_vm10, %v10042_v35, %v4251_v29 }
 0xa9f   :  { %v5764_v26 = vpop.eup %5763  ;;  %v10114_v4 = vadd.f32 1.0, %v5762_v21  ;;  %vm4686_vm11 = vweird.f32 %v10076_v46  ;;  %v4693_v21 = vor.u32 1.1754944e-38, %v4692_v12  ;;  %vm4691_vm13 = vcmp.eq.f32.partialorder %v4690_v28, 8.507059e+37 }
 0xaa0   :  { %v4674_v25 = vsel %vm4673_vm14, %v5758_v60, %v4670_v33  ;;  %v4682_v17 = vmul.f32 %v5764_v26, %v10076_v46  ;;  %5767 = vpow2.f32 %v5093_v37  ;;  %v4264_v60 = vsub.f32 1.0, %v4263_v56  ;;  %v10127_v39 = vpop.eup %5765 }
 0xaa1   :  { %v4679_v10 = vsel %vm4676_vm4, %v4678_v13, %v4674_v25  ;;  %5769 = vrcp.f32 %v10114_v4  ;;  %vm4687_vm9 = vweird.f32 %v5764_v26  ;;  %v4278_v57 = vmul.f32 %v10127_v39, %v10083_v9 }
 0xaa2   :  { %v4878_v40 = vmul.f32 %v4679_v10, %v9292_v15  ;;  %v4683_v62 = vsub.f32 1.0, %v4682_v17  ;;  %5771 = vrcp.f32 %v9975_v51  ;;  %v4430_v15 = vmul.f32 %v4245_v30, %v9123_v7  ;;  %vm4688_vm12 = vmor %vm4686_vm11, %vm4687_vm9 }
 0xaa3   :  { %v4265_v6 = vmul.f32 %v10090_v18, %v4264_v60  ;;  %vm4257_vm15 = vcmp.eq.f32.partialorder %v4256_v52, 8.507059e+37  ;;  %v4259_v46 = vor.u32 1.1754944e-38, %v4258_v44  ;;  %vm4268_vm1 = vweird.f32 %v10090_v18 }
 0xaa4   :  { %v4894_v43 = vadd.f32 %v4878_v40, %v4445_v49  ;;  %v4684_v34 = vmul.f32 %v5764_v26, %v4683_v62  ;;  %v4446_v56 = vadd.f32 %v4430_v15, %v9035_v48  ;;  %v4279_v49 = vsub.f32 1.0, %v4278_v57 }
 0xaa5   :  { %v4553_v5 = vpop.xlane.xlu1 %4552  ;;  %v4260_v17 = vsel %vm4257_vm15, %v4259_v46, %v4255_v38  ;;  %v4707_v10 = vand.u32 2147483648, %v10114_v4  ;;  %v4705_v40 = vand.u32 2147483647, %v10114_v4  ;;  %v10167_v62 = vadd.f32 1.0, %v10004_v27 }
 0xaa6   :  { %v5768_v42 = vpop.eup %5767  ;;  %4910 = vst [vmem:[%s10604_s3 + $0x10] sm:$0xff] %v4894_v43  ;;  %v4685_v7 = vadd.f32 %v5764_v26, %v4684_v34  ;;  %v5094_v32 = vmul.f32 -1.442695, %v4553_v5  ;;  %vm4267_vm2 = vweird.f32 %v10046_v50  ;;  %v4271_v48 = vand.u32 2147483647, %v10046_v50  ;;  %v11061_v43 = vld [vmem:[#allocation16_spill] sm:$0xff] }
 0xaa7   :  { %v5770_v19 = vpop.eup %5769  ;;  %v10154_v11 = vadd.f32 1.0, %v5768_v42  ;;  %v4431_v34 = vmul.f32 %v4260_v17, %v11061_v43  ;;  %vm10175_vm3 = vmor %vm4267_vm2, %vm4268_vm1  ;;  %vm4701_vm7 = vweird.f32 %v10114_v4  ;;  %v4280_v52 = vmul.f32 %v10127_v39, %v4279_v49 }
 0xaa8   :  { %v4689_v35 = vsel %vm4688_vm12, %v5764_v26, %v4685_v7  ;;  %v4697_v33 = vmul.f32 %v5770_v19, %v10114_v4  ;;  %5773 = vpow2.f32 %v5094_v32  ;;  %v10157_v37 = vpop.eup %5771  ;;  %v4266_v26 = vadd.f32 %v10090_v18, %v4265_v6  ;;  %v11064_v4 = vld [vmem:[#allocation18_spill] sm:$0xff] }
 0xaa9   :  { %v4694_v53 = vsel %vm4691_vm13, %v4693_v21, %v4689_v35  ;;  %5775 = vrcp.f32 %v10154_v11  ;;  %vm4702_vm0 = vweird.f32 %v5770_v19  ;;  %v4708_v44 = vor.u32 1.1754944e-38, %v4707_v10  ;;  %v11066_v21 = vld [vmem:[#allocation30_spill] sm:$0xff] }
 0xaaa   :  { %v4879_v13 = vmul.f32 %v4694_v53, %v9308_v20  ;;  %v4698_v25 = vsub.f32 1.0, %v4697_v33  ;;  %v4273_v20 = vand.u32 2147483648, %v10046_v50  ;;  %v4270_v50 = vsel %vm10175_vm3, %v10090_v18, %v4266_v26  ;;  %vm4703_vm5 = vmor %vm4701_vm7, %vm4702_vm0  ;;  %v11065_v18 = vld [vmem:[#allocation34_spill] sm:$0xff] }
 0xaab   :  { %vm4706_vm14 = vcmp.eq.f32.partialorder %v4705_v40, 8.507059e+37  ;;  %vm3490_vm4 = vweird.f32 %v9917_v8  ;;  %v5069_v7 = vmul.f32 -1.442695, %v11064_v4  ;;  %v4447_v57 = vadd.f32 %v4431_v34, %v11065_v18 }
 0xaac   :  { %v4895_v30 = vadd.f32 %v4879_v13, %v4446_v56  ;;  %v4699_v29 = vmul.f32 %v5770_v19, %v4698_v25  ;;  %v4274_v32 = vor.u32 1.1754944e-38, %v4273_v20  ;;  %vm4272_vm6 = vcmp.eq.f32.partialorder %v4271_v48, 8.507059e+37 }
 0xaad   :  { %v4555_v60 = vpop.xlane.xlu2 %4554  ;;  %vm3489_vm8 = vweird.f32 %v9840_v22  ;;  %v4281_v46 = vadd.f32 %v10127_v39, %v4280_v52  ;;  %vm4283_vm9 = vweird.f32 %v10127_v39  ;;  %v4722_v53 = vand.u32 2147483648, %v10154_v11  ;;  %v11073_v52 = vld [vmem:[#allocation14_spill] sm:$0xff] }
 0xaae   :  { %v5774_v12 = vpop.eup %5773  ;;  %4911 = vst [vmem:[%s10604_s3 + $0x18] sm:$0xff] %v4895_v30  ;;  %v4700_v27 = vadd.f32 %v5770_v19, %v4699_v29  ;;  %v5095_v15 = vmul.f32 -1.442695, %v4555_v60  ;;  %v4720_v25 = vand.u32 2147483647, %v10154_v11  ;;  %vm4282_vm11 = vweird.f32 %v10083_v9  ;;  %v11067_v30 = vld [vmem:[#allocation45_spill] sm:$0xff]  ;;  %vm10240_vm3 = vmor %vm3489_vm8, %vm3490_vm4 }
 0xaaf   :  { %v5776_v24 = vpop.eup %5775  ;;  %v10188_v5 = vadd.f32 1.0, %v5774_v12  ;;  %v4286_v17 = vand.u32 2147483647, %v10083_v9  ;;  %v4288_v26 = vand.u32 2147483648, %v10083_v9  ;;  %vm10205_vm12 = vmor %vm4282_vm11, %vm4283_vm9  ;;  %vm4716_vm13 = vweird.f32 %v10154_v11 }
 0xab0   :  { %v4704_v42 = vsel %vm4703_vm5, %v5770_v19, %v4700_v27  ;;  %v4712_v38 = vmul.f32 %v5776_v24, %v10154_v11  ;;  %5777 = vpow2.f32 %v5095_v15  ;;  %v4275_v19 = vsel %vm4272_vm6, %v4274_v32, %v4270_v50  ;;  %v11075_v32 = vld [vmem:[#allocation4_spill] sm:$0xff] }
 0xab1   :  { %v4709_v6 = vsel %vm4706_vm14, %v4708_v44, %v4704_v42  ;;  %5779 = vrcp.f32 %v10188_v5  ;;  %vm4717_vm10 = vweird.f32 %v5776_v24  ;;  %v4432_v29 = vmul.f32 %v4275_v19, %v11067_v30 }
 0xab2   :  { %v4880_v35 = vmul.f32 %v4709_v6, %v11066_v21  ;;  %v4713_v33 = vsub.f32 1.0, %v4712_v38  ;;  %5781 = vpow2.f32 %v5069_v7  ;;  %v4285_v9 = vsel %vm10205_vm12, %v10127_v39, %v4281_v46  ;;  %vm4718_vm15 = vmor %vm4716_vm13, %vm4717_vm10 }
 0xab3   :  { %5783 = vrcp.f32 %v10167_v62  ;;  %v4723_v12 = vor.u32 1.1754944e-38, %v4722_v53  ;;  %vm4721_vm1 = vcmp.eq.f32.partialorder %v4720_v25, 8.507059e+37  ;;  %v3500_v11 = vmul.f32 %v10157_v37, %v9975_v51 }
 0xab4   :  { %v4896_v56 = vadd.f32 %v4880_v35, %v4447_v57  ;;  %v4714_v13 = vmul.f32 %v5776_v24, %v4713_v33  ;;  %v4289_v27 = vor.u32 1.1754944e-38, %v4288_v26  ;;  %v11070_v50 = vand.u32 2147483647, %v9840_v22 }
 0xab5   :  { %v4557_v49 = vpop.xlane.xlu0 %4556  ;;  %v4448_v44 = vadd.f32 %v4432_v29, %v11073_v52  ;;  %vm4287_vm2 = vcmp.eq.f32.partialorder %v4286_v17, 8.507059e+37  ;;  %v11074_v4 = vand.u32 2147483648, %v9840_v22  ;;  %v5070_v6 = vmul.f32 -1.442695, %v11075_v32  ;;  %v11078_v17 = vld [vmem:[#allocation38_spill] sm:$0xff] }
 0xab6   :  { %v5778_v10 = vpop.eup %5777  ;;  %4912 = vst [vmem:[%s10604_s3 + $0x20] sm:$0xff] %v4896_v56  ;;  %v4715_v48 = vadd.f32 %v5776_v24, %v4714_v13  ;;  %v5096_v20 = vmul.f32 -1.442695, %v4557_v49  ;;  %vm10226_vm0 = vcmp.eq.f32.partialorder %v11070_v50, 8.507059e+37  ;;  %v4290_v18 = vsel %vm4287_vm2, %v4289_v27, %v4285_v9 }
 0xab7   :  { %v5780_v60 = vpop.eup %5779  ;;  %v10218_v43 = vadd.f32 1.0, %v5778_v10  ;;  %v3496_v7 = vor.u32 1.1754944e-38, %v11074_v4  ;;  %v4737_v57 = vand.u32 2147483648, %v10188_v5  ;;  %v4735_v33 = vand.u32 2147483647, %v10188_v5 }
 0xab8   :  { %v4719_v34 = vsel %vm4718_vm15, %v5776_v24, %v4715_v48  ;;  %v4727_v28 = vmul.f32 %v5780_v60, %v10188_v5  ;;  %5785 = vpow2.f32 %v5096_v20  ;;  %v5782_v38 = vpop.eup %5781  ;;  %vm4732_vm7 = vweird.f32 %v5780_v60 }
 0xab9   :  { %v4724_v15 = vsel %vm4721_vm1, %v4723_v12, %v4719_v34  ;;  %5787 = vrcp.f32 %v10218_v43  ;;  %v10245_v19 = vpop.eup %5783  ;;  %v3492_v46 = vsel %vm10240_vm3, %v9917_v8, %v10132_v58  ;;  %v3501_v53 = vsub.f32 1.0, %v3500_v11  ;;  %v11079_v12 = vld [vmem:[#allocation3_spill] sm:$0xff] }
 0xaba   :  { %v4881_v24 = vmul.f32 %v4724_v15, %v9377_v2  ;;  %v4728_v42 = vsub.f32 1.0, %v4727_v28  ;;  %v3508_v56 = vand.u32 2147483647, %v9975_v51  ;;  %v3510_v22 = vand.u32 2147483648, %v9975_v51 }
 0xabb   :  { %v4433_v26 = vmul.f32 %v4290_v18, %v11078_v17  ;;  %vm4731_vm5 = vweird.f32 %v10188_v5  ;;  %v10258_v29 = vadd.f32 1.0, %v5782_v38  ;;  %5789 = vpow2.f32 %v5070_v6  ;;  %v11082_v18 = vld [vmem:[#allocation50_spill] sm:$0xff] }
 0xabc   :  { %v4897_v35 = vadd.f32 %v4881_v24, %v4448_v44  ;;  %v4729_v2 = vmul.f32 %v5780_v60, %v4728_v42  ;;  %vm4733_vm14 = vmor %vm4731_vm5, %vm4732_vm7  ;;  %v4738_v8 = vor.u32 1.1754944e-38, %v4737_v57  ;;  %vm4736_vm4 = vcmp.eq.f32.partialorder %v4735_v33, 8.507059e+37 }
 0xabd   :  { %v4559_v13 = vpop.xlane.xlu1 %4558  ;;  %v3502_v20 = vmul.f32 %v10157_v37, %v3501_v53  ;;  %v3515_v5 = vmul.f32 %v10245_v19, %v10167_v62  ;;  %v4449_v34 = vadd.f32 %v4433_v26, %v11079_v12  ;;  %v5085_v28 = vmul.f32 -1.442695, %v9830_v31 }
 0xabe   :  { %v5786_v25 = vpop.eup %5785  ;;  %4913 = vst [vmem:[%s10604_s3 + $0x28] sm:$0xff] %v4897_v35  ;;  %v4730_v49 = vadd.f32 %v5780_v60, %v4729_v2  ;;  %v5097_v10 = vmul.f32 -1.442695, %v4559_v13  ;;  %vm3504_vm6 = vweird.f32 %v9975_v51  ;;  %v4752_v15 = vand.u32 2147483648, %v10218_v43 }
 0xabf   :  { %v5788_v30 = vpop.eup %5787  ;;  %v10261_v58 = vadd.f32 1.0, %v5786_v25  ;;  %vm10276_vm8 = vcmp.eq.f32.partialorder %v3508_v56, 8.507059e+37  ;;  %v4750_v31 = vand.u32 2147483647, %v10218_v43  ;;  %v3503_v24 = vadd.f32 %v10157_v37, %v3502_v20 }
 0xac0   :  { %v4734_v40 = vsel %vm4733_vm14, %v5780_v60, %v4730_v49  ;;  %v4742_v48 = vmul.f32 %v5788_v30, %v10218_v43  ;;  %5791 = vpow2.f32 %v5097_v10  ;;  %v3497_v60 = vsel %vm10226_vm0, %v3496_v7, %v3492_v46 }
 0xac1   :  { %v4739_v9 = vsel %vm4736_vm4, %v4738_v8, %v4734_v40  ;;  %5793 = vrcp.f32 %v10261_v58  ;;  %vm4747_vm9 = vweird.f32 %v5788_v30  ;;  %vm3505_vm10 = vweird.f32 %v10157_v37 }
 0xac2   :  { %v4882_v11 = vmul.f32 %v4739_v9, %v9427_v47  ;;  %v4743_v27 = vsub.f32 1.0, %v4742_v48  ;;  %5795 = vrcp.f32 %v10258_v29  ;;  %v5790_v47 = vpop.eup %5789  ;;  %v3511_v39 = vor.u32 1.1754944e-38, %v3510_v22  ;;  %vm10300_vm1 = vmor %vm3504_vm6, %vm3505_vm10  ;;  %v11088_v9 = vld [vmem:[#allocation26_spill] sm:$0xff] }
 0xac3   :  { %v3516_v42 = vsub.f32 1.0, %v3515_v5  ;;  %5797 = vpow2.f32 %v5085_v28  ;;  %vm4746_vm11 = vweird.f32 %v10218_v43  ;;  %v3542_v57 = vmul.f32 %v3497_v60, %v11082_v18 }
 0xac4   :  { %v4898_v52 = vadd.f32 %v4882_v11, %v4449_v34  ;;  %v4744_v44 = vmul.f32 %v5788_v30, %v4743_v27  ;;  %v3523_v21 = vand.u32 2147483647, %v10167_v62  ;;  %vm4748_vm12 = vmor %vm4746_vm11, %vm4747_vm9  ;;  %v4753_v35 = vor.u32 1.1754944e-38, %v4752_v15 }
 0xac5   :  { %v4561_v38 = vpop.xlane.xlu2 %4560  ;;  %vm3519_vm13 = vweird.f32 %v10167_v62  ;;  %vm4751_vm15 = vcmp.eq.f32.partialorder %v4750_v31, 8.507059e+37  ;;  %v3517_v56 = vmul.f32 %v10245_v19, %v3516_v42  ;;  %v3525_v22 = vand.u32 2147483648, %v10167_v62 }
 0xac6   :  { %v5792_v4 = vpop.eup %5791  ;;  %4914 = vst [vmem:[%s10604_s3 + $0x30] sm:$0xff] %v4898_v52  ;;  %v4745_v7 = vadd.f32 %v5788_v30, %v4744_v44  ;;  %v5098_v32 = vmul.f32 -1.442695, %v4561_v38  ;;  %v3507_v25 = vsel %vm10300_vm1, %v10157_v37, %v3503_v24  ;;  %v10310_v17 = vadd.f32 1.0, %v5790_v47  ;;  %v11087_v37 = vld [vmem:[#allocation42_spill] sm:$0xff]  ;;  %v11089_v47 = vld [vmem:[#allocation19_spill] sm:$0xff] }
 0xac7   :  { %v5794_v6 = vpop.eup %5793  ;;  %v10290_v2 = vadd.f32 1.0, %v5792_v4  ;;  %v10314_v49 = vadd.f32 %v3542_v57, %v9960_v63  ;;  %vm3520_vm0 = vweird.f32 %v10245_v19  ;;  %v5086_v10 = vmul.f32 -1.442695, %v9890_v14  ;;  %v11092_v57 = vld [vmem:[#allocation53_spill] sm:$0xff] }
 0xac8   :  { %v4749_v33 = vsel %vm4748_vm12, %v5788_v30, %v4745_v7  ;;  %v4757_v46 = vmul.f32 %v5794_v6, %v10261_v58  ;;  %5799 = vpow2.f32 %v5098_v32  ;;  %v10294_v53 = vpop.eup %5795  ;;  %v4767_v30 = vand.u32 2147483648, %v10261_v58  ;;  %vm10347_vm4 = vmor %vm3519_vm13, %vm3520_vm0 }
 0xac9   :  { %v4754_v13 = vsel %vm4751_vm15, %v4753_v35, %v4749_v33  ;;  %5801 = vrcp.f32 %v10290_v2  ;;  %v5798_v8 = vpop.eup %5797  ;;  %vm10319_vm2 = vcmp.eq.f32.partialorder %v3523_v21, 8.507059e+37  ;;  %vm4762_vm3 = vweird.f32 %v5794_v6 }
 0xaca   :  { %v4883_v26 = vmul.f32 %v4754_v13, %v9493_v3  ;;  %v4758_v51 = vsub.f32 1.0, %v4757_v46  ;;  %v4765_v3 = vand.u32 2147483647, %v10261_v58  ;;  %v3512_v63 = vsel %vm10276_vm8, %v3511_v39, %v3507_v25 }
 0xacb   :  { %v3518_v5 = vadd.f32 %v10245_v19, %v3517_v56  ;;  %v3934_v14 = vmul.f32 %v10294_v53, %v10258_v29  ;;  %v5071_v12 = vmul.f32 -1.442695, %v11088_v9  ;;  %5803 = vrcp.f32 %v10310_v17 }
 0xacc   :  { %v4899_v48 = vadd.f32 %v4883_v26, %v11087_v37  ;;  %v4759_v20 = vmul.f32 %v5794_v6, %v4758_v51  ;;  %vm4761_vm7 = vweird.f32 %v10261_v58  ;;  %v10336_v15 = vadd.f32 1.0, %v5798_v8 }
 0xacd   :  { %v4563_v34 = vpop.xlane.xlu0 %4562  ;;  %5805 = vpow2.f32 %v5086_v10  ;;  %vm4763_vm5 = vmor %vm4761_vm7, %vm4762_vm3  ;;  %v4768_v50 = vor.u32 1.1754944e-38, %v4767_v30  ;;  %vm4766_vm14 = vcmp.eq.f32.partialorder %v4765_v3, 8.507059e+37  ;;  %v3543_v24 = vmul.f32 %v3512_v63, %v11089_v47 }
 0xace   :  { %v5800_v28 = vpop.eup %5799  ;;  %4915 = vst [vmem:[%s10604_s3 + $0x38] sm:$0xff] %v4899_v48  ;;  %v4760_v11 = vadd.f32 %v5794_v6, %v4759_v20  ;;  %v5099_v27 = vmul.f32 -1.442695, %v4563_v34  ;;  %v3526_v39 = vor.u32 1.1754944e-38, %v3525_v22  ;;  %v3522_v38 = vsel %vm10347_vm4, %v10245_v19, %v3518_v5 }
 0xacf   :  { %v5802_v60 = vpop.eup %5801  ;;  %v10339_v52 = vadd.f32 1.0, %v5800_v28  ;;  %v3935_v32 = vsub.f32 1.0, %v3934_v14  ;;  %v5087_v62 = vmul.f32 -1.442695, %v9938_v45  ;;  %v4780_v33 = vand.u32 2147483647, %v10290_v2 }
 0xad0   :  { %v4764_v44 = vsel %vm4763_vm5, %v5794_v6, %v4760_v11  ;;  %v4772_v31 = vmul.f32 %v5802_v60, %v10290_v2  ;;  %5807 = vpow2.f32 %v5099_v27  ;;  %v4782_v6 = vand.u32 2147483648, %v10290_v2  ;;  %v11095_v28 = vld [vmem:[#allocation8_spill] sm:$0xff] }
 0xad1   :  { %v4769_v42 = vsel %vm4766_vm14, %v4768_v50, %v4764_v44  ;;  %5809 = vrcp.f32 %v10339_v52  ;;  %v10359_v18 = vpop.eup %5803  ;;  %vm4777_vm6 = vweird.f32 %v5802_v60  ;;  %v10364_v46 = vadd.f32 %v3543_v24, %v9962_v1 }
 0xad2   :  { %5811 = vpow2.f32 %v5071_v12  ;;  %v4884_v4 = vmul.f32 %v4769_v42, %v9538_v16  ;;  %v4773_v7 = vsub.f32 1.0, %v4772_v31  ;;  %v10368_v16 = vsel %vm10319_vm2, %v3526_v39, %v3522_v38 }
 0xad3   :  { %5813 = vrcp.f32 %v10336_v15  ;;  %v5806_v19 = vpop.eup %5805  ;;  %vm3938_vm8 = vweird.f32 %v10258_v29  ;;  %v3942_v45 = vand.u32 2147483647, %v10258_v29  ;;  %v3944_v22 = vand.u32 2147483648, %v10258_v29 }
 0xad4   :  { %v4900_v21 = vadd.f32 %v4884_v4, %v11092_v57  ;;  %v4774_v35 = vmul.f32 %v5802_v60, %v4773_v7  ;;  %vm4776_vm9 = vweird.f32 %v10290_v2  ;;  %v3936_v26 = vmul.f32 %v10294_v53, %v3935_v32 }
 0xad5   :  { %v4565_v43 = vpop.xlane.xlu1 %4564  ;;  %5815 = vpow2.f32 %v5087_v62  ;;  %vm4778_vm10 = vmor %vm4776_vm9, %vm4777_vm6  ;;  %v4783_v51 = vor.u32 1.1754944e-38, %v4782_v6  ;;  %vm4781_vm11 = vcmp.eq.f32.partialorder %v4780_v33, 8.507059e+37  ;;  %vm10384_vm12 = vcmp.eq.f32.partialorder %v3942_v45, 8.507059e+37  ;;  %v11098_v33 = vld [vmem:[#allocation31_spill] sm:$0xff] }
 0xad6   :  { %v5808_v56 = vpop.eup %5807  ;;  %4916 = vst [vmem:[%s10604_s3 + $0x40] sm:$0xff] %v4900_v21  ;;  %v4775_v13 = vadd.f32 %v5802_v60, %v4774_v35  ;;  %v5100_v1 = vmul.f32 -1.442695, %v4565_v43  ;;  %v3949_v48 = vmul.f32 %v10359_v18, %v10310_v17  ;;  %v3945_v3 = vor.u32 1.1754944e-38, %v3944_v22 }
 0xad7   :  { %v5810_v25 = vpop.eup %5809  ;;  %v10379_v10 = vadd.f32 1.0, %v5808_v56  ;;  %v10391_v63 = vadd.f32 1.0, %v5806_v19  ;;  %v3937_v9 = vadd.f32 %v10294_v53, %v3936_v26  ;;  %vm3939_vm13 = vweird.f32 %v10294_v53 }
 0xad8   :  { %v5812_v30 = vpop.eup %5811  ;;  %v4779_v8 = vsel %vm4778_vm10, %v5802_v60, %v4775_v13  ;;  %v4787_v40 = vmul.f32 %v5810_v25, %v10339_v52  ;;  %5817 = vpow2.f32 %v5100_v1  ;;  %v4797_v34 = vand.u32 2147483648, %v10339_v52  ;;  %vm10407_vm1 = vmor %vm3938_vm8, %vm3939_vm13  ;;  %v11101_v1 = vld [vmem:[#allocation23_spill] sm:$0xff] }
 0xad9   :  { %v10382_v37 = vpop.eup %5813  ;;  %v4784_v20 = vsel %vm4781_vm11, %v4783_v51, %v4779_v8  ;;  %5819 = vrcp.f32 %v10379_v10  ;;  %v10396_v12 = vadd.f32 1.0, %v5812_v30  ;;  %vm4792_vm15 = vweird.f32 %v5810_v25  ;;  %v11102_v8 = vld [vmem:[#allocation21_spill] sm:$0xff] }
 0xada   :  { %v4885_v5 = vmul.f32 %v4784_v20, %v9590_v61  ;;  %v4788_v14 = vsub.f32 1.0, %v4787_v40  ;;  %v4795_v60 = vand.u32 2147483647, %v10339_v52  ;;  %v3950_v44 = vsub.f32 1.0, %v3949_v48 }
 0xadb   :  { %v5816_v50 = vpop.eup %5815  ;;  %v3957_v31 = vand.u32 2147483647, %v10310_v17  ;;  %v3959_v61 = vand.u32 2147483648, %v10310_v17  ;;  %v4383_v47 = vmul.f32 %v10382_v37, %v10336_v15  ;;  %5821 = vrcp.f32 %v10391_v63 }
 0xadc   :  { %v4901_v11 = vadd.f32 %v4885_v5, %v11095_v28  ;;  %v4789_v27 = vmul.f32 %v5810_v25, %v4788_v14  ;;  %vm4791_vm0 = vweird.f32 %v10339_v52  ;;  %v3941_v7 = vsel %vm10407_vm1, %v10294_v53, %v3937_v9 }
 0xadd   :  { %v4567_v24 = vpop.xlane.xlu2 %4566  ;;  %5823 = vrcp.f32 %v10396_v12  ;;  %vm4793_vm2 = vmor %vm4791_vm0, %vm4792_vm15  ;;  %v4798_v29 = vor.u32 1.1754944e-38, %v4797_v34  ;;  %vm4796_vm3 = vcmp.eq.f32.partialorder %v4795_v60, 8.507059e+37  ;;  %v3951_v52 = vmul.f32 %v10359_v18, %v3950_v44 }
 0xade   :  { %v5818_v58 = vpop.eup %5817  ;;  %4917 = vst [vmem:[%s10604_s3 + $0x48] sm:$0xff] %v4901_v11  ;;  %v4790_v42 = vadd.f32 %v5810_v25, %v4789_v27  ;;  %v5101_v38 = vmul.f32 -1.442695, %v4567_v24  ;;  %v4384_v57 = vsub.f32 1.0, %v4383_v47  ;;  %v3946_v53 = vsel %vm10384_vm12, %v3945_v3, %v3941_v7 }
 0xadf   :  { %v5820_v4 = vpop.eup %5819  ;;  %v10421_v32 = vadd.f32 1.0, %v5818_v58  ;;  %v10428_v35 = vadd.f32 1.0, %v5816_v50  ;;  %vm3953_vm7 = vweird.f32 %v10310_v17  ;;  %vm3954_vm5 = vweird.f32 %v10359_v18 }
 0xae0   :  { %v4794_v62 = vsel %vm4793_vm2, %v5810_v25, %v4790_v42  ;;  %v4802_v6 = vmul.f32 %v5820_v4, %v10379_v10  ;;  %5825 = vpow2.f32 %v5101_v38  ;;  %v3960_v43 = vor.u32 1.1754944e-38, %v3959_v61  ;;  %vm10463_vm9 = vmor %vm3953_vm7, %vm3954_vm5 }
 0xae1   :  { %v4799_v21 = vsel %vm4796_vm3, %v4798_v29, %v4794_v62  ;;  %5827 = vrcp.f32 %v10421_v32  ;;  %v4812_v56 = vand.u32 2147483648, %v10379_v10  ;;  %v10434_v22 = vpop.eup %5821  ;;  %vm10436_vm14 = vcmp.eq.f32.partialorder %v3957_v31, 8.507059e+37 }
 0xae2   :  { %v4886_v19 = vmul.f32 %v4799_v21, %v11098_v33  ;;  %v4803_v45 = vsub.f32 1.0, %v4802_v6  ;;  %vm4807_vm4 = vweird.f32 %v5820_v4  ;;  %v4810_v51 = vand.u32 2147483647, %v10379_v10 }
 0xae3   :  { %v10442_v30 = vpop.eup %5823  ;;  %v3991_v40 = vmul.f32 %v3946_v53, %v11102_v8  ;;  %v3952_v2 = vadd.f32 %v10359_v18, %v3951_v52  ;;  %v3972_v48 = vand.u32 2147483647, %v10396_v12  ;;  %v4385_v20 = vmul.f32 %v10382_v37, %v4384_v57 }
 0xae4   :  { %v4902_v25 = vadd.f32 %v4886_v19, %v11101_v1  ;;  %v4804_v26 = vmul.f32 %v5820_v4, %v4803_v45  ;;  %5829 = vrcp.f32 %v10428_v35  ;;  %vm4806_vm6 = vweird.f32 %v10379_v10 }
 0xae5   :  { %v4569_v3 = vpop.xlane.xlu0 %4568  ;;  %v3974_v28 = vand.u32 2147483648, %v10396_v12  ;;  %v4398_v11 = vmul.f32 %v10434_v22, %v10391_v63  ;;  %vm4808_vm8 = vmor %vm4806_vm6, %vm4807_vm4  ;;  %v4813_v27 = vor.u32 1.1754944e-38, %v4812_v56  ;;  %vm4811_vm10 = vcmp.eq.f32.partialorder %v4810_v51, 8.507059e+37 }
 0xae6   :  { %v5826_v5 = vpop.eup %5825  ;;  %4918 = vst [vmem:[%s10604_s3 + $0x50] sm:$0xff] %v4902_v25  ;;  %v4805_v14 = vadd.f32 %v5820_v4, %v4804_v26  ;;  %v5102_v9 = vmul.f32 -1.442695, %v4569_v3  ;;  %v3956_v31 = vsel %vm10463_vm9, %v10359_v18, %v3952_v2  ;;  %v3964_v61 = vmul.f32 %v10442_v30, %v10396_v12 }
 0xae7   :  { %v5828_v34 = vpop.eup %5827  ;;  %v10457_v60 = vadd.f32 1.0, %v5826_v5  ;;  %v4386_v17 = vadd.f32 %v10382_v37, %v4385_v20  ;;  %vm4388_vm11 = vweird.f32 %v10382_v37  ;;  %v10478_v39 = vadd.f32 %v3991_v40, %v10314_v49 }
 0xae8   :  { %v4809_v10 = vsel %vm4808_vm8, %v5820_v4, %v4805_v14  ;;  %v4817_v44 = vmul.f32 %v5828_v34, %v10421_v32  ;;  %5831 = vpow2.f32 %v5102_v9  ;;  %vm4387_vm12 = vweird.f32 %v10336_v15  ;;  %v11105_v4 = vld [vmem:[#allocation35_spill] sm:$0xff]  ;;  %v11108_v14 = vld [vmem:[#allocation58_spill] sm:$0xff] }
 0xae9   :  { %v4814_v47 = vsel %vm4811_vm10, %v4813_v27, %v4809_v10  ;;  %5833 = vrcp.f32 %v10457_v60  ;;  %v4399_v42 = vsub.f32 1.0, %v4398_v11  ;;  %v4827_v18 = vand.u32 2147483648, %v10421_v32  ;;  %vm10488_vm15 = vmor %vm4387_vm12, %vm4388_vm11  ;;  %v11109_v10 = vld [vmem:[#allocation44_spill] sm:$0xff] }
 0xaea   :  { %v4887_v24 = vmul.f32 %v4814_v47, %v9699_v59  ;;  %v4818_v58 = vsub.f32 1.0, %v4817_v44  ;;  %v10482_v38 = vpop.eup %5829  ;;  %vm4822_vm13 = vweird.f32 %v5828_v34  ;;  %v4825_v62 = vand.u32 2147483647, %v10421_v32 }
 0xaeb   :  { %v3961_v59 = vsel %vm10436_vm14, %v3960_v43, %v3956_v31  ;;  %v3965_v6 = vsub.f32 1.0, %v3964_v61  ;;  %v4391_v52 = vand.u32 2147483647, %v10336_v15  ;;  %v4393_v57 = vand.u32 2147483648, %v10336_v15 }
 0xaec   :  { %v4903_v7 = vadd.f32 %v4887_v24, %v11105_v4  ;;  %v4819_v29 = vmul.f32 %v5828_v34, %v4818_v58  ;;  %v4390_v33 = vsel %vm10488_vm15, %v10382_v37, %v4386_v17  ;;  %vm4821_vm1 = vweird.f32 %v10421_v32  ;;  %v11112_v24 = vld [vmem:[#allocation37_spill] sm:$0xff] }
 0xaed   :  { %v4571_v21 = vpop.xlane.xlu1 %4570  ;;  %vm3968_vm0 = vweird.f32 %v10396_v12  ;;  %v4400_v56 = vmul.f32 %v10434_v22, %v4399_v42  ;;  %v4413_v15 = vmul.f32 %v10482_v38, %v10428_v35  ;;  %vm4823_vm2 = vmor %vm4821_vm1, %vm4822_vm13  ;;  %v4828_v13 = vor.u32 1.1754944e-38, %v4827_v18 }
 0xaee   :  { %v5832_v53 = vpop.eup %5831  ;;  %4919 = vst [vmem:[%s10604_s3 + $0x58] sm:$0xff] %v4903_v7  ;;  %v4820_v19 = vadd.f32 %v5828_v34, %v4819_v29  ;;  %v5103_v45 = vmul.f32 -1.442695, %v4571_v21  ;;  %vm4826_vm3 = vcmp.eq.f32.partialorder %v4825_v62, 8.507059e+37  ;;  %v3966_v32 = vmul.f32 %v10442_v30, %v3965_v6 }
 0xaef   :  { %v5834_v43 = vpop.eup %5833  ;;  %v10506_v37 = vadd.f32 1.0, %v5832_v53  ;;  %v4394_v26 = vor.u32 1.1754944e-38, %v4393_v57  ;;  %vm4392_vm7 = vcmp.eq.f32.partialorder %v4391_v52, 8.507059e+37  ;;  %vm4403_vm5 = vweird.f32 %v10434_v22 }
 0xaf0   :  { %v4824_v1 = vsel %vm4823_vm2, %v5828_v34, %v4820_v19  ;;  %v4832_v25 = vmul.f32 %v5834_v43, %v10457_v60  ;;  %5835 = vpow2.f32 %v5103_v45  ;;  %v4401_v20 = vadd.f32 %v10434_v22, %v4400_v56  ;;  %v11115_v45 = vld [vmem:[#allocation46_spill] sm:$0xff] }
 0xaf1   :  { %v4829_v51 = vsel %vm4826_vm3, %v4828_v13, %v4824_v1  ;;  %5837 = vrcp.f32 %v10506_v37  ;;  %v4395_v2 = vsel %vm4392_vm7, %v4394_v26, %v4390_v33  ;;  %v4414_v3 = vsub.f32 1.0, %v4413_v15 }
 0xaf2   :  { %v4888_v8 = vmul.f32 %v4829_v51, %v9757_v23  ;;  %v4833_v40 = vsub.f32 1.0, %v4832_v25  ;;  %v4842_v5 = vand.u32 2147483648, %v10457_v60  ;;  %vm4837_vm14 = vweird.f32 %v5834_v43 }
 0xaf3   :  { %v4840_v11 = vand.u32 2147483647, %v10457_v60  ;;  %v3967_v27 = vadd.f32 %v10442_v30, %v3966_v32  ;;  %vm3969_vm4 = vweird.f32 %v10442_v30  ;;  %vm4402_vm6 = vweird.f32 %v10391_v63 }
 0xaf4   :  { %v4904_v9 = vadd.f32 %v4888_v8, %v11108_v14  ;;  %v4834_v34 = vmul.f32 %v5834_v43, %v4833_v40  ;;  %v4408_v23 = vand.u32 2147483648, %v10391_v63  ;;  %v4440_v44 = vmul.f32 %v4395_v2, %v11109_v10  ;;  %vm10524_vm8 = vmor %vm4402_vm6, %vm4403_vm5  ;;  %v11119_v8 = vld [vmem:[#allocation6_spill] sm:$0xff]  ;;  %v11120_v14 = vld [vmem:[#allocation47_spill] sm:$0xff] }
 0xaf5   :  { %v4406_v61 = vand.u32 2147483647, %v10391_v63  ;;  %vm4836_vm9 = vweird.f32 %v10457_v60  ;;  %v3992_v58 = vmul.f32 %v3961_v59, %v11112_v24  ;;  %v4415_v42 = vmul.f32 %v10482_v38, %v4414_v3  ;;  %vm10542_vm11 = vmor %vm3968_vm0, %vm3969_vm4 }
 0xaf6   :  { %v5836_v50 = vpop.eup %5835  ;;  %4920 = vst [vmem:[%s10604_s3 + $0x60] sm:$0xff] %v4904_v9  ;;  %v4835_v47 = vadd.f32 %v5834_v43, %v4834_v34  ;;  %vm4838_vm10 = vmor %vm4836_vm9, %vm4837_vm14  ;;  %v4843_v18 = vor.u32 1.1754944e-38, %v4842_v5  ;;  %v4405_v60 = vsel %vm10524_vm8, %v10434_v22, %v4401_v20  ;;  %vm4841_vm12 = vcmp.eq.f32.partialorder %v4840_v11, 8.507059e+37 }
 0xaf7   :  { %v5838_v17 = vpop.eup %5837  ;;  %v10536_v4 = vadd.f32 1.0, %v5836_v50  ;;  %v3971_v62 = vsel %vm10542_vm11, %v10442_v30, %v3967_v27  ;;  %v4409_v59 = vor.u32 1.1754944e-38, %v4408_v23  ;;  %v4456_v49 = vadd.f32 %v4440_v44, %v10478_v39 }
 0xaf8   :  { %v4839_v7 = vsel %vm4838_vm10, %v5834_v43, %v4835_v47  ;;  %v4847_v29 = vmul.f32 %v5838_v17, %v10506_v37  ;;  %vm4407_vm13 = vcmp.eq.f32.partialorder %v4406_v61, 8.507059e+37  ;;  %v4416_v22 = vadd.f32 %v10482_v38, %v4415_v42  ;;  %v11122_v47 = vld [vmem:[#allocation33_spill] sm:$0xff] }
 0xaf9   :  { %v4844_v6 = vsel %vm4841_vm12, %v4843_v18, %v4839_v7  ;;  %5839 = vrcp.f32 %v10536_v4  ;;  %v4410_v21 = vsel %vm4407_vm13, %v4409_v59, %v4405_v60  ;;  %vm4418_vm15 = vweird.f32 %v10482_v38 }
 0xafa   :  { %v4889_v52 = vmul.f32 %v4844_v6, %v9797_v41  ;;  %v4848_v57 = vsub.f32 1.0, %v4847_v29  ;;  %v4857_v53 = vand.u32 2147483648, %v10506_v37  ;;  %vm4852_vm1 = vweird.f32 %v5838_v17 }
 0xafb   :  { %v4855_v30 = vand.u32 2147483647, %v10506_v37  ;;  %vm3973_vm0 = vcmp.eq.f32.partialorder %v3972_v48, 8.507059e+37  ;;  %v3975_v39 = vor.u32 1.1754944e-38, %v3974_v28  ;;  %vm4417_vm2 = vweird.f32 %v10428_v35  ;;  %v11118_v28 = vld [vmem:[#allocation17_spill] sm:$0xff] }
 0xafc   :  { %v4905_v33 = vadd.f32 %v4889_v52, %v4456_v49  ;;  %v4849_v19 = vmul.f32 %v5838_v17, %v4848_v57  ;;  %v4423_v41 = vand.u32 2147483648, %v10428_v35  ;;  %v4441_v43 = vmul.f32 %v4410_v21, %v11115_v45  ;;  %vm10567_vm3 = vmor %vm4417_vm2, %vm4418_vm15 }
 0xafd   :  { %v4421_v15 = vand.u32 2147483647, %v10428_v35  ;;  %vm4851_vm7 = vweird.f32 %v10506_v37  ;;  %v3095_v13 = vmul.f32 %v9964_v55, %v11118_v28  ;;  %v4008_v1 = vadd.f32 %v3992_v58, %v10364_v46 }
 0xafe   :  { %4921 = vst [vmem:[%s10604_s3 + $0x68] sm:$0xff] %v4905_v33  ;;  %v4850_v48 = vadd.f32 %v5838_v17, %v4849_v19  ;;  %v3976_v25 = vsel %vm3973_vm0, %v3975_v39, %v3971_v62  ;;  %vm4853_vm5 = vmor %vm4851_vm7, %vm4852_vm1  ;;  %v4858_v32 = vor.u32 1.1754944e-38, %v4857_v53  ;;  %v4420_v35 = vsel %vm10567_vm3, %v10482_v38, %v4416_v22 }
 0xaff   :  { %v5840_v12 = vpop.eup %5839  ;;  %vm4856_vm14 = vcmp.eq.f32.partialorder %v4855_v30, 8.507059e+37  ;;  %v2662_v37 = vadd.f32 %v9956_v54, %v9819_v0  ;;  %v3544_v55 = vmul.f32 %v10368_v16, %v11119_v8  ;;  %v4424_v40 = vor.u32 1.1754944e-38, %v4423_v41  ;;  %v11121_v16 = vld [vmem:[#allocation49_spill] sm:$0xff] }
 0xb00   :  { %v4854_v26 = vsel %vm4853_vm5, %v5838_v17, %v4850_v48  ;;  %v4862_v51 = vmul.f32 %v5840_v12, %v10536_v4  ;;  %v4457_v2 = vadd.f32 %v4441_v43, %v4008_v1  ;;  %vm4422_vm4 = vcmp.eq.f32.partialorder %v4421_v15, 8.507059e+37 }
 0xb01   :  { %v4859_v46 = vsel %vm4856_vm14, %v4858_v32, %v4854_v26  ;;  %v3111_v5 = vadd.f32 %v3095_v13, %v2662_v37  ;;  %v3993_v38 = vmul.f32 %v3976_v25, %v11120_v14  ;;  %v4425_v9 = vsel %vm4422_vm4, %v4424_v40, %v4420_v35 }
 0xb02   :  { %v4890_v20 = vmul.f32 %v4859_v46, %v9842_v36  ;;  %v4863_v3 = vsub.f32 1.0, %v4862_v51  ;;  %v4872_v34 = vand.u32 2147483648, %v10536_v4  ;;  %vm4867_vm6 = vweird.f32 %v5840_v12 }
 0xb03   :  { %v4870_v0 = vand.u32 2147483647, %v10536_v4  ;;  %v3560_v54 = vadd.f32 %v3544_v55, %v3111_v5  ;;  %v4442_v23 = vmul.f32 %v4425_v9, %v11121_v16  ;;  %vm4866_vm8 = vweird.f32 %v10536_v4 }
 0xb04   :  { %v4906_v11 = vadd.f32 %v4890_v20, %v4457_v2  ;;  %v4864_v27 = vmul.f32 %v5840_v12, %v4863_v3  ;;  %vm4868_vm9 = vmor %vm4866_vm8, %vm4867_vm6  ;;  %v4873_v50 = vor.u32 1.1754944e-38, %v4872_v34 }
 0xb05   :  { %v4009_v10 = vadd.f32 %v3993_v38, %v3560_v54  ;;  %vm4871_vm10 = vcmp.eq.f32.partialorder %v4870_v0, 8.507059e+37 }
 0xb06   :  { %4922 = vst [vmem:[%s10604_s3 + $0x70] sm:$0xff] %v4906_v11  ;;  %v4865_v36 = vadd.f32 %v5840_v12, %v4864_v27 }
 0xb07   :  { %v4458_v61 = vadd.f32 %v4442_v23, %v4009_v10 }
 0xb08   :  { %v4869_v44 = vsel %vm4868_vm9, %v5840_v12, %v4865_v36 }
 0xb09   :  { %v4874_v31 = vsel %vm4871_vm10, %v4873_v50, %v4869_v44 }
 0xb0a   :  { %v4891_v17 = vmul.f32 %v4874_v31, %v11122_v47 }
 0xb0c   :  { %v4907_v24 = vadd.f32 %v4891_v17, %v4458_v61 }
 0xb0e   :  { %4923 = vst [vmem:[%s10604_s3 + $0x78] sm:$0xff] %v4907_v24 }

</bundles_post_ra>
